<compile_context>
chip_gen: v7x
topology: tpu7x:2x2x1
jax: 0.10.0
libtpu: 0.0.40
codegen_flags: <defaults>
</compile_context>

<pallas_src>
import jax
import jax.numpy as jnp
from jax.experimental import pallas as pl
from jax.experimental.pallas import tpu as pltpu

# --- model hyperparameters (small, consistent with the module) -------------
LATENT_DIM = 32
CHANNELS = 1
IMG_SIZE = 16
IMG_FLAT = CHANNELS * IMG_SIZE * IMG_SIZE   # 256
BATCH = 128                                 # full batch = one block (exact BN stats)
BN_EPS = 0.8                                # nn.BatchNorm1d(out_feat, 0.8) -> eps=0.8
LRELU_SLOPE = 0.2

# Layer widths (fixed by the module).
D1, D2, D3, D4 = 128, 256, 512, 1024

# Packed per-feature vectors, concatenated along lanes.  Biases b2/b3/b4 are
# omitted: training-mode BatchNorm subtracts the batch mean, so they cancel
# exactly.  Every width is a multiple of 128, so every in-kernel slice lands on
# a vreg lane boundary (no relayout copies).
_VEC_SIZES = dict(
    b1=D1, g2=D2, be2=D2, g3=D3, be3=D3, g4=D4, be4=D4, b5=IMG_FLAT)
_VEC_OFF = {}
_off = 0
for _name, _n in _VEC_SIZES.items():
    _VEC_OFF[_name] = _off
    _off += _n
VEC_TOTAL = _off                            # 3968 = 31 * 128


def _vec(vec_ref, name):
    off = _VEC_OFF[name]
    return vec_ref[:, off:off + _VEC_SIZES[name]]


def _leaky_relu(x, slope=LRELU_SLOPE):
    return jnp.where(x > 0, x, slope * x)


def _bn_lrelu(x, gamma, beta, eps=BN_EPS):
    # Training-mode BatchNorm1d (biased batch stats), two-pass centered
    # variance (matches the reference, avoids E[x^2]-E[x]^2 cancellation),
    # fused with the LeakyReLU.  The Linear bias is dropped upstream since it
    # cancels in (x - mean).
    mean = jnp.mean(x, axis=0, keepdims=True)
    xc = x - mean
    var = jnp.mean(xc * xc, axis=0, keepdims=True)
    scale = gamma * jax.lax.rsqrt(var + eps)
    return _leaky_relu(xc * scale + beta)


def generator_kernel(z_ref, w1_ref, w2_ref, w3_ref, w4_ref, w5_ref, vec_ref,
                     out_ref):
    # block(latent_dim, 128, normalize=False): Linear + LeakyReLU
    h = jnp.dot(z_ref[...].astype(jnp.bfloat16), w1_ref[...],
                preferred_element_type=jnp.float32) + _vec(vec_ref, "b1")
    h = _leaky_relu(h)

    # block(128, 256): Linear (bias cancelled) + BatchNorm1d(eps=0.8) + LeakyReLU
    h = jnp.dot(h.astype(jnp.bfloat16), w2_ref[...],
                preferred_element_type=jnp.float32)
    h = _bn_lrelu(h, _vec(vec_ref, "g2"), _vec(vec_ref, "be2"))

    # block(256, 512)
    h = jnp.dot(h.astype(jnp.bfloat16), w3_ref[...],
                preferred_element_type=jnp.float32)
    h = _bn_lrelu(h, _vec(vec_ref, "g3"), _vec(vec_ref, "be3"))

    # block(512, 1024)
    h = jnp.dot(h.astype(jnp.bfloat16), w4_ref[...],
                preferred_element_type=jnp.float32)
    h = _bn_lrelu(h, _vec(vec_ref, "g4"), _vec(vec_ref, "be4"))

    # Linear(1024, prod(img_shape)) + Tanh  (elementwise math stays f32)
    h = jnp.dot(h.astype(jnp.bfloat16), w5_ref[...],
                preferred_element_type=jnp.float32) + _vec(vec_ref, "b5")
    out_ref[...] = jnp.tanh(h)


@jax.jit
def generator_forward(z, packed):
    w1, w2, w3, w4, w5, vec = packed
    B = z.shape[0]

    vmem = pl.BlockSpec(memory_space=pltpu.MemorySpace.VMEM)
    flat = pl.pallas_call(
        generator_kernel,
        out_shape=jax.ShapeDtypeStruct((B, IMG_FLAT), jnp.float32),
        in_specs=[vmem] * 7,
        out_specs=vmem,
        # ~1.9 MiB bf16 weights + <1 MiB activations; plenty of headroom even
        # on v7x (64 MiB physical VMEM).
        compiler_params=pltpu.CompilerParams(vmem_limit_bytes=32 << 20),
    )(z, w1, w2, w3, w4, w5, vec)

    # img.view(img.shape[0], *img_shape) -> NCHW
    return flat.reshape(B, CHANNELS, IMG_SIZE, IMG_SIZE)


def init_params(key):
    """Deterministic synthetic f32 parameters; Linear weights as (in, out)."""
    dims = [(LATENT_DIM, D1), (D1, D2), (D2, D3), (D3, D4), (D4, IMG_FLAT)]
    keys = jax.random.split(key, len(dims) * 2)
    p = {}
    for i, (din, dout) in enumerate(dims):
        scale = 1.0 / jnp.sqrt(jnp.float32(din))
        p[f"w{i + 1}"] = jax.random.uniform(keys[2 * i], (din, dout),
                                            jnp.float32, -scale, scale)
        p[f"b{i + 1}"] = jax.random.uniform(keys[2 * i + 1], (1, dout),
                                            jnp.float32, -scale, scale)
    # BatchNorm affine params (gamma=1, beta=0 as in nn.BatchNorm1d defaults).
    for suf, n in (("2", D2), ("3", D3), ("4", D4)):
        p[f"g{suf}"] = jnp.ones((1, n), jnp.float32)
        p[f"be{suf}"] = jnp.zeros((1, n), jnp.float32)
    return p


def pack_params(p):
    """Kernel-side layout: bf16 weights + one packed, lane-aligned f32 vector.

    Done once, outside jit, so the HBM weight copies really are half-width.
    b2/b3/b4 are intentionally excluded (cancelled by training-mode BN)."""
    vec = jnp.concatenate([p[name] for name in _VEC_SIZES], axis=1)
    assert vec.shape == (1, VEC_TOTAL)
    return (p["w1"].astype(jnp.bfloat16), p["w2"].astype(jnp.bfloat16),
            p["w3"].astype(jnp.bfloat16), p["w4"].astype(jnp.bfloat16),
            p["w5"].astype(jnp.bfloat16), vec)


def reference_forward(z, p):
    """Pure-JAX f32 reference of the PyTorch module (training-mode BN)."""
    def bn(x, g, b):
        mean = jnp.mean(x, axis=0, keepdims=True)
        var = jnp.mean((x - mean) ** 2, axis=0, keepdims=True)
        return g * (x - mean) / jnp.sqrt(var + BN_EPS) + b

    lrelu = lambda x: jnp.where(x > 0, x, LRELU_SLOPE * x)
    h = lrelu(z @ p["w1"] + p["b1"])
    h = lrelu(bn(h @ p["w2"] + p["b2"], p["g2"], p["be2"]))
    h = lrelu(bn(h @ p["w3"] + p["b3"], p["g3"], p["be3"]))
    h = lrelu(bn(h @ p["w4"] + p["b4"], p["g4"], p["be4"]))
    h = jnp.tanh(h @ p["w5"] + p["b5"])
    return h.reshape(z.shape[0], CHANNELS, IMG_SIZE, IMG_SIZE)


if __name__ == "__main__":
    key = jax.random.PRNGKey(0)
    pkey, zkey = jax.random.split(key)
    params = init_params(pkey)
    packed = pack_params(params)
    z = jax.random.normal(zkey, (BATCH, LATENT_DIM), jnp.float32)

    img = generator_forward(z, packed)
    jax.block_until_ready(img)

    assert img.shape == (BATCH, CHANNELS, IMG_SIZE, IMG_SIZE)
    assert img.dtype == jnp.float32
    assert bool(jnp.isfinite(img).all())

    # bf16 weight streaming: validate against the f32 reference with a
    # loosened tolerance (outputs are tanh-bounded).
    ref = reference_forward(z, params)
    max_err = float(jnp.max(jnp.abs(img - ref)))
    assert max_err < 0.1, f"max abs error vs f32 reference: {max_err}"

    print("KERNEL_OK")
</pallas_src>

<mosaic_0001>
module attributes {stable_mosaic.version = 11 : i64} {
  func.func @generator_kernel(%arg0: memref<128x32xf32, #tpu.memory_space<vmem>>, %arg1: memref<32x128xbf16, #tpu.memory_space<vmem>>, %arg2: memref<128x256xbf16, #tpu.memory_space<vmem>>, %arg3: memref<256x512xbf16, #tpu.memory_space<vmem>>, %arg4: memref<512x1024xbf16, #tpu.memory_space<vmem>>, %arg5: memref<1024x256xbf16, #tpu.memory_space<vmem>>, %arg6: memref<1x3968xf32, #tpu.memory_space<vmem>>, %arg7: memref<128x256xf32, #tpu.memory_space<vmem>>) attributes {dimension_semantics = [], scalar_prefetch = 0 : i64, scratch_operands = 0 : i64, tpu.core_type = #tpu.core_type<tc>} {
    %c0 = arith.constant 0 : index
    %c0_0 = arith.constant 0 : index
    %0 = vector.load %arg0[%c0, %c0_0] : memref<128x32xf32, #tpu.memory_space<vmem>>, vector<128x32xf32>
    %1 = arith.truncf %0 : vector<128x32xf32> to vector<128x32xbf16>
    %c0_1 = arith.constant 0 : index
    %c0_2 = arith.constant 0 : index
    %2 = vector.load %arg1[%c0_1, %c0_2] : memref<32x128xbf16, #tpu.memory_space<vmem>>, vector<32x128xbf16>
    %cst = arith.constant dense<0.000000e+00> : vector<128x128xf32>
    %3 = tpu.matmul %1, %2, %cst {dimension_numbers = #tpu.dot_dimension_numbers<[1], [0], [0], [1], [0, 0, 1, 1], [], []>} : vector<128x32xbf16>, vector<32x128xbf16>, vector<128x128xf32> -> vector<128x128xf32>
    %c0_3 = arith.constant 0 : index
    %c0_4 = arith.constant 0 : index
    %4 = vector.load %arg6[%c0_3, %c0_4] : memref<1x3968xf32, #tpu.memory_space<vmem>>, vector<1x128xf32>
    %5 = vector.broadcast %4 : vector<1x128xf32> to vector<128x128xf32>
    %6 = arith.addf %3, %5 : vector<128x128xf32>
    %cst_5 = arith.constant 0.000000e+00 : f32
    %7 = vector.broadcast %cst_5 : f32 to vector<128x128xf32>
    %8 = arith.cmpf ogt, %6, %7 : vector<128x128xf32>
    %cst_6 = arith.constant 2.000000e-01 : f32
    %9 = vector.broadcast %cst_6 : f32 to vector<128x128xf32>
    %10 = arith.mulf %9, %6 : vector<128x128xf32>
    %11 = arith.select %8, %6, %10 : vector<128x128xi1>, vector<128x128xf32>
    %12 = arith.truncf %11 : vector<128x128xf32> to vector<128x128xbf16>
    %c0_7 = arith.constant 0 : index
    %c0_8 = arith.constant 0 : index
    %13 = vector.load %arg2[%c0_7, %c0_8] : memref<128x256xbf16, #tpu.memory_space<vmem>>, vector<128x256xbf16>
    %cst_9 = arith.constant dense<0.000000e+00> : vector<128x256xf32>
    %14 = tpu.matmul %12, %13, %cst_9 {dimension_numbers = #tpu.dot_dimension_numbers<[1], [0], [0], [1], [0, 0, 1, 1], [], []>} : vector<128x128xbf16>, vector<128x256xbf16>, vector<128x256xf32> -> vector<128x256xf32>
    %c0_10 = arith.constant 0 : index
    %c128 = arith.constant 128 : index
    %15 = vector.load %arg6[%c0_10, %c128] : memref<1x3968xf32, #tpu.memory_space<vmem>>, vector<1x256xf32>
    %c0_11 = arith.constant 0 : index
    %c384 = arith.constant 384 : index
    %16 = vector.load %arg6[%c0_11, %c384] : memref<1x3968xf32, #tpu.memory_space<vmem>>, vector<1x256xf32>
    %cst_12 = arith.constant dense<0.000000e+00> : vector<256xf32>
    %17 = vector.multi_reduction <add>, %14, %cst_12 [0] : vector<128x256xf32> to vector<256xf32>
    %18 = vector.shape_cast %17 : vector<256xf32> to vector<1x256xf32>
    %cst_13 = arith.constant 1.280000e+02 : f32
    %19 = vector.broadcast %cst_13 : f32 to vector<1x256xf32>
    %20 = arith.divf %18, %19 : vector<1x256xf32>
    %21 = vector.broadcast %20 : vector<1x256xf32> to vector<128x256xf32>
    %22 = arith.subf %14, %21 : vector<128x256xf32>
    %23 = arith.mulf %22, %22 : vector<128x256xf32>
    %cst_14 = arith.constant dense<0.000000e+00> : vector<256xf32>
    %24 = vector.multi_reduction <add>, %23, %cst_14 [0] : vector<128x256xf32> to vector<256xf32>
    %25 = vector.shape_cast %24 : vector<256xf32> to vector<1x256xf32>
    %cst_15 = arith.constant 1.280000e+02 : f32
    %26 = vector.broadcast %cst_15 : f32 to vector<1x256xf32>
    %27 = arith.divf %25, %26 : vector<1x256xf32>
    %cst_16 = arith.constant 8.000000e-01 : f32
    %28 = vector.broadcast %cst_16 : f32 to vector<1x256xf32>
    %29 = arith.addf %27, %28 : vector<1x256xf32>
    %30 = math.rsqrt %29 : vector<1x256xf32>
    %31 = arith.mulf %15, %30 : vector<1x256xf32>
    %32 = vector.broadcast %31 : vector<1x256xf32> to vector<128x256xf32>
    %33 = arith.mulf %22, %32 : vector<128x256xf32>
    %34 = vector.broadcast %16 : vector<1x256xf32> to vector<128x256xf32>
    %35 = arith.addf %33, %34 : vector<128x256xf32>
    %cst_17 = arith.constant 0.000000e+00 : f32
    %36 = vector.broadcast %cst_17 : f32 to vector<128x256xf32>
    %37 = arith.cmpf ogt, %35, %36 : vector<128x256xf32>
    %cst_18 = arith.constant 2.000000e-01 : f32
    %38 = vector.broadcast %cst_18 : f32 to vector<128x256xf32>
    %39 = arith.mulf %38, %35 : vector<128x256xf32>
    %40 = arith.select %37, %35, %39 : vector<128x256xi1>, vector<128x256xf32>
    %41 = arith.truncf %40 : vector<128x256xf32> to vector<128x256xbf16>
    %c0_19 = arith.constant 0 : index
    %c0_20 = arith.constant 0 : index
    %42 = vector.load %arg3[%c0_19, %c0_20] : memref<256x512xbf16, #tpu.memory_space<vmem>>, vector<256x512xbf16>
    %cst_21 = arith.constant dense<0.000000e+00> : vector<128x512xf32>
    %43 = tpu.matmul %41, %42, %cst_21 {dimension_numbers = #tpu.dot_dimension_numbers<[1], [0], [0], [1], [0, 0, 1, 1], [], []>} : vector<128x256xbf16>, vector<256x512xbf16>, vector<128x512xf32> -> vector<128x512xf32>
    %c0_22 = arith.constant 0 : index
    %c640 = arith.constant 640 : index
    %44 = vector.load %arg6[%c0_22, %c640] : memref<1x3968xf32, #tpu.memory_space<vmem>>, vector<1x512xf32>
    %c0_23 = arith.constant 0 : index
    %c1152 = arith.constant 1152 : index
    %45 = vector.load %arg6[%c0_23, %c1152] : memref<1x3968xf32, #tpu.memory_space<vmem>>, vector<1x512xf32>
    %cst_24 = arith.constant dense<0.000000e+00> : vector<512xf32>
    %46 = vector.multi_reduction <add>, %43, %cst_24 [0] : vector<128x512xf32> to vector<512xf32>
    %47 = vector.shape_cast %46 : vector<512xf32> to vector<1x512xf32>
    %cst_25 = arith.constant 1.280000e+02 : f32
    %48 = vector.broadcast %cst_25 : f32 to vector<1x512xf32>
    %49 = arith.divf %47, %48 : vector<1x512xf32>
    %50 = vector.broadcast %49 : vector<1x512xf32> to vector<128x512xf32>
    %51 = arith.subf %43, %50 : vector<128x512xf32>
    %52 = arith.mulf %51, %51 : vector<128x512xf32>
    %cst_26 = arith.constant dense<0.000000e+00> : vector<512xf32>
    %53 = vector.multi_reduction <add>, %52, %cst_26 [0] : vector<128x512xf32> to vector<512xf32>
    %54 = vector.shape_cast %53 : vector<512xf32> to vector<1x512xf32>
    %cst_27 = arith.constant 1.280000e+02 : f32
    %55 = vector.broadcast %cst_27 : f32 to vector<1x512xf32>
    %56 = arith.divf %54, %55 : vector<1x512xf32>
    %cst_28 = arith.constant 8.000000e-01 : f32
    %57 = vector.broadcast %cst_28 : f32 to vector<1x512xf32>
    %58 = arith.addf %56, %57 : vector<1x512xf32>
    %59 = math.rsqrt %58 : vector<1x512xf32>
    %60 = arith.mulf %44, %59 : vector<1x512xf32>
    %61 = vector.broadcast %60 : vector<1x512xf32> to vector<128x512xf32>
    %62 = arith.mulf %51, %61 : vector<128x512xf32>
    %63 = vector.broadcast %45 : vector<1x512xf32> to vector<128x512xf32>
    %64 = arith.addf %62, %63 : vector<128x512xf32>
    %cst_29 = arith.constant 0.000000e+00 : f32
    %65 = vector.broadcast %cst_29 : f32 to vector<128x512xf32>
    %66 = arith.cmpf ogt, %64, %65 : vector<128x512xf32>
    %cst_30 = arith.constant 2.000000e-01 : f32
    %67 = vector.broadcast %cst_30 : f32 to vector<128x512xf32>
    %68 = arith.mulf %67, %64 : vector<128x512xf32>
    %69 = arith.select %66, %64, %68 : vector<128x512xi1>, vector<128x512xf32>
    %70 = arith.truncf %69 : vector<128x512xf32> to vector<128x512xbf16>
    %c0_31 = arith.constant 0 : index
    %c0_32 = arith.constant 0 : index
    %71 = vector.load %arg4[%c0_31, %c0_32] : memref<512x1024xbf16, #tpu.memory_space<vmem>>, vector<512x1024xbf16>
    %cst_33 = arith.constant dense<0.000000e+00> : vector<128x1024xf32>
    %72 = tpu.matmul %70, %71, %cst_33 {dimension_numbers = #tpu.dot_dimension_numbers<[1], [0], [0], [1], [0, 0, 1, 1], [], []>} : vector<128x512xbf16>, vector<512x1024xbf16>, vector<128x1024xf32> -> vector<128x1024xf32>
    %c0_34 = arith.constant 0 : index
    %c1664 = arith.constant 1664 : index
    %73 = vector.load %arg6[%c0_34, %c1664] : memref<1x3968xf32, #tpu.memory_space<vmem>>, vector<1x1024xf32>
    %c0_35 = arith.constant 0 : index
    %c2688 = arith.constant 2688 : index
    %74 = vector.load %arg6[%c0_35, %c2688] : memref<1x3968xf32, #tpu.memory_space<vmem>>, vector<1x1024xf32>
    %cst_36 = arith.constant dense<0.000000e+00> : vector<1024xf32>
    %75 = vector.multi_reduction <add>, %72, %cst_36 [0] : vector<128x1024xf32> to vector<1024xf32>
    %76 = vector.shape_cast %75 : vector<1024xf32> to vector<1x1024xf32>
    %cst_37 = arith.constant 1.280000e+02 : f32
    %77 = vector.broadcast %cst_37 : f32 to vector<1x1024xf32>
    %78 = arith.divf %76, %77 : vector<1x1024xf32>
    %79 = vector.broadcast %78 : vector<1x1024xf32> to vector<128x1024xf32>
    %80 = arith.subf %72, %79 : vector<128x1024xf32>
    %81 = arith.mulf %80, %80 : vector<128x1024xf32>
    %cst_38 = arith.constant dense<0.000000e+00> : vector<1024xf32>
    %82 = vector.multi_reduction <add>, %81, %cst_38 [0] : vector<128x1024xf32> to vector<1024xf32>
    %83 = vector.shape_cast %82 : vector<1024xf32> to vector<1x1024xf32>
    %cst_39 = arith.constant 1.280000e+02 : f32
    %84 = vector.broadcast %cst_39 : f32 to vector<1x1024xf32>
    %85 = arith.divf %83, %84 : vector<1x1024xf32>
    %cst_40 = arith.constant 8.000000e-01 : f32
    %86 = vector.broadcast %cst_40 : f32 to vector<1x1024xf32>
    %87 = arith.addf %85, %86 : vector<1x1024xf32>
    %88 = math.rsqrt %87 : vector<1x1024xf32>
    %89 = arith.mulf %73, %88 : vector<1x1024xf32>
    %90 = vector.broadcast %89 : vector<1x1024xf32> to vector<128x1024xf32>
    %91 = arith.mulf %80, %90 : vector<128x1024xf32>
    %92 = vector.broadcast %74 : vector<1x1024xf32> to vector<128x1024xf32>
    %93 = arith.addf %91, %92 : vector<128x1024xf32>
    %cst_41 = arith.constant 0.000000e+00 : f32
    %94 = vector.broadcast %cst_41 : f32 to vector<128x1024xf32>
    %95 = arith.cmpf ogt, %93, %94 : vector<128x1024xf32>
    %cst_42 = arith.constant 2.000000e-01 : f32
    %96 = vector.broadcast %cst_42 : f32 to vector<128x1024xf32>
    %97 = arith.mulf %96, %93 : vector<128x1024xf32>
    %98 = arith.select %95, %93, %97 : vector<128x1024xi1>, vector<128x1024xf32>
    %99 = arith.truncf %98 : vector<128x1024xf32> to vector<128x1024xbf16>
    %c0_43 = arith.constant 0 : index
    %c0_44 = arith.constant 0 : index
    %100 = vector.load %arg5[%c0_43, %c0_44] : memref<1024x256xbf16, #tpu.memory_space<vmem>>, vector<1024x256xbf16>
    %cst_45 = arith.constant dense<0.000000e+00> : vector<128x256xf32>
    %101 = tpu.matmul %99, %100, %cst_45 {dimension_numbers = #tpu.dot_dimension_numbers<[1], [0], [0], [1], [0, 0, 1, 1], [], []>} : vector<128x1024xbf16>, vector<1024x256xbf16>, vector<128x256xf32> -> vector<128x256xf32>
    %c0_46 = arith.constant 0 : index
    %c3712 = arith.constant 3712 : index
    %102 = vector.load %arg6[%c0_46, %c3712] : memref<1x3968xf32, #tpu.memory_space<vmem>>, vector<1x256xf32>
    %103 = vector.broadcast %102 : vector<1x256xf32> to vector<128x256xf32>
    %104 = arith.addf %101, %103 : vector<128x256xf32>
    %105 = math.tanh %104 : vector<128x256xf32>
    %c0_47 = arith.constant 0 : index
    %c0_48 = arith.constant 0 : index
    %106 = vector.load %arg7[%c0_47, %c0_48] : memref<128x256xf32, #tpu.memory_space<vmem>>, vector<128x256xf32>
    tpu.vector_store %arg7[%c0_47, %c0_48], %105 {strides = array<i32>} : memref<128x256xf32, #tpu.memory_space<vmem>>, vector<128x256xf32>,
    return
  }
}

</mosaic_0001>

<bundles_post_ra>
// kernel: generator_forward.1
= control target key start
LH: loop header
LB: loop body
LE: loop exit
PB: predicated region body
PF: predicated region fallthrough
CT: control target
= control target key end

     0   :  { %12 = vsyncpa [#allocation3], 0  ;;  %s12735_s0 = inlined_call_operand.vmem [shape: f32[128,32], index: 0, kind: input, shape index: {}]   ;;  %s12736_s1 = inlined_call_operand.hbm [shape: bf16[32,128], index: 1, kind: input, shape index: {}]   ;;  %s12737_s2 = inlined_call_operand.vmem [shape: bf16[128,256], index: 2, kind: input, shape index: {}]   ;;  %s12738_s3 = inlined_call_operand.hbm [shape: bf16[256,512], index: 3, kind: input, shape index: {}]   ;;  %s12739_s4 = inlined_call_operand.hbm [shape: bf16[512,1024], index: 4, kind: input, shape index: {}]   ;;  %s12740_s5 = inlined_call_operand.hbm [shape: bf16[1024,256], index: 5, kind: input, shape index: {}]   ;;  %s12741_s6 = inlined_call_operand.vmem [shape: f32[1,3968], index: 6, kind: input, shape index: {}]   ;;  %s12742_s7 = inlined_call_operand.vmem [shape: f32[128,256], index: 7, kind: output, shape index: {}]  }
   0x1   :  { %13 = vsyncpa [#allocation5], 0 }
   0x2   :  { %14 = vsyncpa [#allocation8], 0  ;;  %s8794_s24 = smov [#allocation4]   ;;  %s8700_s28 = scalar_lea.hbm %s12738_s3, 8192 }
   0x3   :  { %s36_s25 = sshll.u32 %s8794_s24, 4  ;;  %p8701_p0 = scmp.ne.s32.totalorder %s12738_s3, %s8700_s28  ;;  %s37_s25 = int_to_ptr.vmem [resolvable:$true] %s36_s25 }
   0x4   :  { %p8704_p1 = scmp.lt.u32.totalorder %s8700_s28, %s12738_s3 }
   0x6   :  { %p8706_p2 = pnand %p8704_p1, %p8701_p0 }
   0x8   :  { %8709 = shalt.err (!%p8706_p2)
}
   0x9   :  { %s8710_s10 = scalar_lea.vmem %s37_s25, 8192  ;;  %p8715_p4 = scmp.lt.s32.totalorder %s37_s25, %s37_s25 }
   0xa   :  { %p8711_p3 = scmp.ne.s32.totalorder %s37_s25, %s8710_s10  ;;  %p8716_p5 = scmp.lt.s32.totalorder %s8710_s10, %s8710_s10 }
   0xc   :  { %p8717_p6 = por %p8716_p5, %p8715_p4 }
   0xe   :  { %p8718_p7 = pnand %p8717_p6, %p8711_p3 }
  0x10   :  { %8721 = shalt.err (!%p8718_p7)
}
  0x11   :  { %s8795_s11 = smov 256   ;;  %s8796_s12 = smov 16  }
  0x12   :  { %42 = dma.hbm_to_vmem [thread:$0]  %s12738_s3, 8192, %s37_s25, [#allocation5], %s8795_s11, %s8795_s11, %s8796_s12  }
  0x13   :  { %s8797_s15 = smov [#allocation2]   ;;  %s8722_s19 = scalar_lea.hbm %s12736_s1, 256 }
  0x14   :  { %s22_s16 = sshll.u32 %s8797_s15, 4  ;;  %p8723_p8 = scmp.ne.s32.totalorder %s12736_s1, %s8722_s19  ;;  %s23_s16 = int_to_ptr.vmem [resolvable:$true] %s22_s16 }
  0x15   :  { %p8726_p9 = scmp.lt.u32.totalorder %s8722_s19, %s12736_s1 }
  0x17   :  { %p8728_p10 = pnand %p8726_p9, %p8723_p8 }
  0x19   :  { %8731 = shalt.err (!%p8728_p10)
}
  0x1a   :  { %s8732_s24 = scalar_lea.vmem %s23_s16, 256  ;;  %p8737_p12 = scmp.lt.s32.totalorder %s23_s16, %s23_s16 }
  0x1b   :  { %p8733_p11 = scmp.ne.s32.totalorder %s23_s16, %s8732_s24  ;;  %p8738_p13 = scmp.lt.s32.totalorder %s8732_s24, %s8732_s24 }
  0x1d   :  { %p8739_p0 = por %p8738_p13, %p8737_p12 }
  0x1f   :  { %p8740_p1 = pnand %p8739_p0, %p8733_p11 }
  0x21   :  { %8743 = shalt.err (!%p8740_p1)
}
  0x22   :  { %s8798_s3 = smov 64   ;;  %s8799_s25 = smov 4  }
  0x23   :  { %28 = dma.hbm_to_vmem [thread:$0]  %s12736_s1, 256, %s23_s16, [#allocation3], %s8798_s3, %s8798_s3, %s8799_s25  }
  0x24   :  { %s8800_s28 = smov [#allocation6]   ;;  %s8744_s9 = scalar_lea.hbm %s12739_s4, 32768 }
  0x25   :  { %s48_s29 = sshll.u32 %s8800_s28, 4  ;;  %p8745_p2 = scmp.ne.s32.totalorder %s12739_s4, %s8744_s9  ;;  %s49_s29 = int_to_ptr.vmem [resolvable:$true] %s48_s29 }
  0x26   :  { %p8748_p3 = scmp.lt.u32.totalorder %s8744_s9, %s12739_s4 }
  0x28   :  { %p8750_p4 = pnand %p8748_p3, %p8745_p2 }
  0x2a   :  { %8753 = shalt.err (!%p8750_p4)
}
  0x2b   :  { %s8754_s14 = scalar_lea.vmem %s49_s29, 32768  ;;  %p8759_p6 = scmp.lt.s32.totalorder %s49_s29, %s49_s29 }
  0x2c   :  { %p8755_p5 = scmp.ne.s32.totalorder %s49_s29, %s8754_s14  ;;  %p8760_p7 = scmp.lt.s32.totalorder %s8754_s14, %s8754_s14 }
  0x2e   :  { %p8761_p8 = por %p8760_p7, %p8759_p6 }
  0x30   :  { %p8762_p9 = pnand %p8761_p8, %p8755_p5 }
  0x32   :  { %8765 = shalt.err (!%p8762_p9)
}
  0x33   :  { %s8801_s1 = smov 512   ;;  %s8802_s15 = smov 32  }
  0x34   :  { %54 = dma.hbm_to_vmem [thread:$0]  %s12739_s4, 32768, %s49_s29, [#allocation5], %s8801_s1, %s8801_s1, %s8802_s15  }
  0x35   :  { %s8803_s18 = smov [#allocation7]   ;;  %s8766_s22 = scalar_lea.hbm %s12740_s5, 16384 }
  0x36   :  { %s60_s19 = sshll.u32 %s8803_s18, 4  ;;  %p8767_p10 = scmp.ne.s32.totalorder %s12740_s5, %s8766_s22  ;;  %s61_s19 = int_to_ptr.vmem [resolvable:$true] %s60_s19 }
  0x37   :  { %p8770_p11 = scmp.lt.u32.totalorder %s8766_s22, %s12740_s5 }
  0x39   :  { %p8772_p12 = pnand %p8770_p11, %p8767_p10 }
  0x3b   :  { %8775 = shalt.err (!%p8772_p12)
}
  0x3c   :  { %s8776_s26 = scalar_lea.vmem %s61_s19, 16384  ;;  %p8781_p0 = scmp.lt.s32.totalorder %s61_s19, %s61_s19 }
  0x3d   :  { %p8777_p13 = scmp.ne.s32.totalorder %s61_s19, %s8776_s26  ;;  %p8782_p1 = scmp.lt.s32.totalorder %s8776_s26, %s8776_s26 }
  0x3f   :  { %p8783_p2 = por %p8782_p1, %p8781_p0 }
  0x41   :  { %p8784_p3 = pnand %p8783_p2, %p8777_p13 }
  0x43   :  { %8787 = shalt.err (!%p8784_p3)
}
  0x44   :  { %s8804_s4 = smov 128   ;;  %s8805_s27 = smov 8  }
  0x45   :  { %66 = dma.hbm_to_vmem [thread:$0]  %s12740_s5, 16384, %s61_s19, [#allocation8], %s8804_s4, %s8804_s4, %s8805_s27  }
  0x46   :  { %8788 = dma.done.wait [#allocation3], 256  }
  0x47   :  { %8789 = vsyncadd [#allocation3], 4294967040 }
  0x48   :  { %8790 = dma.done.wait [#allocation5], 40960  }
  0x49   :  { %8791 = vsyncadd [#allocation5], 4294926336 }
  0x4a   :  { %8792 = dma.done.wait [#allocation8], 16384  }
  0x4b   :  { %8793 = vsyncadd [#allocation8], 4294950912  ;;  %v8261_v0 = vld [vmem:[#allocation2] sm:$0xff]   ;;  %v8262_v1 = vld [vmem:[#allocation2 + $0x8] sm:$0xff]   ;;  %vm129_vm0 = vcmask 261120   ;;  %v8806_v42 = vmov 0  }
  0x4c   :  { %7939 = vmatprep.subr.bf16.mxu0 %v8261_v0  ;;  %v82_v2 = vld [vmem:[%s12735_s0] sm:$0xff]  ;;  %v83_v3 = vld [vmem:[%s12735_s0 + $0x8] sm:$0xff]  ;;  %v84_v5 = vld [vmem:[%s12735_s0 + $0x10] sm:$0xff]  ;;  %435 = vmatprep.mubr.bf16.mxu1 %v8806_v42 }
  0x4d   :  { %7940 = vmatpush3.bf16.msra.mxu0 %v8261_v0  ;;  %v98_v4 = vpack.c.bf16 %v83_v3, %v82_v2  ;;  %v85_v6 = vld [vmem:[%s12735_s0 + $0x18] sm:$0xff]  ;;  %v86_v7 = vld [vmem:[%s12735_s0 + $0x20] sm:$0xff]  ;;  %v87_v8 = vld [vmem:[%s12735_s0 + $0x28] sm:$0xff] }
  0x4e   :  { %7941 = vmatprep.subr.bf16.mxu0 %v8262_v1  ;;  %v99_v9 = vpack.c.bf16 %v85_v6, %v84_v5  ;;  %v100_v10 = vpack.c.bf16 %v87_v8, %v86_v7  ;;  %v8263_v11 = vld [vmem:[%s12737_s2 + $0x4] ss:$8 sps:$4 sm:$0xff]   ;;  %v8265_v12 = vld [vmem:[%s12737_s2] ss:$8 sps:$4 sm:$0xff]   ;;  %v88_v13 = vld [vmem:[%s12735_s0 + $0x30] sm:$0xff] }
  0x4f   :  { %7943 = vmatprep.mubr.msk.bf16.mxu0 %vm129_vm0, %v98_v4  ;;  %v89_v14 = vld [vmem:[%s12735_s0 + $0x38] sm:$0xff]  ;;  %v90_v16 = vld [vmem:[%s12735_s0 + $0x40] sm:$0xff]  ;;  %403 = vmatprep.subr.bf16.mxu1 %v8263_v11  ;;  %v91_v18 = vld [vmem:[%s12735_s0 + $0x48] sm:$0xff] }
  0x50   :  { %v8266_v15 = vld [vmem:[%s12737_s2 + $0x14] ss:$8 sps:$4 sm:$0xff]   ;;  %404 = vmatpush1.bf16.msra.mxu1 %v8265_v12  ;;  %v8268_v17 = vld [vmem:[%s12737_s2 + $0x10] ss:$8 sps:$4 sm:$0xff]   ;;  %v8269_v19 = vld [vmem:[%s12737_s2 + $0x24] ss:$8 sps:$4 sm:$0xff]   ;;  %v101_v21 = vpack.c.bf16 %v89_v14, %v88_v13  ;;  %v102_v23 = vpack.c.bf16 %v91_v18, %v90_v16 }
  0x51   :  { %7942 = vmatpush3.bf16.msra.mxu0 %v8262_v1  ;;  %405 = vmatprep.subr.bf16.mxu1 %v8266_v15  ;;  %v8271_v20 = vld [vmem:[%s12737_s2 + $0x20] ss:$8 sps:$4 sm:$0xff]   ;;  %v8272_v22 = vld [vmem:[%s12737_s2 + $0x34] ss:$8 sps:$4 sm:$0xff]   ;;  %v8274_v26 = vld [vmem:[%s12737_s2 + $0x30] ss:$8 sps:$4 sm:$0xff]  }
  0x52   :  { %v92_v24 = vld [vmem:[%s12735_s0 + $0x50] sm:$0xff]  ;;  %v93_v25 = vld [vmem:[%s12735_s0 + $0x58] sm:$0xff]  ;;  %v94_v27 = vld [vmem:[%s12735_s0 + $0x60] sm:$0xff] }
  0x53   :  { %v95_v28 = vld [vmem:[%s12735_s0 + $0x68] sm:$0xff]  ;;  %v103_v31 = vpack.c.bf16 %v93_v25, %v92_v24  ;;  %v8278_v32 = vld [vmem:[%s12737_s2 + $0x54] ss:$8 sps:$4 sm:$0xff]   ;;  %v8280_v37 = vld [vmem:[%s12737_s2 + $0x50] ss:$8 sps:$4 sm:$0xff]  }
  0x54   :  { %7944 = vmatmul.mubr.msk.bf16.vlgmr.msra.gmra.mrb[0].mxu0 %vm129_vm0, %v99_v9  ;;  %406 = vmatpush1.bf16.msra.mxu1 %v8268_v17  ;;  %v8275_v29 = vld [vmem:[%s12737_s2 + $0x44] ss:$8 sps:$4 sm:$0xff]   ;;  %v8277_v30 = vld [vmem:[%s12737_s2 + $0x40] ss:$8 sps:$4 sm:$0xff]   ;;  %v104_v33 = vpack.c.bf16 %v95_v28, %v94_v27  ;;  %v96_v34 = vld [vmem:[%s12735_s0 + $0x70] sm:$0xff] }
  0x55   :  { %7947 = vmatprep.mubr.msk.bf16.mxu0 %vm129_vm0, %v100_v10  ;;  %407 = vmatprep.subr.bf16.mxu1 %v8269_v19  ;;  %v97_v35 = vld [vmem:[%s12735_s0 + $0x78] sm:$0xff]  ;;  %v8281_v38 = vld [vmem:[%s12737_s2 + $0x64] ss:$8 sps:$4 sm:$0xff]   ;;  %v8283_v39 = vld [vmem:[%s12737_s2 + $0x60] ss:$8 sps:$4 sm:$0xff]  }
  0x56   :  { %v105_v36 = vpack.c.bf16 %v97_v35, %v96_v34  ;;  %v8284_v40 = vld [vmem:[%s12737_s2 + $0x74] ss:$8 sps:$4 sm:$0xff]   ;;  %v8286_v41 = vld [vmem:[%s12737_s2 + $0x70] ss:$8 sps:$4 sm:$0xff]   ;;  %v9004_v43 = vld [vmem:[%s12741_s6] ss:$0 sm:$0xff] }
  0x58   :  { %408 = vmatpush1.bf16.msra.mxu1 %v8271_v20 }
  0x59   :  { %409 = vmatprep.subr.bf16.mxu1 %v8272_v22 }
  0x5c   :  { %7948 = vmatmul.mubr.msk.bf16.gmra.mrb[4].mxu0 %vm129_vm0, %v101_v21  ;;  %410 = vmatpush1.bf16.msra.mxu1 %v8274_v26 }
  0x5d   :  { %7951 = vmatprep.mubr.msk.bf16.mxu0 %vm129_vm0, %v102_v23  ;;  %411 = vmatprep.subr.bf16.mxu1 %v8275_v29 }
  0x60   :  { %412 = vmatpush1.bf16.msra.mxu1 %v8277_v30 }
  0x61   :  { %413 = vmatprep.subr.bf16.mxu1 %v8278_v32 }
  0x64   :  { %7952 = vmatmul.mubr.msk.bf16.gmra.mrb[8].mxu0 %vm129_vm0, %v103_v31  ;;  %414 = vmatpush1.bf16.msra.mxu1 %v8280_v37 }
  0x65   :  { %7955 = vmatprep.mubr.msk.bf16.mxu0 %vm129_vm0, %v104_v33  ;;  %415 = vmatprep.subr.bf16.mxu1 %v8281_v38 }
  0x68   :  { %416 = vmatpush1.bf16.msra.mxu1 %v8283_v39 }
  0x69   :  { %417 = vmatprep.subr.bf16.mxu1 %v8284_v40 }
  0x6c   :  { %7956 = vmatmul.mubr.msk.bf16.gmra.mrb[12].mxu0 %vm129_vm0, %v105_v36  ;;  %418 = vmatpush1.bf16.msra.mxu1 %v8286_v41 }
 0x127   :  { %v7945_v44 = vpop.f32.mrb[0].mxu0 }
 0x128   :  { %v197_v45 = vadd.f32 %v7945_v44, %v9004_v43  ;;  %v188_v46 = vpop.f32.mrb[1].mxu0 }
 0x129   :  { %v189_v47 = vadd.f32 %v9004_v43, %v188_v46  ;;  %v7946_v48 = vpop.f32.mrb[2].mxu0 }
 0x12a   :  { %v269_v49 = vmul.f32 0.2, %v197_v45  ;;  %v200_v50 = vadd.f32 %v7946_v48, %v9004_v43  ;;  %v191_v51 = vpop.f32.mrb[3].mxu0  ;;  %vm253_vm1 = vcmp.gt.f32.partialorder %v197_v45, 0.0 }
 0x12b   :  { %v267_v52 = vmul.f32 0.2, %v189_v47  ;;  %v192_v53 = vadd.f32 %v9004_v43, %v191_v51  ;;  %vm251_vm2 = vcmp.gt.f32.partialorder %v189_v47, 0.0 }
 0x12c   :  { %vm254_vm3 = vcmp.gt.f32.partialorder %v200_v50, 0.0  ;;  %v270_v54 = vmul.f32 0.2, %v200_v50  ;;  %v285_v56 = vsel %vm253_vm1, %v197_v45, %v269_v49 }
 0x12d   :  { %vm252_vm4 = vcmp.gt.f32.partialorder %v192_v53, 0.0  ;;  %v268_v55 = vmul.f32 0.2, %v192_v53  ;;  %v283_v59 = vsel %vm251_vm2, %v189_v47, %v267_v52 }
 0x12e   :  { %v286_v57 = vsel %vm254_vm3, %v200_v50, %v270_v54  ;;  %v8287_v54 = vld [vmem:[#allocation4] ss:$16 sps:$4 sm:$0xff]  }
 0x12f   :  { %v7949_v58 = vpop.f32.mrb[4].mxu0  ;;  %v284_v60 = vsel %vm252_vm4, %v192_v53, %v268_v55  ;;  %v300_v61 = vpack.c.bf16 %v286_v57, %v285_v56  ;;  %v8292_v55 = vld [vmem:[#allocation4 + $0x24] ss:$16 sps:$4 sm:$0xff]   ;;  %v8290_v56 = vld [vmem:[#allocation4 + $0x20] ss:$16 sps:$4 sm:$0xff]  }
 0x130   :  { %v213_v62 = vadd.f32 %v7949_v58, %v9004_v43  ;;  %v299_v63 = vpack.c.bf16 %v284_v60, %v283_v59  ;;  %v204_v0 = vpop.f32.mrb[5].mxu0  ;;  %v8295_v57 = vld [vmem:[#allocation4 + $0x44] ss:$16 sps:$4 sm:$0xff]   ;;  %v8293_v58 = vld [vmem:[#allocation4 + $0x40] ss:$16 sps:$4 sm:$0xff]  }
 0x131   :  { %v205_v1 = vadd.f32 %v9004_v43, %v204_v0  ;;  %v7950_v2 = vpop.f32.mrb[6].mxu0  ;;  %v8298_v59 = vld [vmem:[#allocation4 + $0x64] ss:$16 sps:$4 sm:$0xff]   ;;  %v8296_v60 = vld [vmem:[#allocation4 + $0x60] ss:$16 sps:$4 sm:$0xff]  }
 0x132   :  { %vm257_vm5 = vcmp.gt.f32.partialorder %v213_v62, 0.0  ;;  %v273_v3 = vmul.f32 0.2, %v213_v62  ;;  %436 = vmatmul.mubr.bf16.vlgmr.msra.gmra.mrb[0].mxu1 %v299_v63  ;;  %v216_v4 = vadd.f32 %v7950_v2, %v9004_v43  ;;  %v207_v5 = vpop.f32.mrb[7].mxu0  ;;  %v8302_v63 = vld [vmem:[#allocation4 + $0xa0] ss:$16 sps:$4 sm:$0xff]  }
 0x133   :  { %vm255_vm6 = vcmp.gt.f32.partialorder %v205_v1, 0.0  ;;  %v271_v6 = vmul.f32 0.2, %v205_v1  ;;  %v208_v7 = vadd.f32 %v9004_v43, %v207_v5  ;;  %445 = vmatprep.mubr.bf16.mxu1 %v8806_v42 }
 0x134   :  { %vm258_vm7 = vcmp.gt.f32.partialorder %v216_v4, 0.0  ;;  %v274_v8 = vmul.f32 0.2, %v216_v4  ;;  %v289_v9 = vsel %vm257_vm5, %v213_v62, %v273_v3  ;;  %v8299_v62 = vld [vmem:[#allocation4 + $0x80] ss:$16 sps:$4 sm:$0xff]  }
 0x135   :  { %vm256_vm8 = vcmp.gt.f32.partialorder %v208_v7, 0.0  ;;  %v272_v10 = vmul.f32 0.2, %v208_v7  ;;  %v287_v11 = vsel %vm255_vm6, %v205_v1, %v271_v6  ;;  %v8305_v3 = vld [vmem:[#allocation4 + $0xc0] ss:$16 sps:$4 sm:$0xff]  }
 0x136   :  { %v290_v12 = vsel %vm258_vm7, %v216_v4, %v274_v8  ;;  %v8307_v4 = vld [vmem:[#allocation4 + $0xc4] ss:$16 sps:$4 sm:$0xff]  }
 0x137   :  { %v7953_v13 = vpop.f32.mrb[8].mxu0  ;;  %v288_v14 = vsel %vm256_vm8, %v208_v7, %v272_v10  ;;  %v302_v15 = vpack.c.bf16 %v290_v12, %v289_v9  ;;  %v8310_v8 = vld [vmem:[#allocation4 + $0xe4] ss:$16 sps:$4 sm:$0xff]   ;;  %v8308_v9 = vld [vmem:[#allocation4 + $0xe0] ss:$16 sps:$4 sm:$0xff]  }
 0x138   :  { %v229_v16 = vadd.f32 %v7953_v13, %v9004_v43  ;;  %v301_v17 = vpack.c.bf16 %v288_v14, %v287_v11  ;;  %v220_v18 = vpop.f32.mrb[9].mxu0  ;;  %v8313_v13 = vld [vmem:[#allocation4 + $0x104] ss:$16 sps:$4 sm:$0xff]  }
 0x139   :  { %v221_v19 = vadd.f32 %v9004_v43, %v220_v18  ;;  %v7954_v20 = vpop.f32.mrb[10].mxu0 }
 0x13a   :  { %446 = vmatmul.mubr.bf16.gmra.mrb[4].mxu1 %v300_v61  ;;  %vm261_vm9 = vcmp.gt.f32.partialorder %v229_v16, 0.0  ;;  %v277_v21 = vmul.f32 0.2, %v229_v16  ;;  %v232_v22 = vadd.f32 %v7954_v20, %v9004_v43  ;;  %v223_v23 = vpop.f32.mrb[11].mxu0  ;;  %v8301_v61 = vld [vmem:[#allocation4 + $0x84] ss:$16 sps:$4 sm:$0xff]  }
 0x13b   :  { %455 = vmatprep.mubr.bf16.mxu1 %v8806_v42  ;;  %vm259_vm10 = vcmp.gt.f32.partialorder %v221_v19, 0.0  ;;  %v275_v24 = vmul.f32 0.2, %v221_v19  ;;  %v224_v25 = vadd.f32 %v9004_v43, %v223_v23  ;;  %v8316_v20 = vld [vmem:[#allocation4 + $0x124] ss:$16 sps:$4 sm:$0xff]  }
 0x13c   :  { %vm262_vm11 = vcmp.gt.f32.partialorder %v232_v22, 0.0  ;;  %v278_v26 = vmul.f32 0.2, %v232_v22  ;;  %v293_v27 = vsel %vm261_vm9, %v229_v16, %v277_v21  ;;  %v8311_v16 = vld [vmem:[#allocation4 + $0x100] ss:$16 sps:$4 sm:$0xff]  }
 0x13d   :  { %vm260_vm12 = vcmp.gt.f32.partialorder %v224_v25, 0.0  ;;  %v276_v28 = vmul.f32 0.2, %v224_v25  ;;  %v291_v29 = vsel %vm259_vm10, %v221_v19, %v275_v24  ;;  %v8314_v21 = vld [vmem:[#allocation4 + $0x120] ss:$16 sps:$4 sm:$0xff]  }
 0x13e   :  { %v294_v30 = vsel %vm262_vm11, %v232_v22, %v278_v26 }
 0x13f   :  { %v7957_v31 = vpop.f32.mrb[12].mxu0  ;;  %v292_v32 = vsel %vm260_vm12, %v224_v25, %v276_v28  ;;  %v304_v33 = vpack.c.bf16 %v294_v30, %v293_v27  ;;  %v8319_v25 = vld [vmem:[#allocation4 + $0x144] ss:$16 sps:$4 sm:$0xff]   ;;  %v8317_v28 = vld [vmem:[#allocation4 + $0x140] ss:$16 sps:$4 sm:$0xff]  }
 0x140   :  { %v245_v34 = vadd.f32 %v7957_v31, %v9004_v43  ;;  %v303_v35 = vpack.c.bf16 %v292_v32, %v291_v29  ;;  %v236_v36 = vpop.f32.mrb[13].mxu0  ;;  %v8322_v32 = vld [vmem:[#allocation4 + $0x164] ss:$16 sps:$4 sm:$0xff]  }
 0x141   :  { %v237_v37 = vadd.f32 %v9004_v43, %v236_v36  ;;  %v7958_v38 = vpop.f32.mrb[14].mxu0 }
 0x142   :  { %456 = vmatmul.mubr.bf16.gmra.mrb[8].mxu1 %v301_v17  ;;  %vm265_vm13 = vcmp.gt.f32.partialorder %v245_v34, 0.0  ;;  %v281_v39 = vmul.f32 0.2, %v245_v34  ;;  %v248_v40 = vadd.f32 %v7958_v38, %v9004_v43  ;;  %v239_v41 = vpop.f32.mrb[15].mxu0 }
 0x143   :  { %465 = vmatprep.mubr.bf16.mxu1 %v8806_v42  ;;  %vm263_vm14 = vcmp.gt.f32.partialorder %v237_v37, 0.0  ;;  %v279_v44 = vmul.f32 0.2, %v237_v37  ;;  %v240_v45 = vadd.f32 %v9004_v43, %v239_v41  ;;  %v8289_v43 = vld [vmem:[#allocation4 + $0x4] ss:$16 sps:$4 sm:$0xff]  }
 0x144   :  { %vm266_vm15 = vcmp.gt.f32.partialorder %v248_v40, 0.0  ;;  %v282_v46 = vmul.f32 0.2, %v248_v40  ;;  %v297_v47 = vsel %vm265_vm13, %v245_v34, %v281_v39  ;;  %1276 = vmatprep.subr.bf16.mxu1 %v8289_v43  ;;  %v8331_v43 = vld [vmem:[#allocation4 + $0x1c4] ss:$16 sps:$4 sm:$0xff]  }
 0x145   :  { %vm264_vm0 = vcmp.gt.f32.partialorder %v240_v45, 0.0  ;;  %v280_v48 = vmul.f32 0.2, %v240_v45  ;;  %v295_v49 = vsel %vm263_vm14, %v237_v37, %v279_v44  ;;  %1277 = vmatpush1.bf16.msra.mxu1 %v8287_v54  ;;  %v8325_v37 = vld [vmem:[#allocation4 + $0x184] ss:$16 sps:$4 sm:$0xff]  }
 0x146   :  { %v298_v50 = vsel %vm266_vm15, %v248_v40, %v282_v46  ;;  %1278 = vmatprep.subr.bf16.mxu1 %v8292_v55  ;;  %v8323_v40 = vld [vmem:[#allocation4 + $0x180] ss:$16 sps:$4 sm:$0xff]   ;;  %v8328_v46 = vld [vmem:[#allocation4 + $0x1a4] ss:$16 sps:$4 sm:$0xff]  }
 0x147   :  { %v296_v51 = vsel %vm264_vm0, %v240_v45, %v280_v48  ;;  %v306_v52 = vpack.c.bf16 %v298_v50, %v297_v47  ;;  %v8326_v47 = vld [vmem:[#allocation4 + $0x1a0] ss:$16 sps:$4 sm:$0xff]  }
 0x148   :  { %v305_v53 = vpack.c.bf16 %v296_v51, %v295_v49  ;;  %v8329_v51 = vld [vmem:[#allocation4 + $0x1c0] ss:$16 sps:$4 sm:$0xff]  }
 0x149   :  { %1279 = vmatpush1.bf16.msra.mxu1 %v8290_v56  ;;  %v8334_v56 = vld [vmem:[#allocation4 + $0x1e4] ss:$16 sps:$4 sm:$0xff]  }
 0x14a   :  { %466 = vmatmul.mubr.bf16.gmra.mrb[12].mxu1 %v302_v15  ;;  %1280 = vmatprep.subr.bf16.mxu1 %v8295_v57 }
 0x14b   :  { %475 = vmatprep.mubr.bf16.mxu1 %v8806_v42 }
 0x14d   :  { %1281 = vmatpush1.bf16.msra.mxu1 %v8293_v58  ;;  %v8332_v58 = vld [vmem:[#allocation4 + $0x1e0] ss:$16 sps:$4 sm:$0xff]  }
 0x14e   :  { %1282 = vmatprep.subr.bf16.mxu1 %v8298_v59 }
 0x151   :  { %1283 = vmatpush1.bf16.msra.mxu1 %v8296_v60  ;;  %v8337_v60 = vld [vmem:[#allocation4 + $0xc] ss:$16 sps:$4 sm:$0xff]  }
 0x152   :  { %476 = vmatmul.mubr.bf16.gmra.mrb[16].mxu1 %v303_v35  ;;  %1284 = vmatprep.subr.bf16.mxu1 %v8301_v61 }
 0x153   :  { %485 = vmatprep.mubr.bf16.mxu1 %v8806_v42 }
 0x155   :  { %1285 = vmatpush1.bf16.msra.mxu1 %v8299_v62 }
 0x15a   :  { %486 = vmatmul.mubr.bf16.gmra.mrb[20].mxu1 %v304_v33  ;;  %v8320_v33 = vld [vmem:[#allocation4 + $0x160] ss:$16 sps:$4 sm:$0xff]  }
 0x15b   :  { %495 = vmatprep.mubr.bf16.mxu1 %v8806_v42 }
 0x162   :  { %496 = vmatmul.mubr.bf16.gmra.mrb[24].mxu1 %v305_v53 }
 0x163   :  { %505 = vmatprep.mubr.bf16.mxu1 %v8806_v42  ;;  %v8304_v42 = vld [vmem:[#allocation4 + $0xa4] ss:$16 sps:$4 sm:$0xff]  }
 0x164   :  { %1286 = vmatprep.subr.bf16.mxu1 %v8304_v42 }
 0x165   :  { %1287 = vmatpush1.bf16.msra.mxu1 %v8302_v63 }
 0x166   :  { %1288 = vmatprep.subr.bf16.mxu1 %v8307_v4 }
 0x169   :  { %1289 = vmatpush1.bf16.msra.mxu1 %v8305_v3 }
 0x16a   :  { %506 = vmatmul.mubr.bf16.gmra.mrb[28].mxu1 %v306_v52  ;;  %1290 = vmatprep.subr.bf16.mxu1 %v8310_v8 }
 0x16d   :  { %1291 = vmatpush1.bf16.msra.mxu1 %v8308_v9 }
 0x16e   :  { %1292 = vmatprep.subr.bf16.mxu1 %v8313_v13 }
 0x171   :  { %1293 = vmatpush1.bf16.msra.mxu1 %v8311_v16 }
 0x172   :  { %1294 = vmatprep.subr.bf16.mxu1 %v8316_v20 }
 0x175   :  { %1295 = vmatpush1.bf16.msra.mxu1 %v8314_v21 }
 0x176   :  { %1296 = vmatprep.subr.bf16.mxu1 %v8319_v25 }
 0x179   :  { %1297 = vmatpush1.bf16.msra.mxu1 %v8317_v28 }
 0x17a   :  { %1298 = vmatprep.subr.bf16.mxu1 %v8322_v32 }
 0x17d   :  { %1299 = vmatpush1.bf16.msra.mxu1 %v8320_v33 }
 0x17e   :  { %1300 = vmatprep.subr.bf16.mxu1 %v8325_v37 }
 0x181   :  { %1301 = vmatpush1.bf16.msra.mxu1 %v8323_v40 }
 0x182   :  { %1302 = vmatprep.subr.bf16.mxu1 %v8328_v46 }
 0x185   :  { %1303 = vmatpush1.bf16.msra.mxu1 %v8326_v47 }
 0x186   :  { %1304 = vmatprep.subr.bf16.mxu1 %v8331_v43 }
 0x189   :  { %1305 = vmatpush1.bf16.msra.mxu1 %v8329_v51 }
 0x18a   :  { %1306 = vmatprep.subr.bf16.mxu1 %v8334_v56 }
 0x18d   :  { %1307 = vmatpush1.bf16.msra.mxu1 %v8332_v58 }
 0x18e   :  { %1389 = vmatprep.subr.bf16.mxu1 %v8337_v60 }
 0x205   :  { %v9029_v0 = vpop.f32.mrb[0].mxu1 }
 0x206   :  { %v9031_v1 = vpop.f32.mrb[1].mxu1 }
 0x207   :  { %v9033_v2 = vpop.f32.mrb[2].mxu1 }
 0x208   :  { %v518_v5 = vadd.f32 %v9033_v2, %v9029_v0  ;;  %v9037_v6 = vpop.f32.mrb[3].mxu1 }
 0x209   :  { %v539_v7 = vadd.f32 %v9037_v6, %v9031_v1 }
 0x20d   :  { %v9041_v10 = vpop.f32.mrb[4].mxu1 }
 0x20e   :  { %v519_v11 = vadd.f32 %v518_v5, %v9041_v10  ;;  %v9044_v12 = vpop.f32.mrb[5].mxu1 }
 0x20f   :  { %v540_v14 = vadd.f32 %v539_v7, %v9044_v12  ;;  %v9047_v15 = vpop.f32.mrb[6].mxu1 }
 0x210   :  { %v520_v17 = vadd.f32 %v519_v11, %v9047_v15  ;;  %v9050_v18 = vpop.f32.mrb[7].mxu1 }
 0x211   :  { %v541_v19 = vadd.f32 %v540_v14, %v9050_v18 }
 0x215   :  { %v9053_v22 = vpop.f32.mrb[8].mxu1 }
 0x216   :  { %v521_v23 = vadd.f32 %v520_v17, %v9053_v22  ;;  %v9056_v24 = vpop.f32.mrb[9].mxu1 }
 0x217   :  { %v542_v26 = vadd.f32 %v541_v19, %v9056_v24  ;;  %v9059_v27 = vpop.f32.mrb[10].mxu1 }
 0x218   :  { %v522_v29 = vadd.f32 %v521_v23, %v9059_v27  ;;  %v9062_v30 = vpop.f32.mrb[11].mxu1 }
 0x219   :  { %v543_v31 = vadd.f32 %v542_v26, %v9062_v30 }
 0x21d   :  { %v9065_v34 = vpop.f32.mrb[12].mxu1 }
 0x21e   :  { %v523_v35 = vadd.f32 %v522_v29, %v9065_v34  ;;  %v9068_v36 = vpop.f32.mrb[13].mxu1 }
 0x21f   :  { %v544_v38 = vadd.f32 %v543_v31, %v9068_v36  ;;  %v9071_v39 = vpop.f32.mrb[14].mxu1 }
 0x220   :  { %v524_v41 = vadd.f32 %v523_v35, %v9071_v39  ;;  %v9074_v44 = vpop.f32.mrb[15].mxu1 }
 0x221   :  { %v545_v45 = vadd.f32 %v544_v38, %v9074_v44 }
 0x225   :  { %v9077_v48 = vpop.f32.mrb[16].mxu1 }
 0x226   :  { %v525_v49 = vadd.f32 %v524_v41, %v9077_v48  ;;  %v9080_v50 = vpop.f32.mrb[17].mxu1 }
 0x227   :  { %v546_v52 = vadd.f32 %v545_v45, %v9080_v50  ;;  %v481_v53 = vpop.f32.mrb[18].mxu1 }
 0x228   :  { %v526_v54 = vadd.f32 %v525_v49, %v481_v53  ;;  %v9083_v55 = vpop.f32.mrb[19].mxu1 }
 0x229   :  { %v547_v57 = vadd.f32 %v546_v52, %v9083_v55 }
 0x22d   :  { %v487_v59 = vpop.f32.mrb[20].mxu1 }
 0x22e   :  { %v527_v61 = vadd.f32 %v526_v54, %v487_v59  ;;  %v9086_v62 = vpop.f32.mrb[21].mxu1 }
 0x22f   :  { %v548_v42 = vadd.f32 %v547_v57, %v9086_v62  ;;  %v491_v63 = vpop.f32.mrb[22].mxu1 }
 0x230   :  { %v528_v3 = vadd.f32 %v527_v61, %v491_v63  ;;  %v9089_v4 = vpop.f32.mrb[23].mxu1 }
 0x231   :  { %v549_v5 = vadd.f32 %v548_v42, %v9089_v4 }
 0x235   :  { %v497_v7 = vpop.f32.mrb[24].mxu1 }
 0x236   :  { %v529_v8 = vadd.f32 %v528_v3, %v497_v7  ;;  %v499_v9 = vpop.f32.mrb[25].mxu1 }
 0x237   :  { %v550_v11 = vadd.f32 %v549_v5, %v499_v9  ;;  %v501_v13 = vpop.f32.mrb[26].mxu1 }
 0x238   :  { %v530_v14 = vadd.f32 %v529_v8, %v501_v13  ;;  %v503_v16 = vpop.f32.mrb[27].mxu1 }
 0x239   :  { %v551_v17 = vadd.f32 %v550_v11, %v503_v16 }
 0x23d   :  { %v507_v19 = vpop.f32.mrb[28].mxu1 }
 0x23e   :  { %v531_v20 = vadd.f32 %v530_v14, %v507_v19  ;;  %v509_v21 = vpop.f32.mrb[29].mxu1 }
 0x23f   :  { %v552_v23 = vadd.f32 %v551_v17, %v509_v21  ;;  %v511_v25 = vpop.f32.mrb[30].mxu1 }
 0x240   :  { %v532_v26 = vadd.f32 %v531_v20, %v511_v25  ;;  %v513_v28 = vpop.f32.mrb[31].mxu1 }
 0x241   :  { %v553_v29 = vadd.f32 %v552_v23, %v513_v28 }
 0x242   :  { %v533_v31 = vrot.slane %v532_v26, 4 }
 0x243   :  { %v554_v32 = vrot.slane %v553_v29, 4 }
 0x244   :  { %v534_v33 = vadd.f32 %v533_v31, %v532_v26 }
 0x245   :  { %v555_v35 = vadd.f32 %v554_v32, %v553_v29 }
 0x246   :  { %v535_v37 = vrot.slane %v534_v33, 2 }
 0x247   :  { %v556_v38 = vrot.slane %v555_v35, 2 }
 0x248   :  { %v536_v40 = vadd.f32 %v535_v37, %v534_v33 }
 0x249   :  { %v557_v41 = vadd.f32 %v556_v38, %v555_v35 }
 0x24a   :  { %v537_v45 = vrot.slane %v536_v40, 1 }
 0x24b   :  { %v558_v46 = vrot.slane %v557_v41, 1 }
 0x24c   :  { %v538_v47 = vadd.f32 %v537_v45, %v536_v40 }
 0x24d   :  { %v559_v51 = vadd.f32 %v558_v46, %v557_v41 }
 0x24e   :  { %v561_v49 = vmul.f32 0.0078125, %v538_v47 }
 0x250   :  { %v9093_v52 = vsub.f32 %v9029_v0, %v561_v49  ;;  %v9096_v43 = vsub.f32 %v9033_v2, %v561_v49  ;;  %v9099_v54 = vsub.f32 %v9041_v10, %v561_v49  ;;  %v9102_v56 = vsub.f32 %v9047_v15, %v561_v49 }
 0x251   :  { %v9105_v57 = vsub.f32 %v9053_v22, %v561_v49  ;;  %v9108_v58 = vsub.f32 %v9059_v27, %v561_v49  ;;  %v9111_v60 = vsub.f32 %v9065_v34, %v561_v49  ;;  %v9114_v0 = vsub.f32 %v9071_v39, %v561_v49 }
 0x252   :  { %v9117_v2 = vsub.f32 %v9077_v48, %v561_v49  ;;  %v9119_v10 = vsub.f32 %v481_v53, %v561_v49  ;;  %v9121_v61 = vsub.f32 %v487_v59, %v561_v49  ;;  %v9123_v15 = vsub.f32 %v491_v63, %v561_v49 }
 0x253   :  { %v9125_v22 = vsub.f32 %v497_v7, %v561_v49  ;;  %v9127_v42 = vsub.f32 %v501_v13, %v561_v49  ;;  %v9129_v27 = vsub.f32 %v507_v19, %v561_v49  ;;  %v9131_v34 = vsub.f32 %v511_v25, %v561_v49 }
 0x254   :  { %v595_v39 = vmul.f32 %v9093_v52, %v9093_v52  ;;  %v597_v48 = vmul.f32 %v9096_v43, %v9096_v43  ;;  %v562_v53 = vmul.f32 0.0078125, %v559_v51  ;;  %v599_v59 = vmul.f32 %v9099_v54, %v9099_v54 }
 0x255   :  { %v601_v63 = vmul.f32 %v9102_v56, %v9102_v56  ;;  %v611_v33 = vmul.f32 %v9117_v2, %v9117_v2  ;;  %v613_v40 = vmul.f32 %v9119_v10, %v9119_v10  ;;  %v615_v47 = vmul.f32 %v9121_v61, %v9121_v61 }
 0x256   :  { %v627_v3 = vadd.f32 %v597_v48, %v595_v39  ;;  %v9142_v5 = vsub.f32 %v9031_v1, %v562_v53  ;;  %v9145_v7 = vsub.f32 %v9037_v6, %v562_v53  ;;  %v9148_v8 = vsub.f32 %v9044_v12, %v562_v53 }
 0x257   :  { %v9151_v11 = vsub.f32 %v9050_v18, %v562_v53  ;;  %v9154_v13 = vsub.f32 %v9056_v24, %v562_v53  ;;  %v9157_v14 = vsub.f32 %v9062_v30, %v562_v53  ;;  %v9160_v17 = vsub.f32 %v9068_v36, %v562_v53 }
 0x258   :  { %v628_v1 = vadd.f32 %v627_v3, %v599_v59  ;;  %v9163_v19 = vsub.f32 %v9074_v44, %v562_v53  ;;  %v9166_v6 = vsub.f32 %v9080_v50, %v562_v53  ;;  %v9169_v12 = vsub.f32 %v9083_v55, %v562_v53 }
 0x259   :  { %v9172_v18 = vsub.f32 %v9086_v62, %v562_v53  ;;  %v9175_v24 = vsub.f32 %v9089_v4, %v562_v53  ;;  %v9177_v30 = vsub.f32 %v499_v9, %v562_v53  ;;  %v9179_v36 = vsub.f32 %v503_v16, %v562_v53 }
 0x25a   :  { %v603_v44 = vmul.f32 %v9105_v57, %v9105_v57  ;;  %v629_v20 = vadd.f32 %v628_v1, %v601_v63  ;;  %v9183_v23 = vsub.f32 %v509_v21, %v562_v53  ;;  %v9185_v50 = vsub.f32 %v513_v28, %v562_v53 }
 0x25b   :  { %v596_v55 = vmul.f32 %v9142_v5, %v9142_v5  ;;  %v598_v62 = vmul.f32 %v9145_v7, %v9145_v7  ;;  %v605_v4 = vmul.f32 %v9108_v58, %v9108_v58  ;;  %v607_v16 = vmul.f32 %v9111_v60, %v9111_v60 }
 0x25c   :  { %v630_v9 = vadd.f32 %v629_v20, %v603_v44  ;;  %v600_v21 = vmul.f32 %v9148_v8, %v9148_v8  ;;  %v609_v28 = vmul.f32 %v9114_v0, %v9114_v0  ;;  %v602_v31 = vmul.f32 %v9151_v11, %v9151_v11 }
 0x25d   :  { %v648_v26 = vadd.f32 %v598_v62, %v596_v55  ;;  %v604_v37 = vmul.f32 %v9154_v13, %v9154_v13  ;;  %v606_v45 = vmul.f32 %v9157_v14, %v9157_v14  ;;  %v608_v51 = vmul.f32 %v9160_v17, %v9160_v17 }
 0x25e   :  { %v631_v25 = vadd.f32 %v630_v9, %v605_v4  ;;  %v617_v48 = vmul.f32 %v9123_v15, %v9123_v15  ;;  %v610_v59 = vmul.f32 %v9163_v19, %v9163_v19  ;;  %v619_v3 = vmul.f32 %v9125_v22, %v9125_v22 }
 0x25f   :  { %v649_v32 = vadd.f32 %v648_v26, %v600_v21  ;;  %v612_v44 = vmul.f32 %v9166_v6, %v9166_v6  ;;  %v621_v55 = vmul.f32 %v9127_v42, %v9127_v42  ;;  %v614_v4 = vmul.f32 %v9169_v12, %v9169_v12 }
 0x260   :  { %v632_v29 = vadd.f32 %v631_v25, %v607_v16  ;;  %v623_v16 = vmul.f32 %v9129_v27, %v9129_v27  ;;  %v616_v21 = vmul.f32 %v9172_v18, %v9172_v18 }
 0x261   :  { %v650_v38 = vadd.f32 %v649_v32, %v602_v31  ;;  %v618_v31 = vmul.f32 %v9175_v24, %v9175_v24 }
 0x262   :  { %v633_v35 = vadd.f32 %v632_v29, %v609_v28  ;;  %v625_v28 = vmul.f32 %v9131_v34, %v9131_v34 }
 0x263   :  { %v651_v46 = vadd.f32 %v650_v38, %v604_v37 }
 0x264   :  { %v634_v41 = vadd.f32 %v633_v35, %v611_v33  ;;  %v620_v35 = vmul.f32 %v9177_v30, %v9177_v30 }
 0x265   :  { %v652_v39 = vadd.f32 %v651_v46, %v606_v45  ;;  %v624_v46 = vmul.f32 %v9183_v23, %v9183_v23 }
 0x266   :  { %v635_v49 = vadd.f32 %v634_v41, %v613_v40  ;;  %v622_v40 = vmul.f32 %v9179_v36, %v9179_v36 }
 0x267   :  { %v653_v63 = vadd.f32 %v652_v39, %v608_v51  ;;  %v626_v51 = vmul.f32 %v9185_v50, %v9185_v50 }
 0x268   :  { %v636_v53 = vadd.f32 %v635_v49, %v615_v47 }
 0x269   :  { %v654_v20 = vadd.f32 %v653_v63, %v610_v59 }
 0x26a   :  { %v637_v1 = vadd.f32 %v636_v53, %v617_v48 }
 0x26b   :  { %v655_v9 = vadd.f32 %v654_v20, %v612_v44 }
 0x26c   :  { %v638_v62 = vadd.f32 %v637_v1, %v619_v3 }
 0x26d   :  { %v656_v26 = vadd.f32 %v655_v9, %v614_v4 }
 0x26e   :  { %v639_v25 = vadd.f32 %v638_v62, %v621_v55 }
 0x26f   :  { %v657_v32 = vadd.f32 %v656_v26, %v616_v21  ;;  %v8807_v21 = vmov 1966171168  }
 0x270   :  { %v640_v29 = vadd.f32 %v639_v25, %v623_v16  ;;  %v679_v26 = vunpack.c.l.s4 %v8807_v21 }
 0x271   :  { %v658_v37 = vadd.f32 %v657_v32, %v618_v31 }
 0x272   :  { %v641_v33 = vadd.f32 %v640_v29, %v625_v28  ;;  %v681_v28 = vlaneseq  ;;  %v680_v29 = vunpack.c.0.s8 %v679_v26 }
 0x273   :  { %v659_v41 = vadd.f32 %v658_v37, %v620_v35 }
 0x274   :  { %v642_v38 = vrot.slane %v641_v33, 4  ;;  %v9241_v31 = vshrl.u32 %v681_v28, 7  ;;  %v8335_v28 = vld [vmem:[#allocation4 + $0x8] ss:$16 sps:$4 sm:$0xff]  }
 0x275   :  { %v660_v47 = vadd.f32 %v659_v41, %v622_v40  ;;  %v516_v40 = vld [vmem:[%s12741_s6 + $0x1] sm:$0x3] }
 0x276   :  { %v643_v45 = vadd.f32 %v642_v38, %v641_v33  ;;  %13041 = vst [vmem:[#allocation12_spill] sm:$0xff] %v9241_v31  ;;  %v9244_v33 = vsub.s32 %v680_v29, %v9241_v31 }
 0x277   :  { %v661_v39 = vadd.f32 %v660_v47, %v624_v46  ;;  %v9255_v46 = vsub.s32 1, %v9241_v31  ;;  %v517_v47 = vld [vmem:[%s12741_s6 + $0x3] sm:$0x3] }
 0x278   :  { %v644_v49 = vrot.slane %v643_v45, 2  ;;  %13042 = vst [vmem:[#allocation13_spill] sm:$0xff] %v9244_v33 }
 0x279   :  { %v662_v53 = vadd.f32 %v661_v39, %v626_v51  ;;  %13044 = vst [vmem:[#allocation15_spill] sm:$0xff] %v9255_v46 }
 0x27a   :  { %v645_v48 = vadd.f32 %v644_v49, %v643_v45  ;;  %v9252_v45 = vsub.s32 0, %v9241_v31 }
 0x27b   :  { %v663_v63 = vrot.slane %v662_v53, 4 }
 0x27c   :  { %v646_v59 = vrot.slane %v645_v48, 1  ;;  %13043 = vst [vmem:[#allocation14_spill] sm:$0xff] %v9252_v45 }
 0x27d   :  { %v664_v1 = vadd.f32 %v663_v63, %v662_v53  ;;  %v9270_v53 = vrot.slane %v517_v47, %v9255_v46 }
 0x27e   :  { %v647_v3 = vadd.f32 %v646_v59, %v645_v48  ;;  %v9267_v48 = vrot.slane %v517_v47, %v9252_v45 }
 0x27f   :  { %v665_v44 = vrot.slane %v664_v1, 2 }
 0x280   :  { %v669_v20 = vmul.f32 0.0078125, %v647_v3 }
 0x281   :  { %v666_v55 = vadd.f32 %v665_v44, %v664_v1 }
 0x282   :  { %v671_v4 = vadd.f32 0.8, %v669_v20 }
 0x283   :  { %v667_v62 = vrot.slane %v666_v55, 1 }
 0x284   :  { %8575 = vrsqrt.f32 %v671_v4 }
 0x285   :  { %v668_v9 = vadd.f32 %v667_v62, %v666_v55 }
 0x287   :  { %v670_v16 = vmul.f32 0.0078125, %v668_v9 }
 0x289   :  { %v672_v25 = vadd.f32 0.8, %v670_v16 }
 0x28b   :  { %8577 = vrsqrt.f32 %v672_v25 }
 0x28e   :  { %v8576_v32 = vpop.eup %8575 }
 0x295   :  { %v8578_v35 = vpop.eup %8577 }
 0x296   :  { %v677_v37 = vcombine.low %v8576_v32, %v8578_v35 }
 0x298   :  { %v684_v38 = vrot.slane %v677_v37, %v9244_v33 }
 0x29a   :  { %v691_v41 = vrot.slane %v684_v38, %v9244_v33  ;;  %v8340_v38 = vld [vmem:[#allocation4 + $0x2c] ss:$16 sps:$4 sm:$0xff]  }
 0x29b   :  { %v2257_v33 = vld [vmem:[#allocation6 + $0x88] sm:$0xff] }
 0x29c   :  { %v693_v49 = vmul.f32 %v691_v41, %v516_v40 }
 0x29e   :  { %v9261_v51 = vrot.slane %v693_v49, %v9252_v45  ;;  %v9264_v39 = vrot.slane %v693_v49, %v9255_v46  ;;  %v2261_v46 = vld [vmem:[#allocation6 + $0xa8] sm:$0xff] }
 0x2a0   :  { %v706_v59 = vmul.f32 %v9264_v39, %v9142_v5  ;;  %v708_v63 = vmul.f32 %v9264_v39, %v9145_v7  ;;  %v705_v3 = vmul.f32 %v9261_v51, %v9093_v52  ;;  %v707_v1 = vmul.f32 %v9261_v51, %v9096_v43 }
 0x2a1   :  { %v710_v44 = vmul.f32 %v9264_v39, %v9148_v8  ;;  %v712_v20 = vmul.f32 %v9264_v39, %v9151_v11  ;;  %v709_v7 = vmul.f32 %v9261_v51, %v9099_v54  ;;  %v711_v8 = vmul.f32 %v9261_v51, %v9102_v56 }
 0x2a2   :  { %v749_v55 = vadd.f32 %v9270_v53, %v706_v59  ;;  %v751_v62 = vadd.f32 %v9270_v53, %v708_v63  ;;  %v748_v5 = vadd.f32 %v9267_v48, %v705_v3  ;;  %v750_v52 = vadd.f32 %v9267_v48, %v707_v1 }
 0x2a3   :  { %v753_v4 = vadd.f32 %v9270_v53, %v710_v44  ;;  %v755_v43 = vadd.f32 %v9270_v53, %v712_v20  ;;  %v752_v40 = vadd.f32 %v9267_v48, %v709_v7  ;;  %v754_v41 = vadd.f32 %v9267_v48, %v711_v8  ;;  %v8338_v20 = vld [vmem:[#allocation4 + $0x28] ss:$16 sps:$4 sm:$0xff]  }
 0x2a4   :  { %vm781_vm1 = vcmp.gt.f32.partialorder %v749_v55, 0.0  ;;  %vm783_vm2 = vcmp.gt.f32.partialorder %v751_v62, 0.0  ;;  %v813_v11 = vmul.f32 0.2, %v749_v55  ;;  %v815_v9 = vmul.f32 0.2, %v751_v62 }
 0x2a5   :  { %vm780_vm3 = vcmp.gt.f32.partialorder %v748_v5, 0.0  ;;  %vm782_vm4 = vcmp.gt.f32.partialorder %v750_v52, 0.0  ;;  %v812_v16 = vmul.f32 0.2, %v748_v5  ;;  %v814_v25 = vmul.f32 0.2, %v750_v52 }
 0x2a6   :  { %v845_v21 = vsel %vm781_vm1, %v749_v55, %v813_v11  ;;  %v847_v26 = vsel %vm783_vm2, %v751_v62, %v815_v9  ;;  %vm785_vm5 = vcmp.gt.f32.partialorder %v753_v4, 0.0  ;;  %vm787_vm6 = vcmp.gt.f32.partialorder %v755_v43, 0.0 }
 0x2a7   :  { %v9294_v54 = vpack.c.bf16 %v847_v26, %v845_v21  ;;  %v844_v29 = vsel %vm780_vm3, %v748_v5, %v812_v16  ;;  %v846_v32 = vsel %vm782_vm4, %v750_v52, %v814_v25  ;;  %v817_v35 = vmul.f32 0.2, %v753_v4  ;;  %v8341_v16 = vld [vmem:[#allocation4 + $0x48] ss:$16 sps:$4 sm:$0xff]  }
 0x2a8   :  { %v9296_v37 = vpack.c.bf16 %v846_v32, %v844_v29  ;;  %v819_v56 = vmul.f32 0.2, %v755_v43  ;;  %v714_v49 = vmul.f32 %v9264_v39, %v9154_v13  ;;  %v716_v59 = vmul.f32 %v9264_v39, %v9157_v14  ;;  %v8343_v14 = vld [vmem:[#allocation4 + $0x4c] ss:$16 sps:$4 sm:$0xff]  }
 0x2a9   :  { %1308 = vmatprep.mubr.bf16.mxu1 %v9294_v54  ;;  %v849_v47 = vsel %vm785_vm5, %v753_v4, %v817_v35  ;;  %v713_v63 = vmul.f32 %v9261_v51, %v9105_v57  ;;  %vm784_vm7 = vcmp.gt.f32.partialorder %v752_v40, 0.0  ;;  %vm786_vm8 = vcmp.gt.f32.partialorder %v754_v41, 0.0 }
 0x2aa   :  { %1309 = vmatmul.mubr.bf16.vlgmr.msra.gmra.mrb[32].mxu1 %v9296_v37  ;;  %v851_v3 = vsel %vm787_vm6, %v755_v43, %v819_v56  ;;  %v816_v1 = vmul.f32 0.2, %v752_v40  ;;  %v818_v55 = vmul.f32 0.2, %v754_v41  ;;  %v757_v13 = vadd.f32 %v9270_v53, %v714_v49  ;;  %v8344_v49 = vld [vmem:[#allocation4 + $0x68] ss:$16 sps:$4 sm:$0xff]  }
 0x2ab   :  { %1390 = vmatpush1.bf16.msra.mxu1 %v8335_v28  ;;  %v9309_v44 = vpack.c.bf16 %v851_v3, %v849_v47  ;;  %v759_v62 = vadd.f32 %v9270_v53, %v716_v59  ;;  %v715_v57 = vmul.f32 %v9261_v51, %v9108_v58  ;;  %v756_v7 = vadd.f32 %v9267_v48, %v713_v63  ;;  %v8346_v28 = vld [vmem:[#allocation4 + $0x6c] ss:$16 sps:$4 sm:$0xff]  }
 0x2ac   :  { %1391 = vmatprep.subr.bf16.mxu1 %v8340_v38  ;;  %v848_v5 = vsel %vm784_vm7, %v752_v40, %v816_v1  ;;  %v718_v52 = vmul.f32 %v9264_v39, %v9160_v17  ;;  %v850_v4 = vsel %vm786_vm8, %v754_v41, %v818_v55  ;;  %vm789_vm9 = vcmp.gt.f32.partialorder %v757_v13, 0.0  ;;  %v8349_v63 = vld [vmem:[#allocation4 + $0x8c] ss:$16 sps:$4 sm:$0xff]  }
 0x2ad   :  { %1318 = vmatprep.mubr.bf16.mxu1 %v9309_v44  ;;  %vm791_vm10 = vcmp.gt.f32.partialorder %v759_v62, 0.0  ;;  %v821_v43 = vmul.f32 0.2, %v757_v13  ;;  %v9319_v8 = vpack.c.bf16 %v850_v4, %v848_v5  ;;  %v823_v11 = vmul.f32 0.2, %v759_v62 }
 0x2ae   :  { %v758_v9 = vadd.f32 %v9267_v48, %v715_v57  ;;  %vm788_vm11 = vcmp.gt.f32.partialorder %v756_v7, 0.0  ;;  %v820_v25 = vmul.f32 0.2, %v756_v7  ;;  %v720_v21 = vmul.f32 %v9264_v39, %v9163_v19 }
 0x2af   :  { %1392 = vmatpush1.bf16.msra.mxu1 %v8338_v20  ;;  %v853_v58 = vsel %vm789_vm9, %v757_v13, %v821_v43  ;;  %v761_v17 = vadd.f32 %v9270_v53, %v718_v52  ;;  %v855_v26 = vsel %vm791_vm10, %v759_v62, %v823_v11  ;;  %v717_v32 = vmul.f32 %v9261_v51, %v9111_v60  ;;  %v8352_v52 = vld [vmem:[#allocation4 + $0xac] ss:$16 sps:$4 sm:$0xff]  }
 0x2b0   :  { %1393 = vmatprep.subr.bf16.mxu1 %v8343_v14  ;;  %vm790_vm12 = vcmp.gt.f32.partialorder %v758_v9, 0.0  ;;  %v822_v29 = vmul.f32 0.2, %v758_v9  ;;  %v9327_v35 = vpack.c.bf16 %v855_v26, %v853_v58  ;;  %v852_v56 = vsel %vm788_vm11, %v756_v7, %v820_v25  ;;  %v8347_v14 = vld [vmem:[#allocation4 + $0x88] ss:$16 sps:$4 sm:$0xff]  }
 0x2b1   :  { %v763_v38 = vadd.f32 %v9270_v53, %v720_v21  ;;  %v825_v41 = vmul.f32 0.2, %v761_v17  ;;  %v719_v19 = vmul.f32 %v9261_v51, %v9114_v0  ;;  %v760_v47 = vadd.f32 %v9267_v48, %v717_v32 }
 0x2b2   :  { %1319 = vmatmul.mubr.bf16.gmra.mrb[36].mxu1 %v9319_v8  ;;  %v854_v40 = vsel %vm790_vm12, %v758_v9, %v822_v29  ;;  %vm793_vm13 = vcmp.gt.f32.partialorder %v761_v17, 0.0  ;;  %v722_v59 = vmul.f32 %v9264_v39, %v9166_v6  ;;  %v724_v0 = vmul.f32 %v9264_v39, %v9169_v12 }
 0x2b3   :  { %1394 = vmatpush1.bf16.msra.mxu1 %v8341_v16  ;;  %1328 = vmatprep.mubr.bf16.mxu1 %v9327_v35  ;;  %vm795_vm14 = vcmp.gt.f32.partialorder %v763_v38, 0.0  ;;  %v827_v60 = vmul.f32 0.2, %v763_v38  ;;  %v762_v3 = vadd.f32 %v9267_v48, %v719_v19  ;;  %v9338_v1 = vpack.c.bf16 %v854_v40, %v852_v56  ;;  %v8358_v56 = vld [vmem:[#allocation4 + $0xec] ss:$16 sps:$4 sm:$0xff]  }
 0x2b4   :  { %1395 = vmatprep.subr.bf16.mxu1 %v8346_v28  ;;  %v765_v20 = vadd.f32 %v9270_v53, %v722_v59  ;;  %v857_v55 = vsel %vm793_vm13, %v761_v17, %v825_v41  ;;  %vm792_vm15 = vcmp.gt.f32.partialorder %v760_v47, 0.0  ;;  %v721_v62 = vmul.f32 %v9261_v51, %v9117_v2  ;;  %v8353_v28 = vld [vmem:[#allocation4 + $0xc8] ss:$16 sps:$4 sm:$0xff]  }
 0x2b5   :  { %v859_v13 = vsel %vm795_vm14, %v763_v38, %v827_v60  ;;  %v824_v6 = vmul.f32 0.2, %v760_v47  ;;  %v826_v5 = vmul.f32 0.2, %v762_v3  ;;  %v767_v57 = vadd.f32 %v9270_v53, %v724_v0  ;;  %v8361_v0 = vld [vmem:[#allocation4 + $0x10c] ss:$16 sps:$4 sm:$0xff]  }
 0x2b6   :  { %v723_v7 = vmul.f32 %v9261_v51, %v9119_v10  ;;  %vm794_vm0 = vcmp.gt.f32.partialorder %v762_v3, 0.0  ;;  %v829_v12 = vmul.f32 0.2, %v765_v20  ;;  %v726_v4 = vmul.f32 %v9264_v39, %v9172_v18  ;;  %v8350_v10 = vld [vmem:[#allocation4 + $0xa8] ss:$16 sps:$4 sm:$0xff]  }
 0x2b7   :  { %1396 = vmatpush1.bf16.msra.mxu1 %v8344_v49  ;;  %v728_v43 = vmul.f32 %v9264_v39, %v9175_v24  ;;  %v9352_v2 = vpack.c.bf16 %v859_v13, %v857_v55  ;;  %vm797_vm1 = vcmp.gt.f32.partialorder %v765_v20, 0.0  ;;  %vm799_vm2 = vcmp.gt.f32.partialorder %v767_v57, 0.0  ;;  %v8355_v24 = vld [vmem:[#allocation4 + $0xcc] ss:$16 sps:$4 sm:$0xff]  }
 0x2b8   :  { %1397 = vmatprep.subr.bf16.mxu1 %v8349_v63  ;;  %v831_v11 = vmul.f32 0.2, %v767_v57  ;;  %v764_v9 = vadd.f32 %v9267_v48, %v721_v62  ;;  %v856_v16 = vsel %vm792_vm15, %v760_v47, %v824_v6  ;;  %v858_v58 = vsel %vm794_vm0, %v762_v3, %v826_v5  ;;  %v8359_v62 = vld [vmem:[#allocation4 + $0x108] ss:$16 sps:$4 sm:$0xff]   ;;  %v8364_v5 = vld [vmem:[#allocation4 + $0x12c] ss:$16 sps:$4 sm:$0xff]  }
 0x2b9   :  { %v766_v18 = vadd.f32 %v9267_v48, %v723_v7  ;;  %v861_v25 = vsel %vm797_vm1, %v765_v20, %v829_v12  ;;  %v769_v17 = vadd.f32 %v9270_v53, %v726_v4  ;;  %v771_v26 = vadd.f32 %v9270_v53, %v728_v43 }
 0x2ba   :  { %1329 = vmatmul.mubr.bf16.gmra.mrb[40].mxu1 %v9338_v1  ;;  %v863_v21 = vsel %vm799_vm2, %v767_v57, %v831_v11  ;;  %v9361_v29 = vpack.c.bf16 %v858_v58, %v856_v16  ;;  %vm796_vm3 = vcmp.gt.f32.partialorder %v764_v9, 0.0  ;;  %v828_v38 = vmul.f32 0.2, %v764_v9 }
 0x2bb   :  { %1398 = vmatpush1.bf16.msra.mxu1 %v8347_v14  ;;  %1338 = vmatprep.mubr.bf16.mxu1 %v9352_v2  ;;  %v9363_v32 = vpack.c.bf16 %v863_v21, %v861_v25  ;;  %v830_v40 = vmul.f32 0.2, %v766_v18  ;;  %v725_v41 = vmul.f32 %v9261_v51, %v9121_v61  ;;  %vm798_vm4 = vcmp.gt.f32.partialorder %v766_v18, 0.0  ;;  %v8356_v61 = vld [vmem:[#allocation4 + $0xe8] ss:$16 sps:$4 sm:$0xff]  }
 0x2bc   :  { %1399 = vmatprep.subr.bf16.mxu1 %v8352_v52  ;;  %v833_v19 = vmul.f32 0.2, %v769_v17  ;;  %v835_v47 = vmul.f32 0.2, %v771_v26  ;;  %v727_v49 = vmul.f32 %v9261_v51, %v9123_v15  ;;  %vm801_vm5 = vcmp.gt.f32.partialorder %v769_v17, 0.0 }
 0x2bd   :  { %vm803_vm6 = vcmp.gt.f32.partialorder %v771_v26, 0.0  ;;  %v730_v60 = vmul.f32 %v9264_v39, %v9177_v30  ;;  %v732_v59 = vmul.f32 %v9264_v39, %v9179_v36  ;;  %v860_v63 = vsel %vm796_vm3, %v764_v9, %v828_v38 }
 0x2be   :  { %v862_v3 = vsel %vm798_vm4, %v766_v18, %v830_v40  ;;  %v865_v15 = vsel %vm801_vm5, %v769_v17, %v833_v19  ;;  %v867_v20 = vsel %vm803_vm6, %v771_v26, %v835_v47  ;;  %v768_v55 = vadd.f32 %v9267_v48, %v725_v41  ;;  %v8370_v26 = vld [vmem:[#allocation4 + $0x16c] ss:$16 sps:$4 sm:$0xff]   ;;  %v8368_v19 = vld [vmem:[#allocation4 + $0x168] ss:$16 sps:$4 sm:$0xff]  }
 0x2bf   :  { %1400 = vmatpush1.bf16.msra.mxu1 %v8350_v10  ;;  %v770_v30 = vadd.f32 %v9267_v48, %v727_v49  ;;  %v773_v13 = vadd.f32 %v9270_v53, %v730_v60  ;;  %v775_v36 = vadd.f32 %v9270_v53, %v732_v59  ;;  %v9380_v14 = vpack.c.bf16 %v862_v3, %v860_v63  ;;  %v8367_v10 = vld [vmem:[#allocation4 + $0x14c] ss:$16 sps:$4 sm:$0xff]  }
 0x2c0   :  { %1401 = vmatprep.subr.bf16.mxu1 %v8355_v24  ;;  %v9382_v6 = vpack.c.bf16 %v867_v20, %v865_v15  ;;  %vm800_vm7 = vcmp.gt.f32.partialorder %v768_v55, 0.0  ;;  %v832_v57 = vmul.f32 0.2, %v768_v55  ;;  %v729_v52 = vmul.f32 %v9261_v51, %v9125_v22  ;;  %v8362_v22 = vld [vmem:[#allocation4 + $0x128] ss:$16 sps:$4 sm:$0xff]  }
 0x2c1   :  { %v834_v7 = vmul.f32 0.2, %v770_v30  ;;  %vm802_vm8 = vcmp.gt.f32.partialorder %v770_v30, 0.0  ;;  %v837_v12 = vmul.f32 0.2, %v773_v13  ;;  %v731_v43 = vmul.f32 %v9261_v51, %v9127_v42 }
 0x2c2   :  { %1339 = vmatmul.mubr.bf16.gmra.mrb[44].mxu1 %v9361_v29  ;;  %v839_v4 = vmul.f32 0.2, %v775_v36  ;;  %v736_v11 = vmul.f32 %v9264_v39, %v9185_v50  ;;  %vm805_vm9 = vcmp.gt.f32.partialorder %v773_v13, 0.0  ;;  %vm807_vm10 = vcmp.gt.f32.partialorder %v775_v36, 0.0  ;;  %v8373_v47 = vld [vmem:[#allocation4 + $0x18c] ss:$16 sps:$4 sm:$0xff]  }
 0x2c3   :  { %1402 = vmatpush1.bf16.msra.mxu1 %v8353_v28  ;;  %1348 = vmatprep.mubr.bf16.mxu1 %v9363_v32  ;;  %v734_v9 = vmul.f32 %v9264_v39, %v9183_v23  ;;  %v864_v16 = vsel %vm800_vm7, %v768_v55, %v832_v57  ;;  %v866_v58 = vsel %vm802_vm8, %v770_v30, %v834_v7  ;;  %v8365_v23 = vld [vmem:[#allocation4 + $0x148] ss:$16 sps:$4 sm:$0xff]   ;;  %v8376_v3 = vld [vmem:[#allocation4 + $0x1ac] ss:$16 sps:$4 sm:$0xff]  }
 0x2c4   :  { %1403 = vmatprep.subr.bf16.mxu1 %v8358_v56  ;;  %v869_v42 = vsel %vm805_vm9, %v773_v13, %v837_v12  ;;  %v871_v18 = vsel %vm807_vm10, %v775_v36, %v839_v4  ;;  %v772_v50 = vadd.f32 %v9267_v48, %v729_v52  ;;  %v774_v24 = vadd.f32 %v9267_v48, %v731_v43  ;;  %v8374_v55 = vld [vmem:[#allocation4 + $0x1a8] ss:$16 sps:$4 sm:$0xff]   ;;  %v8379_v30 = vld [vmem:[#allocation4 + $0x1cc] ss:$16 sps:$4 sm:$0xff]  }
 0x2c5   :  { %v779_v25 = vadd.f32 %v9270_v53, %v736_v11  ;;  %v777_v21 = vadd.f32 %v9270_v53, %v734_v9  ;;  %v9399_v39 = vpack.c.bf16 %v866_v58, %v864_v16  ;;  %v9401_v17 = vpack.c.bf16 %v871_v18, %v869_v42  ;;  %v8377_v36 = vld [vmem:[#allocation4 + $0x1c8] ss:$16 sps:$4 sm:$0xff]  }
 0x2c6   :  { %v836_v28 = vmul.f32 0.2, %v772_v50  ;;  %v838_v56 = vmul.f32 0.2, %v774_v24  ;;  %v733_v38 = vmul.f32 %v9261_v51, %v9129_v27  ;;  %v735_v40 = vmul.f32 %v9261_v51, %v9131_v34  ;;  %v8380_v57 = vld [vmem:[#allocation4 + $0x1e8] ss:$16 sps:$4 sm:$0xff]  }
 0x2c7   :  { %1404 = vmatpush1.bf16.msra.mxu1 %v8356_v61  ;;  %vm804_vm11 = vcmp.gt.f32.partialorder %v772_v50, 0.0  ;;  %vm806_vm12 = vcmp.gt.f32.partialorder %v774_v24, 0.0  ;;  %v841_v53 = vmul.f32 0.2, %v777_v21  ;;  %v843_v41 = vmul.f32 0.2, %v779_v25 }
 0x2c8   :  { %1405 = vmatprep.subr.bf16.mxu1 %v8361_v0  ;;  %vm809_vm13 = vcmp.gt.f32.partialorder %v777_v21, 0.0  ;;  %vm811_vm14 = vcmp.gt.f32.partialorder %v779_v25, 0.0  ;;  %v868_v49 = vsel %vm804_vm11, %v772_v50, %v836_v28  ;;  %v870_v60 = vsel %vm806_vm12, %v774_v24, %v838_v56  ;;  %v8371_v61 = vld [vmem:[#allocation4 + $0x188] ss:$16 sps:$4 sm:$0xff]  }
 0x2c9   :  { %v776_v27 = vadd.f32 %v9267_v48, %v733_v38  ;;  %v778_v34 = vadd.f32 %v9267_v48, %v735_v40  ;;  %v873_v51 = vsel %vm809_vm13, %v777_v21, %v841_v53  ;;  %v875_v59 = vsel %vm811_vm14, %v779_v25, %v843_v41 }
 0x2ca   :  { %1349 = vmatmul.mubr.bf16.gmra.mrb[48].mxu1 %v9380_v14  ;;  %v888_v63 = vpack.c.bf16 %v870_v60, %v868_v49  ;;  %v891_v0 = vpack.c.bf16 %v875_v59, %v873_v51 }
 0x2cb   :  { %1406 = vmatpush1.bf16.msra.mxu1 %v8359_v62  ;;  %1358 = vmatprep.mubr.bf16.mxu1 %v9382_v6  ;;  %v840_v15 = vmul.f32 0.2, %v776_v27  ;;  %v842_v20 = vmul.f32 0.2, %v778_v34  ;;  %vm808_vm15 = vcmp.gt.f32.partialorder %v776_v27, 0.0  ;;  %vm810_vm0 = vcmp.gt.f32.partialorder %v778_v34, 0.0 }
 0x2cc   :  { %1407 = vmatprep.subr.bf16.mxu1 %v8364_v5  ;;  %v8382_v5 = vld [vmem:[#allocation4 + $0x1ec] ss:$16 sps:$4 sm:$0xff]  }
 0x2cd   :  { %v872_v13 = vsel %vm808_vm15, %v776_v27, %v840_v15  ;;  %v874_v48 = vsel %vm810_vm0, %v778_v34, %v842_v20 }
 0x2ce   :  { %v890_v62 = vpack.c.bf16 %v874_v48, %v872_v13 }
 0x2cf   :  { %1408 = vmatpush1.bf16.msra.mxu1 %v8362_v22 }
 0x2d0   :  { %1409 = vmatprep.subr.bf16.mxu1 %v8367_v10 }
 0x2d2   :  { %1359 = vmatmul.mubr.bf16.gmra.mrb[52].mxu1 %v9399_v39 }
 0x2d3   :  { %1410 = vmatpush1.bf16.msra.mxu1 %v8365_v23  ;;  %1368 = vmatprep.mubr.bf16.mxu1 %v9401_v17 }
 0x2d4   :  { %1411 = vmatprep.subr.bf16.mxu1 %v8370_v26 }
 0x2d7   :  { %1412 = vmatpush1.bf16.msra.mxu1 %v8368_v19 }
 0x2d8   :  { %1413 = vmatprep.subr.bf16.mxu1 %v8373_v47 }
 0x2da   :  { %1369 = vmatmul.mubr.bf16.gmra.mrb[56].mxu1 %v888_v63 }
 0x2db   :  { %1414 = vmatpush1.bf16.msra.mxu1 %v8371_v61  ;;  %1378 = vmatprep.mubr.bf16.mxu1 %v891_v0 }
 0x2dc   :  { %1415 = vmatprep.subr.bf16.mxu1 %v8376_v3 }
 0x2df   :  { %1416 = vmatpush1.bf16.msra.mxu1 %v8374_v55 }
 0x2e0   :  { %1417 = vmatprep.subr.bf16.mxu1 %v8379_v30 }
 0x2e2   :  { %1379 = vmatmul.mubr.bf16.gmra.mrb[60].mxu1 %v890_v62 }
 0x2e3   :  { %1418 = vmatpush1.bf16.msra.mxu1 %v8377_v36  ;;  %1421 = vmatprep.mubr.bf16.mxu1 %v9294_v54 }
 0x2e4   :  { %1419 = vmatprep.subr.bf16.mxu1 %v8382_v5 }
 0x2e7   :  { %1420 = vmatpush1.bf16.msra.mxu1 %v8380_v57 }
 0x2ea   :  { %1422 = vmatmul.mubr.bf16.vlgmr.msra.gmra.mrb[64].mxu1 %v9296_v37 }
 0x2eb   :  { %1431 = vmatprep.mubr.bf16.mxu1 %v9309_v44 }
 0x2f2   :  { %1432 = vmatmul.mubr.bf16.gmra.mrb[68].mxu1 %v9319_v8 }
 0x2f3   :  { %1441 = vmatprep.mubr.bf16.mxu1 %v9327_v35 }
 0x2fa   :  { %1442 = vmatmul.mubr.bf16.gmra.mrb[72].mxu1 %v9338_v1 }
 0x2fb   :  { %1451 = vmatprep.mubr.bf16.mxu1 %v9352_v2 }
 0x302   :  { %1452 = vmatmul.mubr.bf16.gmra.mrb[76].mxu1 %v9361_v29 }
 0x303   :  { %1461 = vmatprep.mubr.bf16.mxu1 %v9363_v32 }
 0x30a   :  { %1462 = vmatmul.mubr.bf16.gmra.mrb[80].mxu1 %v9380_v14 }
 0x30b   :  { %1471 = vmatprep.mubr.bf16.mxu1 %v9382_v6 }
 0x312   :  { %1472 = vmatmul.mubr.bf16.gmra.mrb[84].mxu1 %v9399_v39 }
 0x313   :  { %1481 = vmatprep.mubr.bf16.mxu1 %v9401_v17 }
 0x31a   :  { %1482 = vmatmul.mubr.bf16.gmra.mrb[88].mxu1 %v888_v63 }
 0x31b   :  { %1491 = vmatprep.mubr.bf16.mxu1 %v891_v0 }
 0x322   :  { %1492 = vmatmul.mubr.bf16.gmra.mrb[92].mxu1 %v890_v62 }
 0x37d   :  { %v9424_v54 = vpop.f32.mrb[32].mxu1 }
 0x37e   :  { %v9426_v37 = vpop.f32.mrb[33].mxu1 }
 0x37f   :  { %v9428_v44 = vpop.f32.mrb[34].mxu1 }
 0x380   :  { %v1504_v8 = vadd.f32 %v9428_v44, %v9424_v54  ;;  %v9432_v35 = vpop.f32.mrb[35].mxu1 }
 0x381   :  { %v1525_v1 = vadd.f32 %v9432_v35, %v9426_v37 }
 0x385   :  { %v9436_v2 = vpop.f32.mrb[36].mxu1 }
 0x386   :  { %v1505_v29 = vadd.f32 %v1504_v8, %v9436_v2  ;;  %v9439_v32 = vpop.f32.mrb[37].mxu1 }
 0x387   :  { %v1526_v14 = vadd.f32 %v1525_v1, %v9439_v32  ;;  %v9442_v6 = vpop.f32.mrb[38].mxu1 }
 0x388   :  { %v1506_v7 = vadd.f32 %v1505_v29, %v9442_v6  ;;  %v9445_v52 = vpop.f32.mrb[39].mxu1 }
 0x389   :  { %v1527_v12 = vadd.f32 %v1526_v14, %v9445_v52 }
 0x38d   :  { %v9448_v4 = vpop.f32.mrb[40].mxu1 }
 0x38e   :  { %v1507_v43 = vadd.f32 %v1506_v7, %v9448_v4  ;;  %v9451_v11 = vpop.f32.mrb[41].mxu1 }
 0x38f   :  { %v1528_v9 = vadd.f32 %v1527_v12, %v9451_v11  ;;  %v9454_v22 = vpop.f32.mrb[42].mxu1 }
 0x390   :  { %v1508_v10 = vadd.f32 %v1507_v43, %v9454_v22  ;;  %v9457_v16 = vpop.f32.mrb[43].mxu1 }
 0x391   :  { %v1529_v58 = vadd.f32 %v1528_v9, %v9457_v16 }
 0x395   :  { %v9460_v42 = vpop.f32.mrb[44].mxu1 }
 0x396   :  { %v1509_v18 = vadd.f32 %v1508_v10, %v9460_v42  ;;  %v9463_v50 = vpop.f32.mrb[45].mxu1 }
 0x397   :  { %v1530_v24 = vadd.f32 %v1529_v58, %v9463_v50  ;;  %v9466_v25 = vpop.f32.mrb[46].mxu1 }
 0x398   :  { %v1510_v21 = vadd.f32 %v1509_v18, %v9466_v25  ;;  %v9469_v23 = vpop.f32.mrb[47].mxu1 }
 0x399   :  { %v1531_v39 = vadd.f32 %v1530_v24, %v9469_v23 }
 0x39d   :  { %v9472_v17 = vpop.f32.mrb[48].mxu1 }
 0x39e   :  { %v1511_v26 = vadd.f32 %v1510_v21, %v9472_v17  ;;  %v9475_v28 = vpop.f32.mrb[49].mxu1 }
 0x39f   :  { %v1532_v56 = vadd.f32 %v1531_v39, %v9475_v28  ;;  %v9478_v38 = vpop.f32.mrb[50].mxu1 }
 0x3a0   :  { %v1512_v40 = vadd.f32 %v1511_v26, %v9478_v38  ;;  %v9481_v53 = vpop.f32.mrb[51].mxu1 }
 0x3a1   :  { %v1533_v41 = vadd.f32 %v1532_v56, %v9481_v53 }
 0x3a5   :  { %v9484_v19 = vpop.f32.mrb[52].mxu1 }
 0x3a6   :  { %v1513_v47 = vadd.f32 %v1512_v40, %v9484_v19  ;;  %v9487_v49 = vpop.f32.mrb[53].mxu1  ;;  %v2240_v40 = vld [vmem:[#allocation6] sm:$0xff] }
 0x3a7   :  { %v1534_v60 = vadd.f32 %v1533_v41, %v9487_v49  ;;  %v9490_v27 = vpop.f32.mrb[54].mxu1  ;;  %v2244_v41 = vld [vmem:[#allocation6 + $0x20] sm:$0xff] }
 0x3a8   :  { %v1514_v34 = vadd.f32 %v1513_v47, %v9490_v27  ;;  %v9493_v51 = vpop.f32.mrb[55].mxu1  ;;  %v2241_v47 = vld [vmem:[#allocation6 + $0x8] sm:$0xff] }
 0x3a9   :  { %v1535_v59 = vadd.f32 %v1534_v60, %v9493_v51 }
 0x3ad   :  { %v9496_v61 = vpop.f32.mrb[56].mxu1 }
 0x3ae   :  { %v1515_v63 = vadd.f32 %v1514_v34, %v9496_v61  ;;  %v9499_v3 = vpop.f32.mrb[57].mxu1  ;;  %v7546_v34 = vcombine.high %v2240_v40, %v2244_v41 }
 0x3af   :  { %v1536_v0 = vadd.f32 %v1535_v59, %v9499_v3  ;;  %v9502_v15 = vpop.f32.mrb[58].mxu1  ;;  %v2245_v59 = vld [vmem:[#allocation6 + $0x28] sm:$0xff] }
 0x3b0   :  { %v1516_v20 = vadd.f32 %v1515_v63, %v9502_v15  ;;  %v9505_v55 = vpop.f32.mrb[59].mxu1  ;;  %3776 = vmatprep.subr.bf16.mxu0 %v7546_v34 }
 0x3b1   :  { %v1537_v30 = vadd.f32 %v1536_v0, %v9505_v55  ;;  %v7545_v0 = vcombine.low %v2240_v40, %v2244_v41 }
 0x3b3   :  { %3777 = vmatpush1.bf16.msra.mxu0 %v7545_v0 }
 0x3b5   :  { %v9508_v13 = vpop.f32.mrb[60].mxu1 }
 0x3b6   :  { %v1517_v48 = vadd.f32 %v1516_v20, %v9508_v13  ;;  %v9511_v36 = vpop.f32.mrb[61].mxu1  ;;  %v7547_v20 = vcombine.low %v2241_v47, %v2245_v59 }
 0x3b7   :  { %v1538_v62 = vadd.f32 %v1537_v30, %v9511_v36  ;;  %v1384_v5 = vpop.f32.mrb[62].mxu1  ;;  %v7548_v30 = vcombine.high %v2241_v47, %v2245_v59 }
 0x3b8   :  { %v1518_v57 = vadd.f32 %v1517_v48, %v1384_v5  ;;  %v9514_v8 = vpop.f32.mrb[63].mxu1 }
 0x3b9   :  { %v1539_v1 = vadd.f32 %v1538_v62, %v9514_v8  ;;  %4002 = vmatprep.subr.bf16.mxu1 %v7548_v30 }
 0x3ba   :  { %v1519_v29 = vrot.slane %v1518_v57, 4  ;;  %4003 = vmatpush1.bf16.msra.mxu1 %v7547_v20 }
 0x3bb   :  { %v1540_v14 = vrot.slane %v1539_v1, 4 }
 0x3bc   :  { %v1520_v7 = vadd.f32 %v1519_v29, %v1518_v57  ;;  %v2248_v57 = vld [vmem:[#allocation6 + $0x40] sm:$0xff] }
 0x3bd   :  { %v1541_v12 = vadd.f32 %v1540_v14, %v1539_v1  ;;  %v9517_v43 = vpop.f32.mrb[64].mxu1  ;;  %v2252_v1 = vld [vmem:[#allocation6 + $0x60] sm:$0xff] }
 0x3be   :  { %v1521_v9 = vrot.slane %v1520_v7, 2  ;;  %v9519_v10 = vpop.f32.mrb[65].mxu1 }
 0x3bf   :  { %v1542_v58 = vrot.slane %v1541_v12, 2  ;;  %v9521_v18 = vpop.f32.mrb[66].mxu1 }
 0x3c0   :  { %v1522_v24 = vadd.f32 %v1521_v9, %v1520_v7  ;;  %v1546_v21 = vadd.f32 %v9521_v18, %v9517_v43  ;;  %v9525_v39 = vpop.f32.mrb[67].mxu1 }
 0x3c1   :  { %v1543_v26 = vadd.f32 %v1542_v58, %v1541_v12  ;;  %v1567_v56 = vadd.f32 %v9525_v39, %v9519_v10  ;;  %v7554_v12 = vcombine.high %v2248_v57, %v2252_v1 }
 0x3c2   :  { %v1523_v60 = vrot.slane %v1522_v24, 1 }
 0x3c3   :  { %v1544_v63 = vrot.slane %v1543_v26, 1  ;;  %3778 = vmatprep.subr.bf16.mxu0 %v7554_v12 }
 0x3c4   :  { %v1524_v48 = vadd.f32 %v1523_v60, %v1522_v24  ;;  %v7553_v24 = vcombine.low %v2248_v57, %v2252_v1  ;;  %v2253_v1 = vld [vmem:[#allocation6 + $0x68] sm:$0xff] }
 0x3c5   :  { %v9529_v62 = vpop.f32.mrb[68].mxu1  ;;  %v1545_v9 = vadd.f32 %v1544_v63, %v1543_v26 }
 0x3c6   :  { %v1588_v29 = vmul.f32 0.0078125, %v1524_v48  ;;  %v1547_v14 = vadd.f32 %v1546_v21, %v9529_v62  ;;  %v9532_v7 = vpop.f32.mrb[69].mxu1  ;;  %3779 = vmatpush1.bf16.msra.mxu0 %v7553_v24 }
 0x3c7   :  { %v1568_v58 = vadd.f32 %v1567_v56, %v9532_v7  ;;  %v9535_v40 = vpop.f32.mrb[70].mxu1  ;;  %v1589_v63 = vmul.f32 0.0078125, %v1545_v9 }
 0x3c8   :  { %v9538_v41 = vsub.f32 %v9424_v54, %v1588_v29  ;;  %v9541_v47 = vsub.f32 %v9428_v44, %v1588_v29  ;;  %v9544_v60 = vsub.f32 %v9436_v2, %v1588_v29  ;;  %v9547_v21 = vsub.f32 %v9442_v6, %v1588_v29  ;;  %v9549_v34 = vpop.f32.mrb[71].mxu1 }
 0x3c9   :  { %v9552_v26 = vsub.f32 %v9448_v4, %v1588_v29  ;;  %v9555_v56 = vsub.f32 %v9454_v22, %v1588_v29  ;;  %v9558_v54 = vsub.f32 %v9460_v42, %v1588_v29  ;;  %v9561_v44 = vsub.f32 %v9466_v25, %v1588_v29 }
 0x3ca   :  { %13045 = vst [vmem:[#allocation16_spill] sm:$0xff] %v9538_v41  ;;  %13046 = vst [vmem:[#allocation17_spill] sm:$0xff] %v9541_v47  ;;  %v9564_v2 = vsub.f32 %v9472_v17, %v1588_v29  ;;  %v9567_v6 = vsub.f32 %v9478_v38, %v1588_v29  ;;  %v9570_v59 = vsub.f32 %v9484_v19, %v1588_v29 }
 0x3cb   :  { %13047 = vst [vmem:[#allocation18_spill] sm:$0xff] %v9544_v60  ;;  %13048 = vst [vmem:[#allocation19_spill] sm:$0xff] %v9547_v21  ;;  %v9573_v4 = vsub.f32 %v9490_v27, %v1588_v29  ;;  %v9576_v22 = vsub.f32 %v9496_v61, %v1588_v29  ;;  %v9579_v42 = vsub.f32 %v9502_v15, %v1588_v29 }
 0x3cc   :  { %13049 = vst [vmem:[#allocation20_spill] sm:$0xff] %v9552_v26  ;;  %13050 = vst [vmem:[#allocation21_spill] sm:$0xff] %v9555_v56  ;;  %v9582_v25 = vsub.f32 %v9508_v13, %v1588_v29  ;;  %v9584_v17 = vsub.f32 %v1384_v5, %v1588_v29  ;;  %v9593_v27 = vsub.f32 %v9426_v37, %v1589_v63  ;;  %v2256_v29 = vld [vmem:[#allocation6 + $0x80] sm:$0xff] }
 0x3cd   :  { %13051 = vst [vmem:[#allocation22_spill] sm:$0xff] %v9558_v54  ;;  %13052 = vst [vmem:[#allocation23_spill] sm:$0xff] %v9561_v44  ;;  %v9586_v38 = vpop.f32.mrb[72].mxu1  ;;  %v9596_v61 = vsub.f32 %v9432_v35, %v1589_v63  ;;  %v9599_v15 = vsub.f32 %v9439_v32, %v1589_v63  ;;  %v9604_v5 = vsub.f32 %v9445_v52, %v1589_v63 }
 0x3ce   :  { %13053 = vst [vmem:[#allocation24_spill] sm:$0xff] %v9564_v2  ;;  %13054 = vst [vmem:[#allocation25_spill] sm:$0xff] %v9567_v6  ;;  %v9588_v0 = vpop.f32.mrb[73].mxu1  ;;  %v9607_v20 = vsub.f32 %v9451_v11, %v1589_v63  ;;  %v9610_v30 = vsub.f32 %v9457_v16, %v1589_v63  ;;  %v9613_v37 = vsub.f32 %v9463_v50, %v1589_v63 }
 0x3cf   :  { %13055 = vst [vmem:[#allocation26_spill] sm:$0xff] %v9570_v59  ;;  %13056 = vst [vmem:[#allocation27_spill] sm:$0xff] %v9573_v4  ;;  %v9590_v19 = vpop.f32.mrb[74].mxu1  ;;  %v9616_v35 = vsub.f32 %v9469_v23, %v1589_v63  ;;  %v9619_v32 = vsub.f32 %v9475_v28, %v1589_v63  ;;  %v9622_v48 = vsub.f32 %v9481_v53, %v1589_v63 }
 0x3d0   :  { %13057 = vst [vmem:[#allocation28_spill] sm:$0xff] %v9576_v22  ;;  %13058 = vst [vmem:[#allocation29_spill] sm:$0xff] %v9582_v25  ;;  %v9601_v13 = vpop.f32.mrb[75].mxu1  ;;  %v9625_v52 = vsub.f32 %v9487_v49, %v1589_v63  ;;  %v9628_v11 = vsub.f32 %v9493_v51, %v1589_v63  ;;  %v9631_v16 = vsub.f32 %v9499_v3, %v1589_v63  ;;  %v2249_v49 = vld [vmem:[#allocation6 + $0x48] sm:$0xff] }
 0x3d1   :  { %13059 = vst [vmem:[#allocation30_spill] sm:$0xff] %v9584_v17  ;;  %13060 = vst [vmem:[#allocation31_spill] sm:$0xff] %v9593_v27  ;;  %v9634_v50 = vsub.f32 %v9505_v55, %v1589_v63  ;;  %v9637_v23 = vsub.f32 %v9511_v36, %v1589_v63  ;;  %v9640_v28 = vsub.f32 %v9514_v8, %v1589_v63  ;;  %v2260_v36 = vld [vmem:[#allocation6 + $0xa0] sm:$0xff] }
 0x3d2   :  { %13061 = vst [vmem:[#allocation32_spill] sm:$0xff] %v9596_v61  ;;  %13062 = vst [vmem:[#allocation33_spill] sm:$0xff] %v9599_v15  ;;  %v1656_v51 = vmul.f32 %v9538_v41, %v9538_v41  ;;  %v1660_v3 = vmul.f32 %v9541_v47, %v9541_v47  ;;  %v1657_v8 = vmul.f32 %v9593_v27, %v9593_v27 }
 0x3d3   :  { %13063 = vst [vmem:[#allocation34_spill] sm:$0xff] %v9604_v5  ;;  %13064 = vst [vmem:[#allocation35_spill] sm:$0xff] %v9607_v20  ;;  %v1661_v12 = vmul.f32 %v9596_v61, %v9596_v61  ;;  %v1548_v24 = vadd.f32 %v1547_v14, %v9535_v40  ;;  %v1569_v63 = vadd.f32 %v1568_v58, %v9549_v34 }
 0x3d4   :  { %13065 = vst [vmem:[#allocation36_spill] sm:$0xff] %v9610_v30  ;;  %13066 = vst [vmem:[#allocation37_spill] sm:$0xff] %v9613_v37  ;;  %v7555_v41 = vcombine.low %v2249_v49, %v2253_v1  ;;  %v7556_v47 = vcombine.high %v2249_v49, %v2253_v1  ;;  %v7561_v45 = vcombine.low %v2256_v29, %v2260_v36  ;;  %v2264_v1 = vld [vmem:[#allocation6 + $0xc0] sm:$0xff] }
 0x3d5   :  { %13067 = vst [vmem:[#allocation38_spill] sm:$0xff] %v9616_v35  ;;  %13068 = vst [vmem:[#allocation39_spill] sm:$0xff] %v9619_v32  ;;  %v9642_v53 = vpop.f32.mrb[76].mxu1  ;;  %v7562_v31 = vcombine.high %v2256_v29, %v2260_v36  ;;  %v1549_v17 = vadd.f32 %v1548_v24, %v9586_v38  ;;  %v1570_v27 = vadd.f32 %v1569_v63, %v9588_v0 }
 0x3d6   :  { %13069 = vst [vmem:[#allocation40_spill] sm:$0xff] %v9622_v48  ;;  %13070 = vst [vmem:[#allocation41_spill] sm:$0xff] %v9625_v52  ;;  %v9644_v57 = vpop.f32.mrb[77].mxu1  ;;  %v1664_v61 = vmul.f32 %v9544_v60, %v9544_v60  ;;  %4004 = vmatprep.subr.bf16.mxu1 %v7556_v47  ;;  %v7564_v14 = vcombine.high %v2257_v33, %v2261_v46  ;;  %v7563_v49 = vcombine.low %v2257_v33, %v2261_v46  ;;  %v2265_v47 = vld [vmem:[#allocation6 + $0xc8] sm:$0xff]  ;;  %v2276_v33 = vld [vmem:[#allocation6 + $0x120] sm:$0xff] }
 0x3d7   :  { %13071 = vst [vmem:[#allocation42_spill] sm:$0xff] %v9628_v11  ;;  %13072 = vst [vmem:[#allocation43_spill] sm:$0xff] %v9631_v16  ;;  %v9650_v55 = vpop.f32.mrb[78].mxu1  ;;  %3780 = vmatprep.subr.bf16.mxu0 %v7562_v31  ;;  %v1550_v58 = vadd.f32 %v1549_v17, %v9590_v19  ;;  %v1571_v25 = vadd.f32 %v1570_v27, %v9601_v13  ;;  %4005 = vmatpush1.bf16.msra.mxu1 %v7555_v41  ;;  %v2269_v31 = vld [vmem:[#allocation6 + $0xe8] sm:$0xff]  ;;  %v2272_v41 = vld [vmem:[#allocation6 + $0x100] sm:$0xff] }
 0x3d8   :  { %13073 = vst [vmem:[#allocation44_spill] sm:$0xff] %v9634_v50  ;;  %13074 = vst [vmem:[#allocation45_spill] sm:$0xff] %v9637_v23  ;;  %v9656_v9 = vpop.f32.mrb[79].mxu1  ;;  %v1741_v23 = vadd.f32 %v1661_v12, %v1657_v8  ;;  %3781 = vmatpush1.bf16.msra.mxu0 %v7561_v45  ;;  %4006 = vmatprep.subr.bf16.mxu1 %v7564_v14  ;;  %v1668_v45 = vmul.f32 %v9547_v21, %v9547_v21 }
 0x3d9   :  { %13075 = vst [vmem:[#allocation46_spill] sm:$0xff] %v9640_v28  ;;  %13076 = vst [vmem:[#allocation47_spill] sm:$0xff] %v9644_v57  ;;  %v1720_v28 = vadd.f32 %v1660_v3, %v1656_v51  ;;  %v2268_v51 = vld [vmem:[#allocation6 + $0xe0] sm:$0xff]  ;;  %v1665_v3 = vmul.f32 %v9599_v15, %v9599_v15  ;;  %v1551_v17 = vadd.f32 %v1550_v58, %v9642_v53  ;;  %v2273_v15 = vld [vmem:[#allocation6 + $0x108] sm:$0xff] }
 0x3da   :  { %v1572_v27 = vadd.f32 %v1571_v25, %v9644_v57  ;;  %v7569_v24 = vcombine.low %v2264_v1, %v2268_v51  ;;  %v7570_v63 = vcombine.high %v2264_v1, %v2268_v51  ;;  %v7572_v58 = vcombine.high %v2265_v47, %v2269_v31  ;;  %v2277_v57 = vld [vmem:[#allocation6 + $0x128] sm:$0xff]  ;;  %v2280_v1 = vld [vmem:[#allocation6 + $0x140] sm:$0xff] }
 0x3db   :  { %v1721_v36 = vadd.f32 %v1720_v28, %v1664_v61  ;;  %v1742_v46 = vadd.f32 %v1741_v23, %v1665_v3  ;;  %v1552_v14 = vadd.f32 %v1551_v17, %v9650_v55  ;;  %4007 = vmatpush1.bf16.msra.mxu1 %v7563_v49  ;;  %v7571_v28 = vcombine.low %v2265_v47, %v2269_v31  ;;  %v2284_v51 = vld [vmem:[#allocation6 + $0x160] sm:$0xff] }
 0x3dc   :  { %v1573_v61 = vadd.f32 %v1572_v27, %v9656_v9  ;;  %v1669_v25 = vmul.f32 %v9604_v5, %v9604_v5  ;;  %3782 = vmatprep.subr.bf16.mxu0 %v7570_v63  ;;  %v7578_v60 = vcombine.high %v2272_v41, %v2276_v33  ;;  %4008 = vmatprep.subr.bf16.mxu1 %v7572_v58  ;;  %v2293_v5 = vld [vmem:[#allocation6 + $0x1a8] sm:$0xff] }
 0x3dd   :  { %v9666_v50 = vpop.f32.mrb[80].mxu1  ;;  %v1722_v21 = vadd.f32 %v1721_v36, %v1668_v45  ;;  %v1672_v49 = vmul.f32 %v9552_v26, %v9552_v26  ;;  %3783 = vmatpush1.bf16.msra.mxu0 %v7569_v24  ;;  %v7577_v47 = vcombine.low %v2272_v41, %v2276_v33  ;;  %v7579_v36 = vcombine.low %v2273_v15, %v2277_v57  ;;  %v2281_v45 = vld [vmem:[#allocation6 + $0x148] sm:$0xff]  ;;  %v2288_v24 = vld [vmem:[#allocation6 + $0x180] sm:$0xff] }
 0x3de   :  { %v9670_v29 = vpop.f32.mrb[81].mxu1  ;;  %v1553_v23 = vadd.f32 %v1552_v14, %v9666_v50  ;;  %v1743_v17 = vadd.f32 %v1742_v46, %v1669_v25  ;;  %3784 = vmatprep.subr.bf16.mxu0 %v7578_v60  ;;  %v2285_v14 = vld [vmem:[#allocation6 + $0x168] sm:$0xff]  ;;  %v7580_v26 = vcombine.high %v2273_v15, %v2277_v57  ;;  %v7586_v46 = vcombine.high %v2280_v1, %v2284_v51 }
 0x3df   :  { %13077 = vst [vmem:[#allocation48_spill] sm:$0xff] %v9670_v29  ;;  %v9674_v8 = vpop.f32.mrb[82].mxu1  ;;  %v1574_v3 = vadd.f32 %v1573_v61, %v9670_v29  ;;  %4009 = vmatpush1.bf16.msra.mxu1 %v7571_v28  ;;  %v1673_v61 = vmul.f32 %v9607_v20, %v9607_v20  ;;  %v1676_v41 = vmul.f32 %v9555_v56, %v9555_v56 }
 0x3e0   :  { %v9678_v12 = vpop.f32.mrb[83].mxu1  ;;  %v1554_v31 = vadd.f32 %v1553_v23, %v9674_v8  ;;  %v1723_v33 = vadd.f32 %v1722_v21, %v1672_v49  ;;  %v2292_v23 = vld [vmem:[#allocation6 + $0x1a0] sm:$0xff]  ;;  %4010 = vmatprep.subr.bf16.mxu1 %v7580_v26  ;;  %v7585_v15 = vcombine.low %v2280_v1, %v2284_v51  ;;  %v7588_v57 = vcombine.high %v2281_v45, %v2285_v14  ;;  %v2297_v26 = vld [vmem:[#allocation6 + $0x1c8] sm:$0xff] }
 0x3e1   :  { %13078 = vst [vmem:[#allocation49_spill] sm:$0xff] %v9678_v12  ;;  %v1575_v27 = vadd.f32 %v1574_v3, %v9678_v12  ;;  %v2289_v3 = vld [vmem:[#allocation6 + $0x188] sm:$0xff]  ;;  %v1744_v12 = vadd.f32 %v1743_v17, %v1673_v61  ;;  %3785 = vmatpush1.bf16.msra.mxu0 %v7577_v47  ;;  %v7587_v49 = vcombine.low %v2281_v45, %v2285_v14  ;;  %v2296_v17 = vld [vmem:[#allocation6 + $0x1c0] sm:$0xff] }
 0x3e2   :  { %3786 = vmatprep.subr.bf16.mxu0 %v7586_v46  ;;  %v7596_v56 = vcombine.high %v2289_v3, %v2293_v5  ;;  %v2300_v61 = vld [vmem:[#allocation6 + $0x1e0] sm:$0xff]  ;;  %v2301_v47 = vld [vmem:[#allocation6 + $0x1e8] sm:$0xff]  ;;  %v7593_v51 = vcombine.low %v2288_v24, %v2292_v23  ;;  %v7595_v45 = vcombine.low %v2289_v3, %v2293_v5  ;;  %v1681_v46 = vmul.f32 %v9613_v37, %v9613_v37 }
 0x3e3   :  { %4011 = vmatpush1.bf16.msra.mxu1 %v7579_v36  ;;  %v7602_v14 = vcombine.high %v2296_v17, %v2300_v61  ;;  %v1684_v5 = vmul.f32 %v9561_v44, %v9561_v44  ;;  %v2316_v44 = vld [vmem:[#allocation6 + $0x260] sm:$0xff] }
 0x3e4   :  { %4012 = vmatprep.subr.bf16.mxu1 %v7588_v57 }
 0x3e5   :  { %v9690_v63 = vpop.f32.mrb[84].mxu1  ;;  %3787 = vmatpush1.bf16.msra.mxu0 %v7585_v15 }
 0x3e6   :  { %v9694_v58 = vpop.f32.mrb[85].mxu1  ;;  %v1555_v25 = vadd.f32 %v1554_v31, %v9690_v63  ;;  %v1677_v31 = vmul.f32 %v9610_v30, %v9610_v30  ;;  %v2312_v30 = vld [vmem:[#allocation6 + $0x240] sm:$0xff] }
 0x3e7   :  { %13079 = vst [vmem:[#allocation50_spill] sm:$0xff] %v9694_v58  ;;  %v1576_v28 = vadd.f32 %v1575_v27, %v9694_v58  ;;  %v9700_v60 = vpop.f32.mrb[86].mxu1  ;;  %v7594_v27 = vcombine.high %v2288_v24, %v2292_v23  ;;  %v1724_v58 = vadd.f32 %v1723_v33, %v1676_v41  ;;  %4013 = vmatpush1.bf16.msra.mxu1 %v7587_v49  ;;  %v2304_v33 = vld [vmem:[#allocation6 + $0x200] sm:$0xff]  ;;  %v2305_v49 = vld [vmem:[#allocation6 + $0x208] sm:$0xff] }
 0x3e8   :  { %v9702_v20 = vpop.f32.mrb[87].mxu1  ;;  %v1556_v29 = vadd.f32 %v1555_v25, %v9700_v60  ;;  %v1745_v1 = vadd.f32 %v1744_v12, %v1677_v31  ;;  %v1680_v25 = vmul.f32 %v9558_v54, %v9558_v54  ;;  %4014 = vmatprep.subr.bf16.mxu1 %v7596_v56  ;;  %v7604_v12 = vcombine.high %v2297_v26, %v2301_v47  ;;  %v2308_v24 = vld [vmem:[#allocation6 + $0x220] sm:$0xff]  ;;  %v2309_v31 = vld [vmem:[#allocation6 + $0x228] sm:$0xff] }
 0x3e9   :  { %13080 = vst [vmem:[#allocation51_spill] sm:$0xff] %v9702_v20  ;;  %v1577_v21 = vadd.f32 %v1576_v28, %v9702_v20  ;;  %3788 = vmatprep.subr.bf16.mxu0 %v7594_v27  ;;  %v7601_v56 = vcombine.low %v2296_v17, %v2300_v61  ;;  %v7612_v37 = vcombine.high %v2305_v49, %v2309_v31 }
 0x3ea   :  { %v1725_v23 = vadd.f32 %v1724_v58, %v1680_v25  ;;  %v1746_v3 = vadd.f32 %v1745_v1, %v1681_v46  ;;  %3789 = vmatpush1.bf16.msra.mxu0 %v7593_v51  ;;  %v7603_v58 = vcombine.low %v2297_v26, %v2301_v47  ;;  %v1685_v25 = vmul.f32 %v9616_v35, %v9616_v35  ;;  %v2313_v46 = vld [vmem:[#allocation6 + $0x248] sm:$0xff] }
 0x3eb   :  { %4015 = vmatpush1.bf16.msra.mxu1 %v7595_v45  ;;  %3790 = vmatprep.subr.bf16.mxu0 %v7602_v14  ;;  %v7609_v51 = vcombine.low %v2304_v33, %v2308_v24  ;;  %v1688_v17 = vmul.f32 %v9564_v2, %v9564_v2  ;;  %v7611_v26 = vcombine.low %v2305_v49, %v2309_v31  ;;  %v9747_v2 = vld [vmem:[#allocation6 + $0x420] sm:$0xff] }
 0x3ec   :  { %4016 = vmatprep.subr.bf16.mxu1 %v7604_v12  ;;  %v1726_v1 = vadd.f32 %v1725_v23, %v1684_v5  ;;  %v7618_v47 = vcombine.high %v2312_v30, %v2316_v44  ;;  %v1689_v45 = vmul.f32 %v9619_v32, %v9619_v32  ;;  %v1692_v49 = vmul.f32 %v9567_v6, %v9567_v6  ;;  %v9750_v32 = vld [vmem:[#allocation6 + $0x408] sm:$0xff] }
 0x3ed   :  { %v9710_v36 = vpop.f32.mrb[88].mxu1  ;;  %v9752_v6 = vld [vmem:[#allocation6 + $0x428] sm:$0xff] }
 0x3ee   :  { %v1557_v28 = vadd.f32 %v1556_v29, %v9710_v36  ;;  %v9715_v41 = vpop.f32.mrb[89].mxu1  ;;  %3791 = vmatpush1.bf16.msra.mxu0 %v7601_v56  ;;  %v2321_v56 = vld [vmem:[#allocation6 + $0x288] sm:$0xff] }
 0x3ef   :  { %13081 = vst [vmem:[#allocation52_spill] sm:$0xff] %v9715_v41  ;;  %v1578_v15 = vadd.f32 %v1577_v21, %v9715_v41  ;;  %v9718_v57 = vpop.f32.mrb[90].mxu1  ;;  %v7610_v21 = vcombine.high %v2304_v33, %v2308_v24  ;;  %v1747_v41 = vadd.f32 %v1746_v3, %v1685_v25  ;;  %4017 = vmatpush1.bf16.msra.mxu1 %v7603_v58  ;;  %v2324_v33 = vld [vmem:[#allocation6 + $0x2a0] sm:$0xff]  ;;  %v2325_v58 = vld [vmem:[#allocation6 + $0x2a8] sm:$0xff] }
 0x3f0   :  { %v1558_v27 = vadd.f32 %v1557_v28, %v9718_v57  ;;  %v9723_v29 = vpop.f32.mrb[91].mxu1  ;;  %v2317_v28 = vld [vmem:[#allocation6 + $0x268] sm:$0xff]  ;;  %4018 = vmatprep.subr.bf16.mxu1 %v7612_v37  ;;  %v1727_v24 = vadd.f32 %v1726_v1, %v1688_v17  ;;  %v7617_v37 = vcombine.low %v2312_v30, %v2316_v44  ;;  %v9745_v25 = vld [vmem:[#allocation6 + $0x400] sm:$0xff]  ;;  %v7628_v44 = vcombine.high %v2321_v56, %v2325_v58 }
 0x3f1   :  { %13082 = vst [vmem:[#allocation53_spill] sm:$0xff] %v9723_v29  ;;  %v1579_v54 = vadd.f32 %v1578_v15, %v9723_v29  ;;  %3792 = vmatprep.subr.bf16.mxu0 %v7610_v21  ;;  %v7620_v23 = vcombine.high %v2313_v46, %v2317_v28  ;;  %v2320_v15 = vld [vmem:[#allocation6 + $0x280] sm:$0xff]  ;;  %v1748_v31 = vadd.f32 %v1747_v41, %v1689_v45 }
 0x3f2   :  { %3793 = vmatpush1.bf16.msra.mxu0 %v7609_v51  ;;  %v7619_v1 = vcombine.low %v2313_v46, %v2317_v28  ;;  %v7626_v17 = vcombine.high %v2320_v15, %v2324_v33  ;;  %v1693_v41 = vmul.f32 %v9622_v48, %v9622_v48  ;;  %v2328_v30 = vld [vmem:[#allocation6 + $0x2c0] sm:$0xff] }
 0x3f3   :  { %4019 = vmatpush1.bf16.msra.mxu1 %v7611_v26  ;;  %3794 = vmatprep.subr.bf16.mxu0 %v7618_v47  ;;  %v2332_v51 = vld [vmem:[#allocation6 + $0x2e0] sm:$0xff]  ;;  %v7625_v47 = vcombine.low %v2320_v15, %v2324_v33  ;;  %v2337_v33 = vld [vmem:[#allocation6 + $0x308] sm:$0xff] }
 0x3f4   :  { %4020 = vmatprep.subr.bf16.mxu1 %v7620_v23  ;;  %v1749_v28 = vadd.f32 %v1748_v31, %v1693_v41  ;;  %v7627_v23 = vcombine.low %v2321_v56, %v2325_v58  ;;  %v7634_v29 = vcombine.high %v2328_v30, %v2332_v51  ;;  %v2341_v41 = vld [vmem:[#allocation6 + $0x328] sm:$0xff]  ;;  %v7633_v56 = vcombine.low %v2328_v30, %v2332_v51  ;;  %v9768_v30 = vld [vmem:[#allocation6 + $0x380] sm:$0xff] }
 0x3f5   :  { %v9730_v61 = vpop.f32.mrb[92].mxu1  ;;  %v7644_v46 = vcombine.high %v2337_v33, %v2341_v41 }
 0x3f6   :  { %v1559_v14 = vadd.f32 %v1558_v27, %v9730_v61  ;;  %v9735_v12 = vpop.f32.mrb[93].mxu1  ;;  %3795 = vmatpush1.bf16.msra.mxu0 %v7617_v37  ;;  %v2340_v37 = vld [vmem:[#allocation6 + $0x320] sm:$0xff] }
 0x3f7   :  { %13083 = vst [vmem:[#allocation54_spill] sm:$0xff] %v9735_v12  ;;  %v1580_v5 = vadd.f32 %v1579_v54, %v9735_v12  ;;  %v9738_v3 = vpop.f32.mrb[94].mxu1  ;;  %v2329_v12 = vld [vmem:[#allocation6 + $0x2c8] sm:$0xff]  ;;  %4021 = vmatpush1.bf16.msra.mxu1 %v7619_v1  ;;  %3796 = vmatprep.subr.bf16.mxu0 %v7626_v17 }
 0x3f8   :  { %v1560_v21 = vadd.f32 %v1559_v14, %v9738_v3  ;;  %v9743_v27 = vpop.f32.mrb[95].mxu1  ;;  %v1728_v14 = vadd.f32 %v1727_v24, %v1692_v49  ;;  %v1696_v24 = vmul.f32 %v9570_v59, %v9570_v59  ;;  %v1697_v49 = vmul.f32 %v9625_v52, %v9625_v52  ;;  %4022 = vmatprep.subr.bf16.mxu1 %v7628_v44  ;;  %v2344_v44 = vld [vmem:[#allocation6 + $0x340] sm:$0xff] }
 0x3f9   :  { %13084 = vst [vmem:[#allocation55_spill] sm:$0xff] %v9743_v27  ;;  %v1581_v54 = vadd.f32 %v1580_v5, %v9743_v27  ;;  %v2333_v5 = vld [vmem:[#allocation6 + $0x2e8] sm:$0xff]  ;;  %v2348_v59 = vld [vmem:[#allocation6 + $0x360] sm:$0xff]  ;;  %v1700_v52 = vmul.f32 %v9573_v4, %v9573_v4 }
 0x3fa   :  { %v1561_v45 = vrot.slane %v1560_v21, 4  ;;  %v7636_v31 = vcombine.high %v2329_v12, %v2333_v5  ;;  %3797 = vmatpush1.bf16.msra.mxu0 %v7625_v47  ;;  %v7635_v1 = vcombine.low %v2329_v12, %v2333_v5  ;;  %v9774_v5 = vld [vmem:[#allocation6 + $0x3a0] sm:$0xff]  ;;  %v9776_v47 = vld [vmem:[#allocation6 + $0x388] sm:$0xff]  ;;  %v7650_v4 = vcombine.high %v2344_v44, %v2348_v59 }
 0x3fb   :  { %v1582_v35 = vrot.slane %v1581_v54, 4  ;;  %4023 = vmatpush1.bf16.msra.mxu1 %v7627_v23  ;;  %3798 = vmatprep.subr.bf16.mxu0 %v7634_v29  ;;  %v1705_v29 = vmul.f32 %v9631_v16, %v9631_v16  ;;  %v9778_v23 = vld [vmem:[#allocation6 + $0x3a8] sm:$0xff] }
 0x3fc   :  { %v1562_v26 = vadd.f32 %v1561_v45, %v1560_v21  ;;  %v2336_v21 = vld [vmem:[#allocation6 + $0x300] sm:$0xff]  ;;  %v1729_v45 = vadd.f32 %v1728_v14, %v1696_v24  ;;  %4024 = vmatprep.subr.bf16.mxu1 %v7636_v31  ;;  %v1701_v14 = vmul.f32 %v9628_v11, %v9628_v11  ;;  %v7643_v31 = vcombine.low %v2337_v33, %v2341_v41 }
 0x3fd   :  { %v1583_v48 = vadd.f32 %v1582_v35, %v1581_v54  ;;  %v1750_v35 = vadd.f32 %v1749_v28, %v1697_v49  ;;  %v7642_v17 = vcombine.high %v2336_v21, %v2340_v37  ;;  %v7641_v51 = vcombine.low %v2336_v21, %v2340_v37 }
 0x3fe   :  { %v1563_v20 = vrot.slane %v1562_v26, 2  ;;  %3799 = vmatpush1.bf16.msra.mxu0 %v7633_v56  ;;  %v1730_v24 = vadd.f32 %v1729_v45, %v1700_v52  ;;  %v7658_v21 = vcombine.high %v9768_v30, %v9774_v5  ;;  %v7660_v37 = vcombine.high %v9776_v47, %v9778_v23  ;;  %v2365_v56 = vld [vmem:[#allocation6 + $0x3e8] sm:$0xff] }
 0x3ff   :  { %v1584_v15 = vrot.slane %v1583_v48, 2  ;;  %v1751_v49 = vadd.f32 %v1750_v35, %v1701_v14  ;;  %4025 = vmatpush1.bf16.msra.mxu1 %v7635_v1  ;;  %3800 = vmatprep.subr.bf16.mxu0 %v7642_v17  ;;  %v2361_v35 = vld [vmem:[#allocation6 + $0x3c8] sm:$0xff] }
 0x400   :  { %v1564_v54 = vadd.f32 %v1563_v20, %v1562_v26  ;;  %v2345_v20 = vld [vmem:[#allocation6 + $0x348] sm:$0xff]  ;;  %4026 = vmatprep.subr.bf16.mxu1 %v7644_v46  ;;  %v7667_v14 = vcombine.low %v2361_v35, %v2365_v56 }
 0x401   :  { %v1585_v58 = vadd.f32 %v1584_v15, %v1583_v48  ;;  %v2349_v26 = vld [vmem:[#allocation6 + $0x368] sm:$0xff]  ;;  %v1704_v48 = vmul.f32 %v9576_v22, %v9576_v22  ;;  %v7649_v22 = vcombine.low %v2344_v44, %v2348_v59  ;;  %v1752_v1 = vadd.f32 %v1751_v49, %v1705_v29 }
 0x402   :  { %v1565_v27 = vrot.slane %v1564_v54, 1  ;;  %v7651_v11 = vcombine.low %v2345_v20, %v2349_v26  ;;  %3801 = vmatpush1.bf16.msra.mxu0 %v7641_v51 }
 0x403   :  { %v1586_v28 = vrot.slane %v1585_v58, 1  ;;  %4027 = vmatpush1.bf16.msra.mxu1 %v7643_v31  ;;  %3802 = vmatprep.subr.bf16.mxu0 %v7650_v4  ;;  %v13116_v31 = vld [vmem:[#allocation51_spill] sm:$0xff] }
 0x404   :  { %v1566_v12 = vadd.f32 %v1565_v27, %v1564_v54  ;;  %v7652_v27 = vcombine.high %v2345_v20, %v2349_v26  ;;  %v7676_v20 = vcombine.high %v9750_v32, %v9752_v6 }
 0x405   :  { %v1587_v16 = vadd.f32 %v1586_v28, %v1585_v58  ;;  %v7659_v58 = vcombine.low %v9776_v47, %v9778_v23  ;;  %v7674_v28 = vcombine.high %v9745_v25, %v9747_v2  ;;  %v13110_v23 = vld [vmem:[#allocation48_spill] sm:$0xff] }
 0x406   :  { %v1590_v15 = vmul.f32 0.0078125, %v1566_v12  ;;  %4028 = vmatprep.subr.bf16.mxu1 %v7652_v27  ;;  %3803 = vmatpush1.bf16.msra.mxu0 %v7649_v22  ;;  %v7668_v22 = vcombine.high %v2361_v35, %v2365_v56  ;;  %v13118_v27 = vld [vmem:[#allocation52_spill] sm:$0xff]  ;;  %v13122_v35 = vld [vmem:[#allocation54_spill] sm:$0xff] }
 0x407   :  { %4029 = vmatpush1.bf16.msra.mxu1 %v7651_v11  ;;  %3804 = vmatprep.subr.bf16.mxu0 %v7658_v21 }
 0x408   :  { %v9785_v54 = vsub.f32 %v9517_v43, %v1590_v15  ;;  %v9788_v52 = vsub.f32 %v9521_v18, %v1590_v15  ;;  %v9791_v33 = vsub.f32 %v9529_v62, %v1590_v15  ;;  %v9794_v59 = vsub.f32 %v9535_v40, %v1590_v15  ;;  %4030 = vmatprep.subr.bf16.mxu1 %v7660_v37 }
 0x409   :  { %v9797_v46 = vsub.f32 %v9586_v38, %v1590_v15  ;;  %v9800_v41 = vsub.f32 %v9590_v19, %v1590_v15  ;;  %v9803_v45 = vsub.f32 %v9642_v53, %v1590_v15  ;;  %v9806_v43 = vsub.f32 %v9650_v55, %v1590_v15  ;;  %v2360_v19 = vld [vmem:[#allocation6 + $0x3c0] sm:$0xff] }
 0x40a   :  { %13085 = vst [vmem:[#allocation56_spill] sm:$0xff] %v9785_v54  ;;  %13086 = vst [vmem:[#allocation57_spill] sm:$0xff] %v9788_v52  ;;  %v9809_v18 = vsub.f32 %v9666_v50, %v1590_v15  ;;  %v9812_v62 = vsub.f32 %v9674_v8, %v1590_v15  ;;  %v9815_v40 = vsub.f32 %v9690_v63, %v1590_v15  ;;  %v2364_v63 = vld [vmem:[#allocation6 + $0x3e0] sm:$0xff] }
 0x40b   :  { %13087 = vst [vmem:[#allocation58_spill] sm:$0xff] %v9791_v33  ;;  %13088 = vst [vmem:[#allocation59_spill] sm:$0xff] %v9794_v59  ;;  %v9818_v38 = vsub.f32 %v9700_v60, %v1590_v15  ;;  %v9821_v53 = vsub.f32 %v9710_v36, %v1590_v15  ;;  %v9824_v55 = vsub.f32 %v9718_v57, %v1590_v15  ;;  %v1591_v36 = vmul.f32 0.0078125, %v1587_v16 }
 0x40c   :  { %13089 = vst [vmem:[#allocation60_spill] sm:$0xff] %v9797_v46  ;;  %13090 = vst [vmem:[#allocation61_spill] sm:$0xff] %v9800_v41  ;;  %v9827_v50 = vsub.f32 %v9730_v61, %v1590_v15  ;;  %v9830_v8 = vsub.f32 %v9738_v3, %v1590_v15  ;;  %v1658_v4 = vmul.f32 %v9785_v54, %v9785_v54  ;;  %4031 = vmatpush1.bf16.msra.mxu1 %v7659_v58  ;;  %v10133_v54 = vld [vmem:[#allocation6 + $0x6c0] sm:$0xff] }
 0x40d   :  { %13091 = vst [vmem:[#allocation62_spill] sm:$0xff] %v9803_v45  ;;  %13092 = vst [vmem:[#allocation63_spill] sm:$0xff] %v9806_v43  ;;  %v1662_v60 = vmul.f32 %v9788_v52, %v9788_v52  ;;  %v7657_v57 = vcombine.low %v9768_v30, %v9774_v5  ;;  %v1708_v61 = vmul.f32 %v9579_v42, %v9579_v42  ;;  %v13107_v5 = vld [vmem:[#allocation47_spill] sm:$0xff]  ;;  %4032 = vmatprep.subr.bf16.mxu1 %v7668_v22  ;;  %v10119_v52 = vld [vmem:[#allocation6 + $0x6a0] sm:$0xff] }
 0x40e   :  { %13093 = vst [vmem:[#allocation64_spill] sm:$0xff] %v9809_v18  ;;  %13094 = vst [vmem:[#allocation65_spill] sm:$0xff] %v9812_v62  ;;  %v1731_v3 = vadd.f32 %v1730_v24, %v1704_v48  ;;  %v7665_v17 = vcombine.low %v2360_v19, %v2364_v63  ;;  %v7666_v44 = vcombine.high %v2360_v19, %v2364_v63  ;;  %v13120_v19 = vld [vmem:[#allocation53_spill] sm:$0xff] }
 0x40f   :  { %13095 = vst [vmem:[#allocation66_spill] sm:$0xff] %v9815_v40  ;;  %13096 = vst [vmem:[#allocation67_spill] sm:$0xff] %v9818_v38  ;;  %v1666_v16 = vmul.f32 %v9791_v33, %v9791_v33  ;;  %v1762_v11 = vadd.f32 %v1662_v60, %v1658_v4  ;;  %v9849_v26 = vsub.f32 %v9519_v10, %v1591_v36  ;;  %3805 = vmatpush1.bf16.msra.mxu0 %v7657_v57  ;;  %v13124_v4 = vld [vmem:[#allocation44_spill] sm:$0xff]  ;;  %v13125_v57 = vld [vmem:[#allocation55_spill] sm:$0xff] }
 0x410   :  { %13097 = vst [vmem:[#allocation68_spill] sm:$0xff] %v9821_v53  ;;  %13098 = vst [vmem:[#allocation69_spill] sm:$0xff] %v9824_v55  ;;  %v9852_v30 = vsub.f32 %v9525_v39, %v1591_v36  ;;  %v9855_v48 = vsub.f32 %v9532_v7, %v1591_v36  ;;  %v9858_v29 = vsub.f32 %v9549_v34, %v1591_v36  ;;  %3806 = vmatprep.subr.bf16.mxu0 %v7666_v44  ;;  %v10106_v33 = vld [vmem:[#allocation6 + $0x648] sm:$0xff] }
 0x411   :  { %13099 = vst [vmem:[#allocation70_spill] sm:$0xff] %v9827_v50  ;;  %13100 = vst [vmem:[#allocation71_spill] sm:$0xff] %v9830_v8  ;;  %v9861_v12 = vsub.f32 %v9588_v0, %v1591_v36  ;;  %v9864_v51 = vsub.f32 %v9601_v13, %v1591_v36  ;;  %v9867_v47 = vsub.f32 %v13107_v5, %v1591_v36  ;;  %v13112_v0 = vld [vmem:[#allocation49_spill] sm:$0xff]  ;;  %v13114_v13 = vld [vmem:[#allocation50_spill] sm:$0xff]  ;;  %4033 = vmatpush1.bf16.msra.mxu1 %v7667_v14 }
 0x412   :  { %13101 = vst [vmem:[#allocation72_spill] sm:$0xff] %v9849_v26  ;;  %13102 = vst [vmem:[#allocation73_spill] sm:$0xff] %v9852_v30  ;;  %v1670_v10 = vmul.f32 %v9794_v59, %v9794_v59  ;;  %v1763_v39 = vadd.f32 %v1762_v11, %v1666_v16  ;;  %v9872_v7 = vsub.f32 %v9656_v9, %v1591_v36  ;;  %4115 = vmatprep.subr.bf16.mxu1 %v7676_v20  ;;  %v10159_v59 = vld [vmem:[#allocation6 + $0x720] sm:$0xff] }
 0x413   :  { %13103 = vst [vmem:[#allocation74_spill] sm:$0xff] %v9855_v48  ;;  %13104 = vst [vmem:[#allocation75_spill] sm:$0xff] %v9858_v29  ;;  %v9875_v34 = vsub.f32 %v13110_v23, %v1591_v36  ;;  %v9878_v24 = vsub.f32 %v13112_v0, %v1591_v36  ;;  %v9881_v49 = vsub.f32 %v13114_v13, %v1591_v36  ;;  %3807 = vmatpush1.bf16.msra.mxu0 %v7665_v17  ;;  %v13128_v0 = vld [vmem:[#allocation45_spill] sm:$0xff] }
 0x414   :  { %13105 = vst [vmem:[#allocation76_spill] sm:$0xff] %v9861_v12  ;;  %13106 = vst [vmem:[#allocation77_spill] sm:$0xff] %v9864_v51  ;;  %v9884_v15 = vsub.f32 %v13116_v31, %v1591_v36  ;;  %v9887_v21 = vsub.f32 %v13118_v27, %v1591_v36  ;;  %v1674_v9 = vmul.f32 %v9797_v46, %v9797_v46  ;;  %3889 = vmatprep.subr.bf16.mxu0 %v7674_v28 }
 0x415   :  { %13108 = vst [vmem:[#allocation47_spill] sm:$0xff] %v9867_v47  ;;  %13109 = vst [vmem:[#allocation78_spill] sm:$0xff] %v9872_v7  ;;  %v1764_v37 = vadd.f32 %v1763_v39, %v1670_v10  ;;  %v9892_v63 = vsub.f32 %v13120_v19, %v1591_v36  ;;  %v9895_v56 = vsub.f32 %v13122_v35, %v1591_v36  ;;  %v13127_v10 = vld [vmem:[#allocation29_spill] sm:$0xff] }
 0x416   :  { %13111 = vst [vmem:[#allocation48_spill] sm:$0xff] %v9875_v34  ;;  %13113 = vst [vmem:[#allocation49_spill] sm:$0xff] %v9878_v24  ;;  %v1709_v60 = vmul.f32 %v13124_v4, %v13124_v4  ;;  %v9900_v58 = vsub.f32 %v13125_v57, %v1591_v36  ;;  %v1659_v44 = vmul.f32 %v9849_v26, %v9849_v26 }
 0x417   :  { %13115 = vst [vmem:[#allocation50_spill] sm:$0xff] %v9881_v49  ;;  %13117 = vst [vmem:[#allocation51_spill] sm:$0xff] %v9884_v15  ;;  %v1663_v16 = vmul.f32 %v9852_v30, %v9852_v30  ;;  %v1732_v22 = vadd.f32 %v1731_v3, %v1708_v61  ;;  %v1678_v11 = vmul.f32 %v9800_v41, %v9800_v41  ;;  %v10080_v41 = vld [vmem:[#allocation6 + $0x600] sm:$0xff] }
 0x418   :  { %13119 = vst [vmem:[#allocation52_spill] sm:$0xff] %v9887_v21  ;;  %13121 = vst [vmem:[#allocation53_spill] sm:$0xff] %v9892_v63  ;;  %v1765_v5 = vadd.f32 %v1764_v37, %v1674_v9  ;;  %v1753_v17 = vadd.f32 %v1752_v1, %v1709_v60  ;;  %v1712_v39 = vmul.f32 %v13127_v10, %v13127_v10  ;;  %v13129_v9 = vld [vmem:[#allocation30_spill] sm:$0xff]  ;;  %v10157_v30 = vld [vmem:[#allocation6 + $0x700] sm:$0xff] }
 0x419   :  { %13123 = vst [vmem:[#allocation54_spill] sm:$0xff] %v9895_v56  ;;  %13126 = vst [vmem:[#allocation44_spill] sm:$0xff] %v9900_v58  ;;  %v1682_v36 = vmul.f32 %v9803_v45, %v9803_v45  ;;  %v1713_v13 = vmul.f32 %v13128_v0, %v13128_v0  ;;  %v1667_v61 = vmul.f32 %v9855_v48, %v9855_v48  ;;  %v13130_v60 = vld [vmem:[#allocation46_spill] sm:$0xff]  ;;  %v10090_v48 = vld [vmem:[#allocation6 + $0x608] sm:$0xff] }
 0x41a   :  { %v1766_v23 = vadd.f32 %v1765_v5, %v1678_v11  ;;  %v1783_v3 = vadd.f32 %v1663_v16, %v1659_v44  ;;  %v1733_v14 = vadd.f32 %v1732_v22, %v1712_v39  ;;  %v1686_v28 = vmul.f32 %v9806_v43, %v9806_v43  ;;  %v10061_v43 = vld [vmem:[#allocation6 + $0x5c0] sm:$0xff]  ;;  %v1502_v45 = vld [vmem:[%s12741_s6 + $0x5] sm:$0xf]  ;;  %13139 = vst [vmem:[#allocation82_spill] sm:$0xff] %v10080_v41 }
 0x41b   :  { %v1754_v20 = vadd.f32 %v1753_v17, %v1713_v13  ;;  %v1671_v31 = vmul.f32 %v9858_v29, %v9858_v29  ;;  %v1716_v37 = vmul.f32 %v13129_v9, %v13129_v9  ;;  %v1690_v19 = vmul.f32 %v9809_v18, %v9809_v18  ;;  %13141 = vst [vmem:[#allocation84_spill] sm:$0xff] %v10090_v48  ;;  %v10102_v29 = vld [vmem:[#allocation6 + $0x640] sm:$0xff] }
 0x41c   :  { %v1767_v1 = vadd.f32 %v1766_v23, %v1682_v36  ;;  %v1784_v27 = vadd.f32 %v1783_v3, %v1667_v61  ;;  %v1717_v57 = vmul.f32 %v13130_v60, %v13130_v60  ;;  %v1675_v44 = vmul.f32 %v9861_v12, %v9861_v12  ;;  %v10078_v12 = vld [vmem:[#allocation6 + $0x5e8] sm:$0xff]  ;;  %13143 = vst [vmem:[#allocation86_spill] sm:$0xff] %v10102_v29  ;;  %v10143_v9 = vld [vmem:[#allocation6 + $0x6e0] sm:$0xff] }
 0x41d   :  { %v1734_v22 = vadd.f32 %v1733_v14, %v1716_v37  ;;  %v1694_v11 = vmul.f32 %v9812_v62, %v9812_v62  ;;  %v1679_v39 = vmul.f32 %v9864_v51, %v9864_v51  ;;  %v1698_v23 = vmul.f32 %v9815_v40, %v9815_v40  ;;  %v10051_v62 = vld [vmem:[#allocation6 + $0x588] sm:$0xff]  ;;  %v10088_v40 = vld [vmem:[#allocation6 + $0x620] sm:$0xff]  ;;  %13145 = vst [vmem:[#allocation88_spill] sm:$0xff] %v10106_v33 }
 0x41e   :  { %v1768_v35 = vadd.f32 %v1767_v1, %v1686_v28  ;;  %v1785_v16 = vadd.f32 %v1784_v27, %v1671_v31  ;;  %v1755_v17 = vadd.f32 %v1754_v20, %v1717_v57  ;;  %v1683_v61 = vmul.f32 %v9867_v47, %v9867_v47  ;;  %v10076_v51 = vld [vmem:[#allocation6 + $0x5c8] sm:$0xff]  ;;  %13140 = vst [vmem:[#allocation83_spill] sm:$0xff] %v10088_v40  ;;  %v10201_v29 = vld [vmem:[#allocation6 + $0x740] sm:$0xff] }
 0x41f   :  { %v1735_v28 = vrot.slane %v1734_v22, 4  ;;  %v1702_v14 = vmul.f32 %v9818_v38, %v9818_v38  ;;  %v1687_v20 = vmul.f32 %v9872_v7, %v9872_v7  ;;  %v1706_v37 = vmul.f32 %v9821_v53, %v9821_v53  ;;  %v10025_v53 = vld [vmem:[#allocation6 + $0x540] sm:$0xff]  ;;  %v10035_v38 = vld [vmem:[#allocation6 + $0x548] sm:$0xff]  ;;  %13148 = vst [vmem:[#allocation91_spill] sm:$0xff] %v10119_v52  ;;  %13151 = vst [vmem:[#allocation94_spill] sm:$0xff] %v10133_v54 }
 0x420   :  { %v1769_v5 = vadd.f32 %v1768_v35, %v1690_v19  ;;  %v1786_v36 = vadd.f32 %v1785_v16, %v1675_v44  ;;  %v1756_v31 = vrot.slane %v1755_v17, 4  ;;  %v1691_v35 = vmul.f32 %v9875_v34, %v9875_v34  ;;  %v13138_v7 = vld [vmem:[#allocation13_spill] sm:$0xff]  ;;  %v10063_v34 = vld [vmem:[#allocation6 + $0x5e0] sm:$0xff]  ;;  %13153 = vst [vmem:[#allocation96_spill] sm:$0xff] %v10143_v9  ;;  %13156 = vst [vmem:[#allocation99_spill] sm:$0xff] %v10157_v30 }
 0x421   :  { %v1736_v44 = vadd.f32 %v1735_v28, %v1734_v22  ;;  %v1710_v16 = vmul.f32 %v9824_v55, %v9824_v55  ;;  %v1718_v22 = vmul.f32 %v9830_v8, %v9830_v8  ;;  %v10023_v55 = vld [vmem:[#allocation6 + $0x528] sm:$0xff]  ;;  %13157 = vst [vmem:[#allocation100_spill] sm:$0xff] %v10159_v59 }
 0x422   :  { %v1770_v13 = vadd.f32 %v1769_v5, %v1694_v11  ;;  %v1787_v3 = vadd.f32 %v1786_v36, %v1679_v39  ;;  %v1757_v5 = vadd.f32 %v1756_v31, %v1755_v17  ;;  %v1695_v39 = vmul.f32 %v9878_v24, %v9878_v24 }
 0x423   :  { %v1703_v17 = vmul.f32 %v9884_v15, %v9884_v15 }
 0x424   :  { %v1771_v1 = vadd.f32 %v1770_v13, %v1698_v23  ;;  %v1788_v27 = vadd.f32 %v1787_v3, %v1683_v61  ;;  %v1714_v23 = vmul.f32 %v9827_v50, %v9827_v50  ;;  %v1699_v61 = vmul.f32 %v9881_v49, %v9881_v49  ;;  %v10021_v49 = vld [vmem:[#allocation6 + $0x508] sm:$0xff] }
 0x426   :  { %v1772_v19 = vadd.f32 %v1771_v1, %v1702_v14  ;;  %v1789_v57 = vadd.f32 %v1788_v27, %v1687_v20  ;;  %v1737_v14 = vrot.slane %v1736_v44, 2  ;;  %v1758_v1 = vrot.slane %v1757_v5, 2 }
 0x427   :  { %v1707_v27 = vmul.f32 %v9887_v21, %v9887_v21 }
 0x428   :  { %v1773_v11 = vadd.f32 %v1772_v19, %v1706_v37  ;;  %v1790_v36 = vadd.f32 %v1789_v57, %v1691_v35  ;;  %v1738_v19 = vadd.f32 %v1737_v14, %v1736_v44  ;;  %v1759_v57 = vadd.f32 %v1758_v1, %v1757_v5 }
 0x42a   :  { %v1774_v13 = vadd.f32 %v1773_v11, %v1710_v16  ;;  %v1791_v3 = vadd.f32 %v1790_v36, %v1695_v39  ;;  %v1711_v16 = vmul.f32 %v9892_v63, %v9892_v63  ;;  %v1715_v36 = vmul.f32 %v9895_v56, %v9895_v56 }
 0x42c   :  { %v1775_v28 = vadd.f32 %v1774_v13, %v1714_v23  ;;  %v1792_v31 = vadd.f32 %v1791_v3, %v1699_v61  ;;  %v1739_v13 = vrot.slane %v1738_v19, 1  ;;  %v1760_v61 = vrot.slane %v1759_v57, 1 }
 0x42d   :  { %v1719_v3 = vmul.f32 %v9900_v58, %v9900_v58  ;;  %v10047_v58 = vld [vmem:[#allocation6 + $0x580] sm:$0xff] }
 0x42e   :  { %v1776_v20 = vadd.f32 %v1775_v28, %v1718_v22  ;;  %v1793_v37 = vadd.f32 %v1792_v31, %v1703_v17  ;;  %v1740_v14 = vadd.f32 %v1739_v13, %v1738_v19  ;;  %v1761_v1 = vadd.f32 %v1760_v61, %v1759_v57  ;;  %v9971_v61 = vld [vmem:[#allocation6 + $0x448] sm:$0xff] }
 0x430   :  { %v1777_v35 = vrot.slane %v1776_v20, 4  ;;  %v1794_v11 = vadd.f32 %v1793_v37, %v1707_v27  ;;  %v1805_v37 = vmul.f32 0.0078125, %v1761_v1  ;;  %v9992_v1 = vld [vmem:[#allocation6 + $0x4c0] sm:$0xff] }
 0x432   :  { %v1778_v39 = vadd.f32 %v1777_v35, %v1776_v20  ;;  %v1795_v23 = vadd.f32 %v1794_v11, %v1711_v16  ;;  %v1804_v20 = vmul.f32 0.0078125, %v1740_v14  ;;  %v1809_v63 = vadd.f32 0.8, %v1805_v37  ;;  %v13134_v14 = vld [vmem:[#allocation14_spill] sm:$0xff] }
 0x434   :  { %v1779_v8 = vrot.slane %v1778_v39, 2  ;;  %v1796_v22 = vadd.f32 %v1795_v23, %v1715_v36  ;;  %v1808_v11 = vadd.f32 0.8, %v1804_v20  ;;  %v9967_v36 = vld [vmem:[#allocation6 + $0x440] sm:$0xff]  ;;  %v13135_v20 = vld [vmem:[#allocation15_spill] sm:$0xff] }
 0x435   :  { %v9969_v23 = vld [vmem:[#allocation6 + $0x460] sm:$0xff] }
 0x436   :  { %v1780_v28 = vadd.f32 %v1779_v8, %v1778_v39  ;;  %v1797_v44 = vadd.f32 %v1796_v22, %v1719_v3  ;;  %8579 = vrsqrt.f32 %v1808_v11  ;;  %v1503_v39 = vld [vmem:[%s12741_s6 + $0x9] sm:$0xf]  ;;  %v9983_v3 = vld [vmem:[#allocation6 + $0x4a0] sm:$0xff]  ;;  %v9985_v22 = vld [vmem:[#allocation6 + $0x488] sm:$0xff] }
 0x437   :  { %8581 = vrsqrt.f32 %v1809_v63  ;;  %v9999_v37 = vrot.slane %v1503_v39, %v13135_v20  ;;  %v10007_v11 = vld [vmem:[#allocation6 + $0x4e8] sm:$0xff] }
 0x438   :  { %v1781_v5 = vrot.slane %v1780_v28, 1  ;;  %v1798_v17 = vrot.slane %v1797_v44, 4 }
 0x43a   :  { %v1782_v31 = vadd.f32 %v1781_v5, %v1780_v28  ;;  %v1799_v27 = vadd.f32 %v1798_v17, %v1797_v44  ;;  %v9987_v28 = vld [vmem:[#allocation6 + $0x4a8] sm:$0xff]  ;;  %v9990_v5 = vrot.slane %v1503_v39, %v13134_v14  ;;  %v9994_v17 = vld [vmem:[#allocation6 + $0x4e0] sm:$0xff] }
 0x43c   :  { %v1800_v35 = vrot.slane %v1799_v27, 2  ;;  %v1806_v56 = vmul.f32 0.0078125, %v1782_v31  ;;  %v9996_v31 = vld [vmem:[#allocation6 + $0x4c8] sm:$0xff] }
 0x43e   :  { %v1801_v16 = vadd.f32 %v1800_v35, %v1799_v27  ;;  %v1810_v50 = vadd.f32 0.8, %v1806_v56  ;;  %v9973_v56 = vld [vmem:[#allocation6 + $0x468] sm:$0xff] }
 0x440   :  { %v1802_v21 = vrot.slane %v1801_v16, 1  ;;  %8583 = vrsqrt.f32 %v1810_v50  ;;  %v8580_v57 = vpop.eup %8579 }
 0x441   :  { %v8582_v13 = vpop.eup %8581 }
 0x442   :  { %v1803_v15 = vadd.f32 %v1802_v21, %v1801_v16  ;;  %v9975_v21 = vld [vmem:[#allocation6 + $0x480] sm:$0xff]  ;;  %v1820_v27 = vcombine.low %v8580_v57, %v8582_v13 }
 0x443   :  { %v10033_v13 = vld [vmem:[#allocation6 + $0x560] sm:$0xff] }
 0x444   :  { %v1807_v8 = vmul.f32 0.0078125, %v1803_v15  ;;  %v13131_v15 = vld [vmem:[#allocation12_spill] sm:$0xff]  ;;  %v1828_v18 = vrot.slane %v1820_v27, %v13138_v7 }
 0x445   :  { %v9978_v50 = vsub.s32 2, %v13131_v15  ;;  %v9981_v63 = vsub.s32 3, %v13131_v15  ;;  %v10049_v57 = vld [vmem:[#allocation6 + $0x5a0] sm:$0xff] }
 0x446   :  { %v1811_v19 = vadd.f32 0.8, %v1807_v8  ;;  %v10009_v8 = vld [vmem:[#allocation6 + $0x500] sm:$0xff] }
 0x447   :  { %13132 = vst [vmem:[#allocation55_spill] sm:$0xff] %v9978_v50  ;;  %13133 = vst [vmem:[#allocation79_spill] sm:$0xff] %v9981_v63  ;;  %v10002_v35 = vrot.slane %v1503_v39, %v9978_v50  ;;  %v10005_v16 = vrot.slane %v1503_v39, %v9981_v63  ;;  %v10037_v39 = vld [vmem:[#allocation6 + $0x568] sm:$0xff]  ;;  %v10117_v27 = vld [vmem:[#allocation6 + $0x680] sm:$0xff] }
 0x448   :  { %8585 = vrsqrt.f32 %v1811_v19  ;;  %v10011_v19 = vld [vmem:[#allocation6 + $0x520] sm:$0xff]  ;;  %13147 = vst [vmem:[#allocation90_spill] sm:$0xff] %v10117_v27  ;;  %v10147_v63 = vld [vmem:[#allocation6 + $0x6e8] sm:$0xff] }
 0x449   :  { %13136 = vst [vmem:[#allocation80_spill] sm:$0xff] %v10002_v35  ;;  %13137 = vst [vmem:[#allocation81_spill] sm:$0xff] %v10005_v16  ;;  %v10115_v35 = vld [vmem:[#allocation6 + $0x668] sm:$0xff] }
 0x44a   :  { %v8584_v44 = vpop.eup %8583  ;;  %13146 = vst [vmem:[#allocation89_spill] sm:$0xff] %v10115_v35  ;;  %13155 = vst [vmem:[#allocation98_spill] sm:$0xff] %v10147_v63  ;;  %v10183_v35 = vld [vmem:[#allocation6 + $0x728] sm:$0xff] }
 0x44b   :  { %13159 = vst [vmem:[#allocation102_spill] sm:$0xff] %v10183_v35  ;;  %v13163_v27 = vld [vmem:[#allocation17_spill] sm:$0xff] }
 0x452   :  { %v8586_v15 = vpop.eup %8585 }
 0x453   :  { %v1821_v24 = vcombine.low %v8584_v44, %v8586_v15  ;;  %v10059_v44 = vld [vmem:[#allocation6 + $0x5a8] sm:$0xff] }
 0x454   :  { %v10092_v15 = vld [vmem:[#allocation6 + $0x628] sm:$0xff] }
 0x455   :  { %v1835_v47 = vrot.slane %v1821_v24, %v13138_v7  ;;  %13142 = vst [vmem:[#allocation85_spill] sm:$0xff] %v10092_v15  ;;  %v10104_v24 = vld [vmem:[#allocation6 + $0x660] sm:$0xff] }
 0x456   :  { %13144 = vst [vmem:[#allocation87_spill] sm:$0xff] %v10104_v24 }
 0x457   :  { %v1836_v46 = vcombine.low %v1828_v18, %v1835_v47  ;;  %v10131_v47 = vld [vmem:[#allocation6 + $0x6a8] sm:$0xff] }
 0x458   :  { %13150 = vst [vmem:[#allocation93_spill] sm:$0xff] %v10131_v47  ;;  %v10145_v18 = vld [vmem:[#allocation6 + $0x6c8] sm:$0xff] }
 0x459   :  { %v1843_v16 = vrot.slane %v1836_v46, %v13138_v7  ;;  %v10129_v7 = vld [vmem:[#allocation6 + $0x688] sm:$0xff]  ;;  %13154 = vst [vmem:[#allocation97_spill] sm:$0xff] %v10145_v18 }
 0x45a   :  { %13149 = vst [vmem:[#allocation92_spill] sm:$0xff] %v10129_v7  ;;  %v13164_v18 = vld [vmem:[#allocation33_spill] sm:$0xff]  ;;  %v13165_v7 = vld [vmem:[#allocation34_spill] sm:$0xff] }
 0x45b   :  { %v10135_v26 = vmul.f32 %v1843_v16, %v1502_v45  ;;  %v13160_v45 = vld [vmem:[#allocation31_spill] sm:$0xff]  ;;  %v13161_v16 = vld [vmem:[#allocation32_spill] sm:$0xff] }
 0x45d   :  { %13152 = vst [vmem:[#allocation95_spill] sm:$0xff] %v10135_v26  ;;  %v10163_v24 = vrot.slane %v10135_v26, %v13134_v14  ;;  %v10167_v50 = vrot.slane %v10135_v26, %v13135_v20  ;;  %v10181_v20 = vld [vmem:[#allocation6 + $0x708] sm:$0xff]  ;;  %v13162_v14 = vld [vmem:[#allocation16_spill] sm:$0xff]  ;;  %v13166_v26 = vld [vmem:[#allocation18_spill] sm:$0xff] }
 0x45e   :  { %13158 = vst [vmem:[#allocation101_spill] sm:$0xff] %v10181_v20 }
 0x45f   :  { %v1868_v33 = vmul.f32 %v10167_v50, %v13160_v45  ;;  %v1872_v47 = vmul.f32 %v10167_v50, %v13161_v16  ;;  %v1867_v9 = vmul.f32 %v10163_v24, %v13162_v14  ;;  %v1871_v63 = vmul.f32 %v10163_v24, %v13163_v27  ;;  %v10203_v16 = vld [vmem:[#allocation6 + $0x760] sm:$0xff] }
 0x460   :  { %v1876_v54 = vmul.f32 %v10167_v50, %v13164_v18  ;;  %v1880_v45 = vmul.f32 %v10167_v50, %v13165_v7 }
 0x461   :  { %v1953_v46 = vadd.f32 %v9999_v37, %v1868_v33  ;;  %v1957_v52 = vadd.f32 %v9999_v37, %v1872_v47  ;;  %v1952_v59 = vadd.f32 %v9990_v5, %v1867_v9  ;;  %v1956_v18 = vadd.f32 %v9990_v5, %v1871_v63 }
 0x462   :  { %v1961_v7 = vadd.f32 %v9999_v37, %v1876_v54  ;;  %v1965_v30 = vadd.f32 %v9999_v37, %v1880_v45  ;;  %v1875_v33 = vmul.f32 %v10163_v24, %v13166_v26  ;;  %v13167_v26 = vld [vmem:[#allocation19_spill] sm:$0xff] }
 0x463   :  { %vm2017_vm1 = vcmp.gt.f32.partialorder %v1953_v46, 0.0  ;;  %vm2021_vm2 = vcmp.gt.f32.partialorder %v1957_v52, 0.0  ;;  %v2081_v14 = vmul.f32 0.2, %v1953_v46  ;;  %v2085_v10 = vmul.f32 0.2, %v1957_v52 }
 0x464   :  { %vm2016_vm3 = vcmp.gt.f32.partialorder %v1952_v59, 0.0  ;;  %vm2020_vm4 = vcmp.gt.f32.partialorder %v1956_v18, 0.0  ;;  %v2080_v27 = vmul.f32 0.2, %v1952_v59  ;;  %v2084_v9 = vmul.f32 0.2, %v1956_v18 }
 0x465   :  { %vm2025_vm5 = vcmp.gt.f32.partialorder %v1961_v7, 0.0  ;;  %vm2029_vm6 = vcmp.gt.f32.partialorder %v1965_v30, 0.0  ;;  %v2145_v63 = vsel %vm2017_vm1, %v1953_v46, %v2081_v14  ;;  %v2149_v54 = vsel %vm2021_vm2, %v1957_v52, %v2085_v10  ;;  %v13168_v46 = vld [vmem:[#allocation35_spill] sm:$0xff] }
 0x466   :  { %v2089_v35 = vmul.f32 0.2, %v1961_v7  ;;  %v2093_v45 = vmul.f32 0.2, %v1965_v30  ;;  %v10219_v20 = vpack.c.bf16 %v2149_v54, %v2145_v63  ;;  %v2144_v60 = vsel %vm2016_vm3, %v1952_v59, %v2080_v27 }
 0x467   :  { %v2148_v15 = vsel %vm2020_vm4, %v1956_v18, %v2084_v9  ;;  %v1879_v48 = vmul.f32 %v10163_v24, %v13167_v26  ;;  %v1960_v0 = vadd.f32 %v9990_v5, %v1875_v33  ;;  %v1884_v59 = vmul.f32 %v10167_v50, %v13168_v46  ;;  %v13173_v18 = vld [vmem:[#allocation21_spill] sm:$0xff] }
 0x468   :  { %v10223_v47 = vpack.c.bf16 %v2148_v15, %v2144_v60  ;;  %v2153_v40 = vsel %vm2025_vm5, %v1961_v7, %v2089_v35  ;;  %v2157_v41 = vsel %vm2029_vm6, %v1965_v30, %v2093_v45  ;;  %3808 = vmatprep.mubr.bf16.mxu0 %v10219_v20  ;;  %4034 = vmatprep.mubr.bf16.mxu1 %v10219_v20  ;;  %v13169_v30 = vld [vmem:[#allocation36_spill] sm:$0xff] }
 0x469   :  { %v10228_v52 = vpack.c.bf16 %v2157_v41, %v2153_v40  ;;  %v1964_v10 = vadd.f32 %v9990_v5, %v1879_v48  ;;  %vm2024_vm7 = vcmp.gt.f32.partialorder %v1960_v0, 0.0  ;;  %v2088_v60 = vmul.f32 0.2, %v1960_v0  ;;  %v13170_v15 = vld [vmem:[#allocation20_spill] sm:$0xff] }
 0x46a   :  { %3809 = vmatmul.mubr.bf16.vlgmr.msra.gmra.mrb[16].mxu0 %v10223_v47  ;;  %4035 = vmatmul.mubr.bf16.vlgmr.msra.gmra.mrb[96].mxu1 %v10223_v47  ;;  %v1888_v35 = vmul.f32 %v10167_v50, %v13169_v30  ;;  %v1883_v14 = vmul.f32 %v10163_v24, %v13170_v15  ;;  %v13171_v41 = vcombine.low %v9745_v25, %v9747_v2 }
 0x46b   :  { %v13172_v40 = vcombine.low %v9750_v32, %v9752_v6  ;;  %vm2028_vm8 = vcmp.gt.f32.partialorder %v1964_v10, 0.0  ;;  %v2092_v48 = vmul.f32 0.2, %v1964_v10  ;;  %v1969_v27 = vadd.f32 %v9999_v37, %v1884_v59  ;;  %3818 = vmatprep.mubr.bf16.mxu0 %v10228_v52  ;;  %4044 = vmatprep.mubr.bf16.mxu1 %v10228_v52 }
 0x46c   :  { %3890 = vmatpush1.bf16.msra.mxu0 %v13171_v41  ;;  %v1887_v7 = vmul.f32 %v10163_v24, %v13173_v18  ;;  %v2152_v33 = vsel %vm2024_vm7, %v1960_v0, %v2088_v60  ;;  %v1973_v9 = vadd.f32 %v9999_v37, %v1888_v35  ;;  %v1968_v2 = vadd.f32 %v9990_v5, %v1883_v14  ;;  %v13180_v14 = vld [vmem:[#allocation37_spill] sm:$0xff] }
 0x46d   :  { %4116 = vmatpush1.bf16.msra.mxu1 %v13172_v40  ;;  %v13174_v6 = vcombine.high %v9967_v36, %v9969_v23  ;;  %v13175_v32 = vcombine.high %v9971_v61, %v9973_v56  ;;  %v2156_v25 = vsel %vm2028_vm8, %v1964_v10, %v2092_v48  ;;  %vm2033_vm9 = vcmp.gt.f32.partialorder %v1969_v27, 0.0  ;;  %v13182_v40 = vld [vmem:[#allocation22_spill] sm:$0xff] }
 0x46e   :  { %v2097_v63 = vmul.f32 0.2, %v1969_v27  ;;  %v1972_v54 = vadd.f32 %v9990_v5, %v1887_v7  ;;  %v10259_v45 = vpack.c.bf16 %v2156_v25, %v2152_v33  ;;  %vm2037_vm10 = vcmp.gt.f32.partialorder %v1973_v9, 0.0 }
 0x46f   :  { %3891 = vmatprep.subr.bf16.mxu0 %v13174_v6  ;;  %4117 = vmatprep.subr.bf16.mxu1 %v13175_v32  ;;  %v2101_v0 = vmul.f32 0.2, %v1973_v9  ;;  %vm2032_vm11 = vcmp.gt.f32.partialorder %v1968_v2, 0.0  ;;  %v13176_v26 = vcombine.low %v9967_v36, %v9969_v23  ;;  %v13177_v46 = vcombine.low %v9971_v61, %v9973_v56  ;;  %v13181_v23 = vld [vmem:[#allocation38_spill] sm:$0xff]  ;;  %v13185_v32 = vld [vmem:[#allocation23_spill] sm:$0xff] }
 0x470   :  { %v2161_v59 = vsel %vm2033_vm9, %v1969_v27, %v2097_v63  ;;  %vm2036_vm12 = vcmp.gt.f32.partialorder %v1972_v54, 0.0  ;;  %v2096_v10 = vmul.f32 0.2, %v1968_v2  ;;  %v2100_v60 = vmul.f32 0.2, %v1972_v54  ;;  %v10548_v27 = vld [vmem:[#allocation6 + $0x70] sm:$0xff] }
 0x471   :  { %3892 = vmatpush1.bf16.msra.mxu0 %v13176_v26  ;;  %4118 = vmatpush1.bf16.msra.mxu1 %v13177_v46  ;;  %v13178_v30 = vcombine.high %v9975_v21, %v9983_v3  ;;  %v13179_v35 = vcombine.high %v9985_v22, %v9987_v28  ;;  %v2165_v15 = vsel %vm2037_vm10, %v1973_v9, %v2101_v0  ;;  %v10287_v9 = vld [vmem:[#allocation6 + $0x748] sm:$0xff]  ;;  %v10302_v46 = vld [vmem:[#allocation6 + $0x780] sm:$0xff] }
 0x472   :  { %v1892_v36 = vmul.f32 %v10167_v50, %v13180_v14  ;;  %v1896_v61 = vmul.f32 %v10167_v50, %v13181_v23  ;;  %v10277_v56 = vpack.c.bf16 %v2165_v15, %v2161_v59  ;;  %v2160_v41 = vsel %vm2032_vm11, %v1968_v2, %v2096_v10  ;;  %3819 = vmatmul.mubr.bf16.gmra.mrb[20].mxu0 %v10259_v45  ;;  %v10300_v26 = vld [vmem:[#allocation6 + $0x768] sm:$0xff]  ;;  %v10304_v59 = vld [vmem:[#allocation6 + $0x7a0] sm:$0xff] }
 0x473   :  { %3893 = vmatprep.subr.bf16.mxu0 %v13178_v30  ;;  %4119 = vmatprep.subr.bf16.mxu1 %v13179_v35  ;;  %v1891_v48 = vmul.f32 %v10163_v24, %v13182_v40  ;;  %v2164_v18 = vsel %vm2036_vm12, %v1972_v54, %v2100_v60  ;;  %v13183_v2 = vcombine.low %v9975_v21, %v9983_v3  ;;  %v13186_v54 = vld [vmem:[#allocation39_spill] sm:$0xff]  ;;  %v13189_v30 = vld [vmem:[#allocation40_spill] sm:$0xff] }
 0x474   :  { %4045 = vmatmul.mubr.bf16.gmra.mrb[100].mxu1 %v10259_v45  ;;  %v1977_v7 = vadd.f32 %v9999_v37, %v1892_v36  ;;  %v1981_v33 = vadd.f32 %v9999_v37, %v1896_v61  ;;  %v13184_v6 = vcombine.low %v9985_v22, %v9987_v28  ;;  %v1895_v25 = vmul.f32 %v10163_v24, %v13185_v32  ;;  %v13190_v23 = vld [vmem:[#allocation24_spill] sm:$0xff] }
 0x475   :  { %3894 = vmatpush1.bf16.msra.mxu0 %v13183_v2  ;;  %v1976_v63 = vadd.f32 %v9990_v5, %v1891_v48  ;;  %v1900_v0 = vmul.f32 %v10167_v50, %v13186_v54  ;;  %3828 = vmatprep.mubr.bf16.mxu0 %v10277_v56  ;;  %v13187_v22 = vcombine.high %v9992_v1, %v9994_v17 }
 0x476   :  { %4120 = vmatpush1.bf16.msra.mxu1 %v13184_v6  ;;  %4054 = vmatprep.mubr.bf16.mxu1 %v10277_v56  ;;  %vm2041_vm13 = vcmp.gt.f32.partialorder %v1977_v7, 0.0  ;;  %vm2045_vm14 = vcmp.gt.f32.partialorder %v1981_v33, 0.0  ;;  %v2105_v21 = vmul.f32 0.2, %v1977_v7  ;;  %v2109_v3 = vmul.f32 0.2, %v1981_v33 }
 0x477   :  { %3895 = vmatprep.subr.bf16.mxu0 %v13187_v22  ;;  %v13188_v28 = vcombine.high %v9996_v31, %v10007_v11  ;;  %v1980_v10 = vadd.f32 %v9990_v5, %v1895_v25  ;;  %vm2040_vm15 = vcmp.gt.f32.partialorder %v1976_v63, 0.0  ;;  %v2104_v60 = vmul.f32 0.2, %v1976_v63  ;;  %v13197_v22 = vld [vmem:[#allocation42_spill] sm:$0xff]  ;;  %v13249_v6 = vld [vmem:[#allocation80_spill] sm:$0xff] }
 0x478   :  { %v1904_v35 = vmul.f32 %v10167_v50, %v13189_v30  ;;  %v2169_v15 = vsel %vm2041_vm13, %v1977_v7, %v2105_v21  ;;  %v2173_v14 = vsel %vm2045_vm14, %v1981_v33, %v2109_v3  ;;  %v1985_v36 = vadd.f32 %v9999_v37, %v1900_v0  ;;  %v13196_v21 = vld [vmem:[#allocation41_spill] sm:$0xff] }
 0x479   :  { %4121 = vmatprep.subr.bf16.mxu1 %v13188_v28  ;;  %v1899_v61 = vmul.f32 %v10163_v24, %v13190_v23  ;;  %v13191_v40 = vcombine.low %v9992_v1, %v9994_v17  ;;  %v13192_v48 = vcombine.low %v9996_v31, %v10007_v11  ;;  %v2108_v2 = vmul.f32 0.2, %v1980_v10  ;;  %v13195_v11 = vld [vmem:[#allocation25_spill] sm:$0xff] }
 0x47a   :  { %v13193_v32 = vcombine.high %v10009_v8, %v10011_v19  ;;  %v13194_v1 = vcombine.high %v10021_v49, %v10023_v55  ;;  %v10338_v17 = vpack.c.bf16 %v2164_v18, %v2160_v41  ;;  %vm2044_vm0 = vcmp.gt.f32.partialorder %v1980_v10, 0.0  ;;  %v10350_v30 = vld [vmem:[#allocation6 + $0x788] sm:$0xff]  ;;  %v10354_v18 = vld [vmem:[#allocation6 + $0x7c0] sm:$0xff] }
 0x47b   :  { %3896 = vmatpush1.bf16.msra.mxu0 %v13191_v40  ;;  %4122 = vmatpush1.bf16.msra.mxu1 %v13192_v48  ;;  %v1989_v31 = vadd.f32 %v9999_v37, %v1904_v35  ;;  %v1903_v25 = vmul.f32 %v10163_v24, %v13195_v11  ;;  %v10343_v54 = vpack.c.bf16 %v2173_v14, %v2169_v15  ;;  %v10352_v41 = vld [vmem:[#allocation6 + $0x7a8] sm:$0xff]  ;;  %vm2049_vm1 = vcmp.gt.f32.partialorder %v1985_v36, 0.0 }
 0x47c   :  { %3897 = vmatprep.subr.bf16.mxu0 %v13193_v32  ;;  %4123 = vmatprep.subr.bf16.mxu1 %v13194_v1  ;;  %v2168_v0 = vsel %vm2040_vm15, %v1976_v63, %v2104_v60  ;;  %v1908_v3 = vmul.f32 %v10167_v50, %v13196_v21  ;;  %v1912_v28 = vmul.f32 %v10167_v50, %v13197_v22  ;;  %v2113_v35 = vmul.f32 0.2, %v1985_v36  ;;  %v10359_v60 = vld [vmem:[#allocation6 + $0x7e0] sm:$0xff]  ;;  %v13200_v1 = vld [vmem:[#allocation26_spill] sm:$0xff] }
 0x47d   :  { %3829 = vmatmul.mubr.bf16.gmra.mrb[24].mxu0 %v10338_v17  ;;  %4055 = vmatmul.mubr.bf16.gmra.mrb[104].mxu1 %v10338_v17  ;;  %v2117_v15 = vmul.f32 0.2, %v1989_v31  ;;  %v1984_v63 = vadd.f32 %v9990_v5, %v1899_v61  ;;  %v13198_v14 = vcombine.low %v10009_v8, %v10011_v19  ;;  %v13199_v23 = vcombine.low %v10021_v49, %v10023_v55  ;;  %v13248_v55 = vld [vmem:[#allocation57_spill] sm:$0xff] }
 0x47e   :  { %v2172_v40 = vsel %vm2044_vm0, %v1980_v10, %v2108_v2  ;;  %vm2053_vm2 = vcmp.gt.f32.partialorder %v1989_v31, 0.0  ;;  %v1988_v48 = vadd.f32 %v9990_v5, %v1903_v25  ;;  %v1993_v32 = vadd.f32 %v9999_v37, %v1908_v3  ;;  %3838 = vmatprep.mubr.bf16.mxu0 %v10343_v54  ;;  %4064 = vmatprep.mubr.bf16.mxu1 %v10343_v54  ;;  %v13245_v2 = vld [vmem:[#allocation93_spill] sm:$0xff] }
 0x47f   :  { %3898 = vmatpush1.bf16.msra.mxu0 %v13198_v14  ;;  %4124 = vmatpush1.bf16.msra.mxu1 %v13199_v23  ;;  %v1997_v61 = vadd.f32 %v9999_v37, %v1912_v28  ;;  %v1907_v8 = vmul.f32 %v10163_v24, %v13200_v1  ;;  %v13201_v49 = vcombine.high %v10025_v53, %v10033_v13  ;;  %v2112_v22 = vmul.f32 0.2, %v1984_v63  ;;  %v10392_v28 = vld [vmem:[#allocation6 + $0x7c8] sm:$0xff] }
 0x480   :  { %v13202_v19 = vcombine.high %v10035_v38, %v10037_v39  ;;  %v10389_v25 = vpack.c.bf16 %v2172_v40, %v2168_v0  ;;  %v2177_v21 = vsel %vm2049_vm1, %v1985_v36, %v2113_v35  ;;  %v2181_v3 = vsel %vm2053_vm2, %v1989_v31, %v2117_v15  ;;  %v10394_v14 = vld [vmem:[#allocation6 + $0x7e8] sm:$0xff]  ;;  %v13205_v0 = vld [vmem:[#allocation27_spill] sm:$0xff] }
 0x481   :  { %3899 = vmatprep.subr.bf16.mxu0 %v13201_v49  ;;  %v13203_v23 = vcombine.low %v10025_v53, %v10033_v13  ;;  %v13204_v1 = vcombine.low %v10035_v38, %v10037_v39  ;;  %v2116_v49 = vmul.f32 0.2, %v1988_v48  ;;  %v1911_v40 = vmul.f32 %v10163_v24, %v13205_v0 }
 0x482   :  { %4125 = vmatprep.subr.bf16.mxu1 %v13202_v19  ;;  %v2121_v19 = vmul.f32 0.2, %v1993_v32  ;;  %v1992_v36 = vadd.f32 %v9990_v5, %v1907_v8  ;;  %v13206_v31 = vcombine.high %v10047_v58, %v10049_v57  ;;  %v13207_v35 = vcombine.high %v10051_v62, %v10059_v44  ;;  %v13208_v8 = vld [vmem:[#allocation43_spill] sm:$0xff] }
 0x483   :  { %3900 = vmatpush1.bf16.msra.mxu0 %v13203_v23  ;;  %4126 = vmatpush1.bf16.msra.mxu1 %v13204_v1  ;;  %vm2048_vm3 = vcmp.gt.f32.partialorder %v1984_v63, 0.0  ;;  %vm2052_vm4 = vcmp.gt.f32.partialorder %v1988_v48, 0.0  ;;  %vm2057_vm5 = vcmp.gt.f32.partialorder %v1993_v32, 0.0  ;;  %v2125_v38 = vmul.f32 0.2, %v1997_v61 }
 0x484   :  { %3901 = vmatprep.subr.bf16.mxu0 %v13206_v31  ;;  %4127 = vmatprep.subr.bf16.mxu1 %v13207_v35  ;;  %vm2061_vm6 = vcmp.gt.f32.partialorder %v1997_v61, 0.0  ;;  %v1996_v53 = vadd.f32 %v9990_v5, %v1911_v40  ;;  %v10418_v15 = vpack.c.bf16 %v2181_v3, %v2177_v21  ;;  %v1916_v23 = vmul.f32 %v10167_v50, %v13208_v8  ;;  %v10430_v21 = vld [vmem:[#allocation6 + $0x10] sm:$0xff] }
 0x485   :  { %3839 = vmatmul.mubr.bf16.gmra.mrb[28].mxu0 %v10389_v25  ;;  %4065 = vmatmul.mubr.bf16.gmra.mrb[108].mxu1 %v10389_v25  ;;  %v1920_v1 = vmul.f32 %v10167_v50, %v13124_v4  ;;  %v13209_v0 = vcombine.low %v10047_v58, %v10049_v57  ;;  %v13210_v40 = vcombine.low %v10051_v62, %v10059_v44  ;;  %v2120_v11 = vmul.f32 0.2, %v1992_v36  ;;  %v10432_v3 = vld [vmem:[#allocation6 + $0x30] sm:$0xff]  ;;  %v13211_v57 = vld [vmem:[#allocation28_spill] sm:$0xff] }
 0x486   :  { %v2176_v31 = vsel %vm2048_vm3, %v1984_v63, %v2112_v22  ;;  %v2180_v35 = vsel %vm2052_vm4, %v1988_v48, %v2116_v49  ;;  %v2185_v39 = vsel %vm2057_vm5, %v1993_v32, %v2121_v19  ;;  %3848 = vmatprep.mubr.bf16.mxu0 %v10418_v15  ;;  %4074 = vmatprep.mubr.bf16.mxu1 %v10418_v15  ;;  %vm2056_vm7 = vcmp.gt.f32.partialorder %v1992_v36, 0.0  ;;  %v13214_v22 = vld [vmem:[#allocation45_spill] sm:$0xff] }
 0x487   :  { %3902 = vmatpush1.bf16.msra.mxu0 %v13209_v0  ;;  %4128 = vmatpush1.bf16.msra.mxu1 %v13210_v40  ;;  %v2189_v4 = vsel %vm2061_vm6, %v1997_v61, %v2125_v38  ;;  %v2124_v58 = vmul.f32 0.2, %v1996_v53  ;;  %v1915_v62 = vmul.f32 %v10163_v24, %v13211_v57  ;;  %v13212_v44 = vcombine.high %v10061_v43, %v10063_v34  ;;  %v13217_v57 = vld [vmem:[#allocation82_spill] sm:$0xff]  ;;  %v13221_v38 = vld [vmem:[#allocation85_spill] sm:$0xff] }
 0x488   :  { %v13213_v63 = vcombine.high %v10076_v51, %v10078_v12  ;;  %vm2060_vm8 = vcmp.gt.f32.partialorder %v1996_v53, 0.0  ;;  %v2001_v48 = vadd.f32 %v9999_v37, %v1916_v23  ;;  %v2005_v32 = vadd.f32 %v9999_v37, %v1920_v1 }
 0x489   :  { %3903 = vmatprep.subr.bf16.mxu0 %v13212_v44  ;;  %v1919_v61 = vmul.f32 %v10163_v24, %v9579_v42  ;;  %v1924_v49 = vmul.f32 %v10167_v50, %v13214_v22  ;;  %v13215_v23 = vcombine.low %v10061_v43, %v10063_v34  ;;  %v13216_v1 = vcombine.low %v10076_v51, %v10078_v12  ;;  %v13218_v44 = vld [vmem:[#allocation83_spill] sm:$0xff]  ;;  %v13220_v22 = vld [vmem:[#allocation84_spill] sm:$0xff] }
 0x48a   :  { %4129 = vmatprep.subr.bf16.mxu1 %v13213_v63  ;;  %v10463_v42 = vpack.c.bf16 %v2180_v35, %v2176_v31  ;;  %v10465_v0 = vpack.c.bf16 %v2189_v4, %v2185_v39  ;;  %v2184_v40 = vsel %vm2056_vm7, %v1992_v36, %v2120_v11  ;;  %v13219_v63 = vcombine.high %v13217_v57, %v13218_v44  ;;  %v10477_v51 = vld [vmem:[#allocation6 + $0x18] sm:$0xff]  ;;  %v13224_v4 = vld [vmem:[#allocation29_spill] sm:$0xff] }
 0x48b   :  { %3904 = vmatpush1.bf16.msra.mxu0 %v13215_v23  ;;  %4130 = vmatpush1.bf16.msra.mxu1 %v13216_v1  ;;  %v13222_v8 = vcombine.high %v13220_v22, %v13221_v38  ;;  %v2188_v43 = vsel %vm2060_vm8, %v1996_v53, %v2124_v58  ;;  %v2000_v34 = vadd.f32 %v9990_v5, %v1915_v62  ;;  %v13223_v23 = vld [vmem:[#allocation46_spill] sm:$0xff]  ;;  %v10479_v39 = vld [vmem:[#allocation6 + $0x38] sm:$0xff]  ;;  %vm2065_vm9 = vcmp.gt.f32.partialorder %v2001_v48, 0.0 }
 0x48c   :  { %3905 = vmatprep.subr.bf16.mxu0 %v13219_v63  ;;  %v1928_v12 = vmul.f32 %v10167_v50, %v13223_v23  ;;  %v2129_v11 = vmul.f32 0.2, %v2001_v48  ;;  %v2133_v36 = vmul.f32 0.2, %v2005_v32  ;;  %v2004_v31 = vadd.f32 %v9990_v5, %v1919_v61  ;;  %v13225_v58 = vld [vmem:[#allocation55_spill] sm:$0xff] }
 0x48d   :  { %4131 = vmatprep.subr.bf16.mxu1 %v13222_v8  ;;  %3849 = vmatmul.mubr.bf16.gmra.mrb[32].mxu0 %v10463_v42  ;;  %vm2069_vm10 = vcmp.gt.f32.partialorder %v2005_v32, 0.0  ;;  %v2009_v53 = vadd.f32 %v9999_v37, %v1924_v49  ;;  %v1923_v50 = vmul.f32 %v10163_v24, %v13224_v4  ;;  %v13226_v62 = vld [vmem:[#allocation95_spill] sm:$0xff]  ;;  %v13228_v61 = vcombine.low %v13217_v57, %v13218_v44  ;;  %v13230_v57 = vld [vmem:[#allocation86_spill] sm:$0xff] }
 0x48e   :  { %4075 = vmatmul.mubr.bf16.gmra.mrb[112].mxu1 %v10463_v42  ;;  %v2013_v35 = vadd.f32 %v9999_v37, %v1928_v12  ;;  %v10490_v8 = vrot.slane %v13226_v62, %v13225_v58  ;;  %v13227_v1 = vld [vmem:[#allocation79_spill] sm:$0xff]  ;;  %v13229_v49 = vcombine.low %v13220_v22, %v13221_v38  ;;  %3858 = vmatprep.mubr.bf16.mxu0 %v10465_v0  ;;  %vm2064_vm11 = vcmp.gt.f32.partialorder %v2000_v34, 0.0  ;;  %v13233_v38 = vld [vmem:[#allocation88_spill] sm:$0xff]  ;;  %v13234_v22 = vld [vmem:[#allocation89_spill] sm:$0xff] }
 0x48f   :  { %v10494_v63 = vrot.slane %v13226_v62, %v13227_v1  ;;  %3906 = vmatpush1.bf16.msra.mxu0 %v13228_v61  ;;  %4084 = vmatprep.mubr.bf16.mxu1 %v10465_v0  ;;  %v10506_v23 = vpack.c.bf16 %v2188_v43, %v2184_v40  ;;  %v2128_v12 = vmul.f32 0.2, %v2000_v34  ;;  %v13231_v44 = vld [vmem:[#allocation87_spill] sm:$0xff]  ;;  %v13235_v61 = vcombine.high %v13233_v38, %v13234_v22  ;;  %v13236_v40 = vld [vmem:[#allocation30_spill] sm:$0xff]  ;;  %v13274_v1 = vld [vmem:[#allocation61_spill] sm:$0xff] }
 0x490   :  { %4132 = vmatpush1.bf16.msra.mxu1 %v13229_v49  ;;  %v13232_v62 = vcombine.high %v13230_v57, %v13231_v44  ;;  %v2193_v49 = vsel %vm2065_vm9, %v2001_v48, %v2129_v11  ;;  %v2197_v37 = vsel %vm2069_vm10, %v2005_v32, %v2133_v36  ;;  %v2132_v19 = vmul.f32 0.2, %v2004_v31  ;;  %v13239_v48 = vld [vmem:[#allocation72_spill] sm:$0xff]  ;;  %v13241_v36 = vld [vmem:[#allocation90_spill] sm:$0xff] }
 0x491   :  { %4133 = vmatprep.subr.bf16.mxu1 %v13235_v61  ;;  %v1927_v43 = vmul.f32 %v10163_v24, %v13236_v40  ;;  %vm2068_vm12 = vcmp.gt.f32.partialorder %v2004_v31, 0.0  ;;  %v2137_v13 = vmul.f32 0.2, %v2009_v53  ;;  %v2141_v10 = vmul.f32 0.2, %v2013_v35  ;;  %v13240_v11 = vld [vmem:[#allocation56_spill] sm:$0xff] }
 0x492   :  { %3907 = vmatprep.subr.bf16.mxu0 %v13232_v62  ;;  %v2008_v4 = vadd.f32 %v9990_v5, %v1923_v50  ;;  %v13237_v62 = vcombine.low %v13230_v57, %v13231_v44  ;;  %v13238_v61 = vcombine.low %v13233_v38, %v13234_v22  ;;  %vm2073_vm13 = vcmp.gt.f32.partialorder %v2009_v53, 0.0  ;;  %v13242_v40 = vld [vmem:[#allocation91_spill] sm:$0xff]  ;;  %v13244_v50 = vld [vmem:[#allocation92_spill] sm:$0xff]  ;;  %v13247_v22 = vld [vmem:[#allocation73_spill] sm:$0xff] }
 0x493   :  { %vm2077_vm14 = vcmp.gt.f32.partialorder %v2013_v35, 0.0  ;;  %v1870_v32 = vmul.f32 %v10494_v63, %v13239_v48  ;;  %v1869_v24 = vmul.f32 %v10490_v8, %v13240_v11  ;;  %v13243_v33 = vcombine.high %v13241_v36, %v13242_v40 }
 0x494   :  { %3908 = vmatpush1.bf16.msra.mxu0 %v13237_v62  ;;  %4134 = vmatpush1.bf16.msra.mxu1 %v13238_v61  ;;  %v13246_v57 = vcombine.high %v13244_v50, %v13245_v2  ;;  %v10537_v44 = vpack.c.bf16 %v2197_v37, %v2193_v49  ;;  %v2192_v38 = vsel %vm2064_vm11, %v2000_v34, %v2128_v12  ;;  %vm2072_vm15 = vcmp.gt.f32.partialorder %v2008_v4, 0.0 }
 0x495   :  { %3909 = vmatprep.subr.bf16.mxu0 %v13243_v33  ;;  %v1874_v62 = vmul.f32 %v10494_v63, %v13247_v22  ;;  %v2196_v61 = vsel %vm2068_vm12, %v2004_v31, %v2132_v19  ;;  %v2012_v48 = vadd.f32 %v9990_v5, %v1927_v43  ;;  %v1873_v11 = vmul.f32 %v10490_v8, %v13248_v55  ;;  %v10546_v33 = vld [vmem:[#allocation6 + $0x50] sm:$0xff]  ;;  %v13252_v31 = vld [vmem:[#allocation81_spill] sm:$0xff] }
 0x496   :  { %4135 = vmatprep.subr.bf16.mxu1 %v13246_v57  ;;  %v1954_v7 = vadd.f32 %v13249_v6, %v1869_v24  ;;  %3859 = vmatmul.mubr.bf16.gmra.mrb[36].mxu0 %v10506_v23  ;;  %v2201_v34 = vsel %vm2073_vm13, %v2009_v53, %v2137_v13  ;;  %v2205_v37 = vsel %vm2077_vm14, %v2013_v35, %v2141_v10  ;;  %v2136_v19 = vmul.f32 0.2, %v2008_v4  ;;  %v13253_v35 = vld [vmem:[#allocation94_spill] sm:$0xff] }
 0x497   :  { %4085 = vmatmul.mubr.bf16.gmra.mrb[116].mxu1 %v10506_v23  ;;  %v13250_v5 = vcombine.low %v13241_v36, %v13242_v40  ;;  %v13251_v55 = vcombine.low %v13244_v50, %v13245_v2  ;;  %v1955_v12 = vadd.f32 %v13252_v31, %v1870_v32  ;;  %v1958_v49 = vadd.f32 %v13249_v6, %v1873_v11  ;;  %v13254_v2 = vld [vmem:[#allocation96_spill] sm:$0xff]  ;;  %v13256_v32 = vld [vmem:[#allocation97_spill] sm:$0xff]  ;;  %v13257_v36 = vld [vmem:[#allocation98_spill] sm:$0xff] }
 0x498   :  { %vm2018_vm0 = vcmp.gt.f32.partialorder %v1954_v7, 0.0  ;;  %v2082_v43 = vmul.f32 0.2, %v1954_v7  ;;  %3868 = vmatprep.mubr.bf16.mxu0 %v10537_v44  ;;  %4094 = vmatprep.mubr.bf16.mxu1 %v10537_v44  ;;  %v10564_v10 = vpack.c.bf16 %v2196_v61, %v2192_v38  ;;  %v1959_v13 = vadd.f32 %v13252_v31, %v1874_v62  ;;  %v13259_v22 = vld [vmem:[#allocation58_spill] sm:$0xff] }
 0x499   :  { %3910 = vmatpush1.bf16.msra.mxu0 %v13250_v5  ;;  %4136 = vmatpush1.bf16.msra.mxu1 %v13251_v55  ;;  %v13255_v24 = vcombine.high %v13253_v35, %v13254_v2  ;;  %v13258_v40 = vcombine.high %v13256_v32, %v13257_v36  ;;  %vm2022_vm1 = vcmp.gt.f32.partialorder %v1958_v49, 0.0  ;;  %v2086_v50 = vmul.f32 0.2, %v1958_v49 }
 0x49a   :  { %v2146_v57 = vsel %vm2018_vm0, %v1954_v7, %v2082_v43  ;;  %v1877_v38 = vmul.f32 %v10490_v8, %v13259_v22  ;;  %v10577_v61 = vpack.c.bf16 %v2205_v37, %v2201_v34  ;;  %vm2076_vm2 = vcmp.gt.f32.partialorder %v2012_v48, 0.0  ;;  %v13262_v7 = vld [vmem:[#allocation59_spill] sm:$0xff] }
 0x49b   :  { %3911 = vmatprep.subr.bf16.mxu0 %v13255_v24  ;;  %4137 = vmatprep.subr.bf16.mxu1 %v13258_v40  ;;  %v2140_v62 = vmul.f32 0.2, %v2012_v48  ;;  %v2200_v11 = vsel %vm2072_vm15, %v2008_v4, %v2136_v19  ;;  %v13260_v5 = vcombine.low %v13253_v35, %v13254_v2  ;;  %v13261_v55 = vcombine.low %v13256_v32, %v13257_v36  ;;  %v13263_v37 = vld [vmem:[#allocation99_spill] sm:$0xff]  ;;  %v13264_v40 = vld [vmem:[#allocation100_spill] sm:$0xff]  ;;  %v13266_v4 = vld [vmem:[#allocation101_spill] sm:$0xff] }
 0x49c   :  { %vm2019_vm3 = vcmp.gt.f32.partialorder %v1955_v12, 0.0  ;;  %v2150_v24 = vsel %vm2022_vm1, %v1958_v49, %v2086_v50  ;;  %v1881_v43 = vmul.f32 %v10490_v8, %v13262_v7  ;;  %v1962_v34 = vadd.f32 %v13249_v6, %v1877_v38  ;;  %v13267_v19 = vld [vmem:[#allocation102_spill] sm:$0xff]  ;;  %v13271_v7 = vld [vmem:[#allocation60_spill] sm:$0xff] }
 0x49d   :  { %3912 = vmatpush1.bf16.msra.mxu0 %v13260_v5  ;;  %4138 = vmatpush1.bf16.msra.mxu1 %v13261_v55  ;;  %v13265_v22 = vcombine.high %v13263_v37, %v13264_v40  ;;  %v13268_v53 = vcombine.high %v13266_v4, %v13267_v19  ;;  %vm2023_vm4 = vcmp.gt.f32.partialorder %v1959_v13, 0.0  ;;  %v2083_v35 = vmul.f32 0.2, %v1955_v12  ;;  %v13269_v36 = vld [vmem:[#allocation74_spill] sm:$0xff]  ;;  %v13270_v55 = vld [vmem:[#allocation75_spill] sm:$0xff] }
 0x49e   :  { %v2087_v2 = vmul.f32 0.2, %v1959_v13  ;;  %v10595_v32 = vpack.c.bf16 %v2150_v24, %v2146_v57  ;;  %v1878_v49 = vmul.f32 %v10494_v63, %v13269_v36  ;;  %v1966_v50 = vadd.f32 %v13249_v6, %v1881_v43  ;;  %3869 = vmatmul.mubr.bf16.gmra.mrb[40].mxu0 %v10564_v10 }
 0x49f   :  { %3913 = vmatprep.subr.bf16.mxu0 %v13265_v22  ;;  %4139 = vmatprep.subr.bf16.mxu1 %v13268_v53  ;;  %vm2026_vm5 = vcmp.gt.f32.partialorder %v1962_v34, 0.0  ;;  %v2090_v38 = vmul.f32 0.2, %v1962_v34  ;;  %v2204_v5 = vsel %vm2076_vm2, %v2012_v48, %v2140_v62  ;;  %v1882_v53 = vmul.f32 %v10494_v63, %v13270_v55 }
 0x4a0   :  { %4095 = vmatmul.mubr.bf16.gmra.mrb[120].mxu1 %v10564_v10  ;;  %v1885_v57 = vmul.f32 %v10490_v8, %v13271_v7  ;;  %v13272_v24 = vcombine.low %v13263_v37, %v13264_v40  ;;  %v13273_v43 = vcombine.low %v13266_v4, %v13267_v19  ;;  %vm2030_vm6 = vcmp.gt.f32.partialorder %v1966_v50, 0.0  ;;  %3878 = vmatprep.mubr.bf16.mxu0 %v10577_v61  ;;  %v10619_v37 = vld [vmem:[#allocation6 + $0x58] sm:$0xff]  ;;  %v13277_v7 = vld [vmem:[#allocation76_spill] sm:$0xff] }
 0x4a1   :  { %v2094_v22 = vmul.f32 0.2, %v1966_v50  ;;  %v2154_v36 = vsel %vm2026_vm5, %v1962_v34, %v2090_v38  ;;  %v1889_v48 = vmul.f32 %v10490_v8, %v13274_v1  ;;  %4104 = vmatprep.mubr.bf16.mxu1 %v10577_v61  ;;  %v2147_v62 = vsel %vm2019_vm3, %v1955_v12, %v2083_v35  ;;  %v10621_v40 = vld [vmem:[#allocation6 + $0x78] sm:$0xff] }
 0x4a2   :  { %3914 = vmatpush1.bf16.msra.mxu0 %v13272_v24  ;;  %4140 = vmatpush1.bf16.msra.mxu1 %v13273_v43  ;;  %v2151_v55 = vsel %vm2023_vm4, %v1959_v13, %v2087_v2  ;;  %v1970_v4 = vadd.f32 %v13249_v6, %v1885_v57  ;;  %v13275_v34 = vcombine.high %v10201_v29, %v10203_v16 }
 0x4a3   :  { %v13276_v1 = vcombine.high %v10287_v9, %v10300_v26  ;;  %v1963_v19 = vadd.f32 %v13252_v31, %v1878_v49  ;;  %v2158_v38 = vsel %vm2030_vm6, %v1966_v50, %v2094_v22  ;;  %v1974_v12 = vadd.f32 %v13249_v6, %v1889_v48  ;;  %v10659_v48 = vld [vmem:[#allocation6 + $0x90] sm:$0xff] }
 0x4a4   :  { %3915 = vmatprep.subr.bf16.mxu0 %v13275_v34  ;;  %v1967_v13 = vadd.f32 %v13252_v31, %v1882_v53  ;;  %v7558_v35 = vcombine.high %v10546_v33, %v10548_v27  ;;  %v10635_v2 = vpack.c.bf16 %v2158_v38, %v2154_v36  ;;  %v1886_v57 = vmul.f32 %v10494_v63, %v13277_v7  ;;  %v10661_v34 = vld [vmem:[#allocation6 + $0xb0] sm:$0xff] }
 0x4a5   :  { %4141 = vmatprep.subr.bf16.mxu1 %v13276_v1  ;;  %v13278_v24 = vcombine.low %v10201_v29, %v10203_v16  ;;  %v13279_v49 = vcombine.low %v10287_v9, %v10300_v26  ;;  %v7559_v50 = vcombine.low %v10619_v37, %v10621_v40  ;;  %vm2034_vm7 = vcmp.gt.f32.partialorder %v1970_v4, 0.0  ;;  %v13282_v9 = vld [vmem:[#allocation77_spill] sm:$0xff]  ;;  %v13283_v38 = vld [vmem:[#allocation62_spill] sm:$0xff] }
 0x4a6   :  { %vm2038_vm8 = vcmp.gt.f32.partialorder %v1974_v12, 0.0  ;;  %v2098_v53 = vmul.f32 0.2, %v1970_v4  ;;  %v13280_v43 = vcombine.high %v10302_v46, %v10304_v59  ;;  %v13281_v22 = vcombine.high %v10350_v30, %v10352_v41 }
 0x4a7   :  { %3916 = vmatpush1.bf16.msra.mxu0 %v13278_v24  ;;  %4142 = vmatpush1.bf16.msra.mxu1 %v13279_v49  ;;  %v10653_v29 = vpack.c.bf16 %v2204_v5, %v2200_v11  ;;  %v10655_v16 = vpack.c.bf16 %v2151_v55, %v2147_v62  ;;  %v1890_v26 = vmul.f32 %v10494_v63, %v13282_v9  ;;  %v2102_v36 = vmul.f32 0.2, %v1974_v12  ;;  %v13284_v24 = vld [vmem:[#allocation63_spill] sm:$0xff] }
 0x4a8   :  { %3917 = vmatprep.subr.bf16.mxu0 %v13280_v43  ;;  %4143 = vmatprep.subr.bf16.mxu1 %v13281_v22  ;;  %vm2027_vm9 = vcmp.gt.f32.partialorder %v1963_v19, 0.0  ;;  %v2162_v1 = vsel %vm2034_vm7, %v1970_v4, %v2098_v53  ;;  %v1893_v7 = vmul.f32 %v10490_v8, %v13283_v38  ;;  %v1897_v49 = vmul.f32 %v10490_v8, %v13284_v24  ;;  %v10677_v53 = vld [vmem:[#allocation6 + $0x98] sm:$0xff] }
 0x4a9   :  { %3879 = vmatmul.mubr.bf16.gmra.mrb[44].mxu0 %v10653_v29  ;;  %4105 = vmatmul.mubr.bf16.gmra.mrb[124].mxu1 %v10653_v29  ;;  %v2091_v11 = vmul.f32 0.2, %v1963_v19  ;;  %v2095_v5 = vmul.f32 0.2, %v1967_v13  ;;  %v1971_v62 = vadd.f32 %v13252_v31, %v1886_v57  ;;  %v2166_v55 = vsel %vm2038_vm8, %v1974_v12, %v2102_v36  ;;  %v10679_v22 = vld [vmem:[#allocation6 + $0xb8] sm:$0xff] }
 0x4aa   :  { %v13285_v43 = vcombine.low %v10302_v46, %v10304_v59  ;;  %v13286_v4 = vcombine.low %v10350_v30, %v10352_v41  ;;  %vm2031_vm10 = vcmp.gt.f32.partialorder %v1967_v13, 0.0  ;;  %v10681_v9 = vpack.c.bf16 %v2166_v55, %v2162_v1  ;;  %3921 = vmatprep.mubr.bf16.mxu0 %v10655_v16  ;;  %4147 = vmatprep.mubr.bf16.mxu1 %v10655_v16 }
 0x4ab   :  { %v1978_v38 = vadd.f32 %v13249_v6, %v1893_v7  ;;  %v1982_v57 = vadd.f32 %v13249_v6, %v1897_v49  ;;  %v7560_v46 = vcombine.high %v10619_v37, %v10621_v40  ;;  %v7565_v59 = vcombine.low %v10659_v48, %v10661_v34 }
 0x4ac   :  { %3918 = vmatpush1.bf16.msra.mxu0 %v13285_v43  ;;  %4144 = vmatpush1.bf16.msra.mxu1 %v13286_v4  ;;  %v1975_v30 = vadd.f32 %v13252_v31, %v1890_v26  ;;  %v13287_v41 = vcombine.high %v10354_v18, %v10359_v60  ;;  %v13288_v12 = vcombine.high %v10392_v28, %v10394_v14  ;;  %v2099_v4 = vmul.f32 0.2, %v1971_v62 }
 0x4ad   :  { %v7566_v36 = vcombine.high %v10659_v48, %v10661_v34  ;;  %vm2042_vm11 = vcmp.gt.f32.partialorder %v1978_v38, 0.0  ;;  %vm2046_vm12 = vcmp.gt.f32.partialorder %v1982_v57, 0.0  ;;  %v2106_v1 = vmul.f32 0.2, %v1978_v38 }
 0x4ae   :  { %3919 = vmatprep.subr.bf16.mxu0 %v13287_v41  ;;  %4145 = vmatprep.subr.bf16.mxu1 %v13288_v12  ;;  %v2155_v7 = vsel %vm2027_vm9, %v1963_v19, %v2091_v11  ;;  %v2159_v24 = vsel %vm2031_vm10, %v1967_v13, %v2095_v5  ;;  %v2110_v49 = vmul.f32 0.2, %v1982_v57  ;;  %v13289_v55 = vcombine.low %v10354_v18, %v10359_v60  ;;  %v10710_v41 = vld [vmem:[#allocation6 + $0xd0] sm:$0xff]  ;;  %v13291_v19 = vld [vmem:[#allocation47_spill] sm:$0xff]  ;;  %v13292_v5 = vld [vmem:[#allocation64_spill] sm:$0xff] }
 0x4af   :  { %v13290_v43 = vcombine.low %v10392_v28, %v10394_v14  ;;  %v10712_v12 = vld [vmem:[#allocation6 + $0xf0] sm:$0xff]  ;;  %v1894_v13 = vmul.f32 %v10494_v63, %v13291_v19  ;;  %v2170_v11 = vsel %vm2042_vm11, %v1978_v38, %v2106_v1  ;;  %v1901_v26 = vmul.f32 %v10490_v8, %v13292_v5  ;;  %v13296_v1 = vld [vmem:[#allocation65_spill] sm:$0xff] }
 0x4b0   :  { %3920 = vmatpush1.bf16.msra.mxu0 %v13289_v55  ;;  %v13293_v18 = vcombine.high %v10430_v21, %v10432_v3  ;;  %v13294_v60 = vcombine.high %v10477_v51, %v10479_v39  ;;  %vm2035_vm13 = vcmp.gt.f32.partialorder %v1971_v62, 0.0  ;;  %v2103_v28 = vmul.f32 0.2, %v1975_v30  ;;  %v13295_v14 = vld [vmem:[#allocation78_spill] sm:$0xff] }
 0x4b1   :  { %4146 = vmatpush1.bf16.msra.mxu1 %v13290_v43  ;;  %v1898_v55 = vmul.f32 %v10494_v63, %v13295_v14  ;;  %v2174_v43 = vsel %vm2046_vm12, %v1982_v57, %v2110_v49  ;;  %vm2039_vm14 = vcmp.gt.f32.partialorder %v1975_v30, 0.0  ;;  %v1905_v19 = vmul.f32 %v10490_v8, %v13296_v1  ;;  %v10740_v49 = vld [vmem:[#allocation6 + $0xd8] sm:$0xff] }
 0x4b2   :  { %4228 = vmatprep.subr.bf16.mxu0 %v13293_v18  ;;  %4454 = vmatprep.subr.bf16.mxu1 %v13294_v60  ;;  %v10727_v38 = vpack.c.bf16 %v2174_v43, %v2170_v11  ;;  %v1986_v5 = vadd.f32 %v13249_v6, %v1901_v26  ;;  %v10734_v18 = vpack.c.bf16 %v2159_v24, %v2155_v7  ;;  %v10749_v7 = vld [vmem:[#allocation6 + $0xf8] sm:$0xff]  ;;  %v10751_v24 = vld [vmem:[#allocation6 + $0x110] sm:$0xff] }
 0x4b3   :  { %3922 = vmatmul.mubr.bf16.vlgmr.msra.gmra.mrb[16].mxu0 %v10595_v32  ;;  %v7568_v60 = vcombine.high %v10677_v53, %v10679_v22  ;;  %v13297_v11 = vcombine.low %v10430_v21, %v10432_v3  ;;  %v13298_v26 = vcombine.low %v10477_v51, %v10479_v39  ;;  %v2163_v14 = vsel %vm2035_vm13, %v1971_v62, %v2099_v4  ;;  %v10753_v43 = vld [vmem:[#allocation6 + $0x130] sm:$0xff] }
 0x4b4   :  { %4148 = vmatmul.mubr.bf16.vlgmr.msra.gmra.mrb[96].mxu1 %v10595_v32  ;;  %v1990_v1 = vadd.f32 %v13249_v6, %v1905_v19  ;;  %vm2050_vm15 = vcmp.gt.f32.partialorder %v1986_v5, 0.0  ;;  %v2114_v57 = vmul.f32 0.2, %v1986_v5  ;;  %3931 = vmatprep.mubr.bf16.mxu0 %v10734_v18  ;;  %v2167_v21 = vsel %vm2039_vm14, %v1975_v30, %v2103_v28  ;;  %v13299_v4 = vld [vmem:[#allocation66_spill] sm:$0xff] }
 0x4b5   :  { %4229 = vmatpush1.bf16.msra.mxu0 %v13297_v11  ;;  %4455 = vmatpush1.bf16.msra.mxu1 %v13298_v26  ;;  %v1979_v3 = vadd.f32 %v13252_v31, %v1894_v13  ;;  %v1983_v51 = vadd.f32 %v13252_v31, %v1898_v55  ;;  %v1909_v19 = vmul.f32 %v10490_v8, %v13299_v4  ;;  %v13301_v55 = vld [vmem:[#allocation67_spill] sm:$0xff] }
 0x4b6   :  { %4157 = vmatprep.mubr.bf16.mxu1 %v10734_v18  ;;  %4230 = vmatprep.subr.bf16.mxu0 %v7558_v35  ;;  %vm2054_vm0 = vcmp.gt.f32.partialorder %v1990_v1, 0.0  ;;  %v2118_v39 = vmul.f32 0.2, %v1990_v1  ;;  %v2178_v62 = vsel %vm2050_vm15, %v1986_v5, %v2114_v57  ;;  %v7574_v11 = vcombine.high %v10710_v41, %v10712_v12 }
 0x4b7   :  { %4456 = vmatprep.subr.bf16.mxu1 %v7560_v46  ;;  %v7575_v30 = vcombine.low %v10740_v49, %v10749_v7  ;;  %v7576_v13 = vcombine.high %v10740_v49, %v10749_v7  ;;  %v7581_v28 = vcombine.low %v10751_v24, %v10753_v43  ;;  %v13300_v35 = vcombine.low %v10546_v33, %v10548_v27  ;;  %v2275_v27 = vld [vmem:[#allocation6 + $0x118] sm:$0xff] }
 0x4b8   :  { %v2182_v46 = vsel %vm2054_vm0, %v1990_v1, %v2118_v39  ;;  %v1913_v5 = vmul.f32 %v10490_v8, %v13301_v55  ;;  %v1994_v57 = vadd.f32 %v13249_v6, %v1909_v19  ;;  %v10783_v49 = vpack.c.bf16 %v2167_v21, %v2163_v14  ;;  %v2279_v33 = vld [vmem:[#allocation6 + $0x138] sm:$0xff]  ;;  %v13303_v14 = vld [vmem:[#allocation49_spill] sm:$0xff]  ;;  %v13304_v21 = vld [vmem:[#allocation68_spill] sm:$0xff] }
 0x4b9   :  { %4231 = vmatpush1.bf16.msra.mxu0 %v13300_v35  ;;  %4457 = vmatpush1.bf16.msra.mxu1 %v7559_v50  ;;  %vm2043_vm1 = vcmp.gt.f32.partialorder %v1979_v3, 0.0  ;;  %v2107_v26 = vmul.f32 0.2, %v1979_v3  ;;  %v10785_v7 = vpack.c.bf16 %v2182_v46, %v2178_v62  ;;  %vm2047_vm2 = vcmp.gt.f32.partialorder %v1983_v51, 0.0  ;;  %v13306_v35 = vld [vmem:[#allocation69_spill] sm:$0xff] }
 0x4ba   :  { %4232 = vmatprep.subr.bf16.mxu0 %v7566_v36  ;;  %4458 = vmatprep.subr.bf16.mxu1 %v7568_v60  ;;  %v1998_v37 = vadd.f32 %v13249_v6, %v1913_v5  ;;  %vm2058_vm3 = vcmp.gt.f32.partialorder %v1994_v57, 0.0  ;;  %v2122_v40 = vmul.f32 0.2, %v1994_v57  ;;  %v2111_v50 = vmul.f32 0.2, %v1983_v51  ;;  %v13302_v36 = vld [vmem:[#allocation48_spill] sm:$0xff] }
 0x4bb   :  { %3932 = vmatmul.mubr.bf16.gmra.mrb[20].mxu0 %v10635_v2  ;;  %v1902_v60 = vmul.f32 %v10494_v63, %v13302_v36  ;;  %v1906_v1 = vmul.f32 %v10494_v63, %v13303_v14  ;;  %v1917_v39 = vmul.f32 %v10490_v8, %v13304_v21  ;;  %v13305_v62 = vcombine.low %v10677_v53, %v10679_v22  ;;  %v2282_v53 = vld [vmem:[#allocation6 + $0x150] sm:$0xff]  ;;  %v2283_v14 = vld [vmem:[#allocation6 + $0x158] sm:$0xff] }
 0x4bc   :  { %4158 = vmatmul.mubr.bf16.gmra.mrb[100].mxu1 %v10635_v2  ;;  %vm2062_vm4 = vcmp.gt.f32.partialorder %v1998_v37, 0.0  ;;  %v2126_v4 = vmul.f32 0.2, %v1998_v37  ;;  %v2186_v19 = vsel %vm2058_vm3, %v1994_v57, %v2122_v40  ;;  %v1921_v46 = vmul.f32 %v10490_v8, %v13306_v35  ;;  %3941 = vmatprep.mubr.bf16.mxu0 %v10783_v49  ;;  %v2286_v22 = vld [vmem:[#allocation6 + $0x170] sm:$0xff]  ;;  %v2287_v21 = vld [vmem:[#allocation6 + $0x178] sm:$0xff] }
 0x4bd   :  { %4233 = vmatpush1.bf16.msra.mxu0 %v7565_v59  ;;  %4459 = vmatpush1.bf16.msra.mxu1 %v13305_v62  ;;  %v7582_v55 = vcombine.high %v10751_v24, %v10753_v43  ;;  %v7584_v5 = vcombine.high %v2275_v27, %v2279_v33  ;;  %v2002_v48 = vadd.f32 %v13249_v6, %v1917_v39  ;;  %v2291_v39 = vld [vmem:[#allocation6 + $0x198] sm:$0xff] }
 0x4be   :  { %4167 = vmatprep.mubr.bf16.mxu1 %v10783_v49  ;;  %4234 = vmatprep.subr.bf16.mxu0 %v7574_v11  ;;  %v7583_v34 = vcombine.low %v2275_v27, %v2279_v33  ;;  %v2190_v59 = vsel %vm2062_vm4, %v1998_v37, %v2126_v4  ;;  %v2006_v57 = vadd.f32 %v13249_v6, %v1921_v46  ;;  %v2295_v4 = vld [vmem:[#allocation6 + $0x1b8] sm:$0xff] }
 0x4bf   :  { %4460 = vmatprep.subr.bf16.mxu1 %v7576_v13  ;;  %v2171_v40 = vsel %vm2043_vm1, %v1979_v3, %v2107_v26  ;;  %v2175_v36 = vsel %vm2047_vm2, %v1983_v51, %v2111_v50  ;;  %v1987_v62 = vadd.f32 %v13252_v31, %v1902_v60  ;;  %v10813_v35 = vpack.c.bf16 %v2190_v59, %v2186_v19  ;;  %v10819_v51 = vld [vmem:[#allocation6 + $0x190] sm:$0xff] }
 0x4c0   :  { %v13307_v11 = vcombine.low %v10710_v41, %v10712_v12  ;;  %v1991_v13 = vadd.f32 %v13252_v31, %v1906_v1  ;;  %vm2066_vm5 = vcmp.gt.f32.partialorder %v2002_v48, 0.0  ;;  %vm2070_vm6 = vcmp.gt.f32.partialorder %v2006_v57, 0.0  ;;  %v2294_v60 = vld [vmem:[#allocation6 + $0x1b0] sm:$0xff] }
 0x4c1   :  { %4461 = vmatpush1.bf16.msra.mxu1 %v7575_v30  ;;  %v2130_v27 = vmul.f32 0.2, %v2002_v48  ;;  %v7589_v3 = vcombine.low %v2282_v53, %v2286_v22  ;;  %v2134_v26 = vmul.f32 0.2, %v2006_v57  ;;  %v7590_v33 = vcombine.high %v2282_v53, %v2286_v22  ;;  %v13308_v1 = vld [vmem:[#allocation50_spill] sm:$0xff] }
 0x4c2   :  { %4235 = vmatpush1.bf16.msra.mxu0 %v13307_v11  ;;  %4462 = vmatprep.subr.bf16.mxu1 %v7584_v5  ;;  %v7591_v37 = vcombine.low %v2283_v14, %v2287_v21  ;;  %v7592_v50 = vcombine.high %v2283_v14, %v2287_v21  ;;  %v10823_v12 = vpack.c.bf16 %v2175_v36, %v2171_v40  ;;  %v2115_v30 = vmul.f32 0.2, %v1987_v62  ;;  %v13309_v5 = vld [vmem:[#allocation51_spill] sm:$0xff] }
 0x4c3   :  { %4236 = vmatprep.subr.bf16.mxu0 %v7582_v55  ;;  %v2194_v41 = vsel %vm2066_vm5, %v2002_v48, %v2130_v27  ;;  %3942 = vmatmul.mubr.bf16.gmra.mrb[24].mxu0 %v10681_v9  ;;  %v1910_v19 = vmul.f32 %v10494_v63, %v13308_v1  ;;  %v2198_v46 = vsel %vm2070_vm6, %v2006_v57, %v2134_v26  ;;  %vm2051_vm7 = vcmp.gt.f32.partialorder %v1987_v62, 0.0  ;;  %v13310_v57 = vld [vmem:[#allocation70_spill] sm:$0xff]  ;;  %v13311_v40 = vld [vmem:[#allocation71_spill] sm:$0xff] }
 0x4c4   :  { %4168 = vmatmul.mubr.bf16.gmra.mrb[104].mxu1 %v10681_v9  ;;  %v2119_v55 = vmul.f32 0.2, %v1991_v13  ;;  %v1914_v48 = vmul.f32 %v10494_v63, %v13309_v5  ;;  %v10833_v53 = vpack.c.bf16 %v2198_v46, %v2194_v41  ;;  %3951 = vmatprep.mubr.bf16.mxu0 %v10823_v12  ;;  %v7598_v22 = vcombine.high %v10819_v51, %v2294_v60  ;;  %v2299_v11 = vld [vmem:[#allocation6 + $0x1d8] sm:$0xff]  ;;  %v2310_v1 = vld [vmem:[#allocation6 + $0x230] sm:$0xff]  ;;  %v13312_v5 = vld [vmem:[#allocation52_spill] sm:$0xff] }
 0x4c5   :  { %4463 = vmatpush1.bf16.msra.mxu1 %v7583_v34  ;;  %4177 = vmatprep.mubr.bf16.mxu1 %v10823_v12  ;;  %v7600_v59 = vcombine.high %v2291_v39, %v2295_v4  ;;  %vm2055_vm8 = vcmp.gt.f32.partialorder %v1991_v13, 0.0  ;;  %v1925_v24 = vmul.f32 %v10490_v8, %v13310_v57  ;;  %v7597_v43 = vcombine.low %v10819_v51, %v2294_v60  ;;  %v2302_v34 = vld [vmem:[#allocation6 + $0x1f0] sm:$0xff]  ;;  %v2303_v27 = vld [vmem:[#allocation6 + $0x1f8] sm:$0xff] }
 0x4c6   :  { %4237 = vmatpush1.bf16.msra.mxu0 %v7581_v28  ;;  %4464 = vmatprep.subr.bf16.mxu1 %v7592_v50  ;;  %v2298_v28 = vld [vmem:[#allocation6 + $0x1d0] sm:$0xff]  ;;  %v1929_v36 = vmul.f32 %v10490_v8, %v13311_v40  ;;  %v7599_v14 = vcombine.low %v2291_v39, %v2295_v4  ;;  %v2179_v21 = vsel %vm2051_vm7, %v1987_v62, %v2115_v30  ;;  %v2311_v46 = vld [vmem:[#allocation6 + $0x238] sm:$0xff] }
 0x4c7   :  { %4238 = vmatprep.subr.bf16.mxu0 %v7590_v33  ;;  %v1995_v26 = vadd.f32 %v13252_v31, %v1910_v19  ;;  %v2010_v41 = vadd.f32 %v13249_v6, %v1925_v24  ;;  %v2183_v33 = vsel %vm2055_vm8, %v1991_v13, %v2119_v55  ;;  %v1999_v51 = vadd.f32 %v13252_v31, %v1914_v48  ;;  %v2306_v39 = vld [vmem:[#allocation6 + $0x210] sm:$0xff]  ;;  %v2307_v19 = vld [vmem:[#allocation6 + $0x218] sm:$0xff] }
 0x4c8   :  { %v2014_v50 = vadd.f32 %v13249_v6, %v1929_v36  ;;  %v7605_v8 = vcombine.low %v2298_v28, %v2302_v34  ;;  %v7606_v60 = vcombine.high %v2298_v28, %v2302_v34  ;;  %v7607_v4 = vcombine.low %v2299_v11, %v2303_v27 }
 0x4c9   :  { %4465 = vmatpush1.bf16.msra.mxu1 %v7591_v37  ;;  %vm2074_vm9 = vcmp.gt.f32.partialorder %v2010_v41, 0.0  ;;  %v2138_v62 = vmul.f32 0.2, %v2010_v41  ;;  %v7608_v30 = vcombine.high %v2299_v11, %v2303_v27  ;;  %v10851_v13 = vpack.c.bf16 %v2183_v33, %v2179_v21  ;;  %v2318_v21 = vld [vmem:[#allocation6 + $0x270] sm:$0xff]  ;;  %v2315_v11 = vld [vmem:[#allocation6 + $0x258] sm:$0xff] }
 0x4ca   :  { %4239 = vmatpush1.bf16.msra.mxu0 %v7589_v3  ;;  %4466 = vmatprep.subr.bf16.mxu1 %v7600_v59  ;;  %vm2078_vm10 = vcmp.gt.f32.partialorder %v2014_v50, 0.0  ;;  %v2142_v3 = vmul.f32 0.2, %v2014_v50  ;;  %vm2059_vm11 = vcmp.gt.f32.partialorder %v1995_v26, 0.0  ;;  %v2123_v6 = vmul.f32 0.2, %v1995_v26 }
 0x4cb   :  { %4240 = vmatprep.subr.bf16.mxu0 %v7598_v22  ;;  %3952 = vmatmul.mubr.bf16.gmra.mrb[28].mxu0 %v10727_v38  ;;  %v2202_v37 = vsel %vm2074_vm9, %v2010_v41, %v2138_v62  ;;  %v2127_v55 = vmul.f32 0.2, %v1999_v51  ;;  %v1918_v48 = vmul.f32 %v10494_v63, %v13312_v5  ;;  %v13313_v22 = vld [vmem:[#allocation53_spill] sm:$0xff]  ;;  %v7614_v24 = vcombine.high %v2306_v39, %v2310_v1  ;;  %v2319_v27 = vld [vmem:[#allocation6 + $0x278] sm:$0xff]  ;;  %v2322_v62 = vld [vmem:[#allocation6 + $0x290] sm:$0xff] }
 0x4cc   :  { %4178 = vmatmul.mubr.bf16.gmra.mrb[108].mxu1 %v10727_v38  ;;  %v1922_v59 = vmul.f32 %v10494_v63, %v13313_v22  ;;  %v2206_v57 = vsel %vm2078_vm10, %v2014_v50, %v2142_v3  ;;  %3961 = vmatprep.mubr.bf16.mxu0 %v10851_v13  ;;  %v7616_v28 = vcombine.high %v2307_v19, %v2311_v46  ;;  %vm2063_vm12 = vcmp.gt.f32.partialorder %v1999_v51, 0.0  ;;  %v2326_v3 = vld [vmem:[#allocation6 + $0x2b0] sm:$0xff] }
 0x4cd   :  { %4467 = vmatpush1.bf16.msra.mxu1 %v7599_v14  ;;  %4187 = vmatprep.mubr.bf16.mxu1 %v10851_v13  ;;  %v10859_v34 = vpack.c.bf16 %v2206_v57, %v2202_v37  ;;  %v7613_v40 = vcombine.low %v2306_v39, %v2310_v1  ;;  %v7615_v36 = vcombine.low %v2307_v19, %v2311_v46  ;;  %v2323_v39 = vld [vmem:[#allocation6 + $0x298] sm:$0xff]  ;;  %v13314_v19 = vld [vmem:[#allocation44_spill] sm:$0xff]  ;;  %v2330_v22 = vld [vmem:[#allocation6 + $0x2d0] sm:$0xff] }
 0x4ce   :  { %4241 = vmatpush1.bf16.msra.mxu0 %v7597_v43  ;;  %4468 = vmatprep.subr.bf16.mxu1 %v7608_v30  ;;  %v2314_v43 = vld [vmem:[#allocation6 + $0x250] sm:$0xff]  ;;  %v2187_v14 = vsel %vm2059_vm11, %v1995_v26, %v2123_v6  ;;  %v2191_v41 = vsel %vm2063_vm12, %v1999_v51, %v2127_v55  ;;  %v2003_v33 = vadd.f32 %v13252_v31, %v1918_v48  ;;  %v2327_v1 = vld [vmem:[#allocation6 + $0x2b8] sm:$0xff] }
 0x4cf   :  { %4242 = vmatprep.subr.bf16.mxu0 %v7606_v60  ;;  %v2007_v50 = vadd.f32 %v13252_v31, %v1922_v59  ;;  %v7622_v60 = vcombine.high %v2314_v43, %v2318_v21  ;;  %v7624_v30 = vcombine.high %v2315_v11, %v2319_v27  ;;  %v1930_v26 = vmul.f32 %v10494_v63, %v13314_v19  ;;  %v2346_v19 = vld [vmem:[#allocation6 + $0x350] sm:$0xff] }
 0x4d0   :  { %v10868_v51 = vpack.c.bf16 %v2191_v41, %v2187_v14  ;;  %v7623_v6 = vcombine.low %v2315_v11, %v2319_v27  ;;  %v2131_v37 = vmul.f32 0.2, %v2003_v33  ;;  %v7630_v5 = vcombine.high %v2322_v62, %v2326_v3  ;;  %v2342_v41 = vld [vmem:[#allocation6 + $0x330] sm:$0xff] }
 0x4d1   :  { %4469 = vmatpush1.bf16.msra.mxu1 %v7607_v4  ;;  %v13315_v4 = vld [vmem:[#allocation54_spill] sm:$0xff]  ;;  %v2135_v55 = vmul.f32 0.2, %v2007_v50  ;;  %v7632_v48 = vcombine.high %v2323_v39, %v2327_v1  ;;  %vm2067_vm13 = vcmp.gt.f32.partialorder %v2003_v33, 0.0  ;;  %vm2071_vm14 = vcmp.gt.f32.partialorder %v2007_v50, 0.0 }
 0x4d2   :  { %4243 = vmatpush1.bf16.msra.mxu0 %v7605_v8  ;;  %4470 = vmatprep.subr.bf16.mxu1 %v7616_v28  ;;  %v7621_v8 = vcombine.low %v2314_v43, %v2318_v21  ;;  %v1926_v46 = vmul.f32 %v10494_v63, %v13315_v4  ;;  %v2015_v59 = vadd.f32 %v13252_v31, %v1930_v26  ;;  %v2331_v28 = vld [vmem:[#allocation6 + $0x2d8] sm:$0xff]  ;;  %v2338_v21 = vld [vmem:[#allocation6 + $0x310] sm:$0xff] }
 0x4d3   :  { %4244 = vmatprep.subr.bf16.mxu0 %v7614_v24  ;;  %3962 = vmatmul.mubr.bf16.gmra.mrb[32].mxu0 %v10785_v7  ;;  %v7629_v57 = vcombine.low %v2322_v62, %v2326_v3  ;;  %v7631_v63 = vcombine.low %v2323_v39, %v2327_v1  ;;  %v2334_v24 = vld [vmem:[#allocation6 + $0x2f0] sm:$0xff]  ;;  %v2335_v43 = vld [vmem:[#allocation6 + $0x2f8] sm:$0xff]  ;;  %v7646_v39 = vcombine.high %v2338_v21, %v2342_v41 }
 0x4d4   :  { %4188 = vmatmul.mubr.bf16.gmra.mrb[112].mxu1 %v10785_v7  ;;  %3971 = vmatprep.mubr.bf16.mxu0 %v10868_v51  ;;  %v2011_v14 = vadd.f32 %v13252_v31, %v1926_v46  ;;  %v7638_v11 = vcombine.high %v2330_v22, %v2334_v24  ;;  %v7640_v27 = vcombine.high %v2331_v28, %v2335_v43  ;;  %v2143_v3 = vmul.f32 0.2, %v2015_v59  ;;  %v2347_v4 = vld [vmem:[#allocation6 + $0x358] sm:$0xff] }
 0x4d5   :  { %4471 = vmatpush1.bf16.msra.mxu1 %v7615_v36  ;;  %4197 = vmatprep.mubr.bf16.mxu1 %v10868_v51  ;;  %v2199_v36 = vsel %vm2071_vm14, %v2007_v50, %v2135_v55  ;;  %v7639_v50 = vcombine.low %v2331_v28, %v2335_v43  ;;  %vm2079_vm15 = vcmp.gt.f32.partialorder %v2015_v59, 0.0  ;;  %v7645_v26 = vcombine.low %v2338_v21, %v2342_v41  ;;  %v2351_v46 = vld [vmem:[#allocation6 + $0x378] sm:$0xff]  ;;  %v2366_v21 = vld [vmem:[#allocation6 + $0x3f0] sm:$0xff] }
 0x4d6   :  { %4245 = vmatpush1.bf16.msra.mxu0 %v7613_v40  ;;  %4472 = vmatprep.subr.bf16.mxu1 %v7624_v30  ;;  %v2195_v40 = vsel %vm2067_vm13, %v2003_v33, %v2131_v37  ;;  %v2343_v30 = vld [vmem:[#allocation6 + $0x338] sm:$0xff]  ;;  %v7637_v33 = vcombine.low %v2330_v22, %v2334_v24  ;;  %v2139_v31 = vmul.f32 0.2, %v2011_v14  ;;  %vm2075_vm0 = vcmp.gt.f32.partialorder %v2011_v14, 0.0 }
 0x4d7   :  { %4246 = vmatprep.subr.bf16.mxu0 %v7622_v60  ;;  %v2339_v60 = vld [vmem:[#allocation6 + $0x318] sm:$0xff]  ;;  %v10878_v62 = vpack.c.bf16 %v2199_v36, %v2195_v40  ;;  %v2207_v55 = vsel %vm2079_vm15, %v2015_v59, %v2143_v3  ;;  %v7656_v22 = vcombine.high %v2347_v4, %v2351_v46  ;;  %v7655_v40 = vcombine.low %v2347_v4, %v2351_v46  ;;  %v2378_v4 = vld [vmem:[#allocation6 + $0x450] sm:$0xff] }
 0x4d8   :  { %v7648_v1 = vcombine.high %v2339_v60, %v2343_v30  ;;  %v2203_v37 = vsel %vm2075_vm0, %v2011_v14, %v2139_v31  ;;  %v2359_v24 = vld [vmem:[#allocation6 + $0x3b8] sm:$0xff]  ;;  %v2362_v14 = vld [vmem:[#allocation6 + $0x3d0] sm:$0xff] }
 0x4d9   :  { %4473 = vmatpush1.bf16.msra.mxu1 %v7623_v6  ;;  %v7647_v6 = vcombine.low %v2339_v60, %v2343_v30  ;;  %v10885_v28 = vpack.c.bf16 %v2207_v55, %v2203_v37  ;;  %v2370_v30 = vld [vmem:[#allocation6 + $0x410] sm:$0xff]  ;;  %v7670_v3 = vcombine.high %v2362_v14, %v2366_v21  ;;  %v2371_v31 = vld [vmem:[#allocation6 + $0x418] sm:$0xff] }
 0x4da   :  { %4247 = vmatpush1.bf16.msra.mxu0 %v7621_v8  ;;  %4474 = vmatprep.subr.bf16.mxu1 %v7632_v48  ;;  %v2350_v8 = vld [vmem:[#allocation6 + $0x370] sm:$0xff]  ;;  %v2383_v37 = vld [vmem:[#allocation6 + $0x478] sm:$0xff] }
 0x4db   :  { %4248 = vmatprep.subr.bf16.mxu0 %v7630_v5  ;;  %3972 = vmatmul.mubr.bf16.gmra.mrb[36].mxu0 %v10813_v35  ;;  %v2354_v5 = vld [vmem:[#allocation6 + $0x390] sm:$0xff]  ;;  %v7654_v48 = vcombine.high %v2346_v19, %v2350_v8  ;;  %v7653_v43 = vcombine.low %v2346_v19, %v2350_v8 }
 0x4dc   :  { %4198 = vmatmul.mubr.bf16.gmra.mrb[116].mxu1 %v10813_v35  ;;  %3981 = vmatprep.mubr.bf16.mxu0 %v10878_v62  ;;  %v2382_v46 = vld [vmem:[#allocation6 + $0x470] sm:$0xff] }
 0x4dd   :  { %4475 = vmatpush1.bf16.msra.mxu1 %v7631_v63  ;;  %4207 = vmatprep.mubr.bf16.mxu1 %v10878_v62  ;;  %v2355_v63 = vld [vmem:[#allocation6 + $0x398] sm:$0xff] }
 0x4de   :  { %4249 = vmatpush1.bf16.msra.mxu0 %v7629_v57  ;;  %4476 = vmatprep.subr.bf16.mxu1 %v7640_v27  ;;  %v2358_v57 = vld [vmem:[#allocation6 + $0x3b0] sm:$0xff]  ;;  %v7664_v36 = vcombine.high %v2355_v63, %v2359_v24  ;;  %v2367_v27 = vld [vmem:[#allocation6 + $0x3f8] sm:$0xff]  ;;  %v7663_v60 = vcombine.low %v2355_v63, %v2359_v24 }
 0x4df   :  { %4250 = vmatprep.subr.bf16.mxu0 %v7638_v11  ;;  %v7662_v59 = vcombine.high %v2354_v5, %v2358_v57  ;;  %v2363_v11 = vld [vmem:[#allocation6 + $0x3d8] sm:$0xff]  ;;  %v7661_v41 = vcombine.low %v2354_v5, %v2358_v57  ;;  %v2390_v63 = vld [vmem:[#allocation6 + $0x4b0] sm:$0xff] }
 0x4e0   :  { %v7671_v19 = vcombine.low %v2363_v11, %v2367_v27  ;;  %v2387_v24 = vld [vmem:[#allocation6 + $0x498] sm:$0xff] }
 0x4e1   :  { %4477 = vmatpush1.bf16.msra.mxu1 %v7639_v50  ;;  %v2374_v50 = vld [vmem:[#allocation6 + $0x430] sm:$0xff] }
 0x4e2   :  { %4251 = vmatpush1.bf16.msra.mxu0 %v7637_v33  ;;  %4478 = vmatprep.subr.bf16.mxu1 %v7648_v1  ;;  %v7672_v33 = vcombine.high %v2363_v11, %v2367_v27  ;;  %v7669_v1 = vcombine.low %v2362_v14, %v2366_v21  ;;  %v7677_v55 = vcombine.low %v2370_v30, %v2374_v50  ;;  %v2394_v14 = vld [vmem:[#allocation6 + $0x4d0] sm:$0xff]  ;;  %v2395_v11 = vld [vmem:[#allocation6 + $0x4d8] sm:$0xff] }
 0x4e3   :  { %4252 = vmatprep.subr.bf16.mxu0 %v7646_v39  ;;  %3982 = vmatmul.mubr.bf16.gmra.mrb[40].mxu0 %v10833_v53  ;;  %v2375_v39 = vld [vmem:[#allocation6 + $0x438] sm:$0xff]  ;;  %v2398_v21 = vld [vmem:[#allocation6 + $0x4f0] sm:$0xff] }
 0x4e4   :  { %4208 = vmatmul.mubr.bf16.gmra.mrb[120].mxu1 %v10833_v53  ;;  %3991 = vmatprep.mubr.bf16.mxu0 %v10885_v28  ;;  %v7680_v8 = vcombine.high %v2371_v31, %v2375_v39  ;;  %v7679_v5 = vcombine.low %v2371_v31, %v2375_v39  ;;  %v2399_v27 = vld [vmem:[#allocation6 + $0x4f8] sm:$0xff]  ;;  %v7701_v31 = vcombine.low %v2394_v14, %v2398_v21 }
 0x4e5   :  { %4479 = vmatpush1.bf16.msra.mxu1 %v7647_v6  ;;  %4217 = vmatprep.mubr.bf16.mxu1 %v10885_v28  ;;  %v2379_v6 = vld [vmem:[#allocation6 + $0x458] sm:$0xff]  ;;  %v7703_v39 = vcombine.low %v2395_v11, %v2399_v27 }
 0x4e6   :  { %4253 = vmatpush1.bf16.msra.mxu0 %v7645_v26  ;;  %4480 = vmatprep.subr.bf16.mxu1 %v7656_v22  ;;  %v7678_v26 = vcombine.high %v2370_v30, %v2374_v50  ;;  %v7686_v22 = vcombine.high %v2378_v4, %v2382_v46  ;;  %v7688_v57 = vcombine.high %v2379_v6, %v2383_v37  ;;  %v2403_v50 = vld [vmem:[#allocation6 + $0x518] sm:$0xff] }
 0x4e7   :  { %4254 = vmatprep.subr.bf16.mxu0 %v7654_v48  ;;  %v2386_v48 = vld [vmem:[#allocation6 + $0x490] sm:$0xff]  ;;  %v7702_v30 = vcombine.high %v2394_v14, %v2398_v21 }
 0x4e8   :  { %v2434_v21 = vld [vmem:[#allocation6 + $0x610] sm:$0xff] }
 0x4e9   :  { %4481 = vmatpush1.bf16.msra.mxu1 %v7655_v40  ;;  %v7687_v40 = vcombine.low %v2379_v6, %v2383_v37  ;;  %v2418_v37 = vld [vmem:[#allocation6 + $0x590] sm:$0xff] }
 0x4ea   :  { %4255 = vmatpush1.bf16.msra.mxu0 %v7653_v43  ;;  %4482 = vmatprep.subr.bf16.mxu1 %v7664_v36  ;;  %v7685_v43 = vcombine.low %v2378_v4, %v2382_v46  ;;  %v2411_v4 = vld [vmem:[#allocation6 + $0x558] sm:$0xff] }
 0x4eb   :  { %4256 = vmatprep.subr.bf16.mxu0 %v7662_v59  ;;  %3992 = vmatmul.mubr.bf16.gmra.mrb[44].mxu0 %v10859_v34  ;;  %v7694_v59 = vcombine.high %v2386_v48, %v2390_v63  ;;  %v2415_v46 = vld [vmem:[#allocation6 + $0x578] sm:$0xff] }
 0x4ec   :  { %4218 = vmatmul.mubr.bf16.gmra.mrb[124].mxu1 %v10859_v34  ;;  %4260 = vmatprep.mubr.bf16.mxu0 %v10219_v20 }
 0x4ed   :  { %4483 = vmatpush1.bf16.msra.mxu1 %v7663_v60  ;;  %4486 = vmatprep.mubr.bf16.mxu1 %v10219_v20  ;;  %v2391_v20 = vld [vmem:[#allocation6 + $0x4b8] sm:$0xff]  ;;  %v2402_v60 = vld [vmem:[#allocation6 + $0x510] sm:$0xff] }
 0x4ee   :  { %4257 = vmatpush1.bf16.msra.mxu0 %v7661_v41  ;;  %4484 = vmatprep.subr.bf16.mxu1 %v7672_v33  ;;  %v7696_v36 = vcombine.high %v2387_v24, %v2391_v20  ;;  %v7693_v41 = vcombine.low %v2386_v48, %v2390_v63  ;;  %v2406_v33 = vld [vmem:[#allocation6 + $0x530] sm:$0xff]  ;;  %v7719_v63 = vcombine.low %v2411_v4, %v2415_v46 }
 0x4ef   :  { %4258 = vmatprep.subr.bf16.mxu0 %v7670_v3  ;;  %v7704_v3 = vcombine.high %v2395_v11, %v2399_v27  ;;  %v7709_v6 = vcombine.low %v2402_v60, %v2406_v33  ;;  %v2422_v48 = vld [vmem:[#allocation6 + $0x5b0] sm:$0xff] }
 0x4f0   :  { %v7725_v14 = vcombine.low %v2418_v37, %v2422_v48 }
 0x4f1   :  { %4485 = vmatpush1.bf16.msra.mxu1 %v7671_v19 }
 0x4f2   :  { %4259 = vmatpush1.bf16.msra.mxu0 %v7669_v1  ;;  %4567 = vmatprep.subr.bf16.mxu1 %v7680_v8  ;;  %v7710_v1 = vcombine.high %v2402_v60, %v2406_v33  ;;  %v2414_v8 = vld [vmem:[#allocation6 + $0x570] sm:$0xff] }
 0x4f3   :  { %4341 = vmatprep.subr.bf16.mxu0 %v7678_v26  ;;  %v2410_v26 = vld [vmem:[#allocation6 + $0x550] sm:$0xff] }
 0x4f4   :  { %4487 = vmatmul.mubr.bf16.vlgmr.msra.gmra.mrb[128].mxu1 %v10223_v47 }
 0x4f5   :  { %4261 = vmatmul.mubr.bf16.vlgmr.msra.gmra.mrb[48].mxu0 %v10223_v47  ;;  %4568 = vmatpush1.bf16.msra.mxu1 %v7679_v5  ;;  %v7695_v47 = vcombine.low %v2387_v24, %v2391_v20  ;;  %v7720_v5 = vcombine.high %v2411_v4, %v2415_v46  ;;  %v7726_v24 = vcombine.high %v2418_v37, %v2422_v48  ;;  %v2454_v4 = vld [vmem:[#allocation6 + $0x6b0] sm:$0xff]  ;;  %v2451_v46 = vld [vmem:[#allocation6 + $0x698] sm:$0xff] }
 0x4f6   :  { %4342 = vmatpush1.bf16.msra.mxu0 %v7677_v55  ;;  %4270 = vmatprep.mubr.bf16.mxu0 %v10228_v52  ;;  %v7718_v55 = vcombine.high %v2410_v26, %v2414_v8  ;;  %v2462_v48 = vld [vmem:[#allocation6 + $0x6f0] sm:$0xff] }
 0x4f7   :  { %4496 = vmatprep.mubr.bf16.mxu1 %v10228_v52  ;;  %4343 = vmatprep.subr.bf16.mxu0 %v7686_v22  ;;  %v2407_v52 = vld [vmem:[#allocation6 + $0x538] sm:$0xff] }
 0x4f8   :  { %4569 = vmatprep.subr.bf16.mxu1 %v7688_v57  ;;  %v7712_v19 = vcombine.high %v2403_v50, %v2407_v52  ;;  %v2419_v22 = vld [vmem:[#allocation6 + $0x598] sm:$0xff]  ;;  %v7717_v57 = vcombine.low %v2410_v26, %v2414_v8 }
 0x4f9   :  { %4570 = vmatpush1.bf16.msra.mxu1 %v7687_v40  ;;  %v2430_v40 = vld [vmem:[#allocation6 + $0x5f0] sm:$0xff] }
 0x4fa   :  { %4344 = vmatpush1.bf16.msra.mxu0 %v7685_v43  ;;  %4571 = vmatprep.subr.bf16.mxu1 %v7696_v36  ;;  %v2426_v43 = vld [vmem:[#allocation6 + $0x5d0] sm:$0xff]  ;;  %v2431_v36 = vld [vmem:[#allocation6 + $0x5f8] sm:$0xff] }
 0x4fb   :  { %4345 = vmatprep.subr.bf16.mxu0 %v7694_v59  ;;  %v2427_v59 = vld [vmem:[#allocation6 + $0x5d8] sm:$0xff]  ;;  %v7734_v11 = vcombine.high %v2426_v43, %v2430_v40  ;;  %v7733_v60 = vcombine.low %v2426_v43, %v2430_v40  ;;  %v2470_v43 = vld [vmem:[#allocation6 + $0x730] sm:$0xff] }
 0x4fc   :  { %4497 = vmatmul.mubr.bf16.gmra.mrb[132].mxu1 %v10259_v45  ;;  %v7736_v27 = vcombine.high %v2427_v59, %v2431_v36  ;;  %v2467_v40 = vld [vmem:[#allocation6 + $0x718] sm:$0xff] }
 0x4fd   :  { %4271 = vmatmul.mubr.bf16.gmra.mrb[52].mxu0 %v10259_v45  ;;  %4572 = vmatpush1.bf16.msra.mxu1 %v7695_v47  ;;  %v7711_v45 = vcombine.low %v2403_v50, %v2407_v52  ;;  %v2435_v47 = vld [vmem:[#allocation6 + $0x618] sm:$0xff]  ;;  %v2442_v50 = vld [vmem:[#allocation6 + $0x650] sm:$0xff] }
 0x4fe   :  { %4346 = vmatpush1.bf16.msra.mxu0 %v7693_v41  ;;  %4280 = vmatprep.mubr.bf16.mxu0 %v10277_v56  ;;  %v2438_v41 = vld [vmem:[#allocation6 + $0x630] sm:$0xff] }
 0x4ff   :  { %4506 = vmatprep.mubr.bf16.mxu1 %v10277_v56  ;;  %4347 = vmatprep.subr.bf16.mxu0 %v7702_v30  ;;  %v2423_v56 = vld [vmem:[#allocation6 + $0x5b8] sm:$0xff]  ;;  %v7735_v30 = vcombine.low %v2427_v59, %v2431_v36  ;;  %v2446_v52 = vld [vmem:[#allocation6 + $0x670] sm:$0xff] }
 0x500   :  { %4573 = vmatprep.subr.bf16.mxu1 %v7704_v3  ;;  %v7728_v20 = vcombine.high %v2419_v22, %v2423_v56  ;;  %v7742_v3 = vcombine.high %v2434_v21, %v2438_v41  ;;  %v7750_v26 = vcombine.high %v2442_v50, %v2446_v52 }
 0x501   :  { %4574 = vmatpush1.bf16.msra.mxu1 %v7703_v39  ;;  %v2447_v39 = vld [vmem:[#allocation6 + $0x678] sm:$0xff] }
 0x502   :  { %4348 = vmatpush1.bf16.msra.mxu0 %v7701_v31  ;;  %4575 = vmatprep.subr.bf16.mxu1 %v7712_v19  ;;  %v2443_v31 = vld [vmem:[#allocation6 + $0x658] sm:$0xff]  ;;  %v2450_v19 = vld [vmem:[#allocation6 + $0x690] sm:$0xff] }
 0x503   :  { %4349 = vmatprep.subr.bf16.mxu0 %v7710_v1  ;;  %v7741_v1 = vcombine.low %v2434_v21, %v2438_v41  ;;  %v7752_v8 = vcombine.high %v2443_v31, %v2447_v39  ;;  %v7758_v37 = vcombine.high %v2450_v19, %v2454_v4  ;;  %v2474_v21 = vld [vmem:[#allocation6 + $0x750] sm:$0xff]  ;;  %v2479_v41 = vld [vmem:[#allocation6 + $0x778] sm:$0xff] }
 0x504   :  { %4507 = vmatmul.mubr.bf16.gmra.mrb[136].mxu1 %v10338_v17 }
 0x505   :  { %4281 = vmatmul.mubr.bf16.gmra.mrb[56].mxu0 %v10338_v17  ;;  %4576 = vmatpush1.bf16.msra.mxu1 %v7711_v45  ;;  %v7727_v17 = vcombine.low %v2419_v22, %v2423_v56  ;;  %v7751_v45 = vcombine.low %v2443_v31, %v2447_v39  ;;  %v2459_v22 = vld [vmem:[#allocation6 + $0x6d8] sm:$0xff] }
 0x506   :  { %4350 = vmatpush1.bf16.msra.mxu0 %v7709_v6  ;;  %4290 = vmatprep.mubr.bf16.mxu0 %v10343_v54  ;;  %v7749_v6 = vcombine.low %v2442_v50, %v2446_v52  ;;  %v2463_v56 = vld [vmem:[#allocation6 + $0x6f8] sm:$0xff] }
 0x507   :  { %4516 = vmatprep.mubr.bf16.mxu1 %v10343_v54  ;;  %4351 = vmatprep.subr.bf16.mxu0 %v7718_v55  ;;  %v2439_v54 = vld [vmem:[#allocation6 + $0x638] sm:$0xff]  ;;  %v7767_v36 = vcombine.low %v2459_v22, %v2463_v56 }
 0x508   :  { %4577 = vmatprep.subr.bf16.mxu1 %v7720_v5  ;;  %v7744_v33 = vcombine.high %v2435_v47, %v2439_v54  ;;  %v2458_v5 = vld [vmem:[#allocation6 + $0x6d0] sm:$0xff] }
 0x509   :  { %4578 = vmatpush1.bf16.msra.mxu1 %v7719_v63  ;;  %v2466_v63 = vld [vmem:[#allocation6 + $0x710] sm:$0xff]  ;;  %v7765_v59 = vcombine.low %v2458_v5, %v2462_v48 }
 0x50a   :  { %4352 = vmatpush1.bf16.msra.mxu0 %v7717_v57  ;;  %4579 = vmatprep.subr.bf16.mxu1 %v7728_v20  ;;  %v7757_v57 = vcombine.low %v2450_v19, %v2454_v4  ;;  %v7768_v20 = vcombine.high %v2459_v22, %v2463_v56  ;;  %v2491_v19 = vld [vmem:[#allocation6 + $0x7d8] sm:$0xff] }
 0x50b   :  { %4353 = vmatprep.subr.bf16.mxu0 %v7726_v24  ;;  %v7766_v24 = vcombine.high %v2458_v5, %v2462_v48 }
 0x50c   :  { %4517 = vmatmul.mubr.bf16.gmra.mrb[140].mxu1 %v10389_v25 }
 0x50d   :  { %4291 = vmatmul.mubr.bf16.gmra.mrb[60].mxu0 %v10389_v25  ;;  %4580 = vmatpush1.bf16.msra.mxu1 %v7727_v17  ;;  %v7743_v25 = vcombine.low %v2435_v47, %v2439_v54  ;;  %v7773_v47 = vcombine.low %v2466_v63, %v2470_v43  ;;  %v2482_v54 = vld [vmem:[#allocation6 + $0x790] sm:$0xff] }
 0x50e   :  { %4354 = vmatpush1.bf16.msra.mxu0 %v7725_v14  ;;  %4300 = vmatprep.mubr.bf16.mxu0 %v10418_v15  ;;  %v7774_v14 = vcombine.high %v2466_v63, %v2470_v43 }
 0x50f   :  { %4526 = vmatprep.mubr.bf16.mxu1 %v10418_v15  ;;  %4355 = vmatprep.subr.bf16.mxu0 %v7734_v11  ;;  %v2455_v15 = vld [vmem:[#allocation6 + $0x6b8] sm:$0xff]  ;;  %v2478_v11 = vld [vmem:[#allocation6 + $0x770] sm:$0xff] }
 0x510   :  { %4581 = vmatprep.subr.bf16.mxu1 %v7736_v27  ;;  %v7760_v55 = vcombine.high %v2451_v46, %v2455_v15  ;;  %v2475_v27 = vld [vmem:[#allocation6 + $0x758] sm:$0xff]  ;;  %v7781_v50 = vcombine.low %v2474_v21, %v2478_v11 }
 0x511   :  { %4582 = vmatpush1.bf16.msra.mxu1 %v7735_v30  ;;  %v7784_v30 = vcombine.high %v2475_v27, %v2479_v41  ;;  %v7783_v52 = vcombine.low %v2475_v27, %v2479_v41 }
 0x512   :  { %4356 = vmatpush1.bf16.msra.mxu0 %v7733_v60  ;;  %4583 = vmatprep.subr.bf16.mxu1 %v7744_v33  ;;  %v7782_v60 = vcombine.high %v2474_v21, %v2478_v11  ;;  %v2483_v33 = vld [vmem:[#allocation6 + $0x798] sm:$0xff] }
 0x513   :  { %4357 = vmatprep.subr.bf16.mxu0 %v7742_v3  ;;  %v2486_v3 = vld [vmem:[#allocation6 + $0x7b0] sm:$0xff] }
 0x514   :  { %4527 = vmatmul.mubr.bf16.gmra.mrb[144].mxu1 %v10463_v42  ;;  %v7790_v31 = vcombine.high %v2482_v54, %v2486_v3 }
 0x515   :  { %4301 = vmatmul.mubr.bf16.gmra.mrb[64].mxu0 %v10463_v42  ;;  %4584 = vmatpush1.bf16.msra.mxu1 %v7743_v25  ;;  %v7759_v42 = vcombine.low %v2451_v46, %v2455_v15  ;;  %v2494_v25 = vld [vmem:[#allocation6 + $0x7f0] sm:$0xff] }
 0x516   :  { %4358 = vmatpush1.bf16.msra.mxu0 %v7741_v1  ;;  %4310 = vmatprep.mubr.bf16.mxu0 %v10465_v0  ;;  %v2490_v1 = vld [vmem:[#allocation6 + $0x7d0] sm:$0xff] }
 0x517   :  { %4536 = vmatprep.mubr.bf16.mxu1 %v10465_v0  ;;  %4359 = vmatprep.subr.bf16.mxu0 %v7750_v26  ;;  %v2471_v0 = vld [vmem:[#allocation6 + $0x738] sm:$0xff]  ;;  %v7798_v4 = vcombine.high %v2490_v1, %v2494_v25 }
 0x518   :  { %4585 = vmatprep.subr.bf16.mxu1 %v7752_v8  ;;  %v7776_v17 = vcombine.high %v2467_v40, %v2471_v0  ;;  %v2495_v26 = vld [vmem:[#allocation6 + $0x7f8] sm:$0xff]  ;;  %v7789_v8 = vcombine.low %v2482_v54, %v2486_v3 }
 0x519   :  { %4586 = vmatpush1.bf16.msra.mxu1 %v7751_v45  ;;  %v7800_v46 = vcombine.high %v2491_v19, %v2495_v26  ;;  %v7799_v15 = vcombine.low %v2491_v19, %v2495_v26 }
 0x51a   :  { %4360 = vmatpush1.bf16.msra.mxu0 %v7749_v6  ;;  %4587 = vmatprep.subr.bf16.mxu1 %v7760_v55 }
 0x51b   :  { %4361 = vmatprep.subr.bf16.mxu0 %v7758_v37 }
 0x51c   :  { %4537 = vmatmul.mubr.bf16.gmra.mrb[148].mxu1 %v10506_v23 }
 0x51d   :  { %4311 = vmatmul.mubr.bf16.gmra.mrb[68].mxu0 %v10506_v23  ;;  %4588 = vmatpush1.bf16.msra.mxu1 %v7759_v42  ;;  %v7775_v23 = vcombine.low %v2467_v40, %v2471_v0 }
 0x51e   :  { %4362 = vmatpush1.bf16.msra.mxu0 %v7757_v57  ;;  %4320 = vmatprep.mubr.bf16.mxu0 %v10537_v44 }
 0x51f   :  { %4546 = vmatprep.mubr.bf16.mxu1 %v10537_v44  ;;  %4363 = vmatprep.subr.bf16.mxu0 %v7766_v24  ;;  %v2487_v44 = vld [vmem:[#allocation6 + $0x7b8] sm:$0xff] }
 0x520   :  { %4589 = vmatprep.subr.bf16.mxu1 %v7768_v20  ;;  %v7792_v39 = vcombine.high %v2483_v33, %v2487_v44 }
 0x521   :  { %4590 = vmatpush1.bf16.msra.mxu1 %v7767_v36 }
 0x522   :  { %4364 = vmatpush1.bf16.msra.mxu0 %v7765_v59  ;;  %4591 = vmatprep.subr.bf16.mxu1 %v7776_v17 }
 0x523   :  { %4365 = vmatprep.subr.bf16.mxu0 %v7774_v14 }
 0x524   :  { %4547 = vmatmul.mubr.bf16.gmra.mrb[152].mxu1 %v10564_v10 }
 0x525   :  { %4321 = vmatmul.mubr.bf16.gmra.mrb[72].mxu0 %v10564_v10  ;;  %4592 = vmatpush1.bf16.msra.mxu1 %v7775_v23  ;;  %v7791_v10 = vcombine.low %v2483_v33, %v2487_v44 }
 0x526   :  { %4366 = vmatpush1.bf16.msra.mxu0 %v7773_v47  ;;  %4330 = vmatprep.mubr.bf16.mxu0 %v10577_v61 }
 0x527   :  { %4556 = vmatprep.mubr.bf16.mxu1 %v10577_v61  ;;  %4367 = vmatprep.subr.bf16.mxu0 %v7782_v60  ;;  %v7797_v61 = vcombine.low %v2490_v1, %v2494_v25 }
 0x528   :  { %4593 = vmatprep.subr.bf16.mxu1 %v7784_v30 }
 0x529   :  { %4594 = vmatpush1.bf16.msra.mxu1 %v7783_v52 }
 0x52a   :  { %4368 = vmatpush1.bf16.msra.mxu0 %v7781_v50  ;;  %4595 = vmatprep.subr.bf16.mxu1 %v7792_v39 }
 0x52b   :  { %4369 = vmatprep.subr.bf16.mxu0 %v7790_v31 }
 0x52c   :  { %4557 = vmatmul.mubr.bf16.gmra.mrb[156].mxu1 %v10653_v29 }
 0x52d   :  { %4331 = vmatmul.mubr.bf16.gmra.mrb[76].mxu0 %v10653_v29  ;;  %4596 = vmatpush1.bf16.msra.mxu1 %v7791_v10 }
 0x52e   :  { %4370 = vmatpush1.bf16.msra.mxu0 %v7789_v8  ;;  %4373 = vmatprep.mubr.bf16.mxu0 %v10655_v16 }
 0x52f   :  { %4599 = vmatprep.mubr.bf16.mxu1 %v10655_v16  ;;  %4371 = vmatprep.subr.bf16.mxu0 %v7798_v4 }
 0x530   :  { %4597 = vmatprep.subr.bf16.mxu1 %v7800_v46 }
 0x531   :  { %4598 = vmatpush1.bf16.msra.mxu1 %v7799_v15 }
 0x532   :  { %4372 = vmatpush1.bf16.msra.mxu0 %v7797_v61 }
 0x534   :  { %4600 = vmatmul.mubr.bf16.vlgmr.msra.gmra.mrb[128].mxu1 %v10595_v32 }
 0x535   :  { %4374 = vmatmul.mubr.bf16.vlgmr.msra.gmra.mrb[48].mxu0 %v10595_v32  ;;  %4609 = vmatprep.mubr.bf16.mxu1 %v10734_v18 }
 0x536   :  { %4383 = vmatprep.mubr.bf16.mxu0 %v10734_v18 }
 0x53c   :  { %4610 = vmatmul.mubr.bf16.gmra.mrb[132].mxu1 %v10635_v2 }
 0x53d   :  { %4384 = vmatmul.mubr.bf16.gmra.mrb[52].mxu0 %v10635_v2  ;;  %4619 = vmatprep.mubr.bf16.mxu1 %v10783_v49 }
 0x53e   :  { %4393 = vmatprep.mubr.bf16.mxu0 %v10783_v49 }
 0x544   :  { %4620 = vmatmul.mubr.bf16.gmra.mrb[136].mxu1 %v10681_v9 }
 0x545   :  { %4394 = vmatmul.mubr.bf16.gmra.mrb[56].mxu0 %v10681_v9  ;;  %4629 = vmatprep.mubr.bf16.mxu1 %v10823_v12 }
 0x546   :  { %4403 = vmatprep.mubr.bf16.mxu0 %v10823_v12 }
 0x54c   :  { %4630 = vmatmul.mubr.bf16.gmra.mrb[140].mxu1 %v10727_v38 }
 0x54d   :  { %4404 = vmatmul.mubr.bf16.gmra.mrb[60].mxu0 %v10727_v38  ;;  %4639 = vmatprep.mubr.bf16.mxu1 %v10851_v13 }
 0x54e   :  { %4413 = vmatprep.mubr.bf16.mxu0 %v10851_v13 }
 0x554   :  { %4640 = vmatmul.mubr.bf16.gmra.mrb[144].mxu1 %v10785_v7 }
 0x555   :  { %4414 = vmatmul.mubr.bf16.gmra.mrb[64].mxu0 %v10785_v7  ;;  %4649 = vmatprep.mubr.bf16.mxu1 %v10868_v51 }
 0x556   :  { %4423 = vmatprep.mubr.bf16.mxu0 %v10868_v51 }
 0x55c   :  { %4650 = vmatmul.mubr.bf16.gmra.mrb[148].mxu1 %v10813_v35 }
 0x55d   :  { %4424 = vmatmul.mubr.bf16.gmra.mrb[68].mxu0 %v10813_v35  ;;  %4659 = vmatprep.mubr.bf16.mxu1 %v10878_v62 }
 0x55e   :  { %4433 = vmatprep.mubr.bf16.mxu0 %v10878_v62 }
 0x564   :  { %4660 = vmatmul.mubr.bf16.gmra.mrb[152].mxu1 %v10833_v53 }
 0x565   :  { %4434 = vmatmul.mubr.bf16.gmra.mrb[72].mxu0 %v10833_v53  ;;  %4669 = vmatprep.mubr.bf16.mxu1 %v10885_v28 }
 0x566   :  { %4443 = vmatprep.mubr.bf16.mxu0 %v10885_v28 }
 0x56c   :  { %4670 = vmatmul.mubr.bf16.gmra.mrb[156].mxu1 %v10859_v34 }
 0x56d   :  { %4444 = vmatmul.mubr.bf16.gmra.mrb[76].mxu0 %v10859_v34 }
 0x586   :  { %v10955_v32 = vpop.f32.mrb[16].mxu0 }
 0x587   :  { %v10957_v2 = vpop.f32.mrb[96].mxu1  ;;  %v10959_v29 = vpop.f32.mrb[17].mxu0 }
 0x588   :  { %v10961_v16 = vpop.f32.mrb[97].mxu1  ;;  %v10963_v9 = vpop.f32.mrb[18].mxu0 }
 0x589   :  { %13316 = vst [vmem:[#allocation31_spill] sm:$0xff] %v10961_v16  ;;  %v10965_v38 = vpop.f32.mrb[98].mxu1  ;;  %v4682_v18 = vadd.f32 %v10963_v9, %v10955_v32  ;;  %v10971_v7 = vpop.f32.mrb[19].mxu0 }
 0x58a   :  { %v4724_v49 = vadd.f32 %v10965_v38, %v10957_v2  ;;  %v10973_v35 = vpop.f32.mrb[99].mxu1  ;;  %v4703_v12 = vadd.f32 %v10971_v7, %v10959_v29 }
 0x58b   :  { %13317 = vst [vmem:[#allocation32_spill] sm:$0xff] %v10973_v35  ;;  %v4745_v53 = vadd.f32 %v10973_v35, %v10961_v16 }
 0x58e   :  { %v10979_v13 = vpop.f32.mrb[20].mxu0 }
 0x58f   :  { %v10981_v34 = vpop.f32.mrb[100].mxu1  ;;  %v4683_v51 = vadd.f32 %v4682_v18, %v10979_v13  ;;  %v10985_v28 = vpop.f32.mrb[21].mxu0 }
 0x590   :  { %v4725_v62 = vadd.f32 %v4724_v49, %v10981_v34  ;;  %v10987_v6 = vpop.f32.mrb[101].mxu1  ;;  %v4704_v45 = vadd.f32 %v4703_v12, %v10985_v28  ;;  %v10991_v55 = vpop.f32.mrb[22].mxu0 }
 0x591   :  { %13318 = vst [vmem:[#allocation16_spill] sm:$0xff] %v10987_v6  ;;  %v4746_v37 = vadd.f32 %v4745_v53, %v10987_v6  ;;  %v10993_v5 = vpop.f32.mrb[102].mxu1  ;;  %v4684_v48 = vadd.f32 %v4683_v51, %v10991_v55  ;;  %v10997_v56 = vpop.f32.mrb[23].mxu0 }
 0x592   :  { %v4726_v22 = vadd.f32 %v4725_v62, %v10993_v5  ;;  %v10999_v57 = vpop.f32.mrb[103].mxu1  ;;  %v4705_v42 = vadd.f32 %v4704_v45, %v10997_v56 }
 0x593   :  { %13319 = vst [vmem:[#allocation17_spill] sm:$0xff] %v10999_v57  ;;  %v4747_v63 = vadd.f32 %v4746_v37, %v10999_v57 }
 0x596   :  { %v11003_v24 = vpop.f32.mrb[24].mxu0 }
 0x597   :  { %v11005_v20 = vpop.f32.mrb[104].mxu1  ;;  %v4685_v43 = vadd.f32 %v4684_v48, %v11003_v24  ;;  %v11009_v0 = vpop.f32.mrb[25].mxu0 }
 0x598   :  { %v4727_v40 = vadd.f32 %v4726_v22, %v11005_v20  ;;  %v11011_v59 = vpop.f32.mrb[105].mxu1  ;;  %v4706_v36 = vadd.f32 %v4705_v42, %v11009_v0  ;;  %v11015_v17 = vpop.f32.mrb[26].mxu0 }
 0x599   :  { %13320 = vst [vmem:[#allocation33_spill] sm:$0xff] %v11011_v59  ;;  %v4748_v14 = vadd.f32 %v4747_v63, %v11011_v59  ;;  %v11017_v21 = vpop.f32.mrb[106].mxu1  ;;  %v4686_v11 = vadd.f32 %v4685_v43, %v11015_v17  ;;  %v11021_v41 = vpop.f32.mrb[27].mxu0 }
 0x59a   :  { %v4728_v27 = vadd.f32 %v4727_v40, %v11017_v21  ;;  %v11023_v47 = vpop.f32.mrb[107].mxu1  ;;  %v4707_v23 = vadd.f32 %v4706_v36, %v11021_v41 }
 0x59b   :  { %13321 = vst [vmem:[#allocation34_spill] sm:$0xff] %v11023_v47  ;;  %v4749_v54 = vadd.f32 %v4748_v14, %v11023_v47 }
 0x59e   :  { %v11027_v60 = vpop.f32.mrb[28].mxu0 }
 0x59f   :  { %v11029_v30 = vpop.f32.mrb[108].mxu1  ;;  %v4687_v3 = vadd.f32 %v4686_v11, %v11027_v60  ;;  %v11033_v44 = vpop.f32.mrb[29].mxu0 }
 0x5a0   :  { %v4729_v33 = vadd.f32 %v4728_v27, %v11029_v30  ;;  %v11035_v50 = vpop.f32.mrb[109].mxu1  ;;  %v4708_v52 = vadd.f32 %v4707_v23, %v11033_v44  ;;  %v11039_v39 = vpop.f32.mrb[30].mxu0 }
 0x5a1   :  { %13322 = vst [vmem:[#allocation18_spill] sm:$0xff] %v11035_v50  ;;  %v4750_v31 = vadd.f32 %v4749_v54, %v11035_v50  ;;  %v11041_v1 = vpop.f32.mrb[110].mxu1  ;;  %v4688_v25 = vadd.f32 %v4687_v3, %v11039_v39  ;;  %v11045_v26 = vpop.f32.mrb[31].mxu0 }
 0x5a2   :  { %v4730_v19 = vadd.f32 %v4729_v33, %v11041_v1  ;;  %13323 = vst [vmem:[#allocation19_spill] sm:$0xff] %v11045_v26  ;;  %v11047_v8 = vpop.f32.mrb[111].mxu1  ;;  %v4709_v10 = vadd.f32 %v4708_v52, %v11045_v26 }
 0x5a3   :  { %13324 = vst [vmem:[#allocation35_spill] sm:$0xff] %v11047_v8  ;;  %v4751_v4 = vadd.f32 %v4750_v31, %v11047_v8 }
 0x5a6   :  { %v11051_v46 = vpop.f32.mrb[32].mxu0 }
 0x5a7   :  { %v11053_v61 = vpop.f32.mrb[112].mxu1  ;;  %v4689_v15 = vadd.f32 %v4688_v25, %v11051_v46  ;;  %v11057_v49 = vpop.f32.mrb[33].mxu0 }
 0x5a8   :  { %v4731_v18 = vadd.f32 %v4730_v19, %v11053_v61  ;;  %13325 = vst [vmem:[#allocation36_spill] sm:$0xff] %v11057_v49  ;;  %v11059_v12 = vpop.f32.mrb[113].mxu1  ;;  %v4710_v53 = vadd.f32 %v4709_v10, %v11057_v49  ;;  %v11063_v62 = vpop.f32.mrb[34].mxu0 }
 0x5a9   :  { %13326 = vst [vmem:[#allocation20_spill] sm:$0xff] %v11059_v12  ;;  %v4752_v51 = vadd.f32 %v4751_v4, %v11059_v12  ;;  %v11065_v45 = vpop.f32.mrb[114].mxu1  ;;  %v4690_v37 = vadd.f32 %v4689_v15, %v11063_v62  ;;  %v11069_v22 = vpop.f32.mrb[35].mxu0 }
 0x5aa   :  { %v4732_v48 = vadd.f32 %v4731_v18, %v11065_v45  ;;  %13327 = vst [vmem:[#allocation21_spill] sm:$0xff] %v11069_v22  ;;  %v11071_v42 = vpop.f32.mrb[115].mxu1  ;;  %v4711_v63 = vadd.f32 %v4710_v53, %v11069_v22 }
 0x5ab   :  { %13328 = vst [vmem:[#allocation37_spill] sm:$0xff] %v11071_v42  ;;  %v4753_v43 = vadd.f32 %v4752_v51, %v11071_v42 }
 0x5ae   :  { %v11075_v40 = vpop.f32.mrb[36].mxu0 }
 0x5af   :  { %v11077_v36 = vpop.f32.mrb[116].mxu1  ;;  %v4691_v14 = vadd.f32 %v4690_v37, %v11075_v40  ;;  %v11081_v27 = vpop.f32.mrb[37].mxu0 }
 0x5b0   :  { %v4733_v11 = vadd.f32 %v4732_v48, %v11077_v36  ;;  %13329 = vst [vmem:[#allocation38_spill] sm:$0xff] %v11081_v27  ;;  %v11083_v23 = vpop.f32.mrb[117].mxu1  ;;  %v4712_v54 = vadd.f32 %v4711_v63, %v11081_v27  ;;  %v11087_v33 = vpop.f32.mrb[38].mxu0 }
 0x5b1   :  { %13330 = vst [vmem:[#allocation22_spill] sm:$0xff] %v11083_v23  ;;  %v4754_v3 = vadd.f32 %v4753_v43, %v11083_v23  ;;  %v11089_v52 = vpop.f32.mrb[118].mxu1  ;;  %v4692_v31 = vadd.f32 %v4691_v14, %v11087_v33  ;;  %v11093_v19 = vpop.f32.mrb[39].mxu0 }
 0x5b2   :  { %v4734_v25 = vadd.f32 %v4733_v11, %v11089_v52  ;;  %13331 = vst [vmem:[#allocation23_spill] sm:$0xff] %v11093_v19  ;;  %v11095_v10 = vpop.f32.mrb[119].mxu1  ;;  %v4713_v4 = vadd.f32 %v4712_v54, %v11093_v19 }
 0x5b3   :  { %13332 = vst [vmem:[#allocation39_spill] sm:$0xff] %v11095_v10  ;;  %v4755_v15 = vadd.f32 %v4754_v3, %v11095_v10 }
 0x5b6   :  { %v11099_v18 = vpop.f32.mrb[40].mxu0 }
 0x5b7   :  { %v11101_v53 = vpop.f32.mrb[120].mxu1  ;;  %v4693_v51 = vadd.f32 %v4692_v31, %v11099_v18  ;;  %v11105_v48 = vpop.f32.mrb[41].mxu0 }
 0x5b8   :  { %v4735_v37 = vadd.f32 %v4734_v25, %v11101_v53  ;;  %13333 = vst [vmem:[#allocation40_spill] sm:$0xff] %v11105_v48  ;;  %v11107_v63 = vpop.f32.mrb[121].mxu1  ;;  %v4714_v43 = vadd.f32 %v4713_v4, %v11105_v48  ;;  %v3987_v11 = vpop.f32.mrb[42].mxu0 }
 0x5b9   :  { %13334 = vst [vmem:[#allocation24_spill] sm:$0xff] %v11107_v63  ;;  %v4756_v14 = vadd.f32 %v4755_v15, %v11107_v63  ;;  %v11111_v54 = vpop.f32.mrb[122].mxu1  ;;  %v4694_v3 = vadd.f32 %v4693_v51, %v3987_v11  ;;  %v11114_v10 = vpop.f32.mrb[43].mxu0 }
 0x5ba   :  { %v4736_v58 = vadd.f32 %v4735_v37, %v11111_v54  ;;  %13335 = vst [vmem:[#allocation25_spill] sm:$0xff] %v11114_v10  ;;  %v11116_v23 = vpop.f32.mrb[123].mxu1  ;;  %v4715_v31 = vadd.f32 %v4714_v43, %v11114_v10 }
 0x5bb   :  { %13336 = vst [vmem:[#allocation41_spill] sm:$0xff] %v11116_v23  ;;  %v4757_v25 = vadd.f32 %v4756_v14, %v11116_v23 }
 0x5be   :  { %v3993_v42 = vpop.f32.mrb[44].mxu0 }
 0x5bf   :  { %v11120_v12 = vpop.f32.mrb[124].mxu1  ;;  %v4695_v4 = vadd.f32 %v4694_v3, %v3993_v42  ;;  %v11123_v63 = vpop.f32.mrb[45].mxu0 }
 0x5c0   :  { %v4737_v15 = vadd.f32 %v4736_v58, %v11120_v12  ;;  %13337 = vst [vmem:[#allocation42_spill] sm:$0xff] %v11123_v63  ;;  %v11125_v8 = vpop.f32.mrb[125].mxu1  ;;  %v4716_v51 = vadd.f32 %v4715_v31, %v11123_v63  ;;  %v3997_v50 = vpop.f32.mrb[46].mxu0 }
 0x5c1   :  { %13338 = vst [vmem:[#allocation26_spill] sm:$0xff] %v11125_v8  ;;  %v4758_v37 = vadd.f32 %v4757_v25, %v11125_v8  ;;  %v4223_v47 = vpop.f32.mrb[126].mxu1  ;;  %v4696_v59 = vadd.f32 %v4695_v4, %v3997_v50  ;;  %v11129_v57 = vpop.f32.mrb[47].mxu0 }
 0x5c2   :  { %v4738_v43 = vadd.f32 %v4737_v15, %v4223_v47  ;;  %13339 = vst [vmem:[#allocation27_spill] sm:$0xff] %v11129_v57  ;;  %v11131_v14 = vpop.f32.mrb[127].mxu1  ;;  %v4717_v3 = vadd.f32 %v4716_v51, %v11129_v57 }
 0x5c3   :  { %v4759_v58 = vadd.f32 %v4758_v37, %v11131_v14  ;;  %v4697_v23 = vrot.slane %v4696_v59, 4 }
 0x5c4   :  { %v4739_v6 = vrot.slane %v4738_v43, 4  ;;  %v4718_v35 = vrot.slane %v4717_v3, 4 }
 0x5c5   :  { %v4698_v16 = vadd.f32 %v4697_v23, %v4696_v59  ;;  %v4760_v27 = vrot.slane %v4759_v58, 4 }
 0x5c6   :  { %v4740_v10 = vadd.f32 %v4739_v6, %v4738_v43  ;;  %v4719_v25 = vadd.f32 %v4718_v35, %v4717_v3 }
 0x5c7   :  { %v4699_v31 = vrot.slane %v4698_v16, 2  ;;  %v4761_v57 = vadd.f32 %v4760_v27, %v4759_v58  ;;  %v13387_v58 = vld [vmem:[#allocation23_spill] sm:$0xff] }
 0x5c8   :  { %v4741_v63 = vrot.slane %v4740_v10, 2  ;;  %v4720_v19 = vrot.slane %v4719_v25, 2 }
 0x5c9   :  { %v4700_v8 = vadd.f32 %v4699_v31, %v4698_v16 }
 0x5ca   :  { %v4742_v48 = vadd.f32 %v4741_v63, %v4740_v10  ;;  %v4721_v51 = vadd.f32 %v4720_v19, %v4719_v25  ;;  %v4762_v19 = vrot.slane %v4761_v57, 2 }
 0x5cb   :  { %v4701_v4 = vrot.slane %v4700_v8, 1 }
 0x5cc   :  { %v4743_v15 = vrot.slane %v4742_v48, 1  ;;  %v4722_v23 = vrot.slane %v4721_v51, 1 }
 0x5cd   :  { %v4702_v22 = vadd.f32 %v4701_v4, %v4700_v8 }
 0x5ce   :  { %v4744_v26 = vadd.f32 %v4743_v15, %v4742_v48  ;;  %v4723_v10 = vadd.f32 %v4722_v23, %v4721_v51  ;;  %v13393_v15 = vld [vmem:[#allocation42_spill] sm:$0xff] }
 0x5cf   :  { %v4850_v49 = vmul.f32 0.0078125, %v4702_v22 }
 0x5d1   :  { %v11136_v37 = vsub.f32 %v10955_v32, %v4850_v49  ;;  %v11139_v59 = vsub.f32 %v10963_v9, %v4850_v49  ;;  %v11142_v6 = vsub.f32 %v10979_v13, %v4850_v49  ;;  %v11145_v16 = vsub.f32 %v10991_v55, %v4850_v49 }
 0x5d2   :  { %v11148_v35 = vsub.f32 %v11003_v24, %v4850_v49  ;;  %v11151_v8 = vsub.f32 %v11015_v17, %v4850_v49  ;;  %v11154_v22 = vsub.f32 %v11027_v60, %v4850_v49  ;;  %v11157_v32 = vsub.f32 %v11039_v39, %v4850_v49 }
 0x5d3   :  { %13340 = vst [vmem:[#allocation43_spill] sm:$0xff] %v11136_v37  ;;  %13341 = vst [vmem:[#allocation28_spill] sm:$0xff] %v11139_v59  ;;  %v11160_v9 = vsub.f32 %v11051_v46, %v4850_v49  ;;  %v11163_v13 = vsub.f32 %v11063_v62, %v4850_v49  ;;  %v11166_v55 = vsub.f32 %v11075_v40, %v4850_v49  ;;  %v4852_v46 = vmul.f32 0.0078125, %v4744_v26 }
 0x5d4   :  { %13342 = vst [vmem:[#allocation45_spill] sm:$0xff] %v11142_v6  ;;  %13343 = vst [vmem:[#allocation82_spill] sm:$0xff] %v11145_v16  ;;  %v11169_v24 = vsub.f32 %v11087_v33, %v4850_v49  ;;  %v11172_v17 = vsub.f32 %v11099_v18, %v4850_v49  ;;  %v11174_v60 = vsub.f32 %v3987_v11, %v4850_v49 }
 0x5d5   :  { %13344 = vst [vmem:[#allocation83_spill] sm:$0xff] %v11148_v35  ;;  %13345 = vst [vmem:[#allocation84_spill] sm:$0xff] %v11151_v8  ;;  %v11176_v27 = vsub.f32 %v3993_v42, %v4850_v49  ;;  %v11178_v39 = vsub.f32 %v3997_v50, %v4850_v49  ;;  %v11181_v62 = vsub.f32 %v10957_v2, %v4852_v46 }
 0x5d6   :  { %13346 = vst [vmem:[#allocation85_spill] sm:$0xff] %v11154_v22  ;;  %13347 = vst [vmem:[#allocation46_spill] sm:$0xff] %v11157_v32  ;;  %v11184_v40 = vsub.f32 %v10965_v38, %v4852_v46  ;;  %v11187_v33 = vsub.f32 %v10981_v34, %v4852_v46  ;;  %v11190_v18 = vsub.f32 %v10993_v5, %v4852_v46 }
 0x5d7   :  { %13348 = vst [vmem:[#allocation29_spill] sm:$0xff] %v11160_v9  ;;  %13349 = vst [vmem:[#allocation95_spill] sm:$0xff] %v11163_v13  ;;  %v11193_v42 = vsub.f32 %v11005_v20, %v4852_v46  ;;  %v11196_v50 = vsub.f32 %v11017_v21, %v4852_v46  ;;  %v11199_v26 = vsub.f32 %v11029_v30, %v4852_v46 }
 0x5d8   :  { %13350 = vst [vmem:[#allocation86_spill] sm:$0xff] %v11166_v55  ;;  %13351 = vst [vmem:[#allocation87_spill] sm:$0xff] %v11169_v24  ;;  %v11202_v2 = vsub.f32 %v11041_v1, %v4852_v46  ;;  %v11205_v38 = vsub.f32 %v11053_v61, %v4852_v46  ;;  %v11208_v34 = vsub.f32 %v11065_v45, %v4852_v46  ;;  %v4851_v45 = vmul.f32 0.0078125, %v4723_v10  ;;  %v13397_v10 = vld [vmem:[#allocation31_spill] sm:$0xff] }
 0x5d9   :  { %13352 = vst [vmem:[#allocation88_spill] sm:$0xff] %v11172_v17  ;;  %13353 = vst [vmem:[#allocation89_spill] sm:$0xff] %v11174_v60  ;;  %v11211_v5 = vsub.f32 %v11077_v36, %v4852_v46  ;;  %v11214_v20 = vsub.f32 %v11089_v52, %v4852_v46  ;;  %v11217_v21 = vsub.f32 %v11101_v53, %v4852_v46 }
 0x5da   :  { %13354 = vst [vmem:[#allocation30_spill] sm:$0xff] %v11176_v27  ;;  %13355 = vst [vmem:[#allocation72_spill] sm:$0xff] %v11178_v39  ;;  %v11220_v30 = vsub.f32 %v11111_v54, %v4852_v46  ;;  %v11223_v1 = vsub.f32 %v11120_v12, %v4852_v46  ;;  %v11225_v61 = vsub.f32 %v4223_v47, %v4852_v46  ;;  %v13395_v46 = vld [vmem:[#allocation27_spill] sm:$0xff] }
 0x5db   :  { %13356 = vst [vmem:[#allocation56_spill] sm:$0xff] %v11181_v62  ;;  %13357 = vst [vmem:[#allocation90_spill] sm:$0xff] %v11184_v40  ;;  %v4763_v49 = vadd.f32 %v4762_v19, %v4761_v57  ;;  %v11228_v36 = vsub.f32 %v10959_v29, %v4851_v45  ;;  %v11231_v52 = vsub.f32 %v10971_v7, %v4851_v45  ;;  %v13379_v29 = vld [vmem:[#allocation19_spill] sm:$0xff]  ;;  %v13381_v7 = vld [vmem:[#allocation36_spill] sm:$0xff] }
 0x5dc   :  { %13358 = vst [vmem:[#allocation91_spill] sm:$0xff] %v11187_v33  ;;  %13359 = vst [vmem:[#allocation92_spill] sm:$0xff] %v11190_v18  ;;  %v11234_v53 = vsub.f32 %v10985_v28, %v4851_v45  ;;  %v11237_v63 = vsub.f32 %v10997_v56, %v4851_v45  ;;  %v11240_v12 = vsub.f32 %v11009_v0, %v4851_v45  ;;  %v13383_v28 = vld [vmem:[#allocation21_spill] sm:$0xff]  ;;  %v13385_v56 = vld [vmem:[#allocation38_spill] sm:$0xff] }
 0x5dd   :  { %13360 = vst [vmem:[#allocation93_spill] sm:$0xff] %v11193_v42  ;;  %13361 = vst [vmem:[#allocation73_spill] sm:$0xff] %v11196_v50  ;;  %v4764_v48 = vrot.slane %v4763_v49, 1  ;;  %v11243_v47 = vsub.f32 %v11021_v41, %v4851_v45  ;;  %v11246_v57 = vsub.f32 %v11033_v44, %v4851_v45  ;;  %v11249_v11 = vsub.f32 %v13379_v29, %v4851_v45  ;;  %v13389_v41 = vld [vmem:[#allocation40_spill] sm:$0xff]  ;;  %v13391_v44 = vld [vmem:[#allocation25_spill] sm:$0xff] }
 0x5de   :  { %13362 = vst [vmem:[#allocation57_spill] sm:$0xff] %v11199_v26  ;;  %13363 = vst [vmem:[#allocation80_spill] sm:$0xff] %v11202_v2  ;;  %v11252_v54 = vsub.f32 %v13381_v7, %v4851_v45  ;;  %v11255_v43 = vsub.f32 %v13383_v28, %v4851_v45  ;;  %v11258_v3 = vsub.f32 %v13385_v56, %v4851_v45  ;;  %v13401_v7 = vld [vmem:[#allocation16_spill] sm:$0xff]  ;;  %v13403_v56 = vld [vmem:[#allocation17_spill] sm:$0xff] }
 0x5df   :  { %13364 = vst [vmem:[#allocation81_spill] sm:$0xff] %v11205_v38  ;;  %13365 = vst [vmem:[#allocation94_spill] sm:$0xff] %v11208_v34  ;;  %v4765_v0 = vadd.f32 %v4764_v48, %v4763_v49  ;;  %v11261_v31 = vsub.f32 %v13387_v58, %v4851_v45  ;;  %v11264_v25 = vsub.f32 %v13389_v41, %v4851_v45  ;;  %v13399_v49 = vld [vmem:[#allocation32_spill] sm:$0xff]  ;;  %v13405_v41 = vld [vmem:[#allocation33_spill] sm:$0xff] }
 0x5e0   :  { %13366 = vst [vmem:[#allocation96_spill] sm:$0xff] %v11211_v5  ;;  %13367 = vst [vmem:[#allocation97_spill] sm:$0xff] %v11214_v20  ;;  %v11267_v4 = vsub.f32 %v13391_v44, %v4851_v45  ;;  %v11270_v51 = vsub.f32 %v13393_v15, %v4851_v45  ;;  %v11273_v23 = vsub.f32 %v13395_v46, %v4851_v45  ;;  %v13407_v15 = vld [vmem:[#allocation34_spill] sm:$0xff]  ;;  %v13411_v46 = vld [vmem:[#allocation35_spill] sm:$0xff] }
 0x5e1   :  { %13368 = vst [vmem:[#allocation98_spill] sm:$0xff] %v11217_v21  ;;  %13369 = vst [vmem:[#allocation58_spill] sm:$0xff] %v11220_v30  ;;  %v4853_v19 = vmul.f32 0.0078125, %v4765_v0  ;;  %v13409_v45 = vld [vmem:[#allocation18_spill] sm:$0xff] }
 0x5e2   :  { %13370 = vst [vmem:[#allocation59_spill] sm:$0xff] %v11223_v1  ;;  %13371 = vst [vmem:[#allocation99_spill] sm:$0xff] %v11225_v61 }
 0x5e3   :  { %13372 = vst [vmem:[#allocation100_spill] sm:$0xff] %v11228_v36  ;;  %13373 = vst [vmem:[#allocation101_spill] sm:$0xff] %v11231_v52  ;;  %v11276_v29 = vsub.f32 %v13397_v10, %v4853_v19  ;;  %v11279_v48 = vsub.f32 %v13399_v49, %v4853_v19  ;;  %v11282_v28 = vsub.f32 %v13401_v7, %v4853_v19  ;;  %v13413_v49 = vld [vmem:[#allocation20_spill] sm:$0xff]  ;;  %v13415_v7 = vld [vmem:[#allocation37_spill] sm:$0xff] }
 0x5e4   :  { %13374 = vst [vmem:[#allocation102_spill] sm:$0xff] %v11234_v53  ;;  %13375 = vst [vmem:[#allocation74_spill] sm:$0xff] %v11237_v63  ;;  %v11285_v58 = vsub.f32 %v13403_v56, %v4853_v19  ;;  %v11288_v44 = vsub.f32 %v13405_v41, %v4853_v19  ;;  %v11294_v0 = vsub.f32 %v13409_v45, %v4853_v19  ;;  %v13417_v56 = vld [vmem:[#allocation22_spill] sm:$0xff]  ;;  %v13419_v41 = vld [vmem:[#allocation39_spill] sm:$0xff] }
 0x5e5   :  { %13376 = vst [vmem:[#allocation75_spill] sm:$0xff] %v11240_v12  ;;  %13377 = vst [vmem:[#allocation60_spill] sm:$0xff] %v11243_v47  ;;  %v11297_v10 = vsub.f32 %v13411_v46, %v4853_v19  ;;  %v13423_v45 = vld [vmem:[#allocation41_spill] sm:$0xff]  ;;  %v13425_v46 = vld [vmem:[#allocation26_spill] sm:$0xff] }
 0x5e6   :  { %13378 = vst [vmem:[#allocation61_spill] sm:$0xff] %v11246_v57  ;;  %13380 = vst [vmem:[#allocation76_spill] sm:$0xff] %v11249_v11  ;;  %v11315_v1 = vsub.f32 %v13423_v45, %v4853_v19 }
 0x5e7   :  { %13382 = vst [vmem:[#allocation77_spill] sm:$0xff] %v11252_v54  ;;  %13384 = vst [vmem:[#allocation62_spill] sm:$0xff] %v11255_v43 }
 0x5e8   :  { %13386 = vst [vmem:[#allocation63_spill] sm:$0xff] %v11258_v3  ;;  %13388 = vst [vmem:[#allocation47_spill] sm:$0xff] %v11261_v31  ;;  %v11309_v31 = vsub.f32 %v13419_v41, %v4853_v19  ;;  %v11318_v3 = vsub.f32 %v13425_v46, %v4853_v19 }
 0x5e9   :  { %13390 = vst [vmem:[#allocation64_spill] sm:$0xff] %v11264_v25  ;;  %13392 = vst [vmem:[#allocation78_spill] sm:$0xff] %v11267_v4  ;;  %v11303_v4 = vsub.f32 %v13415_v7, %v4853_v19  ;;  %v11306_v25 = vsub.f32 %v13417_v56, %v4853_v19 }
 0x5ea   :  { %13394 = vst [vmem:[#allocation65_spill] sm:$0xff] %v11270_v51  ;;  %13396 = vst [vmem:[#allocation66_spill] sm:$0xff] %v11273_v23  ;;  %v11291_v51 = vsub.f32 %v13407_v15, %v4853_v19  ;;  %v11300_v23 = vsub.f32 %v13413_v49, %v4853_v19  ;;  %v13421_v15 = vld [vmem:[#allocation24_spill] sm:$0xff]  ;;  %v11321_v49 = vsub.f32 %v11131_v14, %v4853_v19 }
 0x5eb   :  { %13398 = vst [vmem:[#allocation67_spill] sm:$0xff] %v11276_v29  ;;  %13400 = vst [vmem:[#allocation48_spill] sm:$0xff] %v11279_v48  ;;  %v11312_v61 = vsub.f32 %v13421_v15, %v4853_v19 }
 0x5ec   :  { %13402 = vst [vmem:[#allocation49_spill] sm:$0xff] %v11282_v28  ;;  %13404 = vst [vmem:[#allocation68_spill] sm:$0xff] %v11285_v58 }
 0x5ed   :  { %13406 = vst [vmem:[#allocation69_spill] sm:$0xff] %v11288_v44  ;;  %13408 = vst [vmem:[#allocation50_spill] sm:$0xff] %v11291_v51 }
 0x5ee   :  { %13410 = vst [vmem:[#allocation51_spill] sm:$0xff] %v11294_v0  ;;  %13412 = vst [vmem:[#allocation70_spill] sm:$0xff] %v11297_v10 }
 0x5ef   :  { %13414 = vst [vmem:[#allocation71_spill] sm:$0xff] %v11300_v23  ;;  %13416 = vst [vmem:[#allocation52_spill] sm:$0xff] %v11303_v4 }
 0x5f0   :  { %13418 = vst [vmem:[#allocation53_spill] sm:$0xff] %v11306_v25  ;;  %13420 = vst [vmem:[#allocation44_spill] sm:$0xff] %v11309_v31 }
 0x5f1   :  { %13422 = vst [vmem:[#allocation54_spill] sm:$0xff] %v11312_v61  ;;  %13424 = vst [vmem:[#allocation19_spill] sm:$0xff] %v11315_v1 }
 0x5f2   :  { %13426 = vst [vmem:[#allocation36_spill] sm:$0xff] %v11318_v3  ;;  %13427 = vst [vmem:[#allocation21_spill] sm:$0xff] %v11321_v49 }
 0x607   :  { %v11325_v4 = vpop.f32.mrb[128].mxu1 }
 0x608   :  { %v11323_v7 = vpop.f32.mrb[48].mxu0  ;;  %13429 = vst [vmem:[#allocation23_spill] sm:$0xff] %v11325_v4  ;;  %v11329_v41 = vpop.f32.mrb[129].mxu1 }
 0x609   :  { %13428 = vst [vmem:[#allocation38_spill] sm:$0xff] %v11323_v7  ;;  %v11327_v56 = vpop.f32.mrb[49].mxu0  ;;  %13431 = vst [vmem:[#allocation25_spill] sm:$0xff] %v11329_v41  ;;  %v11333_v15 = vpop.f32.mrb[130].mxu1 }
 0x60a   :  { %13430 = vst [vmem:[#allocation40_spill] sm:$0xff] %v11327_v56  ;;  %v11331_v31 = vpop.f32.mrb[50].mxu0  ;;  %13433 = vst [vmem:[#allocation27_spill] sm:$0xff] %v11333_v15  ;;  %v4808_v46 = vadd.f32 %v11333_v15, %v11325_v4  ;;  %v11341_v19 = vpop.f32.mrb[131].mxu1 }
 0x60b   :  { %13432 = vst [vmem:[#allocation42_spill] sm:$0xff] %v11331_v31  ;;  %v4766_v45 = vadd.f32 %v11331_v31, %v11323_v7  ;;  %v11339_v14 = vpop.f32.mrb[51].mxu0  ;;  %13435 = vst [vmem:[#allocation32_spill] sm:$0xff] %v11341_v19  ;;  %v4829_v3 = vadd.f32 %v11341_v19, %v11329_v41 }
 0x60c   :  { %13434 = vst [vmem:[#allocation31_spill] sm:$0xff] %v11339_v14  ;;  %v4787_v49 = vadd.f32 %v11339_v14, %v11327_v56 }
 0x60f   :  { %v11349_v61 = vpop.f32.mrb[132].mxu1 }
 0x610   :  { %v11347_v1 = vpop.f32.mrb[52].mxu0  ;;  %13437 = vst [vmem:[#allocation17_spill] sm:$0xff] %v11349_v61  ;;  %v4809_v31 = vadd.f32 %v4808_v46, %v11349_v61  ;;  %v11355_v15 = vpop.f32.mrb[133].mxu1 }
 0x611   :  { %13436 = vst [vmem:[#allocation16_spill] sm:$0xff] %v11347_v1  ;;  %v4767_v25 = vadd.f32 %v4766_v45, %v11347_v1  ;;  %v11353_v7 = vpop.f32.mrb[53].mxu0  ;;  %13439 = vst [vmem:[#allocation34_spill] sm:$0xff] %v11355_v15  ;;  %v4830_v23 = vadd.f32 %v4829_v3, %v11355_v15  ;;  %v11361_v56 = vpop.f32.mrb[134].mxu1  ;;  %v4994_v3 = vmul.f32 %v11139_v59, %v11139_v59 }
 0x612   :  { %13438 = vst [vmem:[#allocation33_spill] sm:$0xff] %v11353_v7  ;;  %v4788_v4 = vadd.f32 %v4787_v49, %v11353_v7  ;;  %v11359_v14 = vpop.f32.mrb[54].mxu0  ;;  %13441 = vst [vmem:[#allocation35_spill] sm:$0xff] %v11361_v56  ;;  %v4810_v41 = vadd.f32 %v4809_v31, %v11361_v56  ;;  %v11367_v45 = vpop.f32.mrb[135].mxu1  ;;  %v4986_v49 = vmul.f32 %v11136_v37, %v11136_v37 }
 0x613   :  { %13440 = vst [vmem:[#allocation18_spill] sm:$0xff] %v11359_v14  ;;  %v4768_v19 = vadd.f32 %v4767_v25, %v11359_v14  ;;  %v11365_v30 = vpop.f32.mrb[55].mxu0  ;;  %13443 = vst [vmem:[#allocation37_spill] sm:$0xff] %v11367_v45  ;;  %v4831_v61 = vadd.f32 %v4830_v23, %v11367_v45 }
 0x614   :  { %13442 = vst [vmem:[#allocation20_spill] sm:$0xff] %v11365_v30  ;;  %v4789_v46 = vadd.f32 %v4788_v4, %v11365_v30 }
 0x617   :  { %v11377_v7 = vpop.f32.mrb[136].mxu1 }
 0x618   :  { %v11375_v15 = vpop.f32.mrb[56].mxu0  ;;  %13445 = vst [vmem:[#allocation39_spill] sm:$0xff] %v11377_v7  ;;  %v4811_v25 = vadd.f32 %v4810_v41, %v11377_v7  ;;  %v11383_v14 = vpop.f32.mrb[137].mxu1  ;;  %v5114_v41 = vadd.f32 %v4994_v3, %v4986_v49  ;;  %v5010_v49 = vmul.f32 %v11145_v16, %v11145_v16 }
 0x619   :  { %13444 = vst [vmem:[#allocation22_spill] sm:$0xff] %v11375_v15  ;;  %v4769_v31 = vadd.f32 %v4768_v19, %v11375_v15  ;;  %v11381_v56 = vpop.f32.mrb[57].mxu0  ;;  %13447 = vst [vmem:[#allocation41_spill] sm:$0xff] %v11383_v14  ;;  %v4832_v23 = vadd.f32 %v4831_v61, %v11383_v14  ;;  %v11389_v45 = vpop.f32.mrb[138].mxu1  ;;  %v5002_v61 = vmul.f32 %v11142_v6, %v11142_v6 }
 0x61a   :  { %13446 = vst [vmem:[#allocation24_spill] sm:$0xff] %v11381_v56  ;;  %v4790_v4 = vadd.f32 %v4789_v46, %v11381_v56  ;;  %v11387_v37 = vpop.f32.mrb[58].mxu0  ;;  %13449 = vst [vmem:[#allocation103_spill] sm:$0xff] %v11389_v45  ;;  %v4812_v30 = vadd.f32 %v4811_v25, %v11389_v45  ;;  %v11395_v19 = vpop.f32.mrb[139].mxu1 }
 0x61b   :  { %13448 = vst [vmem:[#allocation26_spill] sm:$0xff] %v11387_v37  ;;  %v4770_v59 = vadd.f32 %v4769_v31, %v11387_v37  ;;  %v11393_v1 = vpop.f32.mrb[59].mxu0  ;;  %13451 = vst [vmem:[#allocation105_spill] sm:$0xff] %v11395_v19  ;;  %v4833_v15 = vadd.f32 %v4832_v23, %v11395_v19  ;;  %v5115_v46 = vadd.f32 %v5114_v41, %v5002_v61 }
 0x61c   :  { %13450 = vst [vmem:[#allocation104_spill] sm:$0xff] %v11393_v1  ;;  %v4791_v7 = vadd.f32 %v4790_v4, %v11393_v1 }
 0x61d   :  { %v5116_v19 = vadd.f32 %v5115_v46, %v5010_v49 }
 0x61f   :  { %v11403_v56 = vpop.f32.mrb[140].mxu1 }
 0x620   :  { %v11401_v14 = vpop.f32.mrb[60].mxu0  ;;  %v4813_v25 = vadd.f32 %v4812_v30, %v11403_v56  ;;  %v11409_v37 = vpop.f32.mrb[141].mxu1 }
 0x621   :  { %v4771_v31 = vadd.f32 %v4770_v59, %v11401_v14  ;;  %v11407_v45 = vpop.f32.mrb[61].mxu0  ;;  %13453 = vst [vmem:[#allocation107_spill] sm:$0xff] %v11409_v37  ;;  %v4834_v4 = vadd.f32 %v4833_v15, %v11409_v37  ;;  %v11417_v41 = vpop.f32.mrb[142].mxu1  ;;  %v4996_v15 = vmul.f32 %v11184_v40, %v11184_v40  ;;  %v5018_v37 = vmul.f32 %v11148_v35, %v11148_v35 }
 0x622   :  { %13452 = vst [vmem:[#allocation106_spill] sm:$0xff] %v11407_v45  ;;  %v4792_v3 = vadd.f32 %v4791_v7, %v11407_v45  ;;  %v11415_v23 = vpop.f32.mrb[62].mxu0  ;;  %v4814_v59 = vadd.f32 %v4813_v25, %v11417_v41  ;;  %v11423_v6 = vpop.f32.mrb[143].mxu1  ;;  %v4988_v7 = vmul.f32 %v11181_v62, %v11181_v62  ;;  %v4995_v25 = vmul.f32 %v11231_v52, %v11231_v52 }
 0x623   :  { %v4772_v61 = vadd.f32 %v4771_v31, %v11415_v23  ;;  %v11421_v30 = vpop.f32.mrb[63].mxu0  ;;  %13455 = vst [vmem:[#allocation109_spill] sm:$0xff] %v11423_v6  ;;  %v4835_v16 = vadd.f32 %v4834_v4, %v11423_v6  ;;  %v4987_v31 = vmul.f32 %v11228_v36, %v11228_v36  ;;  %v5117_v46 = vadd.f32 %v5116_v19, %v5018_v37 }
 0x624   :  { %13454 = vst [vmem:[#allocation108_spill] sm:$0xff] %v11421_v30  ;;  %v4793_v1 = vadd.f32 %v4792_v3, %v11421_v30  ;;  %v5156_v4 = vadd.f32 %v4996_v15, %v4988_v7  ;;  %v5026_v52 = vmul.f32 %v11151_v8, %v11151_v8 }
 0x625   :  { %v5135_v6 = vadd.f32 %v4995_v25, %v4987_v31 }
 0x627   :  { %v11439_v3 = vpop.f32.mrb[144].mxu1 }
 0x628   :  { %v11437_v49 = vpop.f32.mrb[64].mxu0  ;;  %v4815_v40 = vadd.f32 %v4814_v59, %v11439_v3  ;;  %v11445_v36 = vpop.f32.mrb[145].mxu1  ;;  %v5003_v59 = vmul.f32 %v11234_v53, %v11234_v53  ;;  %v4989_v53 = vmul.f32 %v11276_v29, %v11276_v29 }
 0x629   :  { %v4773_v62 = vadd.f32 %v4772_v61, %v11437_v49  ;;  %v11443_v30 = vpop.f32.mrb[65].mxu0  ;;  %13457 = vst [vmem:[#allocation111_spill] sm:$0xff] %v11445_v36  ;;  %v4836_v37 = vadd.f32 %v4835_v16, %v11445_v36  ;;  %v11453_v45 = vpop.f32.mrb[146].mxu1  ;;  %v5004_v61 = vmul.f32 %v11187_v33, %v11187_v33  ;;  %v5034_v33 = vmul.f32 %v11154_v22, %v11154_v22 }
 0x62a   :  { %13456 = vst [vmem:[#allocation110_spill] sm:$0xff] %v11443_v30  ;;  %v4794_v35 = vadd.f32 %v4793_v1, %v11443_v30  ;;  %v11451_v19 = vpop.f32.mrb[66].mxu0  ;;  %v4816_v15 = vadd.f32 %v4815_v40, %v11453_v45  ;;  %v11463_v25 = vpop.f32.mrb[147].mxu1  ;;  %v5118_v1 = vadd.f32 %v5117_v46, %v5026_v52  ;;  %v5136_v30 = vadd.f32 %v5135_v6, %v5003_v59 }
 0x62b   :  { %v4774_v7 = vadd.f32 %v4773_v62, %v11451_v19  ;;  %v11461_v31 = vpop.f32.mrb[67].mxu0  ;;  %13458 = vst [vmem:[#allocation112_spill] sm:$0xff] %v11463_v25  ;;  %v4837_v8 = vadd.f32 %v4836_v37, %v11463_v25  ;;  %v5157_v36 = vadd.f32 %v5156_v4, %v5004_v61  ;;  %v4997_v62 = vmul.f32 %v11279_v48, %v11279_v48 }
 0x62c   :  { %v4795_v16 = vadd.f32 %v4794_v35, %v11461_v31  ;;  %v5012_v40 = vmul.f32 %v11190_v18, %v11190_v18  ;;  %v5011_v52 = vmul.f32 %v11237_v63, %v11237_v63  ;;  %v5119_v35 = vadd.f32 %v5118_v1, %v5034_v33 }
 0x62d   :  { %v5042_v18 = vmul.f32 %v11157_v32, %v11157_v32  ;;  %v5177_v22 = vadd.f32 %v4997_v62, %v4989_v53  ;;  %v5027_v25 = vmul.f32 %v11243_v47, %v11243_v47 }
 0x62e   :  { %v5158_v6 = vadd.f32 %v5157_v36, %v5012_v40  ;;  %v5137_v37 = vadd.f32 %v5136_v30, %v5011_v52  ;;  %v5020_v30 = vmul.f32 %v11193_v42, %v11193_v42 }
 0x62f   :  { %v11479_v4 = vpop.f32.mrb[148].mxu1 }
 0x630   :  { %v11477_v46 = vpop.f32.mrb[68].mxu0  ;;  %v4817_v59 = vadd.f32 %v4816_v15, %v11479_v4  ;;  %v11485_v48 = vpop.f32.mrb[149].mxu1  ;;  %v5159_v42 = vadd.f32 %v5158_v6, %v5020_v30 }
 0x631   :  { %v4775_v61 = vadd.f32 %v4774_v7, %v11477_v46  ;;  %v11483_v29 = vpop.f32.mrb[69].mxu0  ;;  %13459 = vst [vmem:[#allocation113_spill] sm:$0xff] %v11485_v48  ;;  %v4838_v1 = vadd.f32 %v4837_v8, %v11485_v48  ;;  %v11493_v36 = vpop.f32.mrb[150].mxu1  ;;  %v5019_v7 = vmul.f32 %v11240_v12, %v11240_v12  ;;  %v5005_v8 = vmul.f32 %v11282_v28, %v11282_v28 }
 0x632   :  { %v4796_v33 = vadd.f32 %v4795_v16, %v11483_v29  ;;  %v11491_v63 = vpop.f32.mrb[70].mxu0  ;;  %v4818_v40 = vadd.f32 %v4817_v59, %v11493_v36  ;;  %v11503_v53 = vpop.f32.mrb[151].mxu1  ;;  %v5120_v16 = vadd.f32 %v5119_v35, %v5042_v18  ;;  %v5050_v12 = vmul.f32 %v11160_v9, %v11160_v9 }
 0x633   :  { %v4776_v15 = vadd.f32 %v4775_v61, %v11491_v63  ;;  %v11501_v52 = vpop.f32.mrb[71].mxu0  ;;  %13460 = vst [vmem:[#allocation114_spill] sm:$0xff] %v11503_v53  ;;  %v4839_v32 = vadd.f32 %v4838_v1, %v11503_v53  ;;  %v5138_v48 = vadd.f32 %v5137_v37, %v5019_v7  ;;  %v5178_v61 = vadd.f32 %v5177_v22, %v5005_v8 }
 0x634   :  { %v4797_v62 = vadd.f32 %v4796_v33, %v11501_v52  ;;  %v5028_v59 = vmul.f32 %v11196_v50, %v11196_v50  ;;  %v5121_v18 = vadd.f32 %v5120_v16, %v5050_v12  ;;  %v5013_v35 = vmul.f32 %v11285_v58, %v11285_v58 }
 0x635   :  { %v5139_v37 = vadd.f32 %v5138_v48, %v5027_v25  ;;  %v5058_v12 = vmul.f32 %v11163_v13, %v11163_v13  ;;  %v5036_v48 = vmul.f32 %v11199_v26, %v11199_v26  ;;  %v5035_v25 = vmul.f32 %v11246_v57, %v11246_v57 }
 0x636   :  { %v5160_v6 = vadd.f32 %v5159_v42, %v5028_v59  ;;  %v5179_v16 = vadd.f32 %v5178_v61, %v5013_v35  ;;  %v5066_v57 = vmul.f32 %v11166_v55, %v11166_v55  ;;  %v8388_v55 = vld [vmem:[#allocation7 + $0x304] ss:$8 sps:$4 sm:$0xff]  }
 0x637   :  { %v11519_v33 = vpop.f32.mrb[152].mxu1  ;;  %v5140_v9 = vadd.f32 %v5139_v37, %v5035_v25  ;;  %v11569_v37 = vmul.f32 %v11178_v39, %v11178_v39  ;;  %7959 = vmatprep.subr.bf16.mxu1 %v8388_v55 }
 0x638   :  { %v11517_v28 = vpop.f32.mrb[72].mxu0  ;;  %v4819_v22 = vadd.f32 %v4818_v40, %v11519_v33  ;;  %v11525_v7 = vpop.f32.mrb[153].mxu1  ;;  %v5161_v26 = vadd.f32 %v5160_v6, %v5036_v48  ;;  %v5043_v6 = vmul.f32 %v11249_v11, %v11249_v11  ;;  %v5029_v48 = vmul.f32 %v11291_v51, %v11291_v51 }
 0x639   :  { %v4777_v1 = vadd.f32 %v4776_v15, %v11517_v28  ;;  %v11523_v30 = vpop.f32.mrb[73].mxu0  ;;  %13461 = vst [vmem:[#allocation115_spill] sm:$0xff] %v11525_v7  ;;  %v4840_v50 = vadd.f32 %v4839_v32, %v11525_v7  ;;  %v11533_v42 = vpop.f32.mrb[154].mxu1  ;;  %v5021_v32 = vmul.f32 %v11288_v44, %v11288_v44  ;;  %v11611_v7 = vmul.f32 %v11214_v20, %v11214_v20 }
 0x63a   :  { %v4798_v8 = vadd.f32 %v4797_v62, %v11523_v30  ;;  %v11531_v58 = vpop.f32.mrb[74].mxu0  ;;  %v4820_v40 = vadd.f32 %v4819_v22, %v11533_v42  ;;  %v11543_v61 = vpop.f32.mrb[155].mxu1  ;;  %v5122_v62 = vadd.f32 %v5121_v18, %v5058_v12  ;;  %v5082_v22 = vmul.f32 %v11172_v17, %v11172_v17 }
 0x63b   :  { %v4778_v15 = vadd.f32 %v4777_v1, %v11531_v58  ;;  %v11541_v59 = vpop.f32.mrb[75].mxu0  ;;  %13462 = vst [vmem:[#allocation116_spill] sm:$0xff] %v11543_v61  ;;  %v4841_v13 = vadd.f32 %v4840_v50, %v11543_v61  ;;  %v5074_v1 = vmul.f32 %v11169_v24, %v11169_v24  ;;  %v5180_v47 = vadd.f32 %v5179_v16, %v5021_v32  ;;  %v8383_v61 = vld [vmem:[#allocation7] ss:$8 sps:$4 sm:$0xff]  }
 0x63c   :  { %v4799_v35 = vadd.f32 %v4798_v8, %v11541_v59  ;;  %v11557_v18 = vmul.f32 %v11174_v60, %v11174_v60  ;;  %v11561_v12 = vmul.f32 %v11176_v27, %v11176_v27  ;;  %v5044_v50 = vmul.f32 %v11202_v2, %v11202_v2 }
 0x63d   :  { %v5123_v8 = vadd.f32 %v5122_v62, %v5066_v57  ;;  %v5052_v16 = vmul.f32 %v11205_v38, %v11205_v38  ;;  %v5141_v2 = vadd.f32 %v5140_v9, %v5043_v6  ;;  %v5060_v57 = vmul.f32 %v11208_v34, %v11208_v34  ;;  %v8385_v34 = vld [vmem:[#allocation7 + $0x4] ss:$8 sps:$4 sm:$0xff]  }
 0x63e   :  { %v5162_v44 = vadd.f32 %v5161_v26, %v5044_v50  ;;  %v5181_v62 = vadd.f32 %v5180_v47, %v5029_v48  ;;  %v11595_v9 = vmul.f32 %v11211_v5, %v11211_v5  ;;  %v5037_v6 = vmul.f32 %v11294_v0, %v11294_v0  ;;  %6931 = vmatprep.subr.bf16.mxu0 %v8385_v34 }
 0x63f   :  { %v11577_v32 = vpop.f32.mrb[156].mxu1  ;;  %6932 = vmatpush1.bf16.msra.mxu0 %v8383_v61  ;;  %v11617_v20 = vmul.f32 %v11217_v21, %v11217_v21  ;;  %v5045_v34 = vmul.f32 %v11297_v10, %v11297_v10  ;;  %v13467_v21 = vld [vmem:[#allocation63_spill] sm:$0xff] }
 0x640   :  { %v11575_v25 = vpop.f32.mrb[76].mxu0  ;;  %v4821_v60 = vadd.f32 %v4820_v40, %v11577_v32  ;;  %v11583_v39 = vpop.f32.mrb[157].mxu1  ;;  %v5163_v11 = vadd.f32 %v5162_v44, %v5052_v16  ;;  %v8392_v16 = vld [vmem:[#allocation7 + $0x310] ss:$8 sps:$4 sm:$0xff]  }
 0x641   :  { %v4779_v27 = vadd.f32 %v4778_v15, %v11575_v25  ;;  %v11581_v17 = vpop.f32.mrb[77].mxu0  ;;  %13463 = vst [vmem:[#allocation117_spill] sm:$0xff] %v11583_v39  ;;  %v4842_v51 = vadd.f32 %v4841_v13, %v11583_v39  ;;  %v11591_v26 = vpop.f32.mrb[158].mxu1  ;;  %v5051_v15 = vmul.f32 %v11252_v54, %v11252_v54  ;;  %v5124_v13 = vadd.f32 %v5123_v8, %v5074_v1 }
 0x642   :  { %v4800_v38 = vadd.f32 %v4799_v35, %v11581_v17  ;;  %v11589_v24 = vpop.f32.mrb[78].mxu0  ;;  %v4822_v50 = vadd.f32 %v4821_v60, %v11591_v26  ;;  %v11603_v35 = vpop.f32.mrb[159].mxu1  ;;  %v8386_v60 = vld [vmem:[#allocation7 + $0x300] ss:$8 sps:$4 sm:$0xff]   ;;  %v5182_v1 = vadd.f32 %v5181_v62, %v5037_v6  ;;  %v8397_v62 = vld [vmem:[#allocation7 + $0x24] ss:$8 sps:$4 sm:$0xff]  }
 0x643   :  { %v4780_v40 = vadd.f32 %v4779_v27, %v11589_v24  ;;  %v11601_v47 = vpop.f32.mrb[79].mxu0  ;;  %13465 = vst [vmem:[#allocation119_spill] sm:$0xff] %v11603_v35  ;;  %v4843_v5 = vadd.f32 %v4842_v51, %v11603_v35  ;;  %v5142_v54 = vadd.f32 %v5141_v2, %v5051_v15  ;;  %v5059_v51 = vmul.f32 %v11255_v43, %v11255_v43  ;;  %v8389_v2 = vld [vmem:[#allocation7 + $0x10] ss:$8 sps:$4 sm:$0xff]   ;;  %v8394_v15 = vld [vmem:[#allocation7 + $0x314] ss:$8 sps:$4 sm:$0xff]  }
 0x644   :  { %13464 = vst [vmem:[#allocation118_spill] sm:$0xff] %v11601_v47  ;;  %v4801_v48 = vadd.f32 %v4800_v38, %v11601_v47  ;;  %v4823_v27 = vrot.slane %v4822_v50, 4  ;;  %v8391_v38 = vld [vmem:[#allocation7 + $0x14] ss:$8 sps:$4 sm:$0xff]   ;;  %7975 = vmatpush1.bf16.msra.mxu1 %v8386_v60  ;;  %v5125_v35 = vadd.f32 %v5124_v13, %v5082_v22  ;;  %v8400_v6 = vld [vmem:[#allocation7 + $0x324] ss:$8 sps:$4 sm:$0xff]   ;;  %v5164_v43 = vadd.f32 %v5163_v11, %v5060_v57 }
 0x645   :  { %v4781_v39 = vrot.slane %v4780_v40, 4  ;;  %v4844_v53 = vrot.slane %v4843_v5, 4  ;;  %6933 = vmatprep.subr.bf16.mxu0 %v8391_v38  ;;  %7960 = vmatprep.subr.bf16.mxu1 %v8394_v15  ;;  %v5183_v22 = vadd.f32 %v5182_v1, %v5045_v34  ;;  %v5067_v47 = vmul.f32 %v13467_v21, %v13467_v21  ;;  %v8398_v11 = vld [vmem:[#allocation7 + $0x320] ss:$8 sps:$4 sm:$0xff]   ;;  %v13469_v38 = vld [vmem:[#allocation99_spill] sm:$0xff] }
 0x646   :  { %v4802_v8 = vrot.slane %v4801_v48, 4  ;;  %v4824_v44 = vadd.f32 %v4823_v27, %v4822_v50  ;;  %v13466_v50 = vld [vmem:[#allocation58_spill] sm:$0xff]  ;;  %6934 = vmatpush1.bf16.msra.mxu0 %v8389_v2  ;;  %v13471_v1 = vld [vmem:[#allocation71_spill] sm:$0xff]  ;;  %v5165_v2 = vadd.f32 %v5164_v43, %v11595_v9  ;;  %v13473_v21 = vld [vmem:[#allocation64_spill] sm:$0xff] }
 0x647   :  { %v4782_v0 = vadd.f32 %v4781_v39, %v4780_v40  ;;  %v5143_v39 = vadd.f32 %v5142_v54, %v5059_v51  ;;  %v11623_v27 = vmul.f32 %v13466_v50, %v13466_v50  ;;  %v4845_v60 = vadd.f32 %v4844_v53, %v4843_v5  ;;  %v13468_v54 = vld [vmem:[#allocation59_spill] sm:$0xff]  ;;  %6935 = vmatprep.subr.bf16.mxu0 %v8397_v62  ;;  %v13475_v9 = vld [vmem:[#allocation65_spill] sm:$0xff] }
 0x648   :  { %v4803_v55 = vadd.f32 %v4802_v8, %v4801_v48  ;;  %v4825_v61 = vrot.slane %v4824_v44, 2  ;;  %7976 = vmatpush1.bf16.msra.mxu1 %v8392_v16  ;;  %v8395_v8 = vld [vmem:[#allocation7 + $0x20] ss:$8 sps:$4 sm:$0xff]   ;;  %v11629_v57 = vmul.f32 %v13468_v54, %v13468_v54  ;;  %v11633_v51 = vmul.f32 %v13469_v38, %v13469_v38  ;;  %v8403_v53 = vld [vmem:[#allocation7 + $0x34] ss:$8 sps:$4 sm:$0xff]  }
 0x649   :  { %v4783_v40 = vrot.slane %v4782_v0, 2  ;;  %v5053_v5 = vmul.f32 %v13471_v1, %v13471_v1  ;;  %7961 = vmatprep.subr.bf16.mxu1 %v8400_v6  ;;  %v5144_v16 = vadd.f32 %v5143_v39, %v5067_v47  ;;  %v4846_v54 = vrot.slane %v4845_v60, 2  ;;  %v13472_v38 = vld [vmem:[#allocation47_spill] sm:$0xff] }
 0x64a   :  { %v4804_v13 = vrot.slane %v4803_v55, 2  ;;  %v4826_v48 = vadd.f32 %v4825_v61, %v4824_v44  ;;  %13470 = vst [vmem:[#allocation120_spill] sm:$0xff] %v11633_v51  ;;  %v5126_v44 = vadd.f32 %v5125_v35, %v11557_v18  ;;  %v5075_v50 = vmul.f32 %v13472_v38, %v13472_v38  ;;  %6936 = vmatpush1.bf16.msra.mxu0 %v8395_v8  ;;  %v8401_v1 = vld [vmem:[#allocation7 + $0x30] ss:$8 sps:$4 sm:$0xff]   ;;  %v13476_v35 = vld [vmem:[#allocation52_spill] sm:$0xff] }
 0x64b   :  { %v4784_v10 = vadd.f32 %v4783_v40, %v4782_v0  ;;  %v8406_v0 = vld [vmem:[#allocation7 + $0x334] ss:$8 sps:$4 sm:$0xff]   ;;  %v5184_v34 = vadd.f32 %v5183_v22, %v5053_v5  ;;  %v5083_v62 = vmul.f32 %v13473_v21, %v13473_v21  ;;  %v11651_v47 = vmul.f32 %v13475_v9, %v13475_v9  ;;  %6937 = vmatprep.subr.bf16.mxu0 %v8403_v53  ;;  %v8404_v39 = vld [vmem:[#allocation7 + $0x330] ss:$8 sps:$4 sm:$0xff]   ;;  %v8412_v9 = vld [vmem:[#allocation7 + $0x344] ss:$8 sps:$4 sm:$0xff]  }
 0x64c   :  { %v4827_v40 = vrot.slane %v4826_v48, 1  ;;  %v11639_v61 = vadd.f32 %v4804_v13, %v4803_v55  ;;  %7977 = vmatpush1.bf16.msra.mxu1 %v8398_v11  ;;  %v13474_v18 = vld [vmem:[#allocation78_spill] sm:$0xff]  ;;  %v5061_v55 = vmul.f32 %v13476_v35, %v13476_v35  ;;  %v5127_v22 = vadd.f32 %v5126_v44, %v11561_v12  ;;  %v8409_v11 = vld [vmem:[#allocation7 + $0x44] ss:$8 sps:$4 sm:$0xff]   ;;  %v8407_v44 = vld [vmem:[#allocation7 + $0x40] ss:$8 sps:$4 sm:$0xff]  }
 0x64d   :  { %v4785_v15 = vrot.slane %v4784_v10, 1  ;;  %v11647_v43 = vmul.f32 %v13474_v18, %v13474_v18  ;;  %7962 = vmatprep.subr.bf16.mxu1 %v8406_v0  ;;  %v5145_v13 = vadd.f32 %v5144_v16, %v5075_v50  ;;  %v11658_v21 = vadd.f32 %v4846_v54, %v4845_v60  ;;  %v13477_v38 = vld [vmem:[#allocation38_spill] sm:$0xff]  ;;  %v13481_v0 = vld [vmem:[#allocation16_spill] sm:$0xff] }
 0x64e   :  { %v5185_v5 = vadd.f32 %v5184_v34, %v5061_v55  ;;  %v4806_v18 = vrot.slane %v11639_v61, 1  ;;  %v13479_v53 = vld [vmem:[#allocation42_spill] sm:$0xff]  ;;  %6938 = vmatpush1.bf16.msra.mxu0 %v8401_v1  ;;  %v8410_v34 = vld [vmem:[#allocation7 + $0x340] ss:$8 sps:$4 sm:$0xff]  }
 0x64f   :  { %v4786_v6 = vadd.f32 %v4785_v15, %v4784_v10  ;;  %v5166_v10 = vadd.f32 %v5165_v2, %v11611_v7  ;;  %v4828_v15 = vadd.f32 %v4827_v40, %v4826_v48  ;;  %v13483_v7 = vld [vmem:[#allocation18_spill] sm:$0xff]  ;;  %6939 = vmatprep.subr.bf16.mxu0 %v8409_v11 }
 0x650   :  { %v13485_v48 = vld [vmem:[#allocation22_spill] sm:$0xff]  ;;  %7978 = vmatpush1.bf16.msra.mxu1 %v8404_v39  ;;  %v13499_v39 = vld [vmem:[#allocation53_spill] sm:$0xff] }
 0x651   :  { %v4854_v8 = vmul.f32 0.0078125, %v4786_v6  ;;  %v13487_v60 = vld [vmem:[#allocation26_spill] sm:$0xff]  ;;  %7963 = vmatprep.subr.bf16.mxu1 %v8412_v9 }
 0x652   :  { %6940 = vmatpush1.bf16.msra.mxu0 %v8407_v44  ;;  %v13504_v44 = vld [vmem:[#allocation19_spill] sm:$0xff] }
 0x653   :  { %v11661_v51 = vsub.f32 %v13477_v38, %v4854_v8  ;;  %v11664_v35 = vsub.f32 %v13479_v53, %v4854_v8  ;;  %v11667_v12 = vsub.f32 %v13481_v0, %v4854_v8  ;;  %v11670_v50 = vsub.f32 %v13483_v7, %v4854_v8  ;;  %v13502_v7 = vld [vmem:[#allocation44_spill] sm:$0xff] }
 0x654   :  { %v11673_v2 = vsub.f32 %v13485_v48, %v4854_v8  ;;  %v11676_v54 = vsub.f32 %v13487_v60, %v4854_v8  ;;  %v11679_v38 = vsub.f32 %v11401_v14, %v4854_v8  ;;  %v11682_v16 = vsub.f32 %v11415_v23, %v4854_v8  ;;  %v8415_v14 = vld [vmem:[#allocation7 + $0x54] ss:$8 sps:$4 sm:$0xff]   ;;  %7979 = vmatpush1.bf16.msra.mxu1 %v8410_v34  ;;  %v8416_v60 = vld [vmem:[#allocation7 + $0x350] ss:$8 sps:$4 sm:$0xff]  }
 0x655   :  { %13478 = vst [vmem:[#allocation38_spill] sm:$0xff] %v11661_v51  ;;  %13480 = vst [vmem:[#allocation42_spill] sm:$0xff] %v11664_v35  ;;  %v11685_v40 = vsub.f32 %v11437_v49, %v4854_v8  ;;  %v11688_v1 = vsub.f32 %v11451_v19, %v4854_v8  ;;  %v11691_v6 = vsub.f32 %v11477_v46, %v4854_v8  ;;  %v8418_v46 = vld [vmem:[#allocation7 + $0x354] ss:$8 sps:$4 sm:$0xff]   ;;  %v4856_v0 = vmul.f32 0.0078125, %v4828_v15 }
 0x656   :  { %13482 = vst [vmem:[#allocation16_spill] sm:$0xff] %v11667_v12  ;;  %13484 = vst [vmem:[#allocation18_spill] sm:$0xff] %v11670_v50  ;;  %v11694_v55 = vsub.f32 %v11491_v63, %v4854_v8  ;;  %v11697_v53 = vsub.f32 %v11517_v28, %v4854_v8  ;;  %v11700_v23 = vsub.f32 %v11531_v58, %v4854_v8  ;;  %v8413_v58 = vld [vmem:[#allocation7 + $0x50] ss:$8 sps:$4 sm:$0xff]   ;;  %6941 = vmatprep.subr.bf16.mxu0 %v8415_v14  ;;  %v13509_v14 = vld [vmem:[#allocation17_spill] sm:$0xff] }
 0x657   :  { %13486 = vst [vmem:[#allocation22_spill] sm:$0xff] %v11673_v2  ;;  %13488 = vst [vmem:[#allocation26_spill] sm:$0xff] %v11676_v54  ;;  %v11703_v49 = vsub.f32 %v11575_v25, %v4854_v8  ;;  %v11706_v19 = vsub.f32 %v11589_v24, %v4854_v8  ;;  %v5069_v63 = vmul.f32 %v13499_v39, %v13499_v39  ;;  %v13500_v8 = vld [vmem:[#allocation66_spill] sm:$0xff]  ;;  %7964 = vmatprep.subr.bf16.mxu1 %v8418_v46  ;;  %v13514_v46 = vld [vmem:[#allocation103_spill] sm:$0xff] }
 0x658   :  { %13489 = vst [vmem:[#allocation121_spill] sm:$0xff] %v11679_v38  ;;  %13490 = vst [vmem:[#allocation122_spill] sm:$0xff] %v11682_v16  ;;  %v4990_v11 = vmul.f32 %v11661_v51, %v11661_v51  ;;  %v4998_v28 = vmul.f32 %v11664_v35, %v11664_v35  ;;  %v11715_v25 = vadd.f32 %v5127_v22, %v11569_v37  ;;  %v13503_v39 = vld [vmem:[#allocation54_spill] sm:$0xff]  ;;  %6942 = vmatpush1.bf16.msra.mxu0 %v8413_v58 }
 0x659   :  { %13491 = vst [vmem:[#allocation123_spill] sm:$0xff] %v11685_v40  ;;  %13492 = vst [vmem:[#allocation124_spill] sm:$0xff] %v11688_v1  ;;  %v5167_v24 = vadd.f32 %v5166_v10, %v11617_v20  ;;  %v11720_v9 = vmul.f32 %v13500_v8, %v13500_v8  ;;  %v5077_v48 = vmul.f32 %v13502_v7, %v13502_v7  ;;  %v8421_v20 = vld [vmem:[#allocation7 + $0x64] ss:$8 sps:$4 sm:$0xff]   ;;  %v13505_v7 = vld [vmem:[#allocation23_spill] sm:$0xff]  ;;  %7980 = vmatpush1.bf16.msra.mxu1 %v8416_v60 }
 0x65a   :  { %13493 = vst [vmem:[#allocation125_spill] sm:$0xff] %v11691_v6  ;;  %13494 = vst [vmem:[#allocation126_spill] sm:$0xff] %v11694_v55  ;;  %v5146_v51 = vadd.f32 %v5145_v13, %v5083_v62  ;;  %v11726_v15 = vmul.f32 %v13503_v39, %v13503_v39  ;;  %v11730_v37 = vmul.f32 %v13504_v44, %v13504_v44  ;;  %v4848_v62 = vrot.slane %v11658_v21, 1  ;;  %v8424_v13 = vld [vmem:[#allocation7 + $0x364] ss:$8 sps:$4 sm:$0xff]   ;;  %v13507_v44 = vld [vmem:[#allocation27_spill] sm:$0xff] }
 0x65b   :  { %13495 = vst [vmem:[#allocation127_spill] sm:$0xff] %v11697_v53  ;;  %13496 = vst [vmem:[#allocation128_spill] sm:$0xff] %v11700_v23  ;;  %v5186_v22 = vadd.f32 %v5185_v5, %v5069_v63  ;;  %v5006_v10 = vmul.f32 %v11667_v12, %v11667_v12  ;;  %v5014_v35 = vmul.f32 %v11670_v50, %v11670_v50  ;;  %v8419_v12 = vld [vmem:[#allocation7 + $0x60] ss:$8 sps:$4 sm:$0xff]   ;;  %6943 = vmatprep.subr.bf16.mxu0 %v8421_v20 }
 0x65c   :  { %13497 = vst [vmem:[#allocation129_spill] sm:$0xff] %v11703_v49  ;;  %13498 = vst [vmem:[#allocation130_spill] sm:$0xff] %v11706_v19  ;;  %v4807_v34 = vadd.f32 %v4806_v18, %v11639_v61  ;;  %v5198_v39 = vadd.f32 %v4998_v28, %v4990_v11  ;;  %v11739_v8 = vsub.f32 %v13505_v7, %v4856_v0  ;;  %v13510_v19 = vld [vmem:[#allocation35_spill] sm:$0xff]  ;;  %v8422_v28 = vld [vmem:[#allocation7 + $0x360] ss:$8 sps:$4 sm:$0xff]   ;;  %7965 = vmatprep.subr.bf16.mxu1 %v8424_v13 }
 0x65d   :  { %13501 = vst [vmem:[#allocation131_spill] sm:$0xff] %v11720_v9  ;;  %v11742_v5 = vsub.f32 %v13507_v44, %v4856_v0  ;;  %v11745_v63 = vsub.f32 %v13509_v14, %v4856_v0  ;;  %v11748_v50 = vsub.f32 %v13510_v19, %v4856_v0  ;;  %v13512_v61 = vld [vmem:[#allocation39_spill] sm:$0xff]  ;;  %v11754_v9 = vsub.f32 %v13514_v46, %v4856_v0 }
 0x65e   :  { %13506 = vst [vmem:[#allocation23_spill] sm:$0xff] %v11739_v8  ;;  %v11751_v18 = vsub.f32 %v13512_v61, %v4856_v0  ;;  %v11757_v11 = vsub.f32 %v11403_v56, %v4856_v0  ;;  %v5199_v7 = vadd.f32 %v5198_v39, %v5006_v10  ;;  %v11760_v44 = vsub.f32 %v11417_v41, %v4856_v0  ;;  %v8427_v14 = vld [vmem:[#allocation7 + $0x74] ss:$8 sps:$4 sm:$0xff]   ;;  %v13519_v10 = vld [vmem:[#allocation36_spill] sm:$0xff] }
 0x65f   :  { %13508 = vst [vmem:[#allocation27_spill] sm:$0xff] %v11742_v5  ;;  %13511 = vst [vmem:[#allocation17_spill] sm:$0xff] %v11748_v50  ;;  %v11763_v58 = vsub.f32 %v11439_v3, %v4856_v0  ;;  %v11766_v19 = vsub.f32 %v11453_v45, %v4856_v0  ;;  %v11769_v61 = vsub.f32 %v11479_v4, %v4856_v0  ;;  %v8430_v3 = vld [vmem:[#allocation7 + $0x374] ss:$8 sps:$4 sm:$0xff]   ;;  %6944 = vmatpush1.bf16.msra.mxu0 %v8419_v12 }
 0x660   :  { %13513 = vst [vmem:[#allocation35_spill] sm:$0xff] %v11751_v18  ;;  %13515 = vst [vmem:[#allocation39_spill] sm:$0xff] %v11760_v44  ;;  %v11772_v56 = vsub.f32 %v11493_v36, %v4856_v0  ;;  %v11775_v60 = vsub.f32 %v11519_v33, %v4856_v0  ;;  %v11778_v41 = vsub.f32 %v11533_v42, %v4856_v0  ;;  %v8425_v36 = vld [vmem:[#allocation7 + $0x70] ss:$8 sps:$4 sm:$0xff]   ;;  %v4855_v46 = vmul.f32 0.0078125, %v4807_v34 }
 0x661   :  { %13516 = vst [vmem:[#allocation103_spill] sm:$0xff] %v11763_v58  ;;  %13517 = vst [vmem:[#allocation132_spill] sm:$0xff] %v11766_v19  ;;  %v5022_v45 = vmul.f32 %v11673_v2, %v11673_v2  ;;  %v5200_v39 = vadd.f32 %v5199_v7, %v5014_v35  ;;  %v11783_v20 = vsub.f32 %v11577_v32, %v4856_v0  ;;  %7981 = vmatpush1.bf16.msra.mxu1 %v8422_v28  ;;  %v8428_v35 = vld [vmem:[#allocation7 + $0x370] ss:$8 sps:$4 sm:$0xff]   ;;  %v8433_v7 = vld [vmem:[#allocation7 + $0x84] ss:$8 sps:$4 sm:$0xff]  }
 0x662   :  { %13518 = vst [vmem:[#allocation133_spill] sm:$0xff] %v11769_v61  ;;  %v11786_v4 = vsub.f32 %v11591_v26, %v4856_v0  ;;  %v11790_v33 = vmul.f32 %v13519_v10, %v13519_v10  ;;  %v4992_v42 = vmul.f32 %v11739_v8, %v11739_v8  ;;  %v5000_v13 = vmul.f32 %v11742_v5, %v11742_v5  ;;  %v13524_v5 = vld [vmem:[#allocation33_spill] sm:$0xff] }
 0x663   :  { %v11797_v32 = vadd.f32 %v5167_v24, %v11623_v27  ;;  %v11800_v26 = vadd.f32 %v5146_v51, %v11647_v43  ;;  %v5030_v12 = vmul.f32 %v11676_v54, %v11676_v54  ;;  %v5201_v0 = vadd.f32 %v5200_v39, %v5022_v45  ;;  %6945 = vmatprep.subr.bf16.mxu0 %v8427_v14  ;;  %v8436_v27 = vld [vmem:[#allocation7 + $0x384] ss:$8 sps:$4 sm:$0xff]  }
 0x664   :  { %v5187_v2 = vadd.f32 %v5186_v22, %v5077_v48  ;;  %v5038_v8 = vmul.f32 %v11679_v38, %v11679_v38  ;;  %v5046_v34 = vmul.f32 %v11682_v16, %v11682_v16  ;;  %v4849_v28 = vadd.f32 %v4848_v62, %v11658_v21  ;;  %7966 = vmatprep.subr.bf16.mxu1 %v8430_v3  ;;  %v8431_v22 = vld [vmem:[#allocation7 + $0x80] ss:$8 sps:$4 sm:$0xff]   ;;  %v13522_v62 = vld [vmem:[#allocation31_spill] sm:$0xff] }
 0x665   :  { %v5054_v51 = vmul.f32 %v11685_v40, %v11685_v40  ;;  %v5202_v43 = vadd.f32 %v5201_v0, %v5030_v12  ;;  %v5008_v24 = vmul.f32 %v11745_v63, %v11745_v63  ;;  %v5016_v48 = vmul.f32 %v11748_v50, %v11748_v50  ;;  %6946 = vmatpush1.bf16.msra.mxu0 %v8425_v36  ;;  %v13520_v39 = vld [vmem:[#allocation40_spill] sm:$0xff] }
 0x666   :  { %v5024_v14 = vmul.f32 %v11751_v18, %v11751_v18  ;;  %v5240_v45 = vadd.f32 %v5000_v13, %v4992_v42  ;;  %v11818_v21 = vsub.f32 %v13520_v39, %v4855_v46  ;;  %v11821_v3 = vsub.f32 %v13522_v62, %v4855_v46  ;;  %7982 = vmatpush1.bf16.msra.mxu1 %v8428_v35  ;;  %v8434_v12 = vld [vmem:[#allocation7 + $0x380] ss:$8 sps:$4 sm:$0xff]   ;;  %v8439_v42 = vld [vmem:[#allocation7 + $0x94] ss:$8 sps:$4 sm:$0xff]  }
 0x667   :  { %v5203_v0 = vadd.f32 %v5202_v43, %v5038_v8  ;;  %v11824_v40 = vsub.f32 %v13524_v5, %v4855_v46  ;;  %v13526_v16 = vld [vmem:[#allocation20_spill] sm:$0xff]  ;;  %6947 = vmatprep.subr.bf16.mxu0 %v8433_v7  ;;  %v13531_v62 = vld [vmem:[#allocation106_spill] sm:$0xff]  ;;  %7967 = vmatprep.subr.bf16.mxu1 %v8436_v27  ;;  %v11848_v7 = vsub.f32 %v11483_v29, %v4855_v46 }
 0x668   :  { %13521 = vst [vmem:[#allocation40_spill] sm:$0xff] %v11818_v21  ;;  %13523 = vst [vmem:[#allocation31_spill] sm:$0xff] %v11821_v3  ;;  %v11827_v38 = vsub.f32 %v13526_v16, %v4855_v46  ;;  %v13528_v36 = vld [vmem:[#allocation24_spill] sm:$0xff]  ;;  %v5241_v13 = vadd.f32 %v5240_v45, %v5008_v24  ;;  %v11836_v18 = vsub.f32 %v13531_v62, %v4855_v46  ;;  %v8442_v5 = vld [vmem:[#allocation7 + $0x394] ss:$8 sps:$4 sm:$0xff]  }
 0x669   :  { %13525 = vst [vmem:[#allocation33_spill] sm:$0xff] %v11824_v40  ;;  %v11830_v54 = vsub.f32 %v13528_v36, %v4855_v46  ;;  %v13530_v39 = vld [vmem:[#allocation104_spill] sm:$0xff]  ;;  %v5204_v43 = vadd.f32 %v5203_v0, %v5046_v34  ;;  %v13533_v16 = vld [vmem:[#allocation110_spill] sm:$0xff]  ;;  %v11845_v36 = vsub.f32 %v11461_v31, %v4855_v46  ;;  %13535 = vst [vmem:[#allocation106_spill] sm:$0xff] %v11848_v7  ;;  %6948 = vmatpush1.bf16.msra.mxu0 %v8431_v22 }
 0x66a   :  { %13527 = vst [vmem:[#allocation20_spill] sm:$0xff] %v11827_v38  ;;  %v11833_v10 = vsub.f32 %v13530_v39, %v4855_v46  ;;  %v13532_v35 = vld [vmem:[#allocation108_spill] sm:$0xff]  ;;  %v11842_v50 = vsub.f32 %v13533_v16, %v4855_v46  ;;  %v8437_v24 = vld [vmem:[#allocation7 + $0x90] ss:$8 sps:$4 sm:$0xff]   ;;  %v5242_v45 = vadd.f32 %v5241_v13, %v5016_v48  ;;  %v11851_v39 = vsub.f32 %v11501_v52, %v4855_v46 }
 0x66b   :  { %13529 = vst [vmem:[#allocation24_spill] sm:$0xff] %v11830_v54  ;;  %v11839_v8 = vsub.f32 %v13532_v35, %v4855_v46  ;;  %13534 = vst [vmem:[#allocation104_spill] sm:$0xff] %v11845_v36  ;;  %v11854_v62 = vsub.f32 %v11523_v30, %v4855_v46  ;;  %v11857_v34 = vsub.f32 %v11541_v59, %v4855_v46  ;;  %7983 = vmatpush1.bf16.msra.mxu1 %v8434_v12  ;;  %v8440_v27 = vld [vmem:[#allocation7 + $0x390] ss:$8 sps:$4 sm:$0xff]   ;;  %v8445_v52 = vld [vmem:[#allocation7 + $0xa4] ss:$8 sps:$4 sm:$0xff]  }
 0x66c   :  { %13536 = vst [vmem:[#allocation108_spill] sm:$0xff] %v11851_v39  ;;  %v5062_v31 = vmul.f32 %v11688_v1, %v11688_v1  ;;  %v5205_v0 = vadd.f32 %v5204_v43, %v5054_v51  ;;  %v11862_v29 = vsub.f32 %v11581_v17, %v4855_v46  ;;  %v13540_v22 = vld [vmem:[#allocation118_spill] sm:$0xff]  ;;  %6949 = vmatprep.subr.bf16.mxu0 %v8439_v42  ;;  %v11872_v13 = vmul.f32 0.0078125, %v4849_v28  ;;  %v8448_v35 = vld [vmem:[#allocation7 + $0x3a4] ss:$8 sps:$4 sm:$0xff]  }
 0x66d   :  { %13537 = vst [vmem:[#allocation110_spill] sm:$0xff] %v11854_v62  ;;  %13538 = vst [vmem:[#allocation134_spill] sm:$0xff] %v11857_v34  ;;  %v11865_v48 = vsub.f32 %v13540_v22, %v4855_v46  ;;  %v11868_v30 = vadd.f32 %v5187_v2, %v11726_v15  ;;  %v5032_v59 = vmul.f32 %v11754_v9, %v11754_v9  ;;  %7968 = vmatprep.subr.bf16.mxu1 %v8442_v5  ;;  %v8443_v2 = vld [vmem:[#allocation7 + $0xa0] ss:$8 sps:$4 sm:$0xff]  }
 0x66e   :  { %13539 = vst [vmem:[#allocation135_spill] sm:$0xff] %v11862_v29  ;;  %v5243_v12 = vadd.f32 %v5242_v45, %v5024_v14  ;;  %v5070_v17 = vmul.f32 %v11691_v6, %v11691_v6  ;;  %v5206_v51 = vadd.f32 %v5205_v0, %v5062_v31  ;;  %v4991_v46 = vmul.f32 %v11818_v21, %v11818_v21  ;;  %v8446_v43 = vld [vmem:[#allocation7 + $0x3a0] ss:$8 sps:$4 sm:$0xff]   ;;  %v8451_v0 = vld [vmem:[#allocation7 + $0xb4] ss:$8 sps:$4 sm:$0xff]  }
 0x66f   :  { %13541 = vst [vmem:[#allocation118_spill] sm:$0xff] %v11865_v48  ;;  %v4999_v42 = vmul.f32 %v11821_v3, %v11821_v3  ;;  %6950 = vmatpush1.bf16.msra.mxu0 %v8437_v24  ;;  %v5078_v15 = vmul.f32 %v11694_v55, %v11694_v55  ;;  %v5086_v28 = vmul.f32 %v11697_v53, %v11697_v53  ;;  %v13542_v55 = vld [vmem:[#allocation25_spill] sm:$0xff] }
 0x670   :  { %v5040_v14 = vmul.f32 %v11757_v11, %v11757_v11  ;;  %v5244_v5 = vadd.f32 %v5243_v12, %v5032_v59  ;;  %7984 = vmatpush1.bf16.msra.mxu1 %v8440_v27  ;;  %v5207_v16 = vadd.f32 %v5206_v51, %v5070_v17  ;;  %v5048_v45 = vmul.f32 %v11760_v44, %v11760_v44  ;;  %v8454_v12 = vld [vmem:[#allocation7 + $0x3b4] ss:$8 sps:$4 sm:$0xff]  }
 0x671   :  { %v5056_v24 = vmul.f32 %v11763_v58, %v11763_v58  ;;  %v5064_v31 = vmul.f32 %v11766_v19, %v11766_v19  ;;  %6951 = vmatprep.subr.bf16.mxu0 %v8445_v52  ;;  %v5072_v22 = vmul.f32 %v11769_v61, %v11769_v61  ;;  %v5007_v27 = vmul.f32 %v11824_v40, %v11824_v40  ;;  %v13544_v52 = vld [vmem:[#allocation32_spill] sm:$0xff]  ;;  %v13546_v40 = vld [vmem:[#allocation34_spill] sm:$0xff]  ;;  %v13556_v58 = vld [vmem:[#allocation115_spill] sm:$0xff] }
 0x672   :  { %v5245_v53 = vadd.f32 %v5244_v5, %v5040_v14  ;;  %v5015_v59 = vmul.f32 %v11827_v38, %v11827_v38  ;;  %7969 = vmatprep.subr.bf16.mxu1 %v8448_v35  ;;  %v5208_v17 = vadd.f32 %v5207_v16, %v5078_v15  ;;  %v5219_v51 = vadd.f32 %v4999_v42, %v4991_v46  ;;  %v8449_v14 = vld [vmem:[#allocation7 + $0xb0] ss:$8 sps:$4 sm:$0xff]   ;;  %v13547_v35 = vld [vmem:[#allocation37_spill] sm:$0xff] }
 0x673   :  { %v11900_v6 = vsub.f32 %v13542_v55, %v11872_v13  ;;  %v11904_v1 = vsub.f32 %v13544_v52, %v11872_v13  ;;  %6952 = vmatpush1.bf16.msra.mxu0 %v8443_v2  ;;  %v11908_v3 = vsub.f32 %v13546_v40, %v11872_v13  ;;  %v11912_v38 = vsub.f32 %v13547_v35, %v11872_v13  ;;  %v13548_v46 = vld [vmem:[#allocation41_spill] sm:$0xff]  ;;  %v8452_v55 = vld [vmem:[#allocation7 + $0x3b0] ss:$8 sps:$4 sm:$0xff]  }
 0x674   :  { %v5246_v5 = vadd.f32 %v5245_v53, %v5048_v45  ;;  %v11916_v42 = vsub.f32 %v13548_v46, %v11872_v13  ;;  %7985 = vmatpush1.bf16.msra.mxu1 %v8446_v43  ;;  %v5023_v15 = vmul.f32 %v11830_v54, %v11830_v54  ;;  %v5220_v2 = vadd.f32 %v5219_v51, %v5007_v27  ;;  %v13549_v53 = vld [vmem:[#allocation105_spill] sm:$0xff]  ;;  %v13550_v40 = vld [vmem:[#allocation107_spill] sm:$0xff]  ;;  %v13553_v27 = vld [vmem:[#allocation112_spill] sm:$0xff] }
 0x675   :  { %13543 = vst [vmem:[#allocation25_spill] sm:$0xff] %v11900_v6  ;;  %13545 = vst [vmem:[#allocation32_spill] sm:$0xff] %v11904_v1  ;;  %v11922_v16 = vsub.f32 %v13549_v53, %v11872_v13  ;;  %v11926_v45 = vsub.f32 %v13550_v40, %v11872_v13  ;;  %6953 = vmatprep.subr.bf16.mxu0 %v8451_v0  ;;  %v8457_v52 = vld [vmem:[#allocation7 + $0xc4] ss:$8 sps:$4 sm:$0xff]   ;;  %v13552_v43 = vld [vmem:[#allocation111_spill] sm:$0xff]  ;;  %v11938_v51 = vsub.f32 %v13553_v27, %v11872_v13 }
 0x676   :  { %v5247_v35 = vadd.f32 %v5246_v5, %v5056_v24  ;;  %v13551_v46 = vld [vmem:[#allocation109_spill] sm:$0xff]  ;;  %v11934_v61 = vsub.f32 %v13552_v43, %v11872_v13  ;;  %7970 = vmatprep.subr.bf16.mxu1 %v8454_v12  ;;  %v5209_v54 = vadd.f32 %v5208_v17, %v5086_v28  ;;  %v5221_v40 = vadd.f32 %v5220_v2, %v5015_v59  ;;  %v13555_v24 = vld [vmem:[#allocation114_spill] sm:$0xff]  ;;  %v13557_v12 = vld [vmem:[#allocation116_spill] sm:$0xff] }
 0x677   :  { %v11930_v21 = vsub.f32 %v13551_v46, %v11872_v13  ;;  %v8460_v53 = vld [vmem:[#allocation7 + $0x3c4] ss:$8 sps:$4 sm:$0xff]   ;;  %v11946_v5 = vsub.f32 %v13555_v24, %v11872_v13  ;;  %6954 = vmatpush1.bf16.msra.mxu0 %v8449_v14  ;;  %v8455_v46 = vld [vmem:[#allocation7 + $0xc0] ss:$8 sps:$4 sm:$0xff]   ;;  %v11950_v44 = vsub.f32 %v13556_v58, %v11872_v13  ;;  %v11954_v27 = vsub.f32 %v13557_v12, %v11872_v13  ;;  %v13559_v58 = vld [vmem:[#allocation119_spill] sm:$0xff] }
 0x678   :  { %v13554_v0 = vld [vmem:[#allocation113_spill] sm:$0xff]  ;;  %v5248_v43 = vadd.f32 %v5247_v35, %v5064_v31  ;;  %7986 = vmatpush1.bf16.msra.mxu1 %v8452_v55  ;;  %v5094_v2 = vmul.f32 %v11700_v23, %v11700_v23  ;;  %v5031_v31 = vmul.f32 %v11833_v10, %v11833_v10  ;;  %v5222_v14 = vadd.f32 %v5221_v40, %v5023_v15  ;;  %v8466_v24 = vld [vmem:[#allocation7 + $0x3d4] ss:$8 sps:$4 sm:$0xff]  }
 0x679   :  { %v11942_v19 = vsub.f32 %v13554_v0, %v11872_v13  ;;  %v13558_v28 = vld [vmem:[#allocation117_spill] sm:$0xff]  ;;  %v11966_v35 = vsub.f32 %v13559_v58, %v11872_v13  ;;  %6955 = vmatprep.subr.bf16.mxu0 %v8457_v52  ;;  %v8463_v0 = vld [vmem:[#allocation7 + $0xd4] ss:$8 sps:$4 sm:$0xff]   ;;  %v5169_v12 = vadd.f32 %v11797_v32, %v11629_v57  ;;  %v5189_v55 = vadd.f32 %v11868_v30, %v11730_v37  ;;  %v8461_v58 = vld [vmem:[#allocation7 + $0xd0] ss:$8 sps:$4 sm:$0xff]  }
 0x67a   :  { %v11958_v59 = vsub.f32 %v13558_v28, %v11872_v13  ;;  %v8458_v17 = vld [vmem:[#allocation7 + $0x3c0] ss:$8 sps:$4 sm:$0xff]   ;;  %v5080_v28 = vmul.f32 %v11772_v56, %v11772_v56  ;;  %v5249_v23 = vadd.f32 %v5248_v43, %v5072_v22  ;;  %7971 = vmatprep.subr.bf16.mxu1 %v8460_v53  ;;  %v5148_v15 = vadd.f32 %v11800_v26, %v11651_v47  ;;  %v8464_v22 = vld [vmem:[#allocation7 + $0x3d0] ss:$8 sps:$4 sm:$0xff]   ;;  %v8469_v47 = vld [vmem:[#allocation7 + $0xe4] ss:$8 sps:$4 sm:$0xff]  }
 0x67b   :  { %v5210_v40 = vadd.f32 %v5209_v54, %v5094_v2  ;;  %v5039_v13 = vmul.f32 %v11836_v18, %v11836_v18  ;;  %v5223_v52 = vadd.f32 %v5222_v14, %v5031_v31  ;;  %6956 = vmatpush1.bf16.msra.mxu0 %v8455_v46  ;;  %v5088_v57 = vmul.f32 %v11775_v60, %v11775_v60  ;;  %v8472_v46 = vld [vmem:[#allocation7 + $0x3e4] ss:$8 sps:$4 sm:$0xff]  }
 0x67c   :  { %v5250_v32 = vadd.f32 %v5249_v23, %v5080_v28  ;;  %v4993_v37 = vmul.f32 %v11900_v6, %v11900_v6  ;;  %v5001_v30 = vmul.f32 %v11904_v1, %v11904_v1  ;;  %7987 = vmatpush1.bf16.msra.mxu1 %v8458_v17  ;;  %v5102_v54 = vmul.f32 %v11703_v49, %v11703_v49  ;;  %v13560_v23 = vld [vmem:[#allocation21_spill] sm:$0xff]  ;;  %v13561_v14 = vld [vmem:[#allocation120_spill] sm:$0xff] }
 0x67d   :  { %v5047_v26 = vmul.f32 %v11839_v8, %v11839_v8  ;;  %v5224_v53 = vadd.f32 %v5223_v52, %v5039_v13  ;;  %6957 = vmatprep.subr.bf16.mxu0 %v8463_v0  ;;  %7972 = vmatprep.subr.bf16.mxu1 %v8466_v24  ;;  %v5109_v43 = vmul.f32 %v13560_v23, %v13560_v23  ;;  %v8467_v0 = vld [vmem:[#allocation7 + $0xe0] ss:$8 sps:$4 sm:$0xff]   ;;  %v5129_v24 = vrot.slane %v11715_v25, 4 }
 0x67e   :  { %v5190_v2 = vadd.f32 %v5189_v55, %v11790_v33  ;;  %v5096_v17 = vmul.f32 %v11778_v41, %v11778_v41  ;;  %v5251_v31 = vadd.f32 %v5250_v32, %v5088_v57  ;;  %v5170_v28 = vadd.f32 %v5169_v12, %v13561_v14  ;;  %v8470_v55 = vld [vmem:[#allocation7 + $0x3e0] ss:$8 sps:$4 sm:$0xff]   ;;  %v8475_v57 = vld [vmem:[#allocation7 + $0xf4] ss:$8 sps:$4 sm:$0xff]  }
 0x67f   :  { %v5211_v1 = vadd.f32 %v5210_v40, %v5102_v54  ;;  %v5055_v6 = vmul.f32 %v11842_v50, %v11842_v50  ;;  %v5225_v49 = vadd.f32 %v5224_v53, %v5047_v26  ;;  %6958 = vmatpush1.bf16.msra.mxu0 %v8461_v58  ;;  %v5009_v52 = vmul.f32 %v11908_v3, %v11908_v3  ;;  %v13562_v32 = vld [vmem:[#allocation131_spill] sm:$0xff]  ;;  %v13563_v40 = vld [vmem:[#allocation130_spill] sm:$0xff] }
 0x680   :  { %v5252_v13 = vadd.f32 %v5251_v31, %v5096_v17  ;;  %v5261_v33 = vadd.f32 %v5001_v30, %v4993_v37  ;;  %7988 = vmatpush1.bf16.msra.mxu1 %v8464_v22  ;;  %6959 = vmatprep.subr.bf16.mxu0 %v8469_v47  ;;  %v5149_v12 = vadd.f32 %v5148_v15, %v13562_v32  ;;  %v8478_v53 = vld [vmem:[#allocation7 + $0x3f4] ss:$8 sps:$4 sm:$0xff]   ;;  %v5171_v22 = vrot.slane %v5170_v28, 4  ;;  %v8473_v32 = vld [vmem:[#allocation7 + $0xf0] ss:$8 sps:$4 sm:$0xff]  }
 0x681   :  { %v5110_v54 = vmul.f32 %v13563_v40, %v13563_v40  ;;  %v5063_v58 = vmul.f32 %v11845_v36, %v11845_v36  ;;  %v5226_v26 = vadd.f32 %v5225_v49, %v5055_v6  ;;  %7973 = vmatprep.subr.bf16.mxu1 %v8472_v46  ;;  %v5191_v17 = vadd.f32 %v5190_v2, %v5109_v43  ;;  %v8476_v46 = vld [vmem:[#allocation7 + $0x3f0] ss:$8 sps:$4 sm:$0xff]   ;;  %v8481_v43 = vld [vmem:[#allocation7 + $0x104] ss:$8 sps:$4 sm:$0xff]  }
 0x682   :  { %v5104_v31 = vmul.f32 %v11783_v20, %v11783_v20  ;;  %v5017_v37 = vmul.f32 %v11912_v38, %v11912_v38  ;;  %v5262_v30 = vadd.f32 %v5261_v33, %v5009_v52  ;;  %v5071_v15 = vmul.f32 %v11848_v7, %v11848_v7  ;;  %v13576_v36 = vld [vmem:[#allocation74_spill] sm:$0xff] }
 0x683   :  { %v5212_v47 = vadd.f32 %v5211_v1, %v5110_v54  ;;  %v5227_v14 = vadd.f32 %v5226_v26, %v5063_v58  ;;  %6960 = vmatpush1.bf16.msra.mxu0 %v8467_v0  ;;  %v5025_v6 = vmul.f32 %v11916_v42, %v11916_v42  ;;  %v5130_v2 = vadd.f32 %v5129_v24, %v11715_v25 }
 0x684   :  { %v5253_v40 = vadd.f32 %v5252_v13, %v5104_v31  ;;  %v5263_v49 = vadd.f32 %v5262_v30, %v5017_v37  ;;  %7989 = vmatpush1.bf16.msra.mxu1 %v8470_v55  ;;  %6961 = vmatprep.subr.bf16.mxu0 %v8475_v57  ;;  %v5150_v52 = vrot.slane %v5149_v12, 4  ;;  %v5079_v1 = vmul.f32 %v11851_v39, %v11851_v39  ;;  %v13575_v39 = vld [vmem:[#allocation102_spill] sm:$0xff] }
 0x685   :  { %v5228_v33 = vadd.f32 %v5227_v14, %v5071_v15  ;;  %7974 = vmatprep.subr.bf16.mxu1 %v8478_v53  ;;  %v5192_v54 = vrot.slane %v5191_v17, 4  ;;  %v5112_v0 = vmul.f32 %v11786_v4, %v11786_v4  ;;  %v5033_v13 = vmul.f32 %v11922_v16, %v11922_v16 }
 0x686   :  { %v5264_v58 = vadd.f32 %v5263_v49, %v5025_v6  ;;  %v5172_v55 = vadd.f32 %v5171_v22, %v5170_v28  ;;  %v5213_v57 = vrot.slane %v5212_v47, 4  ;;  %v5087_v26 = vmul.f32 %v11854_v62, %v11854_v62 }
 0x687   :  { %v5229_v25 = vadd.f32 %v5228_v33, %v5079_v1  ;;  %6962 = vmatpush1.bf16.msra.mxu0 %v8473_v32  ;;  %v5254_v24 = vadd.f32 %v5253_v40, %v5112_v0  ;;  %v5041_v31 = vmul.f32 %v11926_v45, %v11926_v45  ;;  %v5151_v37 = vadd.f32 %v5150_v52, %v5149_v12 }
 0x688   :  { %v5265_v53 = vadd.f32 %v5264_v58, %v5033_v13  ;;  %7990 = vmatpush1.bf16.msra.mxu1 %v8476_v46  ;;  %7044 = vmatprep.subr.bf16.mxu0 %v8481_v43  ;;  %v5095_v30 = vmul.f32 %v11857_v34, %v11857_v34  ;;  %v5193_v14 = vadd.f32 %v5192_v54, %v5191_v17  ;;  %v5131_v6 = vrot.slane %v5130_v2, 2 }
 0x689   :  { %v5230_v15 = vadd.f32 %v5229_v25, %v5087_v26  ;;  %v5049_v28 = vmul.f32 %v11930_v21, %v11930_v21  ;;  %v5214_v49 = vadd.f32 %v5213_v57, %v5212_v47  ;;  %v5103_v40 = vmul.f32 %v11862_v29, %v11862_v29 }
 0x68a   :  { %v5266_v22 = vadd.f32 %v5265_v53, %v5041_v31  ;;  %v5173_v1 = vrot.slane %v5172_v55, 2  ;;  %v5255_v33 = vrot.slane %v5254_v24, 4  ;;  %v5057_v12 = vmul.f32 %v11934_v61, %v11934_v61 }
 0x68b   :  { %v5231_v32 = vadd.f32 %v5230_v15, %v5095_v30  ;;  %v5152_v43 = vrot.slane %v5151_v37, 2  ;;  %v5111_v17 = vmul.f32 %v11865_v48, %v11865_v48  ;;  %v5194_v54 = vrot.slane %v5193_v14, 2 }
 0x68c   :  { %v5267_v46 = vadd.f32 %v5266_v22, %v5049_v28  ;;  %v5065_v0 = vmul.f32 %v11938_v51, %v11938_v51  ;;  %v5132_v13 = vadd.f32 %v5131_v6, %v5130_v2  ;;  %v5215_v58 = vrot.slane %v5214_v49, 2 }
 0x68d   :  { %v5232_v52 = vadd.f32 %v5231_v32, %v5103_v40  ;;  %v5174_v26 = vadd.f32 %v5173_v1, %v5172_v55  ;;  %v5256_v25 = vadd.f32 %v5255_v33, %v5254_v24  ;;  %v5073_v31 = vmul.f32 %v11942_v19, %v11942_v19 }
 0x68e   :  { %v5268_v47 = vadd.f32 %v5267_v46, %v5057_v12  ;;  %v5153_v30 = vadd.f32 %v5152_v43, %v5151_v37  ;;  %v5195_v28 = vadd.f32 %v5194_v54, %v5193_v14  ;;  %v5081_v22 = vmul.f32 %v11946_v5, %v11946_v5 }
 0x68f   :  { %v5233_v57 = vadd.f32 %v5232_v52, %v5111_v17  ;;  %v5133_v32 = vrot.slane %v5132_v13, 1  ;;  %v5216_v48 = vadd.f32 %v5215_v58, %v5214_v49  ;;  %v5175_v12 = vrot.slane %v5174_v26, 1 }
 0x690   :  { %v5269_v53 = vadd.f32 %v5268_v47, %v5065_v0  ;;  %v5257_v2 = vrot.slane %v5256_v25, 2  ;;  %v5089_v55 = vmul.f32 %v11950_v44, %v11950_v44  ;;  %v5154_v6 = vrot.slane %v5153_v30, 1 }
 0x691   :  { %v5234_v15 = vrot.slane %v5233_v57, 4  ;;  %v5196_v33 = vrot.slane %v5195_v28, 1  ;;  %v5097_v37 = vmul.f32 %v11954_v27, %v11954_v27  ;;  %v5134_v46 = vadd.f32 %v5133_v32, %v5132_v13 }
 0x692   :  { %v5270_v40 = vadd.f32 %v5269_v53, %v5073_v31  ;;  %v5217_v43 = vrot.slane %v5216_v48, 1  ;;  %v5176_v52 = vadd.f32 %v5175_v12, %v5174_v26  ;;  %v5258_v54 = vadd.f32 %v5257_v2, %v5256_v25 }
 0x693   :  { %v5235_v29 = vadd.f32 %v5234_v15, %v5233_v57  ;;  %v5105_v49 = vmul.f32 %v11958_v59, %v11958_v59  ;;  %v5155_v47 = vadd.f32 %v5154_v6, %v5153_v30  ;;  %v5197_v57 = vadd.f32 %v5196_v33, %v5195_v28 }
 0x694   :  { %v5271_v24 = vadd.f32 %v5270_v40, %v5081_v22  ;;  %v5113_v31 = vmul.f32 %v11966_v35, %v11966_v35  ;;  %v5282_v15 = vmul.f32 0.0078125, %v5134_v46  ;;  %v5218_v22 = vadd.f32 %v5217_v43, %v5216_v48 }
 0x695   :  { %v5236_v1 = vrot.slane %v5235_v29, 2  ;;  %v5284_v40 = vmul.f32 0.0078125, %v5176_v52  ;;  %v5285_v26 = vmul.f32 0.0078125, %v5197_v57 }
 0x696   :  { %v5272_v14 = vadd.f32 %v5271_v24, %v5089_v55  ;;  %v5259_v55 = vrot.slane %v5258_v54, 1  ;;  %v5290_v12 = vadd.f32 0.8, %v5282_v15  ;;  %v5286_v2 = vmul.f32 0.0078125, %v5218_v22 }
 0x697   :  { %v5237_v17 = vadd.f32 %v5236_v1, %v5235_v29  ;;  %v5283_v29 = vmul.f32 0.0078125, %v5155_v47  ;;  %v5292_v24 = vadd.f32 0.8, %v5284_v40  ;;  %v5293_v33 = vadd.f32 0.8, %v5285_v26 }
 0x698   :  { %v5273_v0 = vadd.f32 %v5272_v14, %v5097_v37  ;;  %v5260_v1 = vadd.f32 %v5259_v55, %v5258_v54  ;;  %8587 = vrsqrt.f32 %v5290_v12  ;;  %v5294_v14 = vadd.f32 0.8, %v5286_v2 }
 0x699   :  { %v5238_v58 = vrot.slane %v5237_v17, 1  ;;  %v5291_v28 = vadd.f32 0.8, %v5283_v29  ;;  %8589 = vrsqrt.f32 %v5292_v24 }
 0x69a   :  { %v5274_v53 = vadd.f32 %v5273_v0, %v5105_v49  ;;  %v5288_v48 = vmul.f32 0.0078125, %v5260_v1 }
 0x69b   :  { %v5239_v13 = vadd.f32 %v5238_v58, %v5237_v17  ;;  %8591 = vrsqrt.f32 %v5291_v28 }
 0x69c   :  { %v5275_v32 = vadd.f32 %v5274_v53, %v5113_v31  ;;  %8593 = vrsqrt.f32 %v5293_v33  ;;  %v5296_v52 = vadd.f32 0.8, %v5288_v48  ;;  %v4680_v33 = vld [vmem:[%s12741_s6 + $0xd] sm:$0xff] }
 0x69d   :  { %v5287_v30 = vmul.f32 0.0078125, %v5239_v13  ;;  %8595 = vrsqrt.f32 %v5294_v14  ;;  %v13565_v48 = vld [vmem:[#allocation12_spill] sm:$0xff] }
 0x69e   :  { %v5276_v25 = vrot.slane %v5275_v32, 4 }
 0x69f   :  { %v5295_v46 = vadd.f32 0.8, %v5287_v30 }
 0x6a0   :  { %v5277_v6 = vadd.f32 %v5276_v25, %v5275_v32  ;;  %v13564_v32 = vld [vmem:[#allocation13_spill] sm:$0xff] }
 0x6a1   :  { %8597 = vrsqrt.f32 %v5295_v46  ;;  %v5392_v46 = vsub.s32 6, %v13565_v48 }
 0x6a2   :  { %v5278_v37 = vrot.slane %v5277_v6, 2  ;;  %8599 = vrsqrt.f32 %v5296_v52  ;;  %v8588_v47 = vpop.eup %8587  ;;  %v13566_v52 = vld [vmem:[#allocation14_spill] sm:$0xff] }
 0x6a3   :  { %v8590_v58 = vpop.eup %8589 }
 0x6a4   :  { %v5279_v43 = vadd.f32 %v5278_v37, %v5277_v6  ;;  %v4681_v37 = vld [vmem:[%s12741_s6 + $0x15] sm:$0xff] }
 0x6a5   :  { %v8592_v57 = vpop.eup %8591 }
 0x6a6   :  { %v5280_v17 = vrot.slane %v5279_v43, 1  ;;  %v8594_v31 = vpop.eup %8593  ;;  %v5314_v22 = vcombine.low %v8588_v47, %v8592_v57  ;;  %v13568_v47 = vld [vmem:[#allocation55_spill] sm:$0xff] }
 0x6a7   :  { %v8596_v53 = vpop.eup %8595  ;;  %v5315_v40 = vcombine.low %v8590_v58, %v8594_v31  ;;  %v12070_v58 = vrot.slane %v4681_v37, %v13568_v47  ;;  %v13569_v57 = vld [vmem:[#allocation79_spill] sm:$0xff] }
 0x6a8   :  { %v5281_v49 = vadd.f32 %v5280_v17, %v5279_v43  ;;  %v5324_v29 = vrot.slane %v5314_v22, %v13564_v32  ;;  %v5396_v43 = vsub.s32 7, %v13565_v48  ;;  %v12073_v31 = vrot.slane %v4681_v37, %v13569_v57 }
 0x6a9   :  { %v5331_v26 = vrot.slane %v5315_v40, %v13564_v32  ;;  %v12083_v22 = vrot.slane %v4681_v37, %v5392_v46 }
 0x6aa   :  { %v5289_v0 = vmul.f32 0.0078125, %v5281_v49  ;;  %v12064_v49 = vrot.slane %v4681_v37, %v13566_v52  ;;  %v12085_v40 = vrot.slane %v4681_v37, %v5396_v43 }
 0x6ab   :  { %v8598_v15 = vpop.eup %8597  ;;  %v5346_v24 = vcombine.low %v5324_v29, %v5331_v26  ;;  %v13570_v26 = vld [vmem:[#allocation100_spill] sm:$0xff] }
 0x6ac   :  { %v5297_v54 = vadd.f32 0.8, %v5289_v0  ;;  %v5316_v55 = vcombine.low %v8596_v53, %v8598_v15  ;;  %v8600_v13 = vpop.eup %8599  ;;  %v13567_v0 = vld [vmem:[#allocation15_spill] sm:$0xff] }
 0x6ad   :  { %v5354_v6 = vrot.slane %v5346_v24, %v13564_v32  ;;  %v13572_v24 = vld [vmem:[#allocation43_spill] sm:$0xff] }
 0x6ae   :  { %8601 = vrsqrt.f32 %v5297_v54  ;;  %v5338_v12 = vrot.slane %v5316_v55, %v13564_v32  ;;  %v12067_v54 = vrot.slane %v4681_v37, %v13567_v0 }
 0x6b8   :  { %v8602_v25 = vpop.eup %8601 }
 0x6b9   :  { %v5317_v2 = vcombine.low %v8600_v13, %v8602_v25 }
 0x6bb   :  { %v5345_v1 = vrot.slane %v5317_v2, %v13564_v32 }
 0x6bd   :  { %v5347_v30 = vcombine.low %v5338_v12, %v5345_v1  ;;  %v13571_v12 = vld [vmem:[#allocation101_spill] sm:$0xff] }
 0x6bf   :  { %v5361_v28 = vrot.slane %v5347_v30, %v13564_v32  ;;  %v13573_v30 = vld [vmem:[#allocation28_spill] sm:$0xff] }
 0x6c1   :  { %v5362_v14 = vcombine.low %v5354_v6, %v5361_v28 }
 0x6c3   :  { %v12061_v17 = vmul.f32 %v5362_v14, %v4680_v33 }
 0x6c5   :  { %v12077_v53 = vrot.slane %v12061_v17, %v13566_v52  ;;  %v12081_v15 = vrot.slane %v12061_v17, %v13567_v0  ;;  %v12089_v55 = vrot.slane %v12061_v17, %v13568_v47  ;;  %v12093_v13 = vrot.slane %v12061_v17, %v13569_v57 }
 0x6c6   :  { %v12096_v32 = vrot.slane %v12061_v17, %v5392_v46  ;;  %v12099_v29 = vrot.slane %v12061_v17, %v5396_v43 }
 0x6c7   :  { %v5407_v25 = vmul.f32 %v12081_v15, %v13570_v26  ;;  %v5415_v2 = vmul.f32 %v12081_v15, %v13571_v12  ;;  %v5406_v1 = vmul.f32 %v12077_v53, %v13572_v24  ;;  %v5414_v6 = vmul.f32 %v12077_v53, %v13573_v30  ;;  %v13574_v12 = vld [vmem:[#allocation17_spill] sm:$0xff] }
 0x6c8   :  { %v5533_v28 = vmul.f32 %v12099_v29, %v11966_v35  ;;  %v5429_v33 = vmul.f32 %v12099_v29, %v11908_v3  ;;  %v5437_v37 = vmul.f32 %v12099_v29, %v11912_v38  ;;  %v5428_v14 = vmul.f32 %v12096_v32, %v11745_v63 }
 0x6c9   :  { %v5576_v46 = vadd.f32 %v12067_v54, %v5407_v25  ;;  %v5584_v43 = vadd.f32 %v12067_v54, %v5415_v2  ;;  %v5575_v47 = vadd.f32 %v12064_v49, %v5406_v1  ;;  %v5583_v57 = vadd.f32 %v12064_v49, %v5414_v6 }
 0x6ca   :  { %v12122_v26 = vadd.f32 %v12085_v40, %v5533_v28  ;;  %v5598_v35 = vadd.f32 %v12085_v40, %v5429_v33  ;;  %v5606_v3 = vadd.f32 %v12085_v40, %v5437_v37  ;;  %v5436_v38 = vmul.f32 %v12096_v32, %v13574_v12 }
 0x6cb   :  { %vm5704_vm1 = vcmp.gt.f32.partialorder %v5576_v46, 0.0  ;;  %vm5712_vm2 = vcmp.gt.f32.partialorder %v5584_v43, 0.0  ;;  %v5832_v63 = vmul.f32 0.2, %v5576_v46  ;;  %v5840_v25 = vmul.f32 0.2, %v5584_v43 }
 0x6cc   :  { %vm5726_vm3 = vcmp.gt.f32.partialorder %v5598_v35, 0.0  ;;  %vm5734_vm4 = vcmp.gt.f32.partialorder %v5606_v3, 0.0  ;;  %v5854_v2 = vmul.f32 0.2, %v5598_v35  ;;  %v5862_v24 = vmul.f32 0.2, %v5606_v3 }
 0x6cd   :  { %v5960_v1 = vsel %vm5704_vm1, %v5576_v46, %v5832_v63  ;;  %v5968_v30 = vsel %vm5712_vm2, %v5584_v43, %v5840_v25  ;;  %vm5703_vm5 = vcmp.gt.f32.partialorder %v5575_v47, 0.0  ;;  %vm5711_vm6 = vcmp.gt.f32.partialorder %v5583_v57, 0.0 }
 0x6ce   :  { %v6088_v6 = vpack.c.bf16 %v5968_v30, %v5960_v1  ;;  %v5982_v28 = vsel %vm5726_vm3, %v5598_v35, %v5854_v2  ;;  %v5990_v33 = vsel %vm5734_vm4, %v5606_v3, %v5862_v24  ;;  %v5831_v0 = vmul.f32 0.2, %v5575_v47  ;;  %v8479_v35 = vld [vmem:[#allocation7 + $0x100] ss:$8 sps:$4 sm:$0xff]   ;;  %v8482_v30 = vld [vmem:[#allocation7 + $0x110] ss:$8 sps:$4 sm:$0xff]  }
 0x6cf   :  { %v6102_v37 = vpack.c.bf16 %v5990_v33, %v5982_v28  ;;  %v5839_v52 = vmul.f32 0.2, %v5583_v57  ;;  %v5597_v12 = vadd.f32 %v12083_v22, %v5428_v14  ;;  %v5605_v34 = vadd.f32 %v12083_v22, %v5436_v38  ;;  %v13577_v2 = vld [vmem:[#allocation45_spill] sm:$0xff]  ;;  %v13578_v33 = vld [vmem:[#allocation82_spill] sm:$0xff] }
 0x6d0   :  { %6963 = vmatprep.mubr.bf16.mxu0 %v6088_v6  ;;  %v5959_v62 = vsel %vm5703_vm5, %v5575_v47, %v5831_v0  ;;  %v5423_v7 = vmul.f32 %v12081_v15, %v13575_v39  ;;  %v5431_v46 = vmul.f32 %v12081_v15, %v13576_v36  ;;  %v5445_v43 = vmul.f32 %v12099_v29, %v11916_v42  ;;  %v8484_v39 = vld [vmem:[#allocation7 + $0x114] ss:$8 sps:$4 sm:$0xff]  }
 0x6d1   :  { %7312 = vmatprep.mubr.bf16.mxu1 %v6102_v37  ;;  %v5967_v3 = vsel %vm5711_vm6, %v5583_v57, %v5839_v52  ;;  %vm5725_vm7 = vcmp.gt.f32.partialorder %v5597_v12, 0.0  ;;  %vm5733_vm8 = vcmp.gt.f32.partialorder %v5605_v34, 0.0  ;;  %v5853_v14 = vmul.f32 0.2, %v5597_v12 }
 0x6d2   :  { %v6087_v63 = vpack.c.bf16 %v5967_v3, %v5959_v62  ;;  %v5861_v38 = vmul.f32 0.2, %v5605_v34  ;;  %v5592_v0 = vadd.f32 %v12067_v54, %v5423_v7  ;;  %v5600_v47 = vadd.f32 %v12067_v54, %v5431_v46 }
 0x6d3   :  { %v5981_v25 = vsel %vm5725_vm7, %v5597_v12, %v5853_v14  ;;  %v5453_v36 = vmul.f32 %v12099_v29, %v11922_v16  ;;  %v5614_v42 = vadd.f32 %v12085_v40, %v5445_v43  ;;  %v5422_v24 = vmul.f32 %v12077_v53, %v13577_v2  ;;  %v8487_v16 = vld [vmem:[#allocation7 + $0x124] ss:$8 sps:$4 sm:$0xff]   ;;  %v13579_v43 = vld [vmem:[#allocation35_spill] sm:$0xff] }
 0x6d4   :  { %6964 = vmatmul.mubr.bf16.vlgmr.msra.gmra.mrb[80].mxu0 %v6087_v63  ;;  %v5989_v52 = vsel %vm5733_vm8, %v5605_v34, %v5861_v38  ;;  %vm5720_vm9 = vcmp.gt.f32.partialorder %v5592_v0, 0.0  ;;  %vm5728_vm10 = vcmp.gt.f32.partialorder %v5600_v47, 0.0  ;;  %v5848_v62 = vmul.f32 0.2, %v5592_v0 }
 0x6d5   :  { %7045 = vmatpush1.bf16.msra.mxu0 %v8479_v35  ;;  %v6101_v57 = vpack.c.bf16 %v5989_v52, %v5981_v25  ;;  %v5856_v7 = vmul.f32 0.2, %v5600_v47  ;;  %v5622_v1 = vadd.f32 %v12085_v40, %v5453_v36  ;;  %vm5742_vm11 = vcmp.gt.f32.partialorder %v5614_v42, 0.0  ;;  %v8490_v52 = vld [vmem:[#allocation7 + $0x134] ss:$8 sps:$4 sm:$0xff]  }
 0x6d6   :  { %v5976_v6 = vsel %vm5720_vm9, %v5592_v0, %v5848_v62  ;;  %v5870_v28 = vmul.f32 0.2, %v5614_v42  ;;  %7046 = vmatprep.subr.bf16.mxu0 %v8484_v39  ;;  %v5430_v37 = vmul.f32 %v12077_v53, %v13578_v33  ;;  %v5591_v12 = vadd.f32 %v12064_v49, %v5422_v24  ;;  %v8485_v0 = vld [vmem:[#allocation7 + $0x120] ss:$8 sps:$4 sm:$0xff]   ;;  %v13580_v24 = vld [vmem:[#allocation75_spill] sm:$0xff] }
 0x6d7   :  { %7313 = vmatmul.mubr.bf16.vlgmr.msra.gmra.mrb[160].mxu1 %v6101_v57  ;;  %v5984_v34 = vsel %vm5728_vm10, %v5600_v47, %v5856_v7  ;;  %vm5750_vm12 = vcmp.gt.f32.partialorder %v5622_v1, 0.0  ;;  %v5878_v46 = vmul.f32 0.2, %v5622_v1  ;;  %v5444_v35 = vmul.f32 %v12096_v32, %v13579_v43 }
 0x6d8   :  { %v6096_v3 = vpack.c.bf16 %v5984_v34, %v5976_v6  ;;  %v5998_v14 = vsel %vm5742_vm11, %v5614_v42, %v5870_v28  ;;  %v5599_v63 = vadd.f32 %v12064_v49, %v5430_v37  ;;  %vm5719_vm13 = vcmp.gt.f32.partialorder %v5591_v12, 0.0 }
 0x6d9   :  { %v6006_v38 = vsel %vm5750_vm12, %v5622_v1, %v5878_v46  ;;  %7047 = vmatpush1.bf16.msra.mxu0 %v8482_v30  ;;  %v5847_v39 = vmul.f32 0.2, %v5591_v12  ;;  %v5452_v25 = vmul.f32 %v12096_v32, %v11754_v9  ;;  %v5613_v36 = vadd.f32 %v12083_v22, %v5444_v35  ;;  %v13581_v30 = vld [vmem:[#allocation60_spill] sm:$0xff] }
 0x6da   :  { %6973 = vmatprep.mubr.bf16.mxu0 %v6096_v3  ;;  %v6110_v47 = vpack.c.bf16 %v6006_v38, %v5998_v14  ;;  %7048 = vmatprep.subr.bf16.mxu0 %v8487_v16  ;;  %vm5727_vm14 = vcmp.gt.f32.partialorder %v5599_v63, 0.0  ;;  %v5855_v2 = vmul.f32 0.2, %v5599_v63  ;;  %v5439_v42 = vmul.f32 %v12081_v15, %v13580_v24  ;;  %v8493_v35 = vld [vmem:[#allocation7 + $0x144] ss:$8 sps:$4 sm:$0xff]  }
 0x6db   :  { %v5975_v62 = vsel %vm5719_vm13, %v5591_v12, %v5847_v39  ;;  %v5621_v57 = vadd.f32 %v12083_v22, %v5452_v25  ;;  %vm5741_vm15 = vcmp.gt.f32.partialorder %v5613_v36, 0.0  ;;  %v5869_v7 = vmul.f32 0.2, %v5613_v36  ;;  %v8488_v12 = vld [vmem:[#allocation7 + $0x130] ss:$8 sps:$4 sm:$0xff]   ;;  %v13583_v38 = vld [vmem:[#allocation84_spill] sm:$0xff] }
 0x6dc   :  { %7322 = vmatprep.mubr.bf16.mxu1 %v6110_v47  ;;  %v5983_v1 = vsel %vm5727_vm14, %v5599_v63, %v5855_v2  ;;  %v5447_v9 = vmul.f32 %v12081_v15, %v13581_v30  ;;  %v5608_v6 = vadd.f32 %v12067_v54, %v5439_v42  ;;  %v5461_v28 = vmul.f32 %v12099_v29, %v11926_v45  ;;  %v13582_v45 = vld [vmem:[#allocation83_spill] sm:$0xff]  ;;  %v8491_v2 = vld [vmem:[#allocation7 + $0x140] ss:$8 sps:$4 sm:$0xff]  }
 0x6dd   :  { %v6095_v16 = vpack.c.bf16 %v5983_v1, %v5975_v62  ;;  %7049 = vmatpush1.bf16.msra.mxu0 %v8485_v0  ;;  %vm5749_vm0 = vcmp.gt.f32.partialorder %v5621_v57, 0.0  ;;  %v5877_v33 = vmul.f32 0.2, %v5621_v57  ;;  %v5997_v37 = vsel %vm5741_vm15, %v5613_v36, %v5869_v7 }
 0x6de   :  { %v5616_v34 = vadd.f32 %v12067_v54, %v5447_v9  ;;  %vm5736_vm1 = vcmp.gt.f32.partialorder %v5608_v6, 0.0  ;;  %v5864_v46 = vmul.f32 0.2, %v5608_v6  ;;  %v5469_v43 = vmul.f32 %v12099_v29, %v11930_v21  ;;  %7050 = vmatprep.subr.bf16.mxu0 %v8490_v52 }
 0x6df   :  { %6974 = vmatmul.mubr.bf16.gmra.mrb[84].mxu0 %v6095_v16  ;;  %v6005_v3 = vsel %vm5749_vm0, %v5621_v57, %v5877_v33  ;;  %v5630_v14 = vadd.f32 %v12085_v40, %v5461_v28  ;;  %v5438_v63 = vmul.f32 %v12077_v53, %v13582_v45  ;;  %v5446_v0 = vmul.f32 %v12077_v53, %v13583_v38  ;;  %v8496_v57 = vld [vmem:[#allocation7 + $0x154] ss:$8 sps:$4 sm:$0xff]   ;;  %v13586_v38 = vld [vmem:[#allocation76_spill] sm:$0xff] }
 0x6e0   :  { %v6109_v39 = vpack.c.bf16 %v6005_v3, %v5997_v37  ;;  %vm5744_vm2 = vcmp.gt.f32.partialorder %v5616_v34, 0.0  ;;  %v5872_v25 = vmul.f32 0.2, %v5616_v34  ;;  %v5992_v36 = vsel %vm5736_vm1, %v5608_v6, %v5864_v46  ;;  %v13584_v16 = vld [vmem:[#allocation39_spill] sm:$0xff]  ;;  %v13585_v46 = vld [vmem:[#allocation61_spill] sm:$0xff] }
 0x6e1   :  { %v5638_v47 = vadd.f32 %v12085_v40, %v5469_v43  ;;  %vm5758_vm3 = vcmp.gt.f32.partialorder %v5630_v14, 0.0  ;;  %v5886_v21 = vmul.f32 0.2, %v5630_v14  ;;  %7051 = vmatpush1.bf16.msra.mxu0 %v8488_v12  ;;  %v5607_v24 = vadd.f32 %v12064_v49, %v5438_v63  ;;  %v8499_v63 = vld [vmem:[#allocation7 + $0x164] ss:$8 sps:$4 sm:$0xff]  }
 0x6e2   :  { %7323 = vmatmul.mubr.bf16.gmra.mrb[164].mxu1 %v6109_v39  ;;  %v6000_v42 = vsel %vm5744_vm2, %v5616_v34, %v5872_v25  ;;  %7052 = vmatprep.subr.bf16.mxu0 %v8493_v35  ;;  %v5615_v52 = vadd.f32 %v12064_v49, %v5446_v0  ;;  %v5460_v62 = vmul.f32 %v12096_v32, %v11757_v11  ;;  %v8494_v35 = vld [vmem:[#allocation7 + $0x150] ss:$8 sps:$4 sm:$0xff]  }
 0x6e3   :  { %v6104_v7 = vpack.c.bf16 %v6000_v42, %v5992_v36  ;;  %vm5766_vm4 = vcmp.gt.f32.partialorder %v5638_v47, 0.0  ;;  %v5894_v1 = vmul.f32 0.2, %v5638_v47  ;;  %v6014_v30 = vsel %vm5758_vm3, %v5630_v14, %v5886_v21 }
 0x6e4   :  { %vm5735_vm5 = vcmp.gt.f32.partialorder %v5607_v24, 0.0  ;;  %vm5743_vm6 = vcmp.gt.f32.partialorder %v5615_v52, 0.0  ;;  %v5863_v9 = vmul.f32 0.2, %v5607_v24  ;;  %v5871_v6 = vmul.f32 0.2, %v5615_v52 }
 0x6e5   :  { %6983 = vmatprep.mubr.bf16.mxu0 %v6104_v7  ;;  %v6022_v28 = vsel %vm5766_vm4, %v5638_v47, %v5894_v1  ;;  %7053 = vmatpush1.bf16.msra.mxu0 %v8491_v2  ;;  %v5468_v33 = vmul.f32 %v12096_v32, %v13584_v16  ;;  %v5629_v37 = vadd.f32 %v12083_v22, %v5460_v62  ;;  %v13587_v2 = vld [vmem:[#allocation85_spill] sm:$0xff] }
 0x6e6   :  { %v6118_v12 = vpack.c.bf16 %v6022_v28, %v6014_v30  ;;  %v5991_v34 = vsel %vm5735_vm5, %v5607_v24, %v5863_v9  ;;  %v5999_v11 = vsel %vm5743_vm6, %v5615_v52, %v5871_v6  ;;  %v5455_v43 = vmul.f32 %v12081_v15, %v13585_v46  ;;  %7054 = vmatprep.subr.bf16.mxu0 %v8496_v57  ;;  %v8497_v57 = vld [vmem:[#allocation7 + $0x160] ss:$8 sps:$4 sm:$0xff]   ;;  %v8502_v9 = vld [vmem:[#allocation7 + $0x174] ss:$8 sps:$4 sm:$0xff]   ;;  %v8500_v46 = vld [vmem:[#allocation7 + $0x170] ss:$8 sps:$4 sm:$0xff]  }
 0x6e7   :  { %v6103_v3 = vpack.c.bf16 %v5999_v11, %v5991_v34  ;;  %v5637_v14 = vadd.f32 %v12083_v22, %v5468_v33  ;;  %vm5757_vm7 = vcmp.gt.f32.partialorder %v5629_v37, 0.0  ;;  %v5885_v45 = vmul.f32 0.2, %v5629_v37 }
 0x6e8   :  { %7332 = vmatprep.mubr.bf16.mxu1 %v6118_v12  ;;  %v5463_v0 = vmul.f32 %v12081_v15, %v13586_v38  ;;  %v5624_v39 = vadd.f32 %v12067_v54, %v5455_v43  ;;  %v5477_v25 = vmul.f32 %v12099_v29, %v11934_v61  ;;  %v5485_v36 = vmul.f32 %v12099_v29, %v11938_v51  ;;  %v13588_v51 = vld [vmem:[#allocation46_spill] sm:$0xff] }
 0x6e9   :  { %6984 = vmatmul.mubr.bf16.gmra.mrb[88].mxu0 %v6103_v3  ;;  %vm5765_vm8 = vcmp.gt.f32.partialorder %v5637_v14, 0.0  ;;  %v5893_v47 = vmul.f32 0.2, %v5637_v14  ;;  %v6013_v21 = vsel %vm5757_vm7, %v5629_v37, %v5885_v45  ;;  %v5454_v24 = vmul.f32 %v12077_v53, %v13587_v2 }
 0x6ea   :  { %v5632_v42 = vadd.f32 %v12067_v54, %v5463_v0  ;;  %vm5752_vm9 = vcmp.gt.f32.partialorder %v5624_v39, 0.0  ;;  %v5880_v52 = vmul.f32 0.2, %v5624_v39  ;;  %v5646_v62 = vadd.f32 %v12085_v40, %v5477_v25  ;;  %7055 = vmatpush1.bf16.msra.mxu0 %v8494_v35  ;;  %v13590_v25 = vld [vmem:[#allocation132_spill] sm:$0xff] }
 0x6eb   :  { %v6021_v7 = vsel %vm5765_vm8, %v5637_v14, %v5893_v47  ;;  %v5654_v61 = vadd.f32 %v12085_v40, %v5485_v36  ;;  %7056 = vmatprep.subr.bf16.mxu0 %v8499_v63  ;;  %v5462_v1 = vmul.f32 %v12077_v53, %v13588_v51  ;;  %v5623_v30 = vadd.f32 %v12064_v49, %v5454_v24  ;;  %v13589_v14 = vld [vmem:[#allocation103_spill] sm:$0xff]  ;;  %v8505_v63 = vld [vmem:[#allocation7 + $0x184] ss:$8 sps:$4 sm:$0xff]   ;;  %v13592_v24 = vld [vmem:[#allocation62_spill] sm:$0xff] }
 0x6ec   :  { %v6117_v6 = vpack.c.bf16 %v6021_v7, %v6013_v21  ;;  %vm5760_vm10 = vcmp.gt.f32.partialorder %v5632_v42, 0.0  ;;  %v5888_v28 = vmul.f32 0.2, %v5632_v42  ;;  %v6008_v16 = vsel %vm5752_vm9, %v5624_v39, %v5880_v52  ;;  %v13591_v21 = vld [vmem:[#allocation77_spill] sm:$0xff] }
 0x6ed   :  { %vm5774_vm11 = vcmp.gt.f32.partialorder %v5646_v62, 0.0  ;;  %vm5782_vm12 = vcmp.gt.f32.partialorder %v5654_v61, 0.0  ;;  %v5902_v33 = vmul.f32 0.2, %v5646_v62  ;;  %v5910_v37 = vmul.f32 0.2, %v5654_v61 }
 0x6ee   :  { %7333 = vmatmul.mubr.bf16.gmra.mrb[168].mxu1 %v6117_v6  ;;  %v6016_v12 = vsel %vm5760_vm10, %v5632_v42, %v5888_v28  ;;  %v5631_v34 = vadd.f32 %v12064_v49, %v5462_v1  ;;  %vm5751_vm13 = vcmp.gt.f32.partialorder %v5623_v30, 0.0  ;;  %v5879_v11 = vmul.f32 0.2, %v5623_v30  ;;  %7057 = vmatpush1.bf16.msra.mxu0 %v8497_v57  ;;  %v8503_v7 = vld [vmem:[#allocation7 + $0x180] ss:$8 sps:$4 sm:$0xff]  }
 0x6ef   :  { %v6112_v43 = vpack.c.bf16 %v6016_v12, %v6008_v16  ;;  %v6030_v35 = vsel %vm5774_vm11, %v5646_v62, %v5902_v33  ;;  %v6038_v3 = vsel %vm5782_vm12, %v5654_v61, %v5910_v37  ;;  %v5476_v45 = vmul.f32 %v12096_v32, %v13589_v14  ;;  %7058 = vmatprep.subr.bf16.mxu0 %v8502_v9  ;;  %v8508_v9 = vld [vmem:[#allocation7 + $0x194] ss:$8 sps:$4 sm:$0xff]   ;;  %v13593_v37 = vld [vmem:[#allocation29_spill] sm:$0xff] }
 0x6f0   :  { %v6126_v38 = vpack.c.bf16 %v6038_v3, %v6030_v35  ;;  %vm5759_vm14 = vcmp.gt.f32.partialorder %v5631_v34, 0.0  ;;  %v5887_v0 = vmul.f32 0.2, %v5631_v34  ;;  %v6007_v39 = vsel %vm5751_vm13, %v5623_v30, %v5879_v11  ;;  %v8506_v35 = vld [vmem:[#allocation7 + $0x190] ss:$8 sps:$4 sm:$0xff]  }
 0x6f1   :  { %6993 = vmatprep.mubr.bf16.mxu0 %v6112_v43  ;;  %v5484_v36 = vmul.f32 %v12096_v32, %v13590_v25  ;;  %v5645_v47 = vadd.f32 %v12083_v22, %v5476_v45  ;;  %v5471_v2 = vmul.f32 %v12081_v15, %v13591_v21  ;;  %v5479_v42 = vmul.f32 %v12081_v15, %v13592_v24  ;;  %v13594_v25 = vld [vmem:[#allocation95_spill] sm:$0xff] }
 0x6f2   :  { %7342 = vmatprep.mubr.bf16.mxu1 %v6126_v38  ;;  %v6015_v52 = vsel %vm5759_vm14, %v5631_v34, %v5887_v0  ;;  %v5493_v62 = vmul.f32 %v12099_v29, %v11942_v19  ;;  %v5501_v57 = vmul.f32 %v12099_v29, %v11946_v5  ;;  %7059 = vmatpush1.bf16.msra.mxu0 %v8500_v46  ;;  %v12211_v61 = vmul.f32 0.2, %v12122_v26  ;;  %v8511_v38 = vld [vmem:[#allocation7 + $0x1a4] ss:$8 sps:$4 sm:$0xff]  }
 0x6f3   :  { %v6111_v51 = vpack.c.bf16 %v6015_v52, %v6007_v39  ;;  %v5653_v1 = vadd.f32 %v12083_v22, %v5484_v36  ;;  %vm5773_vm15 = vcmp.gt.f32.partialorder %v5645_v47, 0.0  ;;  %v5901_v30 = vmul.f32 0.2, %v5645_v47  ;;  %7060 = vmatprep.subr.bf16.mxu0 %v8505_v63  ;;  %v13596_v52 = vld [vmem:[#allocation63_spill] sm:$0xff] }
 0x6f4   :  { %v5640_v6 = vadd.f32 %v12067_v54, %v5471_v2  ;;  %v5648_v28 = vadd.f32 %v12067_v54, %v5479_v42  ;;  %v5662_v19 = vadd.f32 %v12085_v40, %v5493_v62  ;;  %v5670_v5 = vadd.f32 %v12085_v40, %v5501_v57  ;;  %v13595_v2 = vld [vmem:[#allocation133_spill] sm:$0xff] }
 0x6f5   :  { %6994 = vmatmul.mubr.bf16.gmra.mrb[92].mxu0 %v6111_v51  ;;  %vm5781_vm0 = vcmp.gt.f32.partialorder %v5653_v1, 0.0  ;;  %v5909_v16 = vmul.f32 0.2, %v5653_v1  ;;  %v6029_v33 = vsel %vm5773_vm15, %v5645_v47, %v5901_v30  ;;  %v5470_v12 = vmul.f32 %v12077_v53, %v13593_v37 }
 0x6f6   :  { %vm5768_vm1 = vcmp.gt.f32.partialorder %v5640_v6, 0.0  ;;  %vm5776_vm2 = vcmp.gt.f32.partialorder %v5648_v28, 0.0  ;;  %v5896_v34 = vmul.f32 0.2, %v5640_v6  ;;  %v5904_v11 = vmul.f32 0.2, %v5648_v28  ;;  %7061 = vmatpush1.bf16.msra.mxu0 %v8503_v7 }
 0x6f7   :  { %v6037_v46 = vsel %vm5781_vm0, %v5653_v1, %v5909_v16  ;;  %vm5790_vm3 = vcmp.gt.f32.partialorder %v5662_v19, 0.0  ;;  %vm5798_vm4 = vcmp.gt.f32.partialorder %v5670_v5, 0.0  ;;  %v5918_v43 = vmul.f32 0.2, %v5662_v19  ;;  %7062 = vmatprep.subr.bf16.mxu0 %v8508_v9  ;;  %v8509_v1 = vld [vmem:[#allocation7 + $0x1a0] ss:$8 sps:$4 sm:$0xff]  }
 0x6f8   :  { %v6125_v3 = vpack.c.bf16 %v6037_v46, %v6029_v33  ;;  %v6024_v14 = vsel %vm5768_vm1, %v5640_v6, %v5896_v34  ;;  %v6032_v45 = vsel %vm5776_vm2, %v5648_v28, %v5904_v11  ;;  %v5926_v63 = vmul.f32 0.2, %v5670_v5  ;;  %v13597_v6 = vld [vmem:[#allocation47_spill] sm:$0xff] }
 0x6f9   :  { %v6120_v0 = vpack.c.bf16 %v6032_v45, %v6024_v14  ;;  %v6046_v39 = vsel %vm5790_vm3, %v5662_v19, %v5918_v43  ;;  %v5478_v36 = vmul.f32 %v12077_v53, %v13594_v25  ;;  %v5639_v47 = vadd.f32 %v12064_v49, %v5470_v12  ;;  %v8514_v19 = vld [vmem:[#allocation7 + $0x1b4] ss:$8 sps:$4 sm:$0xff]   ;;  %v8512_v45 = vld [vmem:[#allocation7 + $0x1b0] ss:$8 sps:$4 sm:$0xff]  }
 0x6fa   :  { %7343 = vmatmul.mubr.bf16.gmra.mrb[172].mxu1 %v6125_v3  ;;  %v6054_v21 = vsel %vm5798_vm4, %v5670_v5, %v5926_v63  ;;  %v5492_v24 = vmul.f32 %v12096_v32, %v13595_v2  ;;  %v5500_v42 = vmul.f32 %v12096_v32, %v11772_v56  ;;  %v5487_v62 = vmul.f32 %v12081_v15, %v13596_v52  ;;  %v13600_v52 = vld [vmem:[#allocation64_spill] sm:$0xff] }
 0x6fb   :  { %7003 = vmatprep.mubr.bf16.mxu0 %v6120_v0  ;;  %v6134_v57 = vpack.c.bf16 %v6054_v21, %v6046_v39  ;;  %v5647_v7 = vadd.f32 %v12064_v49, %v5478_v36  ;;  %vm5767_vm5 = vcmp.gt.f32.partialorder %v5639_v47, 0.0  ;;  %v5895_v51 = vmul.f32 0.2, %v5639_v47  ;;  %7063 = vmatpush1.bf16.msra.mxu0 %v8506_v35  ;;  %v8517_v0 = vld [vmem:[#allocation7 + $0x1c4] ss:$8 sps:$4 sm:$0xff]   ;;  %v13598_v36 = vld [vmem:[#allocation86_spill] sm:$0xff] }
 0x6fc   :  { %v5661_v30 = vadd.f32 %v12083_v22, %v5492_v24  ;;  %v5669_v9 = vadd.f32 %v12083_v22, %v5500_v42  ;;  %v5495_v28 = vmul.f32 %v12081_v15, %v13597_v6  ;;  %v5656_v56 = vadd.f32 %v12067_v54, %v5487_v62  ;;  %7064 = vmatprep.subr.bf16.mxu0 %v8511_v38  ;;  %v13599_v21 = vld [vmem:[#allocation87_spill] sm:$0xff] }
 0x6fd   :  { %7352 = vmatprep.mubr.bf16.mxu1 %v6134_v57  ;;  %vm5775_vm6 = vcmp.gt.f32.partialorder %v5647_v7, 0.0  ;;  %v5903_v5 = vmul.f32 0.2, %v5647_v7  ;;  %v6023_v16 = vsel %vm5767_vm5, %v5639_v47, %v5895_v51  ;;  %v5509_v33 = vmul.f32 %v12099_v29, %v11950_v44  ;;  %v8515_v51 = vld [vmem:[#allocation7 + $0x1c0] ss:$8 sps:$4 sm:$0xff]  }
 0x6fe   :  { %vm5789_vm7 = vcmp.gt.f32.partialorder %v5661_v30, 0.0  ;;  %vm5797_vm8 = vcmp.gt.f32.partialorder %v5669_v9, 0.0  ;;  %v5917_v37 = vmul.f32 0.2, %v5661_v30  ;;  %v5925_v12 = vmul.f32 0.2, %v5669_v9 }
 0x6ff   :  { %v6031_v34 = vsel %vm5775_vm6, %v5647_v7, %v5903_v5  ;;  %v5664_v11 = vadd.f32 %v12067_v54, %v5495_v28  ;;  %vm5784_vm9 = vcmp.gt.f32.partialorder %v5656_v56, 0.0  ;;  %v5912_v46 = vmul.f32 0.2, %v5656_v56  ;;  %7065 = vmatpush1.bf16.msra.mxu0 %v8509_v1 }
 0x700   :  { %v6119_v43 = vpack.c.bf16 %v6031_v34, %v6023_v16  ;;  %v6045_v35 = vsel %vm5789_vm7, %v5661_v30, %v5917_v37  ;;  %v6053_v3 = vsel %vm5797_vm8, %v5669_v9, %v5925_v12  ;;  %v5517_v14 = vmul.f32 %v12099_v29, %v11954_v27  ;;  %7066 = vmatprep.subr.bf16.mxu0 %v8514_v19  ;;  %v8518_v34 = vld [vmem:[#allocation7 + $0x1d0] ss:$8 sps:$4 sm:$0xff]  }
 0x701   :  { %v6133_v63 = vpack.c.bf16 %v6053_v3, %v6045_v35  ;;  %vm5792_vm10 = vcmp.gt.f32.partialorder %v5664_v11, 0.0  ;;  %v5920_v44 = vmul.f32 0.2, %v5664_v11  ;;  %v6040_v38 = vsel %vm5784_vm9, %v5656_v56, %v5912_v46  ;;  %v13601_v56 = vld [vmem:[#allocation78_spill] sm:$0xff] }
 0x702   :  { %7004 = vmatmul.mubr.bf16.gmra.mrb[96].mxu0 %v6119_v43  ;;  %v5678_v39 = vadd.f32 %v12085_v40, %v5509_v33  ;;  %v5686_v25 = vadd.f32 %v12085_v40, %v5517_v14  ;;  %v5486_v47 = vmul.f32 %v12077_v53, %v13598_v36  ;;  %v5494_v2 = vmul.f32 %v12077_v53, %v13599_v21  ;;  %v8521_v21 = vld [vmem:[#allocation7 + $0x1e0] ss:$8 sps:$4 sm:$0xff]  }
 0x703   :  { %vm5830_vm11 = vcmp.gt.f32.partialorder %v12122_v26, 0.0  ;;  %7353 = vmatmul.mubr.bf16.gmra.mrb[176].mxu1 %v6133_v63  ;;  %v6048_v27 = vsel %vm5792_vm10, %v5664_v11, %v5920_v44  ;;  %v5508_v24 = vmul.f32 %v12096_v32, %v11775_v60  ;;  %v5516_v42 = vmul.f32 %v12096_v32, %v11778_v41  ;;  %7067 = vmatpush1.bf16.msra.mxu0 %v8512_v45  ;;  %v8520_v60 = vld [vmem:[#allocation7 + $0x1d4] ss:$8 sps:$4 sm:$0xff]   ;;  %v8523_v63 = vld [vmem:[#allocation7 + $0x1e4] ss:$8 sps:$4 sm:$0xff]  }
 0x704   :  { %v5503_v62 = vmul.f32 %v12081_v15, %v13600_v52  ;;  %v6128_v57 = vpack.c.bf16 %v6048_v27, %v6040_v38  ;;  %vm5806_vm12 = vcmp.gt.f32.partialorder %v5678_v39, 0.0  ;;  %vm5814_vm13 = vcmp.gt.f32.partialorder %v5686_v25, 0.0  ;;  %7068 = vmatprep.subr.bf16.mxu0 %v8517_v0 }
 0x705   :  { %v5934_v7 = vmul.f32 0.2, %v5678_v39  ;;  %v5942_v1 = vmul.f32 0.2, %v5686_v25  ;;  %v5655_v30 = vadd.f32 %v12064_v49, %v5486_v47  ;;  %v5663_v9 = vadd.f32 %v12064_v49, %v5494_v2  ;;  %v13602_v2 = vld [vmem:[#allocation88_spill] sm:$0xff] }
 0x706   :  { %v5677_v6 = vadd.f32 %v12083_v22, %v5508_v24  ;;  %7013 = vmatprep.mubr.bf16.mxu0 %v6128_v57  ;;  %v5685_v28 = vadd.f32 %v12083_v22, %v5516_v42  ;;  %v5511_v19 = vmul.f32 %v12081_v15, %v13601_v56  ;;  %v5672_v5 = vadd.f32 %v12067_v54, %v5503_v62  ;;  %v13603_v24 = vld [vmem:[#allocation89_spill] sm:$0xff]  ;;  %v8526_v62 = vld [vmem:[#allocation7 + $0x1f4] ss:$8 sps:$4 sm:$0xff]   ;;  %v8524_v56 = vld [vmem:[#allocation7 + $0x1f0] ss:$8 sps:$4 sm:$0xff]  }
 0x707   :  { %v6062_v41 = vsel %vm5806_vm12, %v5678_v39, %v5934_v7  ;;  %v6070_v16 = vsel %vm5814_vm13, %v5686_v25, %v5942_v1  ;;  %vm5783_vm14 = vcmp.gt.f32.partialorder %v5655_v30, 0.0  ;;  %vm5791_vm15 = vcmp.gt.f32.partialorder %v5663_v9, 0.0  ;;  %7069 = vmatpush1.bf16.msra.mxu0 %v8515_v51 }
 0x708   :  { %v5911_v33 = vmul.f32 0.2, %v5655_v30  ;;  %v6142_v37 = vpack.c.bf16 %v6070_v16, %v6062_v41  ;;  %v5919_v12 = vmul.f32 0.2, %v5663_v9  ;;  %vm5805_vm0 = vcmp.gt.f32.partialorder %v5677_v6, 0.0  ;;  %7070 = vmatprep.subr.bf16.mxu0 %v8520_v60  ;;  %v13605_v41 = vld [vmem:[#allocation66_spill] sm:$0xff] }
 0x709   :  { %vm5813_vm1 = vcmp.gt.f32.partialorder %v5685_v28, 0.0  ;;  %v5933_v46 = vmul.f32 0.2, %v5677_v6  ;;  %v5941_v43 = vmul.f32 0.2, %v5685_v28  ;;  %v5680_v35 = vadd.f32 %v12067_v54, %v5511_v19 }
 0x70a   :  { %v6039_v11 = vsel %vm5783_vm14, %v5655_v30, %v5911_v33  ;;  %7362 = vmatprep.mubr.bf16.mxu1 %v6142_v37  ;;  %v6047_v3 = vsel %vm5791_vm15, %v5663_v9, %v5919_v12  ;;  %vm5800_vm2 = vcmp.gt.f32.partialorder %v5672_v5, 0.0  ;;  %v5928_v14 = vmul.f32 0.2, %v5672_v5 }
 0x70b   :  { %v5525_v45 = vmul.f32 %v12099_v29, %v11958_v59  ;;  %v6127_v44 = vpack.c.bf16 %v6047_v3, %v6039_v11  ;;  %v6061_v38 = vsel %vm5805_vm0, %v5677_v6, %v5933_v46  ;;  %v6069_v0 = vsel %vm5813_vm1, %v5685_v28, %v5941_v43  ;;  %7071 = vmatpush1.bf16.msra.mxu0 %v8518_v34  ;;  %v13606_v43 = vld [vmem:[#allocation30_spill] sm:$0xff]  ;;  %v13607_v3 = vld [vmem:[#allocation72_spill] sm:$0xff] }
 0x70c   :  { %vm5808_vm3 = vcmp.gt.f32.partialorder %v5680_v35, 0.0  ;;  %v6141_v39 = vpack.c.bf16 %v6069_v0, %v6061_v38  ;;  %v5936_v25 = vmul.f32 0.2, %v5680_v35  ;;  %v6056_v36 = vsel %vm5800_vm2, %v5672_v5, %v5928_v14  ;;  %7072 = vmatprep.subr.bf16.mxu0 %v8523_v63  ;;  %v8529_v5 = vld [vmem:[#allocation7 + $0x204] ss:$8 sps:$4 sm:$0xff]  }
 0x70d   :  { %v5694_v47 = vadd.f32 %v12085_v40, %v5525_v45  ;;  %7014 = vmatmul.mubr.bf16.gmra.mrb[100].mxu0 %v6127_v44  ;;  %v6086_v59 = vsel %vm5830_vm11, %v12122_v26, %v12211_v61  ;;  %v5502_v27 = vmul.f32 %v12077_v53, %v13602_v2  ;;  %v5510_v42 = vmul.f32 %v12077_v53, %v13603_v24 }
 0x70e   :  { %v5524_v52 = vmul.f32 %v12096_v32, %v11783_v20  ;;  %7363 = vmatmul.mubr.bf16.gmra.mrb[180].mxu1 %v6141_v39  ;;  %v6064_v57 = vsel %vm5808_vm3, %v5680_v35, %v5936_v25  ;;  %v5532_v51 = vmul.f32 %v12096_v32, %v11786_v4  ;;  %v13604_v20 = vld [vmem:[#allocation65_spill] sm:$0xff]  ;;  %v5527_v28 = vmul.f32 %v12081_v15, %v13605_v41  ;;  %v13608_v25 = vld [vmem:[#allocation67_spill] sm:$0xff] }
 0x70f   :  { %vm5822_vm4 = vcmp.gt.f32.partialorder %v5694_v47, 0.0  ;;  %v5950_v7 = vmul.f32 0.2, %v5694_v47  ;;  %v6136_v1 = vpack.c.bf16 %v6064_v57, %v6056_v36  ;;  %v5671_v26 = vadd.f32 %v12064_v49, %v5502_v27  ;;  %7073 = vmatpush1.bf16.msra.mxu0 %v8521_v21  ;;  %v13610_v21 = vld [vmem:[#allocation56_spill] sm:$0xff] }
 0x710   :  { %v5679_v61 = vadd.f32 %v12064_v49, %v5510_v42  ;;  %v5693_v30 = vadd.f32 %v12083_v22, %v5524_v52  ;;  %v5701_v6 = vadd.f32 %v12083_v22, %v5532_v51  ;;  %v5519_v60 = vmul.f32 %v12081_v15, %v13604_v20  ;;  %7074 = vmatprep.subr.bf16.mxu0 %v8526_v62 }
 0x711   :  { %v6078_v9 = vsel %vm5822_vm4, %v5694_v47, %v5950_v7  ;;  %7023 = vmatprep.mubr.bf16.mxu0 %v6136_v1  ;;  %vm5799_vm5 = vcmp.gt.f32.partialorder %v5671_v26, 0.0  ;;  %v5927_v19 = vmul.f32 0.2, %v5671_v26  ;;  %v5696_v15 = vadd.f32 %v12067_v54, %v5527_v28  ;;  %v13609_v47 = vld [vmem:[#allocation48_spill] sm:$0xff]  ;;  %v13611_v7 = vld [vmem:[#allocation90_spill] sm:$0xff] }
 0x712   :  { %v6150_v4 = vpack.c.bf16 %v6086_v59, %v6078_v9  ;;  %vm5807_vm6 = vcmp.gt.f32.partialorder %v5679_v61, 0.0  ;;  %v5935_v16 = vmul.f32 0.2, %v5679_v61  ;;  %vm5821_vm7 = vcmp.gt.f32.partialorder %v5693_v30, 0.0 }
 0x713   :  { %vm5829_vm8 = vcmp.gt.f32.partialorder %v5701_v6, 0.0  ;;  %v5949_v33 = vmul.f32 0.2, %v5693_v30  ;;  %v6055_v37 = vsel %vm5799_vm5, %v5671_v26, %v5927_v19  ;;  %v5957_v12 = vmul.f32 0.2, %v5701_v6  ;;  %7075 = vmatpush1.bf16.msra.mxu0 %v8524_v56  ;;  %v13613_v56 = vld [vmem:[#allocation68_spill] sm:$0xff] }
 0x714   :  { %7372 = vmatprep.mubr.bf16.mxu1 %v6150_v4  ;;  %v5688_v34 = vadd.f32 %v12067_v54, %v5519_v60  ;;  %v6063_v11 = vsel %vm5807_vm6, %v5679_v61, %v5935_v16  ;;  %v5518_v35 = vmul.f32 %v12077_v53, %v13606_v43  ;;  %v5526_v14 = vmul.f32 %v12077_v53, %v13607_v3 }
 0x715   :  { %v6077_v46 = vsel %vm5821_vm7, %v5693_v30, %v5949_v33  ;;  %v6135_v45 = vpack.c.bf16 %v6063_v11, %v6055_v37  ;;  %v6085_v63 = vsel %vm5829_vm8, %v5701_v6, %v5957_v12  ;;  %vm5824_vm10 = vcmp.gt.f32.partialorder %v5696_v15, 0.0  ;;  %7157 = vmatprep.subr.bf16.mxu0 %v8529_v5  ;;  %v13612_v30 = vld [vmem:[#allocation49_spill] sm:$0xff]  ;;  %v13614_v12 = vld [vmem:[#allocation91_spill] sm:$0xff] }
 0x716   :  { %vm5816_vm9 = vcmp.gt.f32.partialorder %v5688_v34, 0.0  ;;  %v6149_v44 = vpack.c.bf16 %v6085_v63, %v6077_v46  ;;  %v5944_v38 = vmul.f32 0.2, %v5688_v34  ;;  %v5952_v0 = vmul.f32 0.2, %v5696_v15  ;;  %v13615_v46 = vld [vmem:[#allocation92_spill] sm:$0xff] }
 0x717   :  { %v5687_v39 = vadd.f32 %v12064_v49, %v5518_v35  ;;  %7024 = vmatmul.mubr.bf16.gmra.mrb[104].mxu0 %v6135_v45  ;;  %v5695_v54 = vadd.f32 %v12064_v49, %v5526_v14  ;;  %v5409_v36 = vmul.f32 %v12093_v13, %v13608_v25  ;;  %v5417_v53 = vmul.f32 %v12093_v13, %v13609_v47  ;;  %v13616_v63 = vld [vmem:[#allocation69_spill] sm:$0xff] }
 0x718   :  { %v5408_v59 = vmul.f32 %v12089_v55, %v13610_v21  ;;  %7373 = vmatmul.mubr.bf16.gmra.mrb[184].mxu1 %v6149_v44  ;;  %v6072_v2 = vsel %vm5816_vm9, %v5688_v34, %v5944_v38  ;;  %v6080_v27 = vsel %vm5824_vm10, %v5696_v15, %v5952_v0  ;;  %v5416_v51 = vmul.f32 %v12089_v55, %v13611_v7  ;;  %v13617_v38 = vld [vmem:[#allocation50_spill] sm:$0xff]  ;;  %v8527_v25 = vld [vmem:[#allocation7 + $0x200] ss:$8 sps:$4 sm:$0xff]  }
 0x719   :  { %vm5815_vm11 = vcmp.gt.f32.partialorder %v5687_v39, 0.0  ;;  %v5943_v24 = vmul.f32 0.2, %v5687_v39  ;;  %v6144_v42 = vpack.c.bf16 %v6080_v27, %v6072_v2  ;;  %vm5823_vm12 = vcmp.gt.f32.partialorder %v5695_v54, 0.0 }
 0x71a   :  { %v5951_v52 = vmul.f32 0.2, %v5695_v54  ;;  %v5578_v62 = vadd.f32 %v12073_v31, %v5409_v36  ;;  %v5586_v57 = vadd.f32 %v12073_v31, %v5417_v53  ;;  %v5577_v1 = vadd.f32 %v12070_v58, %v5408_v59  ;;  %v13618_v53 = vld [vmem:[#allocation93_spill] sm:$0xff]  ;;  %v8532_v59 = vld [vmem:[#allocation7 + $0x214] ss:$8 sps:$4 sm:$0xff]  }
 0x71b   :  { %v6071_v49 = vsel %vm5815_vm11, %v5687_v39, %v5943_v24  ;;  %7033 = vmatprep.mubr.bf16.mxu0 %v6144_v42  ;;  %v5425_v9 = vmul.f32 %v12093_v13, %v13612_v30  ;;  %v5585_v60 = vadd.f32 %v12070_v58, %v5416_v51  ;;  %v5433_v4 = vmul.f32 %v12093_v13, %v13613_v56  ;;  %v13619_v42 = vld [vmem:[#allocation73_spill] sm:$0xff] }
 0x71c   :  { %v6079_v26 = vsel %vm5823_vm12, %v5695_v54, %v5951_v52  ;;  %vm5706_vm13 = vcmp.gt.f32.partialorder %v5578_v62, 0.0  ;;  %v5834_v61 = vmul.f32 0.2, %v5578_v62  ;;  %vm5714_vm14 = vcmp.gt.f32.partialorder %v5586_v57, 0.0 }
 0x71d   :  { %v6143_v6 = vpack.c.bf16 %v6079_v26, %v6071_v49  ;;  %v5842_v20 = vmul.f32 0.2, %v5586_v57  ;;  %vm5705_vm15 = vcmp.gt.f32.partialorder %v5577_v1, 0.0  ;;  %v5833_v28 = vmul.f32 0.2, %v5577_v1 }
 0x71e   :  { %v5962_v41 = vsel %vm5706_vm13, %v5578_v62, %v5834_v61  ;;  %vm5713_vm0 = vcmp.gt.f32.partialorder %v5585_v60, 0.0  ;;  %v5841_v5 = vmul.f32 0.2, %v5585_v60  ;;  %v5594_v16 = vadd.f32 %v12073_v31, %v5425_v9  ;;  %v13621_v61 = vld [vmem:[#allocation70_spill] sm:$0xff]  ;;  %v8535_v9 = vld [vmem:[#allocation7 + $0x224] ss:$8 sps:$4 sm:$0xff]  }
 0x71f   :  { %v5970_v19 = vsel %vm5714_vm14, %v5586_v57, %v5842_v20  ;;  %7034 = vmatmul.mubr.bf16.gmra.mrb[108].mxu0 %v6143_v6  ;;  %v5602_v37 = vadd.f32 %v12073_v31, %v5433_v4  ;;  %v5424_v34 = vmul.f32 %v12089_v55, %v13614_v12  ;;  %v5961_v15 = vsel %vm5705_vm15, %v5577_v1, %v5833_v28  ;;  %v13620_v57 = vld [vmem:[#allocation51_spill] sm:$0xff] }
 0x720   :  { %v6090_v33 = vpack.c.bf16 %v5970_v19, %v5962_v41  ;;  %vm5722_vm1 = vcmp.gt.f32.partialorder %v5594_v16, 0.0  ;;  %v5850_v11 = vmul.f32 0.2, %v5594_v16  ;;  %v5432_v43 = vmul.f32 %v12089_v55, %v13615_v46  ;;  %v8530_v1 = vld [vmem:[#allocation7 + $0x210] ss:$8 sps:$4 sm:$0xff]  }
 0x721   :  { %v5969_v35 = vsel %vm5713_vm0, %v5585_v60, %v5841_v5  ;;  %vm5730_vm2 = vcmp.gt.f32.partialorder %v5602_v37, 0.0  ;;  %v5858_v3 = vmul.f32 0.2, %v5602_v37  ;;  %v5593_v14 = vadd.f32 %v12070_v58, %v5424_v34  ;;  %v8533_v19 = vld [vmem:[#allocation7 + $0x220] ss:$8 sps:$4 sm:$0xff]  }
 0x722   :  { %7076 = vmatprep.mubr.bf16.mxu0 %v6090_v33  ;;  %v5601_v45 = vadd.f32 %v12070_v58, %v5432_v43  ;;  %v5441_v44 = vmul.f32 %v12093_v13, %v13616_v63  ;;  %v5449_v0 = vmul.f32 %v12093_v13, %v13617_v38  ;;  %v5978_v39 = vsel %vm5722_vm1, %v5594_v16, %v5850_v11  ;;  %v13622_v33 = vld [vmem:[#allocation57_spill] sm:$0xff]  ;;  %v8538_v34 = vld [vmem:[#allocation7 + $0x234] ss:$8 sps:$4 sm:$0xff]   ;;  %v13623_v11 = vld [vmem:[#allocation80_spill] sm:$0xff] }
 0x723   :  { %v5986_v54 = vsel %vm5730_vm2, %v5602_v37, %v5858_v3  ;;  %v6089_v36 = vpack.c.bf16 %v5969_v35, %v5961_v15  ;;  %vm5721_vm3 = vcmp.gt.f32.partialorder %v5593_v14, 0.0  ;;  %v5440_v21 = vmul.f32 %v12089_v55, %v13618_v53  ;;  %v13624_v3 = vld [vmem:[#allocation71_spill] sm:$0xff] }
 0x724   :  { %v5610_v47 = vadd.f32 %v12073_v31, %v5441_v44  ;;  %v5849_v2 = vmul.f32 0.2, %v5593_v14  ;;  %v5857_v27 = vmul.f32 0.2, %v5601_v45  ;;  %v5618_v24 = vadd.f32 %v12073_v31, %v5449_v0  ;;  %v8536_v44 = vld [vmem:[#allocation7 + $0x230] ss:$8 sps:$4 sm:$0xff]  }
 0x725   :  { %v5448_v52 = vmul.f32 %v12089_v55, %v13619_v42  ;;  %v6098_v62 = vpack.c.bf16 %v5986_v54, %v5978_v39  ;;  %vm5729_vm4 = vcmp.gt.f32.partialorder %v5601_v45, 0.0  ;;  %v5457_v7 = vmul.f32 %v12093_v13, %v13620_v57  ;;  %v8541_v0 = vld [vmem:[#allocation7 + $0x244] ss:$8 sps:$4 sm:$0xff]   ;;  %v13627_v57 = vld [vmem:[#allocation94_spill] sm:$0xff] }
 0x726   :  { %v5866_v49 = vmul.f32 0.2, %v5610_v47  ;;  %vm5738_vm5 = vcmp.gt.f32.partialorder %v5610_v47, 0.0  ;;  %vm5746_vm6 = vcmp.gt.f32.partialorder %v5618_v24, 0.0  ;;  %v5874_v51 = vmul.f32 0.2, %v5618_v24 }
 0x727   :  { %7077 = vmatmul.mubr.bf16.vlgmr.msra.gmra.mrb[80].mxu0 %v6089_v36  ;;  %v5609_v26 = vadd.f32 %v12070_v58, %v5440_v21  ;;  %v5465_v30 = vmul.f32 %v12093_v13, %v13621_v61  ;;  %v5977_v6 = vsel %vm5721_vm3, %v5593_v14, %v5849_v2  ;;  %v5985_v20 = vsel %vm5729_vm4, %v5601_v45, %v5857_v27  ;;  %v13625_v45 = vld [vmem:[#allocation52_spill] sm:$0xff] }
 0x728   :  { %7158 = vmatpush1.bf16.msra.mxu0 %v8527_v25  ;;  %7086 = vmatprep.mubr.bf16.mxu0 %v6098_v62  ;;  %v5617_v60 = vadd.f32 %v12070_v58, %v5448_v52  ;;  %v5994_v41 = vsel %vm5738_vm5, %v5610_v47, %v5866_v49  ;;  %v6002_v28 = vsel %vm5746_vm6, %v5618_v24, %v5874_v51  ;;  %v13626_v24 = vld [vmem:[#allocation81_spill] sm:$0xff]  ;;  %v8544_v62 = vld [vmem:[#allocation7 + $0x254] ss:$8 sps:$4 sm:$0xff]  }
 0x729   :  { %7159 = vmatprep.subr.bf16.mxu0 %v8532_v59  ;;  %v5626_v56 = vadd.f32 %v12073_v31, %v5457_v7  ;;  %v5634_v4 = vadd.f32 %v12073_v31, %v5465_v30  ;;  %v6097_v5 = vpack.c.bf16 %v5985_v20, %v5977_v6  ;;  %vm5737_vm7 = vcmp.gt.f32.partialorder %v5609_v26, 0.0  ;;  %v8539_v59 = vld [vmem:[#allocation7 + $0x240] ss:$8 sps:$4 sm:$0xff]   ;;  %v8542_v6 = vld [vmem:[#allocation7 + $0x250] ss:$8 sps:$4 sm:$0xff]  }
 0x72a   :  { %v5865_v16 = vmul.f32 0.2, %v5609_v26  ;;  %v5456_v37 = vmul.f32 %v12089_v55, %v13622_v33  ;;  %v6106_v12 = vpack.c.bf16 %v6002_v28, %v5994_v41  ;;  %vm5745_vm8 = vcmp.gt.f32.partialorder %v5617_v60, 0.0  ;;  %v13629_v30 = vld [vmem:[#allocation44_spill] sm:$0xff] }
 0x72b   :  { %v5873_v15 = vmul.f32 0.2, %v5617_v60  ;;  %v5464_v46 = vmul.f32 %v12089_v55, %v13623_v11  ;;  %v5882_v43 = vmul.f32 0.2, %v5626_v56  ;;  %v5890_v35 = vmul.f32 0.2, %v5634_v4 }
 0x72c   :  { %7160 = vmatpush1.bf16.msra.mxu0 %v8530_v1  ;;  %v5473_v14 = vmul.f32 %v12093_v13, %v13624_v3  ;;  %v5481_v63 = vmul.f32 %v12093_v13, %v13625_v45  ;;  %vm5754_vm9 = vcmp.gt.f32.partialorder %v5626_v56, 0.0  ;;  %vm5762_vm10 = vcmp.gt.f32.partialorder %v5634_v4, 0.0  ;;  %v8545_v33 = vld [vmem:[#allocation7 + $0x260] ss:$8 sps:$4 sm:$0xff]  }
 0x72d   :  { %7161 = vmatprep.subr.bf16.mxu0 %v8535_v9  ;;  %v5625_v38 = vadd.f32 %v12070_v58, %v5456_v37  ;;  %v5993_v39 = vsel %vm5737_vm7, %v5609_v26, %v5865_v16  ;;  %v6001_v54 = vsel %vm5745_vm8, %v5617_v60, %v5873_v15  ;;  %v5633_v25 = vadd.f32 %v12070_v58, %v5464_v46  ;;  %v13628_v26 = vld [vmem:[#allocation53_spill] sm:$0xff]  ;;  %v8550_v46 = vld [vmem:[#allocation7 + $0x274] ss:$8 sps:$4 sm:$0xff]  }
 0x72e   :  { %v6010_v36 = vsel %vm5754_vm9, %v5626_v56, %v5882_v43  ;;  %v6018_v47 = vsel %vm5762_vm10, %v5634_v4, %v5890_v35  ;;  %v5642_v53 = vadd.f32 %v12073_v31, %v5473_v14  ;;  %v5650_v21 = vadd.f32 %v12073_v31, %v5481_v63  ;;  %v8547_v60 = vld [vmem:[#allocation7 + $0x264] ss:$8 sps:$4 sm:$0xff]   ;;  %v13632_v63 = vld [vmem:[#allocation54_spill] sm:$0xff] }
 0x72f   :  { %7087 = vmatmul.mubr.bf16.gmra.mrb[84].mxu0 %v6097_v5  ;;  %v6105_v2 = vpack.c.bf16 %v6001_v54, %v5993_v39  ;;  %vm5753_vm11 = vcmp.gt.f32.partialorder %v5625_v38, 0.0  ;;  %v5881_v27 = vmul.f32 0.2, %v5625_v38  ;;  %v5472_v42 = vmul.f32 %v12089_v55, %v13626_v24  ;;  %v13631_v35 = vld [vmem:[#allocation97_spill] sm:$0xff]  ;;  %v8548_v39 = vld [vmem:[#allocation7 + $0x270] ss:$8 sps:$4 sm:$0xff]  }
 0x730   :  { %7162 = vmatpush1.bf16.msra.mxu0 %v8533_v19  ;;  %7096 = vmatprep.mubr.bf16.mxu0 %v6106_v12  ;;  %v6114_v52 = vpack.c.bf16 %v6018_v47, %v6010_v36  ;;  %vm5761_vm12 = vcmp.gt.f32.partialorder %v5633_v25, 0.0  ;;  %v5889_v49 = vmul.f32 0.2, %v5633_v25  ;;  %v5480_v7 = vmul.f32 %v12089_v55, %v13627_v57 }
 0x731   :  { %7163 = vmatprep.subr.bf16.mxu0 %v8538_v34  ;;  %v5898_v51 = vmul.f32 0.2, %v5642_v53  ;;  %v5906_v1 = vmul.f32 0.2, %v5650_v21  ;;  %v5489_v61 = vmul.f32 %v12093_v13, %v13628_v26  ;;  %v5497_v9 = vmul.f32 %v12093_v13, %v13629_v30  ;;  %v13630_v34 = vld [vmem:[#allocation96_spill] sm:$0xff]  ;;  %v13634_v26 = vld [vmem:[#allocation98_spill] sm:$0xff] }
 0x732   :  { %vm5770_vm13 = vcmp.gt.f32.partialorder %v5642_v53, 0.0  ;;  %vm5778_vm14 = vcmp.gt.f32.partialorder %v5650_v21, 0.0  ;;  %v5641_v20 = vadd.f32 %v12070_v58, %v5472_v42  ;;  %v6009_v41 = vsel %vm5753_vm11, %v5625_v38, %v5881_v27  ;;  %v13633_v38 = vld [vmem:[#allocation19_spill] sm:$0xff]  ;;  %v8551_v42 = vld [vmem:[#allocation7 + $0x280] ss:$8 sps:$4 sm:$0xff]   ;;  %v13635_v30 = vld [vmem:[#allocation58_spill] sm:$0xff] }
 0x733   :  { %v6017_v28 = vsel %vm5761_vm12, %v5633_v25, %v5889_v49  ;;  %v5649_v56 = vadd.f32 %v12070_v58, %v5480_v7  ;;  %v6026_v4 = vsel %vm5770_vm13, %v5642_v53, %v5898_v51  ;;  %v6034_v19 = vsel %vm5778_vm14, %v5650_v21, %v5906_v1  ;;  %v8553_v25 = vld [vmem:[#allocation7 + $0x284] ss:$8 sps:$4 sm:$0xff]  }
 0x734   :  { %7164 = vmatpush1.bf16.msra.mxu0 %v8536_v44  ;;  %v5658_v5 = vadd.f32 %v12073_v31, %v5489_v61  ;;  %v5666_v16 = vadd.f32 %v12073_v31, %v5497_v9  ;;  %v6113_v37 = vpack.c.bf16 %v6017_v28, %v6009_v41  ;;  %vm5769_vm15 = vcmp.gt.f32.partialorder %v5641_v20, 0.0  ;;  %v8554_v41 = vld [vmem:[#allocation7 + $0x290] ss:$8 sps:$4 sm:$0xff]   ;;  %v8559_v28 = vld [vmem:[#allocation7 + $0x2a4] ss:$8 sps:$4 sm:$0xff]  }
 0x735   :  { %7165 = vmatprep.subr.bf16.mxu0 %v8541_v0  ;;  %v5897_v12 = vmul.f32 0.2, %v5641_v20  ;;  %v5488_v15 = vmul.f32 %v12089_v55, %v13630_v34  ;;  %v6122_v11 = vpack.c.bf16 %v6034_v19, %v6026_v4  ;;  %vm5777_vm0 = vcmp.gt.f32.partialorder %v5649_v56, 0.0  ;;  %v8667_v34 = vld [vmem:[%s12741_s6 + $0x15] sm:$0xff] }
 0x736   :  { %v5905_v43 = vmul.f32 0.2, %v5649_v56  ;;  %v5496_v3 = vmul.f32 %v12089_v55, %v13631_v35  ;;  %v5914_v14 = vmul.f32 0.2, %v5658_v5  ;;  %v5922_v45 = vmul.f32 0.2, %v5666_v16 }
 0x737   :  { %7097 = vmatmul.mubr.bf16.gmra.mrb[88].mxu0 %v6105_v2  ;;  %v5505_v44 = vmul.f32 %v12093_v13, %v13632_v63  ;;  %v5513_v0 = vmul.f32 %v12093_v13, %v13633_v38  ;;  %vm5786_vm1 = vcmp.gt.f32.partialorder %v5658_v5, 0.0  ;;  %vm5794_vm2 = vcmp.gt.f32.partialorder %v5666_v16, 0.0  ;;  %v8562_v35 = vld [vmem:[#allocation7 + $0x2b4] ss:$8 sps:$4 sm:$0xff]  }
 0x738   :  { %7166 = vmatpush1.bf16.msra.mxu0 %v8539_v59  ;;  %7106 = vmatprep.mubr.bf16.mxu0 %v6114_v52  ;;  %v5657_v54 = vadd.f32 %v12070_v58, %v5488_v15  ;;  %v6025_v36 = vsel %vm5769_vm15, %v5641_v20, %v5897_v12  ;;  %v6033_v47 = vsel %vm5777_vm0, %v5649_v56, %v5905_v43  ;;  %v5388_v24 = vsub.s32 5, %v13565_v48 }
 0x739   :  { %7167 = vmatprep.subr.bf16.mxu0 %v8544_v62  ;;  %v5665_v53 = vadd.f32 %v12070_v58, %v5496_v3  ;;  %v6042_v21 = vsel %vm5786_vm1, %v5658_v5, %v5914_v14  ;;  %v6050_v59 = vsel %vm5794_vm2, %v5666_v16, %v5922_v45  ;;  %v5674_v2 = vadd.f32 %v12073_v31, %v5505_v44  ;;  %v8556_v62 = vld [vmem:[#allocation7 + $0x294] ss:$8 sps:$4 sm:$0xff]  }
 0x73a   :  { %v5682_v27 = vadd.f32 %v12073_v31, %v5513_v0  ;;  %v6121_v52 = vpack.c.bf16 %v6033_v47, %v6025_v36  ;;  %vm5785_vm3 = vcmp.gt.f32.partialorder %v5657_v54, 0.0  ;;  %v6130_v49 = vpack.c.bf16 %v6050_v59, %v6042_v21  ;;  %v13637_v3 = vld [vmem:[#allocation59_spill] sm:$0xff]  ;;  %v13639_v0 = vld [vmem:[#allocation40_spill] sm:$0xff] }
 0x73b   :  { %vm5793_vm4 = vcmp.gt.f32.partialorder %v5665_v53, 0.0  ;;  %v5913_v57 = vmul.f32 0.2, %v5657_v54  ;;  %v5921_v7 = vmul.f32 0.2, %v5665_v53  ;;  %v5504_v61 = vmul.f32 %v12089_v55, %v13634_v26  ;;  %v13638_v45 = vld [vmem:[#allocation99_spill] sm:$0xff] }
 0x73c   :  { %7168 = vmatpush1.bf16.msra.mxu0 %v8542_v6  ;;  %v5930_v51 = vmul.f32 0.2, %v5674_v2  ;;  %v5938_v1 = vmul.f32 0.2, %v5682_v27  ;;  %v5512_v9 = vmul.f32 %v12089_v55, %v13635_v30  ;;  %vm5802_vm5 = vcmp.gt.f32.partialorder %v5674_v2, 0.0  ;;  %v13636_v6 = vld [vmem:[#allocation36_spill] sm:$0xff] }
 0x73d   :  { %7169 = vmatprep.subr.bf16.mxu0 %v8547_v60  ;;  %vm5810_vm6 = vcmp.gt.f32.partialorder %v5682_v27, 0.0  ;;  %v5521_v20 = vmul.f32 %v12093_v13, %v13636_v6  ;;  %v5529_v60 = vmul.f32 %v12093_v13, %v13560_v23  ;;  %v6041_v56 = vsel %vm5785_vm3, %v5657_v54, %v5913_v57  ;;  %v13640_v54 = vld [vmem:[#allocation31_spill] sm:$0xff]  ;;  %v13643_v30 = vld [vmem:[#allocation33_spill] sm:$0xff] }
 0x73e   :  { %v6049_v4 = vsel %vm5793_vm4, %v5665_v53, %v5921_v7  ;;  %v6058_v19 = vsel %vm5802_vm5, %v5674_v2, %v5930_v51  ;;  %v6066_v5 = vsel %vm5810_vm6, %v5682_v27, %v5938_v1  ;;  %v5673_v16 = vadd.f32 %v12070_v58, %v5504_v61  ;;  %v8560_v47 = vld [vmem:[#allocation7 + $0x2b0] ss:$8 sps:$4 sm:$0xff]   ;;  %v8568_v1 = vld [vmem:[#allocation7 + $0x2d4] ss:$8 sps:$4 sm:$0xff]  }
 0x73f   :  { %7107 = vmatmul.mubr.bf16.gmra.mrb[92].mxu0 %v6113_v37  ;;  %v12393_v37 = vrot.slane %v12061_v17, %v5388_v24  ;;  %v5690_v23 = vadd.f32 %v12073_v31, %v5521_v20  ;;  %v5698_v13 = vadd.f32 %v12073_v31, %v5529_v60  ;;  %v5384_v12 = vsub.s32 4, %v13565_v48  ;;  %v13642_v7 = vld [vmem:[#allocation42_spill] sm:$0xff]  ;;  %v13644_v20 = vld [vmem:[#allocation20_spill] sm:$0xff] }
 0x740   :  { %7170 = vmatpush1.bf16.msra.mxu0 %v8545_v33  ;;  %7116 = vmatprep.mubr.bf16.mxu0 %v6122_v11  ;;  %v5681_v33 = vadd.f32 %v12070_v58, %v5512_v9  ;;  %v12401_v15 = vrot.slane %v8667_v34, %v5388_v24  ;;  %v8557_v11 = vld [vmem:[#allocation7 + $0x2a0] ss:$8 sps:$4 sm:$0xff]   ;;  %v6138_v43 = vpack.c.bf16 %v6066_v5, %v6058_v19  ;;  %vm5801_vm7 = vcmp.gt.f32.partialorder %v5673_v16, 0.0  ;;  %v8571_v5 = vld [vmem:[#allocation7 + $0x2e4] ss:$8 sps:$4 sm:$0xff]  }
 0x741   :  { %7171 = vmatprep.subr.bf16.mxu0 %v8550_v46  ;;  %v6129_v46 = vpack.c.bf16 %v6049_v4, %v6041_v56  ;;  %v5520_v14 = vmul.f32 %v12089_v55, %v13637_v3  ;;  %v5528_v31 = vmul.f32 %v12089_v55, %v13638_v45  ;;  %v5929_v48 = vmul.f32 0.2, %v5673_v16  ;;  %v8565_v55 = vld [vmem:[#allocation7 + $0x2c4] ss:$8 sps:$4 sm:$0xff]   ;;  %v8566_v56 = vld [vmem:[#allocation7 + $0x2d0] ss:$8 sps:$4 sm:$0xff]  }
 0x742   :  { %vm5809_vm8 = vcmp.gt.f32.partialorder %v5681_v33, 0.0  ;;  %v5937_v63 = vmul.f32 0.2, %v5681_v33  ;;  %v5946_v44 = vmul.f32 0.2, %v5690_v23  ;;  %v12412_v36 = vrot.slane %v12061_v17, %v5384_v12  ;;  %v13645_v45 = vld [vmem:[#allocation16_spill] sm:$0xff] }
 0x743   :  { %v5954_v38 = vmul.f32 0.2, %v5698_v13  ;;  %vm5818_vm9 = vcmp.gt.f32.partialorder %v5690_v23, 0.0  ;;  %vm5826_vm10 = vcmp.gt.f32.partialorder %v5698_v13, 0.0  ;;  %v5689_v53 = vadd.f32 %v12070_v58, %v5520_v14 }
 0x744   :  { %7172 = vmatpush1.bf16.msra.mxu0 %v8548_v39  ;;  %v5411_v39 = vmul.f32 %v12393_v37, %v13639_v0  ;;  %v5697_v21 = vadd.f32 %v12070_v58, %v5528_v31  ;;  %v6057_v59 = vsel %vm5801_vm7, %v5673_v16, %v5929_v48  ;;  %v6065_v2 = vsel %vm5809_vm8, %v5681_v33, %v5937_v63  ;;  %v13647_v0 = vld [vmem:[#allocation24_spill] sm:$0xff] }
 0x745   :  { %7173 = vmatprep.subr.bf16.mxu0 %v8553_v25  ;;  %v5419_v25 = vmul.f32 %v12393_v37, %v13640_v54  ;;  %v6074_v27 = vsel %vm5818_vm9, %v5690_v23, %v5946_v44  ;;  %v6082_v24 = vsel %vm5826_vm10, %v5698_v13, %v5954_v38  ;;  %v5418_v58 = vmul.f32 %v12412_v36, %v13642_v7  ;;  %v13646_v44 = vld [vmem:[#allocation18_spill] sm:$0xff] }
 0x746   :  { %v5580_v17 = vadd.f32 %v12401_v15, %v5411_v39  ;;  %v6137_v51 = vpack.c.bf16 %v6065_v2, %v6057_v59  ;;  %v5945_v26 = vmul.f32 0.2, %v5689_v53  ;;  %v5953_v61 = vmul.f32 0.2, %v5697_v21 }
 0x747   :  { %7117 = vmatmul.mubr.bf16.gmra.mrb[96].mxu0 %v6121_v52  ;;  %v12420_v52 = vrot.slane %v8667_v34, %v5384_v12  ;;  %v5427_v9 = vmul.f32 %v12393_v37, %v13643_v30  ;;  %v6146_v6 = vpack.c.bf16 %v6082_v24, %v6074_v27  ;;  %vm5817_vm11 = vcmp.gt.f32.partialorder %v5689_v53, 0.0  ;;  %v8569_v12 = vld [vmem:[#allocation7 + $0x2e0] ss:$8 sps:$4 sm:$0xff]   ;;  %v13648_v24 = vld [vmem:[#allocation22_spill] sm:$0xff] }
 0x748   :  { %7174 = vmatpush1.bf16.msra.mxu0 %v8551_v42  ;;  %7126 = vmatprep.mubr.bf16.mxu0 %v6130_v49  ;;  %v5588_v42 = vadd.f32 %v12401_v15, %v5419_v25  ;;  %v13641_v49 = vld [vmem:[#allocation38_spill] sm:$0xff]  ;;  %vm5825_vm12 = vcmp.gt.f32.partialorder %v5697_v21, 0.0  ;;  %v5435_v60 = vmul.f32 %v12393_v37, %v13644_v20  ;;  %vm5708_vm13 = vcmp.gt.f32.partialorder %v5580_v17, 0.0 }
 0x749   :  { %7175 = vmatprep.subr.bf16.mxu0 %v8556_v62  ;;  %v8563_v62 = vld [vmem:[#allocation7 + $0x2c0] ss:$8 sps:$4 sm:$0xff]   ;;  %v5410_v57 = vmul.f32 %v12412_v36, %v13641_v49  ;;  %v5587_v19 = vadd.f32 %v12420_v52, %v5418_v58  ;;  %v6073_v16 = vsel %vm5817_vm11, %v5689_v53, %v5945_v26  ;;  %v6081_v33 = vsel %vm5825_vm12, %v5697_v21, %v5953_v61  ;;  %v8572_v25 = vld [vmem:[#allocation7 + $0x2f0] ss:$8 sps:$4 sm:$0xff]   ;;  %v8668_v49 = vld [vmem:[#allocation7 + $0x304] ss:$8 sps:$4 sm:$0xff]  }
 0x74a   :  { %vm5716_vm14 = vcmp.gt.f32.partialorder %v5588_v42, 0.0  ;;  %v5596_v23 = vadd.f32 %v12401_v15, %v5427_v9  ;;  %v5604_v13 = vadd.f32 %v12401_v15, %v5435_v60  ;;  %v5426_v31 = vmul.f32 %v12412_v36, %v13645_v45  ;;  %v8670_v60 = vld [vmem:[#allocation7 + $0x314] ss:$8 sps:$4 sm:$0xff]  }
 0x74b   :  { %v5579_v4 = vadd.f32 %v12420_v52, %v5410_v57  ;;  %vm5715_vm0 = vcmp.gt.f32.partialorder %v5587_v19, 0.0  ;;  %v5843_v3 = vmul.f32 0.2, %v5587_v19  ;;  %v5434_v38 = vmul.f32 %v12412_v36, %v13646_v44 }
 0x74c   :  { %7176 = vmatpush1.bf16.msra.mxu0 %v8554_v41  ;;  %v5836_v41 = vmul.f32 0.2, %v5580_v17  ;;  %vm5724_vm1 = vcmp.gt.f32.partialorder %v5596_v23, 0.0  ;;  %v5852_v14 = vmul.f32 0.2, %v5596_v23  ;;  %v5443_v39 = vmul.f32 %v12393_v37, %v13647_v0 }
 0x74d   :  { %7177 = vmatprep.subr.bf16.mxu0 %v8559_v28  ;;  %v5844_v28 = vmul.f32 0.2, %v5588_v42  ;;  %vm5707_vm15 = vcmp.gt.f32.partialorder %v5579_v4, 0.0  ;;  %v5860_v63 = vmul.f32 0.2, %v5604_v13  ;;  %vm5732_vm2 = vcmp.gt.f32.partialorder %v5604_v13, 0.0 }
 0x74e   :  { %v5964_v34 = vsel %vm5708_vm13, %v5580_v17, %v5836_v41  ;;  %v5451_v54 = vmul.f32 %v12393_v37, %v11833_v10  ;;  %v5980_v53 = vsel %vm5724_vm1, %v5596_v23, %v5852_v14  ;;  %v5595_v21 = vadd.f32 %v12420_v52, %v5426_v31  ;;  %v8674_v0 = vld [vmem:[#allocation7 + $0x334] ss:$8 sps:$4 sm:$0xff]  }
 0x74f   :  { %7127 = vmatmul.mubr.bf16.gmra.mrb[100].mxu0 %v6129_v46  ;;  %v6145_v46 = vpack.c.bf16 %v6081_v33, %v6073_v16  ;;  %v5988_v59 = vsel %vm5732_vm2, %v5604_v13, %v5860_v63  ;;  %v5603_v2 = vadd.f32 %v12420_v52, %v5434_v38  ;;  %v5612_v27 = vadd.f32 %v12401_v15, %v5443_v39  ;;  %v8671_v33 = vld [vmem:[#allocation7 + $0x310] ss:$8 sps:$4 sm:$0xff]   ;;  %v8673_v63 = vld [vmem:[#allocation7 + $0x320] ss:$8 sps:$4 sm:$0xff]  }
 0x750   :  { %7178 = vmatpush1.bf16.msra.mxu0 %v8557_v11  ;;  %7136 = vmatprep.mubr.bf16.mxu0 %v6138_v43  ;;  %v5972_v11 = vsel %vm5716_vm14, %v5588_v42, %v5844_v28  ;;  %v8574_v43 = vld [vmem:[#allocation7 + $0x2f4] ss:$8 sps:$4 sm:$0xff]   ;;  %v5442_v10 = vmul.f32 %v12412_v36, %v13648_v24  ;;  %v5620_v17 = vadd.f32 %v12401_v15, %v5451_v54  ;;  %vm5723_vm3 = vcmp.gt.f32.partialorder %v5595_v21, 0.0 }
 0x751   :  { %7179 = vmatprep.subr.bf16.mxu0 %v8562_v35  ;;  %v5835_v35 = vmul.f32 0.2, %v5579_v4  ;;  %v6092_v48 = vpack.c.bf16 %v5972_v11, %v5964_v34  ;;  %v13649_v42 = vld [vmem:[#allocation26_spill] sm:$0xff]  ;;  %v6100_v7 = vpack.c.bf16 %v5988_v59, %v5980_v53  ;;  %v5851_v58 = vmul.f32 0.2, %v5595_v21  ;;  %v13653_v59 = vld [vmem:[#allocation123_spill] sm:$0xff] }
 0x752   :  { %vm5731_vm4 = vcmp.gt.f32.partialorder %v5603_v2, 0.0  ;;  %v5611_v26 = vadd.f32 %v12420_v52, %v5442_v10  ;;  %vm5740_vm5 = vcmp.gt.f32.partialorder %v5612_v27, 0.0  ;;  %v5876_v61 = vmul.f32 0.2, %v5620_v17  ;;  %v13651_v13 = vld [vmem:[#allocation122_spill] sm:$0xff] }
 0x753   :  { %v5459_v30 = vmul.f32 %v12393_v37, %v11836_v18  ;;  %v5467_v9 = vmul.f32 %v12393_v37, %v11839_v8  ;;  %vm5748_vm6 = vcmp.gt.f32.partialorder %v5620_v17, 0.0  ;;  %v5979_v41 = vsel %vm5723_vm3, %v5595_v21, %v5851_v58  ;;  %v13650_v8 = vld [vmem:[#allocation121_spill] sm:$0xff] }
 0x754   :  { %7180 = vmatpush1.bf16.msra.mxu0 %v8560_v47  ;;  %v5963_v47 = vsel %vm5707_vm15, %v5579_v4, %v5835_v35  ;;  %v5867_v4 = vmul.f32 0.2, %v5611_v26  ;;  %v5458_v16 = vmul.f32 %v12412_v36, %v13650_v8  ;;  %vm5739_vm7 = vcmp.gt.f32.partialorder %v5611_v26, 0.0  ;;  %v8672_v34 = vld [vmem:[#allocation7 + $0x324] ss:$8 sps:$4 sm:$0xff]  }
 0x755   :  { %7181 = vmatprep.subr.bf16.mxu0 %v8565_v55  ;;  %v5971_v55 = vsel %vm5715_vm0, %v5587_v19, %v5843_v3  ;;  %v6004_v19 = vsel %vm5748_vm6, %v5620_v17, %v5876_v61  ;;  %v5628_v18 = vadd.f32 %v12401_v15, %v5459_v30  ;;  %v13654_v17 = vld [vmem:[#allocation124_spill] sm:$0xff]  ;;  %v8678_v61 = vld [vmem:[#allocation7 + $0x354] ss:$8 sps:$4 sm:$0xff]  }
 0x756   :  { %v6091_v57 = vpack.c.bf16 %v5971_v55, %v5963_v47  ;;  %v5995_v14 = vsel %vm5739_vm7, %v5611_v26, %v5867_v4  ;;  %v8675_v55 = vld [vmem:[#allocation7 + $0x330] ss:$8 sps:$4 sm:$0xff]  }
 0x757   :  { %7137 = vmatmul.mubr.bf16.gmra.mrb[104].mxu0 %v6137_v51  ;;  %v5859_v51 = vmul.f32 0.2, %v5603_v2  ;;  %v5884_v45 = vmul.f32 0.2, %v5628_v18  ;;  %vm5756_vm9 = vcmp.gt.f32.partialorder %v5628_v18, 0.0 }
 0x758   :  { %7182 = vmatpush1.bf16.msra.mxu0 %v8563_v62  ;;  %7146 = vmatprep.mubr.bf16.mxu0 %v6146_v6  ;;  %v5450_v62 = vmul.f32 %v12412_v36, %v13649_v42  ;;  %v8669_v6 = vld [vmem:[#allocation7 + $0x300] ss:$8 sps:$4 sm:$0xff]   ;;  %v5482_v42 = vmul.f32 %v12412_v36, %v13654_v17 }
 0x759   :  { %7183 = vmatprep.subr.bf16.mxu0 %v8568_v1  ;;  %v5868_v1 = vmul.f32 0.2, %v5612_v27  ;;  %v5987_v28 = vsel %vm5731_vm4, %v5603_v2, %v5859_v51  ;;  %v5474_v2 = vmul.f32 %v12412_v36, %v13653_v59  ;;  %v8677_v51 = vld [vmem:[#allocation7 + $0x340] ss:$8 sps:$4 sm:$0xff]  }
 0x75a   :  { %v5619_v20 = vadd.f32 %v12420_v52, %v5450_v62  ;;  %v6099_v11 = vpack.c.bf16 %v5987_v28, %v5979_v41  ;;  %v8679_v28 = vld [vmem:[#allocation7 + $0x350] ss:$8 sps:$4 sm:$0xff]   ;;  %v13662_v59 = vld [vmem:[#allocation128_spill] sm:$0xff] }
 0x75b   :  { %v5643_v26 = vadd.f32 %v12420_v52, %v5474_v2  ;;  %v5514_v2 = vmul.f32 %v12412_v36, %v13662_v59 }
 0x75c   :  { %7184 = vmatpush1.bf16.msra.mxu0 %v8566_v56  ;;  %v5996_v56 = vsel %vm5740_vm5, %v5612_v27, %v5868_v1  ;;  %v5875_v23 = vmul.f32 0.2, %v5619_v20  ;;  %vm5747_vm8 = vcmp.gt.f32.partialorder %v5619_v20, 0.0  ;;  %v8676_v27 = vld [vmem:[#allocation7 + $0x344] ss:$8 sps:$4 sm:$0xff]  }
 0x75d   :  { %7185 = vmatprep.subr.bf16.mxu0 %v8571_v5  ;;  %v5636_v5 = vadd.f32 %v12401_v15, %v5467_v9  ;;  %v6108_v3 = vpack.c.bf16 %v6004_v19, %v5996_v56  ;;  %vm5771_vm15 = vcmp.gt.f32.partialorder %v5643_v26, 0.0  ;;  %v13657_v19 = vld [vmem:[#allocation125_spill] sm:$0xff]  ;;  %v5899_v8 = vmul.f32 0.2, %v5643_v26 }
 0x75e   :  { %v6003_v44 = vsel %vm5747_vm8, %v5619_v20, %v5875_v23  ;;  %v5651_v20 = vadd.f32 %v12420_v52, %v5482_v42  ;;  %v13664_v42 = vld [vmem:[#allocation118_spill] sm:$0xff] }
 0x75f   :  { %7147 = vmatmul.mubr.bf16.gmra.mrb[108].mxu0 %v6145_v46  ;;  %v5475_v46 = vmul.f32 %v12393_v37, %v11842_v50  ;;  %v5892_v31 = vmul.f32 0.2, %v5636_v5  ;;  %vm5764_vm10 = vcmp.gt.f32.partialorder %v5636_v5, 0.0  ;;  %v6107_v54 = vpack.c.bf16 %v6003_v44, %v5995_v14  ;;  %v8682_v14 = vld [vmem:[#allocation7 + $0x374] ss:$8 sps:$4 sm:$0xff]  }
 0x760   :  { %7186 = vmatpush1.bf16.msra.mxu0 %v8569_v12  ;;  %7189 = vmatprep.mubr.bf16.mxu0 %v6092_v48  ;;  %v5466_v12 = vmul.f32 %v12412_v36, %v13651_v13  ;;  %v5627_v48 = vadd.f32 %v12420_v52, %v5458_v16  ;;  %vm5779_vm0 = vcmp.gt.f32.partialorder %v5651_v20, 0.0  ;;  %v5907_v16 = vmul.f32 0.2, %v5651_v20 }
 0x761   :  { %7187 = vmatprep.subr.bf16.mxu0 %v8574_v43  ;;  %v13652_v43 = vld [vmem:[#allocation104_spill] sm:$0xff]  ;;  %v5644_v50 = vadd.f32 %v12401_v15, %v5475_v46  ;;  %v6020_v47 = vsel %vm5764_vm10, %v5636_v5, %v5892_v31  ;;  %v13660_v46 = vld [vmem:[#allocation134_spill] sm:$0xff] }
 0x762   :  { %v5483_v35 = vmul.f32 %v12393_v37, %v13652_v43  ;;  %v5635_v38 = vadd.f32 %v12420_v52, %v5466_v12  ;;  %vm5755_vm11 = vcmp.gt.f32.partialorder %v5627_v48, 0.0  ;;  %v5883_v53 = vmul.f32 0.2, %v5627_v48  ;;  %v8680_v5 = vld [vmem:[#allocation7 + $0x364] ss:$8 sps:$4 sm:$0xff]  }
 0x763   :  { %vm5772_vm13 = vcmp.gt.f32.partialorder %v5644_v50, 0.0  ;;  %v5900_v24 = vmul.f32 0.2, %v5644_v50  ;;  %v5515_v43 = vmul.f32 %v12393_v37, %v13660_v46  ;;  %v6035_v31 = vsel %vm5779_vm0, %v5651_v20, %v5907_v16  ;;  %v8688_v20 = vld [vmem:[#allocation7 + $0x3a4] ss:$8 sps:$4 sm:$0xff]  }
 0x764   :  { %7188 = vmatpush1.bf16.msra.mxu0 %v8572_v25  ;;  %v5652_v39 = vadd.f32 %v12401_v15, %v5483_v35  ;;  %v6012_v25 = vsel %vm5756_vm9, %v5628_v18, %v5884_v45  ;;  %vm5763_vm12 = vcmp.gt.f32.partialorder %v5635_v38, 0.0  ;;  %v5891_v21 = vmul.f32 0.2, %v5635_v38  ;;  %v8681_v35 = vld [vmem:[#allocation7 + $0x360] ss:$8 sps:$4 sm:$0xff]  }
 0x765   :  { %7270 = vmatprep.subr.bf16.mxu0 %v8668_v49  ;;  %v6116_v62 = vpack.c.bf16 %v6020_v47, %v6012_v25  ;;  %v13655_v49 = vld [vmem:[#allocation106_spill] sm:$0xff]  ;;  %v6011_v1 = vsel %vm5755_vm11, %v5627_v48, %v5883_v53  ;;  %v6028_v9 = vsel %vm5772_vm13, %v5644_v50, %v5900_v24  ;;  %v5490_v18 = vmul.f32 %v12412_v36, %v13657_v19  ;;  %v13661_v25 = vld [vmem:[#allocation127_spill] sm:$0xff]  ;;  %v13665_v19 = vld [vmem:[#allocation129_spill] sm:$0xff] }
 0x766   :  { %v5908_v10 = vmul.f32 0.2, %v5652_v39  ;;  %vm5780_vm14 = vcmp.gt.f32.partialorder %v5652_v39, 0.0  ;;  %v6019_v30 = vsel %vm5763_vm12, %v5635_v38, %v5891_v21  ;;  %v6027_v45 = vsel %vm5771_vm15, %v5643_v26, %v5899_v8  ;;  %v8683_v50 = vld [vmem:[#allocation7 + $0x370] ss:$8 sps:$4 sm:$0xff]  }
 0x767   :  { %7190 = vmatmul.mubr.bf16.vlgmr.msra.gmra.mrb[80].mxu0 %v6091_v57  ;;  %v5491_v57 = vmul.f32 %v12393_v37, %v13655_v49  ;;  %v6115_v56 = vpack.c.bf16 %v6019_v30, %v6011_v1  ;;  %v5506_v47 = vmul.f32 %v12412_v36, %v13661_v25  ;;  %v8685_v49 = vld [vmem:[#allocation7 + $0x380] ss:$8 sps:$4 sm:$0xff]   ;;  %v5683_v1 = vadd.f32 %v12420_v52, %v5514_v2  ;;  %v8694_v25 = vld [vmem:[#allocation7 + $0x3d4] ss:$8 sps:$4 sm:$0xff]   ;;  %v8695_v2 = vld [vmem:[#allocation7 + $0x3d0] ss:$8 sps:$4 sm:$0xff]  }
 0x768   :  { %7271 = vmatpush1.bf16.msra.mxu0 %v8669_v6  ;;  %7199 = vmatprep.mubr.bf16.mxu0 %v6100_v7  ;;  %v13656_v7 = vld [vmem:[#allocation108_spill] sm:$0xff]  ;;  %v6036_v6 = vsel %vm5780_vm14, %v5652_v39, %v5908_v10  ;;  %v6123_v39 = vpack.c.bf16 %v6035_v31, %v6027_v45  ;;  %v13663_v10 = vld [vmem:[#allocation135_spill] sm:$0xff] }
 0x769   :  { %7272 = vmatprep.subr.bf16.mxu0 %v8670_v60  ;;  %v5499_v58 = vmul.f32 %v12393_v37, %v13656_v7  ;;  %v5660_v60 = vadd.f32 %v12401_v15, %v5491_v57  ;;  %v6124_v4 = vpack.c.bf16 %v6036_v6, %v6028_v9  ;;  %v5523_v17 = vmul.f32 %v12393_v37, %v13663_v10  ;;  %v8686_v7 = vld [vmem:[#allocation7 + $0x394] ss:$8 sps:$4 sm:$0xff]   ;;  %v8687_v9 = vld [vmem:[#allocation7 + $0x390] ss:$8 sps:$4 sm:$0xff]   ;;  %v8692_v45 = vld [vmem:[#allocation7 + $0x3c4] ss:$8 sps:$4 sm:$0xff]  }
 0x76a   :  { %v5675_v57 = vadd.f32 %v12420_v52, %v5506_v47  ;;  %vm5811_vm8 = vcmp.gt.f32.partialorder %v5683_v1, 0.0 }
 0x76b   :  { %v5668_v41 = vadd.f32 %v12401_v15, %v5499_v58  ;;  %v5916_v13 = vmul.f32 0.2, %v5660_v60  ;;  %vm5788_vm1 = vcmp.gt.f32.partialorder %v5660_v60, 0.0 }
 0x76c   :  { %7273 = vmatpush1.bf16.msra.mxu0 %v8671_v33  ;;  %v13658_v33 = vld [vmem:[#allocation126_spill] sm:$0xff]  ;;  %vm5803_vm7 = vcmp.gt.f32.partialorder %v5675_v57, 0.0 }
 0x76d   :  { %7274 = vmatprep.subr.bf16.mxu0 %v8672_v34  ;;  %v5498_v23 = vmul.f32 %v12412_v36, %v13658_v33  ;;  %v5924_v12 = vmul.f32 0.2, %v5668_v41  ;;  %v13659_v34 = vld [vmem:[#allocation110_spill] sm:$0xff]  ;;  %vm5796_vm2 = vcmp.gt.f32.partialorder %v5668_v41, 0.0  ;;  %v13668_v33 = vld [vmem:[#allocation32_spill] sm:$0xff] }
 0x76f   :  { %7200 = vmatmul.mubr.bf16.gmra.mrb[84].mxu0 %v6099_v11  ;;  %v5507_v11 = vmul.f32 %v12393_v37, %v13659_v34  ;;  %v5667_v48 = vadd.f32 %v12420_v52, %v5498_v23  ;;  %v6052_v44 = vsel %vm5796_vm2, %v5668_v41, %v5924_v12  ;;  %v5931_v41 = vmul.f32 0.2, %v5675_v57  ;;  %v8690_v12 = vld [vmem:[#allocation7 + $0x3b4] ss:$8 sps:$4 sm:$0xff]  }
 0x770   :  { %7275 = vmatpush1.bf16.msra.mxu0 %v8673_v63  ;;  %7209 = vmatprep.mubr.bf16.mxu0 %v6108_v3  ;;  %v5659_v3 = vadd.f32 %v12420_v52, %v5490_v18  ;;  %v6044_v63 = vsel %vm5788_vm1, %v5660_v60, %v5916_v13  ;;  %v5522_v18 = vmul.f32 %v12412_v36, %v13665_v19  ;;  %v8689_v13 = vld [vmem:[#allocation7 + $0x3a0] ss:$8 sps:$4 sm:$0xff]  }
 0x771   :  { %7276 = vmatprep.subr.bf16.mxu0 %v8674_v0  ;;  %v5676_v38 = vadd.f32 %v12401_v15, %v5507_v11  ;;  %v5684_v0 = vadd.f32 %v12401_v15, %v5515_v43  ;;  %v6132_v53 = vpack.c.bf16 %v6052_v44, %v6044_v63  ;;  %vm5795_vm4 = vcmp.gt.f32.partialorder %v5667_v48, 0.0 }
 0x772   :  { %vm5787_vm3 = vcmp.gt.f32.partialorder %v5659_v3, 0.0  ;;  %v5923_v21 = vmul.f32 0.2, %v5667_v48  ;;  %v5421_v23 = vmul.f32 %v12099_v29, %v13668_v33  ;;  %v6059_v34 = vsel %vm5803_vm7, %v5675_v57, %v5931_v41 }
 0x773   :  { %v5940_v24 = vmul.f32 0.2, %v5684_v0  ;;  %vm5804_vm5 = vcmp.gt.f32.partialorder %v5676_v38, 0.0  ;;  %vm5812_vm6 = vcmp.gt.f32.partialorder %v5684_v0, 0.0  ;;  %v5691_v43 = vadd.f32 %v12420_v52, %v5522_v18 }
 0x774   :  { %7277 = vmatpush1.bf16.msra.mxu0 %v8675_v55  ;;  %v8684_v55 = vld [vmem:[#allocation7 + $0x384] ss:$8 sps:$4 sm:$0xff]  }
 0x775   :  { %7278 = vmatprep.subr.bf16.mxu0 %v8676_v27  ;;  %v5932_v27 = vmul.f32 0.2, %v5676_v38  ;;  %v5947_v63 = vmul.f32 0.2, %v5691_v43  ;;  %vm5819_vm11 = vcmp.gt.f32.partialorder %v5691_v43, 0.0 }
 0x777   :  { %7210 = vmatmul.mubr.bf16.gmra.mrb[88].mxu0 %v6107_v54  ;;  %v5915_v54 = vmul.f32 0.2, %v5659_v3  ;;  %v6060_v26 = vsel %vm5804_vm5, %v5676_v38, %v5932_v27  ;;  %v13669_v38 = vld [vmem:[#allocation23_spill] sm:$0xff]  ;;  %v6075_v47 = vsel %vm5819_vm11, %v5691_v43, %v5947_v63  ;;  %v8696_v27 = vld [vmem:[#allocation7 + $0x3e4] ss:$8 sps:$4 sm:$0xff]  }
 0x778   :  { %7279 = vmatpush1.bf16.msra.mxu0 %v8677_v51  ;;  %7219 = vmatprep.mubr.bf16.mxu0 %v6116_v62  ;;  %v5531_v62 = vmul.f32 %v12393_v37, %v13664_v42  ;;  %v6051_v51 = vsel %vm5795_vm4, %v5667_v48, %v5923_v21  ;;  %v5692_v37 = vadd.f32 %v12401_v15, %v5523_v17  ;;  %v6279_v43 = vld [vmem:[%s12741_s6 + $0x1d] sm:$0x3] }
 0x779   :  { %7280 = vmatprep.subr.bf16.mxu0 %v8678_v61  ;;  %v6043_v58 = vsel %vm5787_vm3, %v5659_v3, %v5915_v54  ;;  %v6068_v61 = vsel %vm5812_vm6, %v5684_v0, %v5940_v24  ;;  %v5412_v0 = vmul.f32 %v12096_v32, %v13669_v38 }
 0x77a   :  { %v5700_v30 = vadd.f32 %v12401_v15, %v5531_v62  ;;  %v6131_v6 = vpack.c.bf16 %v6051_v51, %v6043_v58  ;;  %v6140_v60 = vpack.c.bf16 %v6068_v61, %v6060_v26  ;;  %vm5820_vm9 = vcmp.gt.f32.partialorder %v5692_v37, 0.0  ;;  %v13667_v15 = vld [vmem:[#allocation25_spill] sm:$0xff] }
 0x77b   :  { %v5413_v16 = vmul.f32 %v12099_v29, %v13667_v15  ;;  %v8691_v29 = vld [vmem:[#allocation7 + $0x3b0] ss:$8 sps:$4 sm:$0xff]   ;;  %v8697_v62 = vld [vmem:[#allocation7 + $0x3e0] ss:$8 sps:$4 sm:$0xff]  }
 0x77c   :  { %7281 = vmatpush1.bf16.msra.mxu0 %v8679_v28  ;;  %v5939_v28 = vmul.f32 0.2, %v5683_v1  ;;  %vm5828_vm10 = vcmp.gt.f32.partialorder %v5700_v30, 0.0 }
 0x77d   :  { %7282 = vmatprep.subr.bf16.mxu0 %v8680_v5  ;;  %v13666_v5 = vld [vmem:[#allocation130_spill] sm:$0xff]  ;;  %v5582_v3 = vadd.f32 %v12085_v40, %v5413_v16 }
 0x77e   :  { %v5530_v8 = vmul.f32 %v12412_v36, %v13666_v5  ;;  %v6067_v11 = vsel %vm5811_vm8, %v5683_v1, %v5939_v28 }
 0x77f   :  { %7220 = vmatmul.mubr.bf16.gmra.mrb[92].mxu0 %v6115_v56  ;;  %v5948_v56 = vmul.f32 0.2, %v5692_v37  ;;  %v6139_v31 = vpack.c.bf16 %v6067_v11, %v6059_v34  ;;  %vm5710_vm13 = vcmp.gt.f32.partialorder %v5582_v3, 0.0 }
 0x780   :  { %7283 = vmatpush1.bf16.msra.mxu0 %v8681_v35  ;;  %7229 = vmatprep.mubr.bf16.mxu0 %v6124_v4  ;;  %v5956_v4 = vmul.f32 0.2, %v5700_v30  ;;  %v5699_v35 = vadd.f32 %v12420_v52, %v5530_v8  ;;  %v5838_v52 = vmul.f32 0.2, %v5582_v3 }
 0x781   :  { %7284 = vmatprep.subr.bf16.mxu0 %v8682_v14  ;;  %v6076_v46 = vsel %vm5820_vm9, %v5692_v37, %v5948_v56  ;;  %v5590_v14 = vadd.f32 %v12085_v40, %v5421_v23  ;;  %v8693_v40 = vld [vmem:[#allocation7 + $0x3c0] ss:$8 sps:$4 sm:$0xff]  }
 0x782   :  { %v6084_v36 = vsel %vm5828_vm10, %v5700_v30, %v5956_v4  ;;  %v5955_v44 = vmul.f32 0.2, %v5699_v35  ;;  %vm5827_vm12 = vcmp.gt.f32.partialorder %v5699_v35, 0.0  ;;  %v5966_v59 = vsel %vm5710_vm13, %v5582_v3, %v5838_v52 }
 0x783   :  { %v6148_v48 = vpack.c.bf16 %v6084_v36, %v6076_v46  ;;  %v5846_v54 = vmul.f32 0.2, %v5590_v14  ;;  %vm5718_vm14 = vcmp.gt.f32.partialorder %v5590_v14, 0.0 }
 0x784   :  { %7285 = vmatpush1.bf16.msra.mxu0 %v8683_v50  ;;  %v13670_v50 = vld [vmem:[#allocation27_spill] sm:$0xff] }
 0x785   :  { %7286 = vmatprep.subr.bf16.mxu0 %v8684_v55  ;;  %v6083_v55 = vsel %vm5827_vm12, %v5699_v35, %v5955_v44  ;;  %v13671_v35 = vld [vmem:[#allocation14_spill] sm:$0xff] }
 0x786   :  { %v6147_v24 = vpack.c.bf16 %v6083_v55, %v6075_v47  ;;  %v12582_v3 = vrot.slane %v6279_v43, %v13671_v35 }
 0x787   :  { %7230 = vmatmul.mubr.bf16.gmra.mrb[96].mxu0 %v6123_v39  ;;  %v5420_v39 = vmul.f32 %v12096_v32, %v13670_v50  ;;  %v5974_v32 = vsel %vm5718_vm14, %v5590_v14, %v5846_v54  ;;  %v13672_v14 = vld [vmem:[#allocation15_spill] sm:$0xff] }
 0x788   :  { %7287 = vmatpush1.bf16.msra.mxu0 %v8685_v49  ;;  %7239 = vmatprep.mubr.bf16.mxu0 %v6132_v53  ;;  %v5581_v53 = vadd.f32 %v12083_v22, %v5412_v0  ;;  %v6094_v10 = vpack.c.bf16 %v5974_v32, %v5966_v59  ;;  %v8698_v49 = vld [vmem:[#allocation7 + $0x3f4] ss:$8 sps:$4 sm:$0xff]  }
 0x789   :  { %7288 = vmatprep.subr.bf16.mxu0 %v8686_v7  ;;  %v5589_v21 = vadd.f32 %v12083_v22, %v5420_v39  ;;  %v8699_v7 = vld [vmem:[#allocation7 + $0x3f0] ss:$8 sps:$4 sm:$0xff]  }
 0x78a   :  { %v5837_v17 = vmul.f32 0.2, %v5581_v53  ;;  %vm5709_vm15 = vcmp.gt.f32.partialorder %v5581_v53, 0.0 }
 0x78b   :  { %v5845_v42 = vmul.f32 0.2, %v5589_v21  ;;  %vm5717_vm0 = vcmp.gt.f32.partialorder %v5589_v21, 0.0 }
 0x78c   :  { %7289 = vmatpush1.bf16.msra.mxu0 %v8687_v9  ;;  %v5965_v57 = vsel %vm5709_vm15, %v5581_v53, %v5837_v17 }
 0x78d   :  { %7290 = vmatprep.subr.bf16.mxu0 %v8688_v20  ;;  %v5973_v22 = vsel %vm5717_vm0, %v5589_v21, %v5845_v42 }
 0x78e   :  { %v6093_v58 = vpack.c.bf16 %v5973_v22, %v5965_v57 }
 0x78f   :  { %7240 = vmatmul.mubr.bf16.gmra.mrb[100].mxu0 %v6131_v6 }
 0x790   :  { %7291 = vmatpush1.bf16.msra.mxu0 %v8689_v13  ;;  %7249 = vmatprep.mubr.bf16.mxu0 %v6140_v60 }
 0x791   :  { %7292 = vmatprep.subr.bf16.mxu0 %v8690_v12 }
 0x794   :  { %7293 = vmatpush1.bf16.msra.mxu0 %v8691_v29  ;;  %v12585_v29 = vrot.slane %v6279_v43, %v13672_v14 }
 0x795   :  { %7294 = vmatprep.subr.bf16.mxu0 %v8692_v45 }
 0x797   :  { %7250 = vmatmul.mubr.bf16.gmra.mrb[104].mxu0 %v6139_v31 }
 0x798   :  { %7295 = vmatpush1.bf16.msra.mxu0 %v8693_v40  ;;  %7259 = vmatprep.mubr.bf16.mxu0 %v6148_v48 }
 0x799   :  { %7296 = vmatprep.subr.bf16.mxu0 %v8694_v25 }
 0x79c   :  { %7297 = vmatpush1.bf16.msra.mxu0 %v8695_v2 }
 0x79d   :  { %7298 = vmatprep.subr.bf16.mxu0 %v8696_v27 }
 0x79f   :  { %7260 = vmatmul.mubr.bf16.gmra.mrb[108].mxu0 %v6147_v24 }
 0x7a0   :  { %7299 = vmatpush1.bf16.msra.mxu0 %v8697_v62  ;;  %7302 = vmatprep.mubr.bf16.mxu0 %v6094_v10 }
 0x7a1   :  { %7300 = vmatprep.subr.bf16.mxu0 %v8698_v49 }
 0x7a4   :  { %7301 = vmatpush1.bf16.msra.mxu0 %v8699_v7 }
 0x7a7   :  { %7303 = vmatmul.mubr.bf16.vlgmr.msra.gmra.mrb[80].mxu0 %v6093_v58 }
 0x7aa   :  { %v7314_v51 = vpop.f32.mrb[160].mxu1 }
 0x7ab   :  { %v7316_v1 = vpop.f32.mrb[161].mxu1 }
 0x7ac   :  { %v7318_v26 = vpop.f32.mrb[162].mxu1 }
 0x7ad   :  { %v7320_v61 = vpop.f32.mrb[163].mxu1 }
 0x7b5   :  { %v7324_v37 = vpop.f32.mrb[164].mxu1 }
 0x7b6   :  { %v7326_v30 = vpop.f32.mrb[165].mxu1 }
 0x7b7   :  { %v7328_v9 = vpop.f32.mrb[166].mxu1 }
 0x7b8   :  { %v7330_v6 = vpop.f32.mrb[167].mxu1 }
 0x7c1   :  { %v12538_v20 = vpop.f32.mrb[168].mxu1 }
 0x7c2   :  { %v12540_v60 = vpop.f32.mrb[169].mxu1 }
 0x7c3   :  { %v12542_v41 = vpop.f32.mrb[170].mxu1 }
 0x7c4   :  { %v12544_v28 = vpop.f32.mrb[171].mxu1 }
 0x7cd   :  { %v12546_v56 = vpop.f32.mrb[172].mxu1 }
 0x7ce   :  { %v12548_v4 = vpop.f32.mrb[173].mxu1 }
 0x7cf   :  { %v12550_v19 = vpop.f32.mrb[174].mxu1 }
 0x7d0   :  { %v12552_v18 = vpop.f32.mrb[175].mxu1 }
 0x7d6   :  { %v12554_v5 = vpop.f32.mrb[176].mxu1 }
 0x7d7   :  { %v12556_v8 = vpop.f32.mrb[177].mxu1 }
 0x7d8   :  { %v12558_v15 = vpop.f32.mrb[178].mxu1 }
 0x7d9   :  { %v12560_v16 = vpop.f32.mrb[179].mxu1 }
 0x7e1   :  { %v12562_v33 = vpop.f32.mrb[180].mxu1 }
 0x7e2   :  { %v12564_v23 = vpop.f32.mrb[181].mxu1 }
 0x7e3   :  { %v12566_v13 = vpop.f32.mrb[182].mxu1 }
 0x7e4   :  { %v12568_v12 = vpop.f32.mrb[183].mxu1 }
 0x7eb   :  { %v12570_v34 = vpop.f32.mrb[184].mxu1 }
 0x7ec   :  { %v12572_v11 = vpop.f32.mrb[185].mxu1 }
 0x7ed   :  { %v12574_v46 = vpop.f32.mrb[186].mxu1 }
 0x7ee   :  { %v12576_v36 = vpop.f32.mrb[187].mxu1 }
 0x842   :  { %v7201_v45 = vpop.f32.mrb[84].mxu0 }
 0x843   :  { %v7995_v31 = vadd.f32 %v7201_v45, %v12582_v3  ;;  %v7203_v48 = vpop.f32.mrb[85].mxu0 }
 0x844   :  { %v7997_v63 = vadd.f32 %v7203_v48, %v12585_v29  ;;  %v7205_v44 = vpop.f32.mrb[86].mxu0 }
 0x845   :  { %v7996_v38 = vadd.f32 %v7995_v31, %v7314_v51  ;;  %v7999_v0 = vadd.f32 %v7205_v44, %v12582_v3  ;;  %v7207_v50 = vpop.f32.mrb[87].mxu0 }
 0x846   :  { %v7998_v39 = vadd.f32 %v7997_v63, %v7316_v1  ;;  %v8001_v52 = vadd.f32 %v7207_v50, %v12585_v29 }
 0x847   :  { %8603 = vtanh.f32 %v7996_v38  ;;  %v8000_v54 = vadd.f32 %v7999_v0, %v7318_v26 }
 0x848   :  { %8605 = vtanh.f32 %v7998_v39  ;;  %v8002_v40 = vadd.f32 %v8001_v52, %v7320_v61 }
 0x849   :  { %8607 = vtanh.f32 %v8000_v54 }
 0x84a   :  { %8609 = vtanh.f32 %v8002_v40  ;;  %v7211_v25 = vpop.f32.mrb[88].mxu0 }
 0x84b   :  { %v8003_v47 = vadd.f32 %v7211_v25, %v12582_v3  ;;  %v7213_v55 = vpop.f32.mrb[89].mxu0 }
 0x84c   :  { %v8005_v53 = vadd.f32 %v7213_v55, %v12585_v29  ;;  %v7215_v21 = vpop.f32.mrb[90].mxu0 }
 0x84d   :  { %v8004_v59 = vadd.f32 %v8003_v47, %v7324_v37  ;;  %v8007_v32 = vadd.f32 %v7215_v21, %v12582_v3  ;;  %v7217_v2 = vpop.f32.mrb[91].mxu0 }
 0x84e   :  { %v8006_v27 = vadd.f32 %v8005_v53, %v7326_v30  ;;  %v8009_v24 = vadd.f32 %v7217_v2, %v12585_v29 }
 0x84f   :  { %8611 = vtanh.f32 %v8004_v59  ;;  %v8008_v10 = vadd.f32 %v8007_v32, %v7328_v9 }
 0x850   :  { %8613 = vtanh.f32 %v8006_v27  ;;  %v8010_v17 = vadd.f32 %v8009_v24, %v7330_v6 }
 0x851   :  { %v8604_v42 = vpop.eup %8603  ;;  %8615 = vtanh.f32 %v8008_v10 }
 0x852   :  { %v8606_v62 = vpop.eup %8605  ;;  %7419 = vst [vmem:[%s12742_s7 + $0x20] sm:$0xff] %v8604_v42  ;;  %8617 = vtanh.f32 %v8010_v17  ;;  %v7221_v49 = vpop.f32.mrb[92].mxu0 }
 0x853   :  { %v8608_v57 = vpop.eup %8607  ;;  %7420 = vst [vmem:[%s12742_s7 + $0x28] sm:$0xff] %v8606_v62  ;;  %v8011_v22 = vadd.f32 %v7221_v49, %v12582_v3  ;;  %v7223_v7 = vpop.f32.mrb[93].mxu0 }
 0x854   :  { %v8610_v58 = vpop.eup %8609  ;;  %7421 = vst [vmem:[%s12742_s7 + $0x30] sm:$0xff] %v8608_v57  ;;  %v8013_v51 = vadd.f32 %v7223_v7, %v12585_v29  ;;  %v7225_v1 = vpop.f32.mrb[94].mxu0 }
 0x855   :  { %7422 = vst [vmem:[%s12742_s7 + $0x38] sm:$0xff] %v8610_v58  ;;  %v8012_v26 = vadd.f32 %v8011_v22, %v12538_v20  ;;  %v8015_v61 = vadd.f32 %v7225_v1, %v12582_v3  ;;  %v7227_v37 = vpop.f32.mrb[95].mxu0 }
 0x856   :  { %v8014_v30 = vadd.f32 %v8013_v51, %v12540_v60  ;;  %v8017_v9 = vadd.f32 %v7227_v37, %v12585_v29 }
 0x857   :  { %8619 = vtanh.f32 %v8012_v26  ;;  %v8016_v6 = vadd.f32 %v8015_v61, %v12542_v41 }
 0x858   :  { %8621 = vtanh.f32 %v8014_v30  ;;  %v8018_v43 = vadd.f32 %v8017_v9, %v12544_v28 }
 0x859   :  { %v8612_v35 = vpop.eup %8611  ;;  %8623 = vtanh.f32 %v8016_v6 }
 0x85a   :  { %v8614_v14 = vpop.eup %8613  ;;  %7423 = vst [vmem:[%s12742_s7 + $0x40] sm:$0xff] %v8612_v35  ;;  %8625 = vtanh.f32 %v8018_v43  ;;  %v7231_v20 = vpop.f32.mrb[96].mxu0 }
 0x85b   :  { %v8616_v45 = vpop.eup %8615  ;;  %7424 = vst [vmem:[%s12742_s7 + $0x48] sm:$0xff] %v8614_v14  ;;  %v8019_v60 = vadd.f32 %v7231_v20, %v12582_v3  ;;  %v7233_v41 = vpop.f32.mrb[97].mxu0 }
 0x85c   :  { %v8618_v31 = vpop.eup %8617  ;;  %7425 = vst [vmem:[%s12742_s7 + $0x50] sm:$0xff] %v8616_v45  ;;  %v8021_v28 = vadd.f32 %v7233_v41, %v12585_v29  ;;  %v7235_v48 = vpop.f32.mrb[98].mxu0 }
 0x85d   :  { %7426 = vst [vmem:[%s12742_s7 + $0x58] sm:$0xff] %v8618_v31  ;;  %v8020_v63 = vadd.f32 %v8019_v60, %v12546_v56  ;;  %v8023_v44 = vadd.f32 %v7235_v48, %v12582_v3  ;;  %v7237_v38 = vpop.f32.mrb[99].mxu0 }
 0x85e   :  { %v8022_v0 = vadd.f32 %v8021_v28, %v12548_v4  ;;  %v8025_v50 = vadd.f32 %v7237_v38, %v12585_v29 }
 0x85f   :  { %8627 = vtanh.f32 %v8020_v63  ;;  %v8024_v39 = vadd.f32 %v8023_v44, %v12550_v19 }
 0x860   :  { %8629 = vtanh.f32 %v8022_v0  ;;  %v8026_v52 = vadd.f32 %v8025_v50, %v12552_v18 }
 0x861   :  { %v8620_v54 = vpop.eup %8619  ;;  %8631 = vtanh.f32 %v8024_v39 }
 0x862   :  { %v8622_v40 = vpop.eup %8621  ;;  %7427 = vst [vmem:[%s12742_s7 + $0x60] sm:$0xff] %v8620_v54  ;;  %8633 = vtanh.f32 %v8026_v52  ;;  %v7241_v56 = vpop.f32.mrb[100].mxu0 }
 0x863   :  { %v8624_v25 = vpop.eup %8623  ;;  %7428 = vst [vmem:[%s12742_s7 + $0x68] sm:$0xff] %v8622_v40  ;;  %v8027_v4 = vadd.f32 %v7241_v56, %v12582_v3  ;;  %v7243_v19 = vpop.f32.mrb[101].mxu0 }
 0x864   :  { %v8626_v47 = vpop.eup %8625  ;;  %7429 = vst [vmem:[%s12742_s7 + $0x70] sm:$0xff] %v8624_v25  ;;  %v8029_v18 = vadd.f32 %v7243_v19, %v12585_v29  ;;  %v7245_v55 = vpop.f32.mrb[102].mxu0 }
 0x865   :  { %7430 = vst [vmem:[%s12742_s7 + $0x78] sm:$0xff] %v8626_v47  ;;  %v8028_v53 = vadd.f32 %v8027_v4, %v12554_v5  ;;  %v8031_v21 = vadd.f32 %v7245_v55, %v12582_v3  ;;  %v7247_v59 = vpop.f32.mrb[103].mxu0 }
 0x866   :  { %v8030_v32 = vadd.f32 %v8029_v18, %v12556_v8  ;;  %v8033_v2 = vadd.f32 %v7247_v59, %v12585_v29 }
 0x867   :  { %8635 = vtanh.f32 %v8028_v53  ;;  %v8032_v27 = vadd.f32 %v8031_v21, %v12558_v15 }
 0x868   :  { %8637 = vtanh.f32 %v8030_v32  ;;  %v8034_v24 = vadd.f32 %v8033_v2, %v12560_v16 }
 0x869   :  { %v8628_v10 = vpop.eup %8627  ;;  %8639 = vtanh.f32 %v8032_v27 }
 0x86a   :  { %v8630_v17 = vpop.eup %8629  ;;  %7431 = vst [vmem:[%s12742_s7 + $0x80] sm:$0xff] %v8628_v10  ;;  %8641 = vtanh.f32 %v8034_v24  ;;  %v7251_v5 = vpop.f32.mrb[104].mxu0 }
 0x86b   :  { %v8632_v42 = vpop.eup %8631  ;;  %7432 = vst [vmem:[%s12742_s7 + $0x88] sm:$0xff] %v8630_v17  ;;  %v8035_v8 = vadd.f32 %v7251_v5, %v12582_v3  ;;  %v7253_v15 = vpop.f32.mrb[105].mxu0 }
 0x86c   :  { %v8634_v62 = vpop.eup %8633  ;;  %7433 = vst [vmem:[%s12742_s7 + $0x90] sm:$0xff] %v8632_v42  ;;  %v8037_v16 = vadd.f32 %v7253_v15, %v12585_v29  ;;  %v7255_v49 = vpop.f32.mrb[106].mxu0 }
 0x86d   :  { %7434 = vst [vmem:[%s12742_s7 + $0x98] sm:$0xff] %v8634_v62  ;;  %v8036_v57 = vadd.f32 %v8035_v8, %v12562_v33  ;;  %v8039_v22 = vadd.f32 %v7255_v49, %v12582_v3  ;;  %v7257_v7 = vpop.f32.mrb[107].mxu0 }
 0x86e   :  { %v8038_v58 = vadd.f32 %v8037_v16, %v12564_v23  ;;  %v8041_v51 = vadd.f32 %v7257_v7, %v12585_v29 }
 0x86f   :  { %8643 = vtanh.f32 %v8036_v57  ;;  %v8040_v1 = vadd.f32 %v8039_v22, %v12566_v13 }
 0x870   :  { %8645 = vtanh.f32 %v8038_v58  ;;  %v8042_v26 = vadd.f32 %v8041_v51, %v12568_v12 }
 0x871   :  { %v8636_v61 = vpop.eup %8635  ;;  %8647 = vtanh.f32 %v8040_v1 }
 0x872   :  { %v8638_v37 = vpop.eup %8637  ;;  %7435 = vst [vmem:[%s12742_s7 + $0xa0] sm:$0xff] %v8636_v61  ;;  %8649 = vtanh.f32 %v8042_v26  ;;  %v7261_v33 = vpop.f32.mrb[108].mxu0 }
 0x873   :  { %v8640_v30 = vpop.eup %8639  ;;  %7436 = vst [vmem:[%s12742_s7 + $0xa8] sm:$0xff] %v8638_v37  ;;  %v8043_v23 = vadd.f32 %v7261_v33, %v12582_v3  ;;  %v7263_v13 = vpop.f32.mrb[109].mxu0 }
 0x874   :  { %v8642_v9 = vpop.eup %8641  ;;  %7437 = vst [vmem:[%s12742_s7 + $0xb0] sm:$0xff] %v8640_v30  ;;  %v8045_v12 = vadd.f32 %v7263_v13, %v12585_v29  ;;  %v7265_v6 = vpop.f32.mrb[110].mxu0 }
 0x875   :  { %7438 = vst [vmem:[%s12742_s7 + $0xb8] sm:$0xff] %v8642_v9  ;;  %v8044_v43 = vadd.f32 %v8043_v23, %v12570_v34  ;;  %v8047_v35 = vadd.f32 %v7265_v6, %v12582_v3  ;;  %v7267_v14 = vpop.f32.mrb[111].mxu0 }
 0x876   :  { %v8046_v20 = vadd.f32 %v8045_v12, %v12572_v11  ;;  %v8049_v45 = vadd.f32 %v7267_v14, %v12585_v29 }
 0x877   :  { %8651 = vtanh.f32 %v8044_v43  ;;  %v8048_v60 = vadd.f32 %v8047_v35, %v12574_v46 }
 0x878   :  { %8653 = vtanh.f32 %v8046_v20  ;;  %v8050_v41 = vadd.f32 %v8049_v45, %v12576_v36 }
 0x879   :  { %v8644_v31 = vpop.eup %8643  ;;  %8655 = vtanh.f32 %v8048_v60 }
 0x87a   :  { %v8646_v28 = vpop.eup %8645  ;;  %7439 = vst [vmem:[%s12742_s7 + $0xc0] sm:$0xff] %v8644_v31  ;;  %8657 = vtanh.f32 %v8050_v41  ;;  %v7304_v34 = vpop.f32.mrb[80].mxu0 }
 0x87b   :  { %v8648_v48 = vpop.eup %8647  ;;  %7440 = vst [vmem:[%s12742_s7 + $0xc8] sm:$0xff] %v8646_v28  ;;  %v7991_v11 = vadd.f32 %v7304_v34, %v12582_v3  ;;  %v7306_v46 = vpop.f32.mrb[81].mxu0 }
 0x87c   :  { %v8650_v63 = vpop.eup %8649  ;;  %7441 = vst [vmem:[%s12742_s7 + $0xd0] sm:$0xff] %v8648_v48  ;;  %v7992_v36 = vadd.f32 %v7306_v46, %v12585_v29  ;;  %v7308_v44 = vpop.f32.mrb[82].mxu0 }
 0x87d   :  { %7442 = vst [vmem:[%s12742_s7 + $0xd8] sm:$0xff] %v8650_v63  ;;  %8659 = vtanh.f32 %v7991_v11  ;;  %v7993_v38 = vadd.f32 %v7308_v44, %v12582_v3  ;;  %v7310_v0 = vpop.f32.mrb[83].mxu0 }
 0x87e   :  { %8661 = vtanh.f32 %v7992_v36  ;;  %v7994_v50 = vadd.f32 %v7310_v0, %v12585_v29 }
 0x87f   :  { %8663 = vtanh.f32 %v7993_v38 }
 0x880   :  { %8665 = vtanh.f32 %v7994_v50 }
 0x881   :  { %v8652_v39 = vpop.eup %8651 }
 0x882   :  { %v8654_v52 = vpop.eup %8653  ;;  %7443 = vst [vmem:[%s12742_s7 + $0xe0] sm:$0xff] %v8652_v39 }
 0x883   :  { %v8656_v54 = vpop.eup %8655  ;;  %7444 = vst [vmem:[%s12742_s7 + $0xe8] sm:$0xff] %v8654_v52 }
 0x884   :  { %v8658_v40 = vpop.eup %8657  ;;  %7445 = vst [vmem:[%s12742_s7 + $0xf0] sm:$0xff] %v8656_v54 }
 0x885   :  { %7446 = vst [vmem:[%s12742_s7 + $0xf8] sm:$0xff] %v8658_v40 }
 0x887   :  { %v8660_v3 = vpop.eup %8659 }
 0x888   :  { %v8662_v29 = vpop.eup %8661  ;;  %7415 = vst [vmem:[%s12742_s7] sm:$0xff] %v8660_v3 }
 0x889   :  { %v8664_v56 = vpop.eup %8663  ;;  %7416 = vst [vmem:[%s12742_s7 + $0x8] sm:$0xff] %v8662_v29 }
 0x88a   :  { %v8666_v25 = vpop.eup %8665  ;;  %7417 = vst [vmem:[%s12742_s7 + $0x10] sm:$0xff] %v8664_v56 }
 0x88b   :  { %7418 = vst [vmem:[%s12742_s7 + $0x18] sm:$0xff] %v8666_v25 }
 0x88c   :  { %7451 = vsyncpa [#allocation3], 1 }
 0x88d   :  { %7452 = vsyncpa [#allocation5], 1 }
 0x88e   :  { %7453 = vsyncpa [#allocation8], 1 }

</bundles_post_ra>
